<compile_context>
chip_gen: v7x
topology: tpu7x:2x2x1
jax: 0.10.0
libtpu: 0.0.40
codegen_flags: <defaults>
</compile_context>

<pallas_src>
import functools

import jax
import jax.numpy as jnp
from jax.experimental import pallas as pl
from jax.experimental.pallas import tpu as pltpu


GUARD_ROWS = 8  # zero rows appended after each padded slab so tap-offset reads stay in bounds


# --------------------------------------------------------------------------- #
# Kernel: fused conv3x3+BN+ReLU -> conv3x3+BN+ReLU on a channel-last padded slab
# --------------------------------------------------------------------------- #
def _up_kernel(x_ref, mask_ref, w1_ref, b1_ref, w2_ref, b2_ref, o_ref,
               acc_ref, y1pad_ref, *, H, W):
    f32 = jnp.float32
    Wp = W + 2
    HWp = H * Wp

    # ---- conv1: 9 channel-contraction taps over the wrapper-padded slab ----
    # Accumulator row r = i*Wp + j reads input row r + ky*Wp + kx; columns
    # j in {W, W+1} are wrap-around garbage and get masked below.
    for k in range(9):
        ky, kx = divmod(k, 3)
        off = ky * Wp + kx
        patch = x_ref[0, off:off + HWp, :]                            # (HWp, Cin) bf16
        contrib = jnp.dot(patch, w1_ref[k], preferred_element_type=f32)
        if k == 0:
            acc_ref[...] = contrib          # first tap initializes (no zero sweep)
        else:
            acc_ref[...] += contrib

    # Bias (+folded BN) + ReLU in f32; the mask zeroes the 2 wrap-around
    # columns per padded row so the bulk store below also writes correct zeros
    # into y1's left/right halo columns.
    y1 = jnp.maximum(acc_ref[...] + b1_ref[...], 0.0) * mask_ref[...]
    y1 = y1.astype(y1pad_ref.dtype)

    # ---- build the conv2 input slab: halo/guard-only zeroing + one bulk store
    cm = y1pad_ref.shape[1]
    tail = y1pad_ref.shape[0] - (Wp + 1 + HWp)
    y1pad_ref[0:Wp + 1, :] = jnp.zeros((Wp + 1, cm), y1pad_ref.dtype)     # top halo
    y1pad_ref[Wp + 1:Wp + 1 + HWp, :] = y1                                 # interior
    y1pad_ref[Wp + 1 + HWp:, :] = jnp.zeros((tail, cm), y1pad_ref.dtype)   # bottom halo + guard

    # ---- conv2: same 9-tap structure, accumulating into the output block ----
    for k in range(9):
        ky, kx = divmod(k, 3)
        off = ky * Wp + kx
        patch = y1pad_ref[off:off + HWp, :]                           # (HWp, Cmid) bf16
        contrib = jnp.dot(patch, w2_ref[k], preferred_element_type=f32)
        if k == 0:
            o_ref[0] = contrib
        else:
            o_ref[0] += contrib
    o_ref[0] = jnp.maximum(o_ref[0] + b2_ref[...], 0.0)


# --------------------------------------------------------------------------- #
# Wrapper-side helpers
# --------------------------------------------------------------------------- #
def _bilinear_up2_align_corners(x):
    """2x bilinear upsample, align_corners=True, NCHW (exact, gather+lerp)."""
    n, c, h, w = x.shape
    ho, wo = 2 * h, 2 * w

    def coords(n_in, n_out):
        denom = max(n_out - 1, 1)
        s = jnp.arange(n_out, dtype=jnp.float32) * (n_in - 1) / denom
        i0 = jnp.clip(jnp.floor(s).astype(jnp.int32), 0, n_in - 1)
        i1 = jnp.clip(i0 + 1, 0, n_in - 1)
        return i0, i1, s - i0.astype(jnp.float32)

    h0, h1i, fh = coords(h, ho)
    w0, w1i, fw = coords(w, wo)
    xh = (x[:, :, h0, :] * (1.0 - fh)[None, None, :, None]
          + x[:, :, h1i, :] * fh[None, None, :, None])
    xw = (xh[:, :, :, w0] * (1.0 - fw)[None, None, None, :]
          + xh[:, :, :, w1i] * fw[None, None, None, :])
    return xw


def _fold_bn_into_conv(w_hwio, b, gamma, beta, mean, var, *, eps=1e-5):
    """Fold eval-mode BatchNorm into conv weight (kh,kw,cin,cout) and bias."""
    scale = gamma / jnp.sqrt(var + eps)
    return w_hwio * scale[None, None, None, :], (b - mean) * scale + beta


def up_forward(x1, x2, params, *, dropout_probability=0.0, eps=1e-5):
    """Pallas equivalent of Up.forward(x1, x2) (eval-mode)."""
    # TODO(synk): training-mode Dropout masking and batch-statistic BatchNorm
    # are not implemented; this is the eval-mode forward (Dropout = identity,
    # BatchNorm uses running statistics folded into the conv weights).
    del dropout_probability
    n, c1, h1, w1 = x1.shape
    nb, c2, H, W = x2.shape
    assert nb == n and H == 2 * h1 and W == 2 * w1
    cin = c1 + c2

    w1f, b1f = _fold_bn_into_conv(params["w1"], params["b1"], *params["bn1"], eps=eps)
    w2f, b2f = _fold_bn_into_conv(params["w2"], params["b2"], *params["bn2"], eps=eps)
    cmid, cout = w1f.shape[-1], w2f.shape[-1]
    assert w1f.shape[2] == cin and w2f.shape[2] == cmid

    Hp, Wp = H + 2, W + 2
    L = Hp * Wp
    HWp = H * Wp
    rows_in = L + GUARD_ROWS
    rows_y1 = L + GUARD_ROWS

    # --- XLA prologue: upsample, concat, spatial pad, channel-last flatten ---
    up = _bilinear_up2_align_corners(x1)                           # (N,C1,H,W)
    cat = jnp.concatenate([x2, up], axis=1)                        # (N,Cin,H,W)
    cat = jnp.transpose(cat, (0, 2, 3, 1))                         # (N,H,W,Cin)
    cat = jnp.pad(cat, ((0, 0), (1, 1), (1, 1), (0, 0)))           # (N,Hp,Wp,Cin)
    x_slab = jnp.pad(cat.reshape(n, L, cin),
                     ((0, 0), (0, GUARD_ROWS), (0, 0))).astype(jnp.bfloat16)

    # Tap weights: plain (Cin, Cout) channel contractions per tap — no
    # Kronecker / block-diagonal expansion.
    w1_t = w1f.reshape(9, cin, cmid).astype(jnp.bfloat16)
    w2_t = w2f.reshape(9, cmid, cout).astype(jnp.bfloat16)
    b1_r = b1f.reshape(1, cmid).astype(jnp.float32)
    b2_r = b2f.reshape(1, cout).astype(jnp.float32)

    # Row-validity mask over padded-width rows: zero for j in {W, W+1}.
    col = jnp.arange(HWp, dtype=jnp.int32) % Wp
    mask = (col < W).astype(jnp.float32).reshape(HWp, 1)

    kernel = functools.partial(_up_kernel, H=H, W=W)

    flops = n * (18 * HWp * cin * cmid + 18 * HWp * cmid * cout)
    bytes_accessed = (2 * n * rows_in * cin + 2 * (w1_t.size + w2_t.size)
                      + 4 * (b1_r.size + b2_r.size + mask.size)
                      + 4 * n * HWp * cout)

    out = pl.pallas_call(
        kernel,
        out_shape=jax.ShapeDtypeStruct((n, HWp, cout), jnp.float32),
        grid_spec=pltpu.PrefetchScalarGridSpec(
            num_scalar_prefetch=0,
            grid=(n,),
            in_specs=[
                pl.BlockSpec((1, rows_in, cin), lambda i: (i, 0, 0)),   # padded concat slab
                pl.BlockSpec((HWp, 1), lambda i: (0, 0)),               # column-validity mask
                pl.BlockSpec((9, cin, cmid), lambda i: (0, 0, 0)),      # conv1 taps (BN folded)
                pl.BlockSpec((1, cmid), lambda i: (0, 0)),              # bias1 (BN folded)
                pl.BlockSpec((9, cmid, cout), lambda i: (0, 0, 0)),     # conv2 taps (BN folded)
                pl.BlockSpec((1, cout), lambda i: (0, 0)),              # bias2 (BN folded)
            ],
            out_specs=pl.BlockSpec((1, HWp, cout), lambda i: (i, 0, 0)),
            scratch_shapes=[
                pltpu.VMEM((HWp, cmid), jnp.float32),                   # conv1 accumulator
                pltpu.VMEM((rows_y1, cmid), jnp.bfloat16),              # padded y1 slab
            ],
        ),
        compiler_params=pltpu.CompilerParams(dimension_semantics=("parallel",)),
        cost_estimate=pl.CostEstimate(flops=int(flops), transcendentals=0,
                                      bytes_accessed=int(bytes_accessed)),
    )(x_slab, mask, w1_t, b1_r, w2_t, b2_r)

    # Drop the 2 wrap-around columns per row, back to NCHW.
    out = out.reshape(n, H, Wp, cout)[:, :, :W, :]
    return jnp.transpose(out, (0, 3, 1, 2))


# --------------------------------------------------------------------------- #
# Pure-JAX reference (eval-mode Up.forward)
# --------------------------------------------------------------------------- #
def _conv_bn_relu_ref(x, w_hwio, b, bn, eps=1e-5):
    gamma, beta, mean, var = bn
    w_oihw = jnp.transpose(w_hwio, (3, 2, 0, 1))
    y = jax.lax.conv_general_dilated(
        x, w_oihw, (1, 1), "SAME",
        dimension_numbers=("NCHW", "OIHW", "NCHW"),
        precision=jax.lax.Precision.HIGHEST)
    y = y + b[None, :, None, None]
    y = ((y - mean[None, :, None, None])
         / jnp.sqrt(var[None, :, None, None] + eps)
         * gamma[None, :, None, None] + beta[None, :, None, None])
    return jnp.maximum(y, 0.0)


def _up_forward_ref(x1, x2, params, eps=1e-5):
    up = _bilinear_up2_align_corners(x1)
    x = jnp.concatenate([x2, up], axis=1)
    y = _conv_bn_relu_ref(x, params["w1"], params["b1"], params["bn1"], eps)
    return _conv_bn_relu_ref(y, params["w2"], params["b2"], params["bn2"], eps)


# --------------------------------------------------------------------------- #
if __name__ == "__main__":
    key = jax.random.PRNGKey(0)
    ks = jax.random.split(key, 14)

    N = 2
    C1, H1, W1 = 8, 8, 8            # deep features fed to the upsample
    C2, H2, W2 = 8, 16, 16          # skip connection
    Cin, Cmid = C1 + C2, 8          # Up(in_channels=16, out_channels=8, p=0.1)
    Cout = Cmid

    x1 = jax.random.normal(ks[0], (N, C1, H1, W1), jnp.float32)
    x2 = jax.random.normal(ks[1], (N, C2, H2, W2), jnp.float32)

    s1 = (9 * Cin) ** -0.5
    s2 = (9 * Cmid) ** -0.5
    params = {
        "w1": jax.random.uniform(ks[2], (3, 3, Cin, Cmid), jnp.float32, -s1, s1),
        "b1": jax.random.uniform(ks[3], (Cmid,), jnp.float32, -s1, s1),
        "bn1": (1.0 + 0.1 * jax.random.normal(ks[4], (Cmid,), jnp.float32),
                0.1 * jax.random.normal(ks[5], (Cmid,), jnp.float32),
                0.1 * jax.random.normal(ks[6], (Cmid,), jnp.float32),
                1.0 + 0.1 * jax.random.uniform(ks[7], (Cmid,), jnp.float32)),
        "w2": jax.random.uniform(ks[8], (3, 3, Cmid, Cout), jnp.float32, -s2, s2),
        "b2": jax.random.uniform(ks[9], (Cout,), jnp.float32, -s2, s2),
        "bn2": (1.0 + 0.1 * jax.random.normal(ks[10], (Cout,), jnp.float32),
                0.1 * jax.random.normal(ks[11], (Cout,), jnp.float32),
                0.1 * jax.random.normal(ks[12], (Cout,), jnp.float32),
                1.0 + 0.1 * jax.random.uniform(ks[13], (Cout,), jnp.float32)),
    }

    out = up_forward(x1, x2, params, dropout_probability=0.1)
    jax.block_until_ready(out)

    ref = _up_forward_ref(x1, x2, params)
    assert out.shape == ref.shape == (N, Cout, H2, W2), (out.shape, ref.shape)
    # Tolerance budget: bf16 matmul operands in-kernel (f32 accumulation) vs
    # the precision=HIGHEST f32 XLA reference, through two chained 3x3 convs.
    assert jnp.allclose(out, ref, atol=5e-2, rtol=5e-2), \
        float(jnp.max(jnp.abs(out - ref)))
    print("KERNEL_OK")
</pallas_src>

<mosaic_0001>
module attributes {stable_mosaic.version = 11 : i64} {
  func.func @_up_kernel(%arg0: i32, %arg1: memref<1x332x16xbf16, #tpu.memory_space<vmem>>, %arg2: memref<288x1xf32, #tpu.memory_space<vmem>>, %arg3: memref<9x16x8xbf16, #tpu.memory_space<vmem>>, %arg4: memref<1x8xf32, #tpu.memory_space<vmem>>, %arg5: memref<9x8x8xbf16, #tpu.memory_space<vmem>>, %arg6: memref<1x8xf32, #tpu.memory_space<vmem>>, %arg7: memref<1x288x8xf32, #tpu.memory_space<vmem>>, %arg8: memref<288x8xf32, #tpu.memory_space<vmem>>, %arg9: memref<332x8xbf16, #tpu.memory_space<vmem>>) attributes {dimension_semantics = [#tpu.dimension_semantics<parallel>], iteration_bounds = array<i64: 2>, scalar_prefetch = 0 : i64, scratch_operands = 2 : i64, tpu.core_type = #tpu.core_type<tc>, window_params = [{transform_indices = @transform_0, window_bounds = array<i64: 1, 332, 16>}, {pipeline_mode = #tpu.pipeline_mode<synchronous>, transform_indices = @transform_1, window_bounds = array<i64: 288, 1>}, {pipeline_mode = #tpu.pipeline_mode<synchronous>, transform_indices = @transform_2, window_bounds = array<i64: 9, 16, 8>}, {pipeline_mode = #tpu.pipeline_mode<synchronous>, transform_indices = @transform_3, window_bounds = array<i64: 1, 8>}, {pipeline_mode = #tpu.pipeline_mode<synchronous>, transform_indices = @transform_4, window_bounds = array<i64: 9, 8, 8>}, {pipeline_mode = #tpu.pipeline_mode<synchronous>, transform_indices = @transform_5, window_bounds = array<i64: 1, 8>}, {transform_indices = @transform_6, window_bounds = array<i64: 1, 288, 8>}]} {
    %c0 = arith.constant 0 : index
    %c0_0 = arith.constant 0 : index
    %c0_1 = arith.constant 0 : index
    %0 = vector.load %arg1[%c0, %c0_0, %c0_1] : memref<1x332x16xbf16, #tpu.memory_space<vmem>>, vector<1x288x16xbf16>
    %1 = vector.shape_cast %0 : vector<1x288x16xbf16> to vector<288x16xbf16>
    %c0_2 = arith.constant 0 : index
    %c0_3 = arith.constant 0 : index
    %c0_4 = arith.constant 0 : index
    %2 = vector.load %arg3[%c0_2, %c0_3, %c0_4] : memref<9x16x8xbf16, #tpu.memory_space<vmem>>, vector<1x16x8xbf16>
    %3 = vector.shape_cast %2 : vector<1x16x8xbf16> to vector<16x8xbf16>
    %cst = arith.constant dense<0.000000e+00> : vector<288x8xf32>
    %4 = tpu.matmul %1, %3, %cst {dimension_numbers = #tpu.dot_dimension_numbers<[1], [0], [0], [1], [0, 0, 1, 1], [], []>} : vector<288x16xbf16>, vector<16x8xbf16>, vector<288x8xf32> -> vector<288x8xf32>
    %c0_5 = arith.constant 0 : index
    %c0_6 = arith.constant 0 : index
    %5 = vector.load %arg8[%c0_5, %c0_6] : memref<288x8xf32, #tpu.memory_space<vmem>>, vector<288x8xf32>
    tpu.vector_store %arg8[%c0_5, %c0_6], %4 {strides = array<i32>} : memref<288x8xf32, #tpu.memory_space<vmem>>, vector<288x8xf32>,
    %c0_7 = arith.constant 0 : index
    %c1 = arith.constant 1 : index
    %c0_8 = arith.constant 0 : index
    %6 = vector.load %arg1[%c0_7, %c1, %c0_8] : memref<1x332x16xbf16, #tpu.memory_space<vmem>>, vector<1x288x16xbf16>
    %7 = vector.shape_cast %6 : vector<1x288x16xbf16> to vector<288x16xbf16>
    %c1_9 = arith.constant 1 : index
    %c0_10 = arith.constant 0 : index
    %c0_11 = arith.constant 0 : index
    %8 = vector.load %arg3[%c1_9, %c0_10, %c0_11] : memref<9x16x8xbf16, #tpu.memory_space<vmem>>, vector<1x16x8xbf16>
    %9 = vector.shape_cast %8 : vector<1x16x8xbf16> to vector<16x8xbf16>
    %cst_12 = arith.constant dense<0.000000e+00> : vector<288x8xf32>
    %10 = tpu.matmul %7, %9, %cst_12 {dimension_numbers = #tpu.dot_dimension_numbers<[1], [0], [0], [1], [0, 0, 1, 1], [], []>} : vector<288x16xbf16>, vector<16x8xbf16>, vector<288x8xf32> -> vector<288x8xf32>
    %c0_13 = arith.constant 0 : index
    %c0_14 = arith.constant 0 : index
    %11 = vector.load %arg8[%c0_13, %c0_14] : memref<288x8xf32, #tpu.memory_space<vmem>>, vector<288x8xf32>
    %12 = arith.addf %11, %10 : vector<288x8xf32>
    %c0_15 = arith.constant 0 : index
    %c0_16 = arith.constant 0 : index
    %13 = vector.load %arg8[%c0_15, %c0_16] : memref<288x8xf32, #tpu.memory_space<vmem>>, vector<288x8xf32>
    tpu.vector_store %arg8[%c0_15, %c0_16], %12 {strides = array<i32>} : memref<288x8xf32, #tpu.memory_space<vmem>>, vector<288x8xf32>,
    %c0_17 = arith.constant 0 : index
    %c2 = arith.constant 2 : index
    %c0_18 = arith.constant 0 : index
    %14 = vector.load %arg1[%c0_17, %c2, %c0_18] : memref<1x332x16xbf16, #tpu.memory_space<vmem>>, vector<1x288x16xbf16>
    %15 = vector.shape_cast %14 : vector<1x288x16xbf16> to vector<288x16xbf16>
    %c2_19 = arith.constant 2 : index
    %c0_20 = arith.constant 0 : index
    %c0_21 = arith.constant 0 : index
    %16 = vector.load %arg3[%c2_19, %c0_20, %c0_21] : memref<9x16x8xbf16, #tpu.memory_space<vmem>>, vector<1x16x8xbf16>
    %17 = vector.shape_cast %16 : vector<1x16x8xbf16> to vector<16x8xbf16>
    %cst_22 = arith.constant dense<0.000000e+00> : vector<288x8xf32>
    %18 = tpu.matmul %15, %17, %cst_22 {dimension_numbers = #tpu.dot_dimension_numbers<[1], [0], [0], [1], [0, 0, 1, 1], [], []>} : vector<288x16xbf16>, vector<16x8xbf16>, vector<288x8xf32> -> vector<288x8xf32>
    %c0_23 = arith.constant 0 : index
    %c0_24 = arith.constant 0 : index
    %19 = vector.load %arg8[%c0_23, %c0_24] : memref<288x8xf32, #tpu.memory_space<vmem>>, vector<288x8xf32>
    %20 = arith.addf %19, %18 : vector<288x8xf32>
    %c0_25 = arith.constant 0 : index
    %c0_26 = arith.constant 0 : index
    %21 = vector.load %arg8[%c0_25, %c0_26] : memref<288x8xf32, #tpu.memory_space<vmem>>, vector<288x8xf32>
    tpu.vector_store %arg8[%c0_25, %c0_26], %20 {strides = array<i32>} : memref<288x8xf32, #tpu.memory_space<vmem>>, vector<288x8xf32>,
    %c0_27 = arith.constant 0 : index
    %c18 = arith.constant 18 : index
    %c0_28 = arith.constant 0 : index
    %22 = vector.load %arg1[%c0_27, %c18, %c0_28] : memref<1x332x16xbf16, #tpu.memory_space<vmem>>, vector<1x288x16xbf16>
    %23 = vector.shape_cast %22 : vector<1x288x16xbf16> to vector<288x16xbf16>
    %c3 = arith.constant 3 : index
    %c0_29 = arith.constant 0 : index
    %c0_30 = arith.constant 0 : index
    %24 = vector.load %arg3[%c3, %c0_29, %c0_30] : memref<9x16x8xbf16, #tpu.memory_space<vmem>>, vector<1x16x8xbf16>
    %25 = vector.shape_cast %24 : vector<1x16x8xbf16> to vector<16x8xbf16>
    %cst_31 = arith.constant dense<0.000000e+00> : vector<288x8xf32>
    %26 = tpu.matmul %23, %25, %cst_31 {dimension_numbers = #tpu.dot_dimension_numbers<[1], [0], [0], [1], [0, 0, 1, 1], [], []>} : vector<288x16xbf16>, vector<16x8xbf16>, vector<288x8xf32> -> vector<288x8xf32>
    %c0_32 = arith.constant 0 : index
    %c0_33 = arith.constant 0 : index
    %27 = vector.load %arg8[%c0_32, %c0_33] : memref<288x8xf32, #tpu.memory_space<vmem>>, vector<288x8xf32>
    %28 = arith.addf %27, %26 : vector<288x8xf32>
    %c0_34 = arith.constant 0 : index
    %c0_35 = arith.constant 0 : index
    %29 = vector.load %arg8[%c0_34, %c0_35] : memref<288x8xf32, #tpu.memory_space<vmem>>, vector<288x8xf32>
    tpu.vector_store %arg8[%c0_34, %c0_35], %28 {strides = array<i32>} : memref<288x8xf32, #tpu.memory_space<vmem>>, vector<288x8xf32>,
    %c0_36 = arith.constant 0 : index
    %c19 = arith.constant 19 : index
    %c0_37 = arith.constant 0 : index
    %30 = vector.load %arg1[%c0_36, %c19, %c0_37] : memref<1x332x16xbf16, #tpu.memory_space<vmem>>, vector<1x288x16xbf16>
    %31 = vector.shape_cast %30 : vector<1x288x16xbf16> to vector<288x16xbf16>
    %c4 = arith.constant 4 : index
    %c0_38 = arith.constant 0 : index
    %c0_39 = arith.constant 0 : index
    %32 = vector.load %arg3[%c4, %c0_38, %c0_39] : memref<9x16x8xbf16, #tpu.memory_space<vmem>>, vector<1x16x8xbf16>
    %33 = vector.shape_cast %32 : vector<1x16x8xbf16> to vector<16x8xbf16>
    %cst_40 = arith.constant dense<0.000000e+00> : vector<288x8xf32>
    %34 = tpu.matmul %31, %33, %cst_40 {dimension_numbers = #tpu.dot_dimension_numbers<[1], [0], [0], [1], [0, 0, 1, 1], [], []>} : vector<288x16xbf16>, vector<16x8xbf16>, vector<288x8xf32> -> vector<288x8xf32>
    %c0_41 = arith.constant 0 : index
    %c0_42 = arith.constant 0 : index
    %35 = vector.load %arg8[%c0_41, %c0_42] : memref<288x8xf32, #tpu.memory_space<vmem>>, vector<288x8xf32>
    %36 = arith.addf %35, %34 : vector<288x8xf32>
    %c0_43 = arith.constant 0 : index
    %c0_44 = arith.constant 0 : index
    %37 = vector.load %arg8[%c0_43, %c0_44] : memref<288x8xf32, #tpu.memory_space<vmem>>, vector<288x8xf32>
    tpu.vector_store %arg8[%c0_43, %c0_44], %36 {strides = array<i32>} : memref<288x8xf32, #tpu.memory_space<vmem>>, vector<288x8xf32>,
    %c0_45 = arith.constant 0 : index
    %c20 = arith.constant 20 : index
    %c0_46 = arith.constant 0 : index
    %38 = vector.load %arg1[%c0_45, %c20, %c0_46] : memref<1x332x16xbf16, #tpu.memory_space<vmem>>, vector<1x288x16xbf16>
    %39 = vector.shape_cast %38 : vector<1x288x16xbf16> to vector<288x16xbf16>
    %c5 = arith.constant 5 : index
    %c0_47 = arith.constant 0 : index
    %c0_48 = arith.constant 0 : index
    %40 = vector.load %arg3[%c5, %c0_47, %c0_48] : memref<9x16x8xbf16, #tpu.memory_space<vmem>>, vector<1x16x8xbf16>
    %41 = vector.shape_cast %40 : vector<1x16x8xbf16> to vector<16x8xbf16>
    %cst_49 = arith.constant dense<0.000000e+00> : vector<288x8xf32>
    %42 = tpu.matmul %39, %41, %cst_49 {dimension_numbers = #tpu.dot_dimension_numbers<[1], [0], [0], [1], [0, 0, 1, 1], [], []>} : vector<288x16xbf16>, vector<16x8xbf16>, vector<288x8xf32> -> vector<288x8xf32>
    %c0_50 = arith.constant 0 : index
    %c0_51 = arith.constant 0 : index
    %43 = vector.load %arg8[%c0_50, %c0_51] : memref<288x8xf32, #tpu.memory_space<vmem>>, vector<288x8xf32>
    %44 = arith.addf %43, %42 : vector<288x8xf32>
    %c0_52 = arith.constant 0 : index
    %c0_53 = arith.constant 0 : index
    %45 = vector.load %arg8[%c0_52, %c0_53] : memref<288x8xf32, #tpu.memory_space<vmem>>, vector<288x8xf32>
    tpu.vector_store %arg8[%c0_52, %c0_53], %44 {strides = array<i32>} : memref<288x8xf32, #tpu.memory_space<vmem>>, vector<288x8xf32>,
    %c0_54 = arith.constant 0 : index
    %c36 = arith.constant 36 : index
    %c0_55 = arith.constant 0 : index
    %46 = vector.load %arg1[%c0_54, %c36, %c0_55] : memref<1x332x16xbf16, #tpu.memory_space<vmem>>, vector<1x288x16xbf16>
    %47 = vector.shape_cast %46 : vector<1x288x16xbf16> to vector<288x16xbf16>
    %c6 = arith.constant 6 : index
    %c0_56 = arith.constant 0 : index
    %c0_57 = arith.constant 0 : index
    %48 = vector.load %arg3[%c6, %c0_56, %c0_57] : memref<9x16x8xbf16, #tpu.memory_space<vmem>>, vector<1x16x8xbf16>
    %49 = vector.shape_cast %48 : vector<1x16x8xbf16> to vector<16x8xbf16>
    %cst_58 = arith.constant dense<0.000000e+00> : vector<288x8xf32>
    %50 = tpu.matmul %47, %49, %cst_58 {dimension_numbers = #tpu.dot_dimension_numbers<[1], [0], [0], [1], [0, 0, 1, 1], [], []>} : vector<288x16xbf16>, vector<16x8xbf16>, vector<288x8xf32> -> vector<288x8xf32>
    %c0_59 = arith.constant 0 : index
    %c0_60 = arith.constant 0 : index
    %51 = vector.load %arg8[%c0_59, %c0_60] : memref<288x8xf32, #tpu.memory_space<vmem>>, vector<288x8xf32>
    %52 = arith.addf %51, %50 : vector<288x8xf32>
    %c0_61 = arith.constant 0 : index
    %c0_62 = arith.constant 0 : index
    %53 = vector.load %arg8[%c0_61, %c0_62] : memref<288x8xf32, #tpu.memory_space<vmem>>, vector<288x8xf32>
    tpu.vector_store %arg8[%c0_61, %c0_62], %52 {strides = array<i32>} : memref<288x8xf32, #tpu.memory_space<vmem>>, vector<288x8xf32>,
    %c0_63 = arith.constant 0 : index
    %c37 = arith.constant 37 : index
    %c0_64 = arith.constant 0 : index
    %54 = vector.load %arg1[%c0_63, %c37, %c0_64] : memref<1x332x16xbf16, #tpu.memory_space<vmem>>, vector<1x288x16xbf16>
    %55 = vector.shape_cast %54 : vector<1x288x16xbf16> to vector<288x16xbf16>
    %c7 = arith.constant 7 : index
    %c0_65 = arith.constant 0 : index
    %c0_66 = arith.constant 0 : index
    %56 = vector.load %arg3[%c7, %c0_65, %c0_66] : memref<9x16x8xbf16, #tpu.memory_space<vmem>>, vector<1x16x8xbf16>
    %57 = vector.shape_cast %56 : vector<1x16x8xbf16> to vector<16x8xbf16>
    %cst_67 = arith.constant dense<0.000000e+00> : vector<288x8xf32>
    %58 = tpu.matmul %55, %57, %cst_67 {dimension_numbers = #tpu.dot_dimension_numbers<[1], [0], [0], [1], [0, 0, 1, 1], [], []>} : vector<288x16xbf16>, vector<16x8xbf16>, vector<288x8xf32> -> vector<288x8xf32>
    %c0_68 = arith.constant 0 : index
    %c0_69 = arith.constant 0 : index
    %59 = vector.load %arg8[%c0_68, %c0_69] : memref<288x8xf32, #tpu.memory_space<vmem>>, vector<288x8xf32>
    %60 = arith.addf %59, %58 : vector<288x8xf32>
    %c0_70 = arith.constant 0 : index
    %c0_71 = arith.constant 0 : index
    %61 = vector.load %arg8[%c0_70, %c0_71] : memref<288x8xf32, #tpu.memory_space<vmem>>, vector<288x8xf32>
    tpu.vector_store %arg8[%c0_70, %c0_71], %60 {strides = array<i32>} : memref<288x8xf32, #tpu.memory_space<vmem>>, vector<288x8xf32>,
    %c0_72 = arith.constant 0 : index
    %c38 = arith.constant 38 : index
    %c0_73 = arith.constant 0 : index
    %62 = vector.load %arg1[%c0_72, %c38, %c0_73] : memref<1x332x16xbf16, #tpu.memory_space<vmem>>, vector<1x288x16xbf16>
    %63 = vector.shape_cast %62 : vector<1x288x16xbf16> to vector<288x16xbf16>
    %c8 = arith.constant 8 : index
    %c0_74 = arith.constant 0 : index
    %c0_75 = arith.constant 0 : index
    %64 = vector.load %arg3[%c8, %c0_74, %c0_75] : memref<9x16x8xbf16, #tpu.memory_space<vmem>>, vector<1x16x8xbf16>
    %65 = vector.shape_cast %64 : vector<1x16x8xbf16> to vector<16x8xbf16>
    %cst_76 = arith.constant dense<0.000000e+00> : vector<288x8xf32>
    %66 = tpu.matmul %63, %65, %cst_76 {dimension_numbers = #tpu.dot_dimension_numbers<[1], [0], [0], [1], [0, 0, 1, 1], [], []>} : vector<288x16xbf16>, vector<16x8xbf16>, vector<288x8xf32> -> vector<288x8xf32>
    %c0_77 = arith.constant 0 : index
    %c0_78 = arith.constant 0 : index
    %67 = vector.load %arg8[%c0_77, %c0_78] : memref<288x8xf32, #tpu.memory_space<vmem>>, vector<288x8xf32>
    %68 = arith.addf %67, %66 : vector<288x8xf32>
    %c0_79 = arith.constant 0 : index
    %c0_80 = arith.constant 0 : index
    %69 = vector.load %arg8[%c0_79, %c0_80] : memref<288x8xf32, #tpu.memory_space<vmem>>, vector<288x8xf32>
    tpu.vector_store %arg8[%c0_79, %c0_80], %68 {strides = array<i32>} : memref<288x8xf32, #tpu.memory_space<vmem>>, vector<288x8xf32>,
    %c0_81 = arith.constant 0 : index
    %c0_82 = arith.constant 0 : index
    %70 = vector.load %arg8[%c0_81, %c0_82] : memref<288x8xf32, #tpu.memory_space<vmem>>, vector<288x8xf32>
    %c0_83 = arith.constant 0 : index
    %c0_84 = arith.constant 0 : index
    %71 = vector.load %arg4[%c0_83, %c0_84] : memref<1x8xf32, #tpu.memory_space<vmem>>, vector<1x8xf32>
    %72 = vector.broadcast %71 : vector<1x8xf32> to vector<288x8xf32>
    %73 = arith.addf %70, %72 : vector<288x8xf32>
    %cst_85 = arith.constant 0.000000e+00 : f32
    %74 = vector.broadcast %cst_85 : f32 to vector<288x8xf32>
    %75 = arith.maximumf %73, %74 : vector<288x8xf32>
    %c0_86 = arith.constant 0 : index
    %c0_87 = arith.constant 0 : index
    %76 = vector.load %arg2[%c0_86, %c0_87] : memref<288x1xf32, #tpu.memory_space<vmem>>, vector<288x1xf32>
    %77 = vector.broadcast %76 : vector<288x1xf32> to vector<288x8xf32>
    %78 = arith.mulf %75, %77 : vector<288x8xf32>
    %79 = arith.truncf %78 : vector<288x8xf32> to vector<288x8xbf16>
    %cst_88 = arith.constant 0.000000e+00 : bf16
    %80 = vector.broadcast %cst_88 : bf16 to vector<19x8xbf16>
    %c0_89 = arith.constant 0 : index
    %c0_90 = arith.constant 0 : index
    %81 = vector.load %arg9[%c0_89, %c0_90] : memref<332x8xbf16, #tpu.memory_space<vmem>>, vector<19x8xbf16>
    tpu.vector_store %arg9[%c0_89, %c0_90], %80 {strides = array<i32>} : memref<332x8xbf16, #tpu.memory_space<vmem>>, vector<19x8xbf16>,
    %c19_91 = arith.constant 19 : index
    %c0_92 = arith.constant 0 : index
    %82 = vector.load %arg9[%c19_91, %c0_92] : memref<332x8xbf16, #tpu.memory_space<vmem>>, vector<288x8xbf16>
    tpu.vector_store %arg9[%c19_91, %c0_92], %79 {strides = array<i32>} : memref<332x8xbf16, #tpu.memory_space<vmem>>, vector<288x8xbf16>,
    %cst_93 = arith.constant 0.000000e+00 : bf16
    %83 = vector.broadcast %cst_93 : bf16 to vector<25x8xbf16>
    %c307 = arith.constant 307 : index
    %c0_94 = arith.constant 0 : index
    %84 = vector.load %arg9[%c307, %c0_94] : memref<332x8xbf16, #tpu.memory_space<vmem>>, vector<25x8xbf16>
    tpu.vector_store %arg9[%c307, %c0_94], %83 {strides = array<i32>} : memref<332x8xbf16, #tpu.memory_space<vmem>>, vector<25x8xbf16>,
    %c0_95 = arith.constant 0 : index
    %c0_96 = arith.constant 0 : index
    %85 = vector.load %arg9[%c0_95, %c0_96] : memref<332x8xbf16, #tpu.memory_space<vmem>>, vector<288x8xbf16>
    %c0_97 = arith.constant 0 : index
    %c0_98 = arith.constant 0 : index
    %c0_99 = arith.constant 0 : index
    %86 = vector.load %arg5[%c0_97, %c0_98, %c0_99] : memref<9x8x8xbf16, #tpu.memory_space<vmem>>, vector<1x8x8xbf16>
    %87 = vector.shape_cast %86 : vector<1x8x8xbf16> to vector<8x8xbf16>
    %cst_100 = arith.constant dense<0.000000e+00> : vector<288x8xf32>
    %88 = tpu.matmul %85, %87, %cst_100 {dimension_numbers = #tpu.dot_dimension_numbers<[1], [0], [0], [1], [0, 0, 1, 1], [], []>} : vector<288x8xbf16>, vector<8x8xbf16>, vector<288x8xf32> -> vector<288x8xf32>
    %c0_101 = arith.constant 0 : index
    %c0_102 = arith.constant 0 : index
    %c0_103 = arith.constant 0 : index
    %89 = vector.load %arg7[%c0_101, %c0_102, %c0_103] : memref<1x288x8xf32, #tpu.memory_space<vmem>>, vector<1x288x8xf32>
    %90 = vector.shape_cast %89 : vector<1x288x8xf32> to vector<288x8xf32>
    %91 = vector.shape_cast %88 : vector<288x8xf32> to vector<1x288x8xf32>
    tpu.vector_store %arg7[%c0_101, %c0_102, %c0_103], %91 {strides = array<i32>} : memref<1x288x8xf32, #tpu.memory_space<vmem>>, vector<1x288x8xf32>,
    %c1_104 = arith.constant 1 : index
    %c0_105 = arith.constant 0 : index
    %92 = vector.load %arg9[%c1_104, %c0_105] : memref<332x8xbf16, #tpu.memory_space<vmem>>, vector<288x8xbf16>
    %c1_106 = arith.constant 1 : index
    %c0_107 = arith.constant 0 : index
    %c0_108 = arith.constant 0 : index
    %93 = vector.load %arg5[%c1_106, %c0_107, %c0_108] : memref<9x8x8xbf16, #tpu.memory_space<vmem>>, vector<1x8x8xbf16>
    %94 = vector.shape_cast %93 : vector<1x8x8xbf16> to vector<8x8xbf16>
    %cst_109 = arith.constant dense<0.000000e+00> : vector<288x8xf32>
    %95 = tpu.matmul %92, %94, %cst_109 {dimension_numbers = #tpu.dot_dimension_numbers<[1], [0], [0], [1], [0, 0, 1, 1], [], []>} : vector<288x8xbf16>, vector<8x8xbf16>, vector<288x8xf32> -> vector<288x8xf32>
    %c0_110 = arith.constant 0 : index
    %c0_111 = arith.constant 0 : index
    %c0_112 = arith.constant 0 : index
    %96 = vector.load %arg7[%c0_110, %c0_111, %c0_112] : memref<1x288x8xf32, #tpu.memory_space<vmem>>, vector<1x288x8xf32>
    %97 = vector.shape_cast %96 : vector<1x288x8xf32> to vector<288x8xf32>
    %98 = arith.addf %97, %95 : vector<288x8xf32>
    %c0_113 = arith.constant 0 : index
    %c0_114 = arith.constant 0 : index
    %c0_115 = arith.constant 0 : index
    %99 = vector.load %arg7[%c0_113, %c0_114, %c0_115] : memref<1x288x8xf32, #tpu.memory_space<vmem>>, vector<1x288x8xf32>
    %100 = vector.shape_cast %99 : vector<1x288x8xf32> to vector<288x8xf32>
    %101 = vector.shape_cast %98 : vector<288x8xf32> to vector<1x288x8xf32>
    tpu.vector_store %arg7[%c0_113, %c0_114, %c0_115], %101 {strides = array<i32>} : memref<1x288x8xf32, #tpu.memory_space<vmem>>, vector<1x288x8xf32>,
    %c2_116 = arith.constant 2 : index
    %c0_117 = arith.constant 0 : index
    %102 = vector.load %arg9[%c2_116, %c0_117] : memref<332x8xbf16, #tpu.memory_space<vmem>>, vector<288x8xbf16>
    %c2_118 = arith.constant 2 : index
    %c0_119 = arith.constant 0 : index
    %c0_120 = arith.constant 0 : index
    %103 = vector.load %arg5[%c2_118, %c0_119, %c0_120] : memref<9x8x8xbf16, #tpu.memory_space<vmem>>, vector<1x8x8xbf16>
    %104 = vector.shape_cast %103 : vector<1x8x8xbf16> to vector<8x8xbf16>
    %cst_121 = arith.constant dense<0.000000e+00> : vector<288x8xf32>
    %105 = tpu.matmul %102, %104, %cst_121 {dimension_numbers = #tpu.dot_dimension_numbers<[1], [0], [0], [1], [0, 0, 1, 1], [], []>} : vector<288x8xbf16>, vector<8x8xbf16>, vector<288x8xf32> -> vector<288x8xf32>
    %c0_122 = arith.constant 0 : index
    %c0_123 = arith.constant 0 : index
    %c0_124 = arith.constant 0 : index
    %106 = vector.load %arg7[%c0_122, %c0_123, %c0_124] : memref<1x288x8xf32, #tpu.memory_space<vmem>>, vector<1x288x8xf32>
    %107 = vector.shape_cast %106 : vector<1x288x8xf32> to vector<288x8xf32>
    %108 = arith.addf %107, %105 : vector<288x8xf32>
    %c0_125 = arith.constant 0 : index
    %c0_126 = arith.constant 0 : index
    %c0_127 = arith.constant 0 : index
    %109 = vector.load %arg7[%c0_125, %c0_126, %c0_127] : memref<1x288x8xf32, #tpu.memory_space<vmem>>, vector<1x288x8xf32>
    %110 = vector.shape_cast %109 : vector<1x288x8xf32> to vector<288x8xf32>
    %111 = vector.shape_cast %108 : vector<288x8xf32> to vector<1x288x8xf32>
    tpu.vector_store %arg7[%c0_125, %c0_126, %c0_127], %111 {strides = array<i32>} : memref<1x288x8xf32, #tpu.memory_space<vmem>>, vector<1x288x8xf32>,
    %c18_128 = arith.constant 18 : index
    %c0_129 = arith.constant 0 : index
    %112 = vector.load %arg9[%c18_128, %c0_129] : memref<332x8xbf16, #tpu.memory_space<vmem>>, vector<288x8xbf16>
    %c3_130 = arith.constant 3 : index
    %c0_131 = arith.constant 0 : index
    %c0_132 = arith.constant 0 : index
    %113 = vector.load %arg5[%c3_130, %c0_131, %c0_132] : memref<9x8x8xbf16, #tpu.memory_space<vmem>>, vector<1x8x8xbf16>
    %114 = vector.shape_cast %113 : vector<1x8x8xbf16> to vector<8x8xbf16>
    %cst_133 = arith.constant dense<0.000000e+00> : vector<288x8xf32>
    %115 = tpu.matmul %112, %114, %cst_133 {dimension_numbers = #tpu.dot_dimension_numbers<[1], [0], [0], [1], [0, 0, 1, 1], [], []>} : vector<288x8xbf16>, vector<8x8xbf16>, vector<288x8xf32> -> vector<288x8xf32>
    %c0_134 = arith.constant 0 : index
    %c0_135 = arith.constant 0 : index
    %c0_136 = arith.constant 0 : index
    %116 = vector.load %arg7[%c0_134, %c0_135, %c0_136] : memref<1x288x8xf32, #tpu.memory_space<vmem>>, vector<1x288x8xf32>
    %117 = vector.shape_cast %116 : vector<1x288x8xf32> to vector<288x8xf32>
    %118 = arith.addf %117, %115 : vector<288x8xf32>
    %c0_137 = arith.constant 0 : index
    %c0_138 = arith.constant 0 : index
    %c0_139 = arith.constant 0 : index
    %119 = vector.load %arg7[%c0_137, %c0_138, %c0_139] : memref<1x288x8xf32, #tpu.memory_space<vmem>>, vector<1x288x8xf32>
    %120 = vector.shape_cast %119 : vector<1x288x8xf32> to vector<288x8xf32>
    %121 = vector.shape_cast %118 : vector<288x8xf32> to vector<1x288x8xf32>
    tpu.vector_store %arg7[%c0_137, %c0_138, %c0_139], %121 {strides = array<i32>} : memref<1x288x8xf32, #tpu.memory_space<vmem>>, vector<1x288x8xf32>,
    %c19_140 = arith.constant 19 : index
    %c0_141 = arith.constant 0 : index
    %122 = vector.load %arg9[%c19_140, %c0_141] : memref<332x8xbf16, #tpu.memory_space<vmem>>, vector<288x8xbf16>
    %c4_142 = arith.constant 4 : index
    %c0_143 = arith.constant 0 : index
    %c0_144 = arith.constant 0 : index
    %123 = vector.load %arg5[%c4_142, %c0_143, %c0_144] : memref<9x8x8xbf16, #tpu.memory_space<vmem>>, vector<1x8x8xbf16>
    %124 = vector.shape_cast %123 : vector<1x8x8xbf16> to vector<8x8xbf16>
    %cst_145 = arith.constant dense<0.000000e+00> : vector<288x8xf32>
    %125 = tpu.matmul %122, %124, %cst_145 {dimension_numbers = #tpu.dot_dimension_numbers<[1], [0], [0], [1], [0, 0, 1, 1], [], []>} : vector<288x8xbf16>, vector<8x8xbf16>, vector<288x8xf32> -> vector<288x8xf32>
    %c0_146 = arith.constant 0 : index
    %c0_147 = arith.constant 0 : index
    %c0_148 = arith.constant 0 : index
    %126 = vector.load %arg7[%c0_146, %c0_147, %c0_148] : memref<1x288x8xf32, #tpu.memory_space<vmem>>, vector<1x288x8xf32>
    %127 = vector.shape_cast %126 : vector<1x288x8xf32> to vector<288x8xf32>
    %128 = arith.addf %127, %125 : vector<288x8xf32>
    %c0_149 = arith.constant 0 : index
    %c0_150 = arith.constant 0 : index
    %c0_151 = arith.constant 0 : index
    %129 = vector.load %arg7[%c0_149, %c0_150, %c0_151] : memref<1x288x8xf32, #tpu.memory_space<vmem>>, vector<1x288x8xf32>
    %130 = vector.shape_cast %129 : vector<1x288x8xf32> to vector<288x8xf32>
    %131 = vector.shape_cast %128 : vector<288x8xf32> to vector<1x288x8xf32>
    tpu.vector_store %arg7[%c0_149, %c0_150, %c0_151], %131 {strides = array<i32>} : memref<1x288x8xf32, #tpu.memory_space<vmem>>, vector<1x288x8xf32>,
    %c20_152 = arith.constant 20 : index
    %c0_153 = arith.constant 0 : index
    %132 = vector.load %arg9[%c20_152, %c0_153] : memref<332x8xbf16, #tpu.memory_space<vmem>>, vector<288x8xbf16>
    %c5_154 = arith.constant 5 : index
    %c0_155 = arith.constant 0 : index
    %c0_156 = arith.constant 0 : index
    %133 = vector.load %arg5[%c5_154, %c0_155, %c0_156] : memref<9x8x8xbf16, #tpu.memory_space<vmem>>, vector<1x8x8xbf16>
    %134 = vector.shape_cast %133 : vector<1x8x8xbf16> to vector<8x8xbf16>
    %cst_157 = arith.constant dense<0.000000e+00> : vector<288x8xf32>
    %135 = tpu.matmul %132, %134, %cst_157 {dimension_numbers = #tpu.dot_dimension_numbers<[1], [0], [0], [1], [0, 0, 1, 1], [], []>} : vector<288x8xbf16>, vector<8x8xbf16>, vector<288x8xf32> -> vector<288x8xf32>
    %c0_158 = arith.constant 0 : index
    %c0_159 = arith.constant 0 : index
    %c0_160 = arith.constant 0 : index
    %136 = vector.load %arg7[%c0_158, %c0_159, %c0_160] : memref<1x288x8xf32, #tpu.memory_space<vmem>>, vector<1x288x8xf32>
    %137 = vector.shape_cast %136 : vector<1x288x8xf32> to vector<288x8xf32>
    %138 = arith.addf %137, %135 : vector<288x8xf32>
    %c0_161 = arith.constant 0 : index
    %c0_162 = arith.constant 0 : index
    %c0_163 = arith.constant 0 : index
    %139 = vector.load %arg7[%c0_161, %c0_162, %c0_163] : memref<1x288x8xf32, #tpu.memory_space<vmem>>, vector<1x288x8xf32>
    %140 = vector.shape_cast %139 : vector<1x288x8xf32> to vector<288x8xf32>
    %141 = vector.shape_cast %138 : vector<288x8xf32> to vector<1x288x8xf32>
    tpu.vector_store %arg7[%c0_161, %c0_162, %c0_163], %141 {strides = array<i32>} : memref<1x288x8xf32, #tpu.memory_space<vmem>>, vector<1x288x8xf32>,
    %c36_164 = arith.constant 36 : index
    %c0_165 = arith.constant 0 : index
    %142 = vector.load %arg9[%c36_164, %c0_165] : memref<332x8xbf16, #tpu.memory_space<vmem>>, vector<288x8xbf16>
    %c6_166 = arith.constant 6 : index
    %c0_167 = arith.constant 0 : index
    %c0_168 = arith.constant 0 : index
    %143 = vector.load %arg5[%c6_166, %c0_167, %c0_168] : memref<9x8x8xbf16, #tpu.memory_space<vmem>>, vector<1x8x8xbf16>
    %144 = vector.shape_cast %143 : vector<1x8x8xbf16> to vector<8x8xbf16>
    %cst_169 = arith.constant dense<0.000000e+00> : vector<288x8xf32>
    %145 = tpu.matmul %142, %144, %cst_169 {dimension_numbers = #tpu.dot_dimension_numbers<[1], [0], [0], [1], [0, 0, 1, 1], [], []>} : vector<288x8xbf16>, vector<8x8xbf16>, vector<288x8xf32> -> vector<288x8xf32>
    %c0_170 = arith.constant 0 : index
    %c0_171 = arith.constant 0 : index
    %c0_172 = arith.constant 0 : index
    %146 = vector.load %arg7[%c0_170, %c0_171, %c0_172] : memref<1x288x8xf32, #tpu.memory_space<vmem>>, vector<1x288x8xf32>
    %147 = vector.shape_cast %146 : vector<1x288x8xf32> to vector<288x8xf32>
    %148 = arith.addf %147, %145 : vector<288x8xf32>
    %c0_173 = arith.constant 0 : index
    %c0_174 = arith.constant 0 : index
    %c0_175 = arith.constant 0 : index
    %149 = vector.load %arg7[%c0_173, %c0_174, %c0_175] : memref<1x288x8xf32, #tpu.memory_space<vmem>>, vector<1x288x8xf32>
    %150 = vector.shape_cast %149 : vector<1x288x8xf32> to vector<288x8xf32>
    %151 = vector.shape_cast %148 : vector<288x8xf32> to vector<1x288x8xf32>
    tpu.vector_store %arg7[%c0_173, %c0_174, %c0_175], %151 {strides = array<i32>} : memref<1x288x8xf32, #tpu.memory_space<vmem>>, vector<1x288x8xf32>,
    %c37_176 = arith.constant 37 : index
    %c0_177 = arith.constant 0 : index
    %152 = vector.load %arg9[%c37_176, %c0_177] : memref<332x8xbf16, #tpu.memory_space<vmem>>, vector<288x8xbf16>
    %c7_178 = arith.constant 7 : index
    %c0_179 = arith.constant 0 : index
    %c0_180 = arith.constant 0 : index
    %153 = vector.load %arg5[%c7_178, %c0_179, %c0_180] : memref<9x8x8xbf16, #tpu.memory_space<vmem>>, vector<1x8x8xbf16>
    %154 = vector.shape_cast %153 : vector<1x8x8xbf16> to vector<8x8xbf16>
    %cst_181 = arith.constant dense<0.000000e+00> : vector<288x8xf32>
    %155 = tpu.matmul %152, %154, %cst_181 {dimension_numbers = #tpu.dot_dimension_numbers<[1], [0], [0], [1], [0, 0, 1, 1], [], []>} : vector<288x8xbf16>, vector<8x8xbf16>, vector<288x8xf32> -> vector<288x8xf32>
    %c0_182 = arith.constant 0 : index
    %c0_183 = arith.constant 0 : index
    %c0_184 = arith.constant 0 : index
    %156 = vector.load %arg7[%c0_182, %c0_183, %c0_184] : memref<1x288x8xf32, #tpu.memory_space<vmem>>, vector<1x288x8xf32>
    %157 = vector.shape_cast %156 : vector<1x288x8xf32> to vector<288x8xf32>
    %158 = arith.addf %157, %155 : vector<288x8xf32>
    %c0_185 = arith.constant 0 : index
    %c0_186 = arith.constant 0 : index
    %c0_187 = arith.constant 0 : index
    %159 = vector.load %arg7[%c0_185, %c0_186, %c0_187] : memref<1x288x8xf32, #tpu.memory_space<vmem>>, vector<1x288x8xf32>
    %160 = vector.shape_cast %159 : vector<1x288x8xf32> to vector<288x8xf32>
    %161 = vector.shape_cast %158 : vector<288x8xf32> to vector<1x288x8xf32>
    tpu.vector_store %arg7[%c0_185, %c0_186, %c0_187], %161 {strides = array<i32>} : memref<1x288x8xf32, #tpu.memory_space<vmem>>, vector<1x288x8xf32>,
    %c38_188 = arith.constant 38 : index
    %c0_189 = arith.constant 0 : index
    %162 = vector.load %arg9[%c38_188, %c0_189] : memref<332x8xbf16, #tpu.memory_space<vmem>>, vector<288x8xbf16>
    %c8_190 = arith.constant 8 : index
    %c0_191 = arith.constant 0 : index
    %c0_192 = arith.constant 0 : index
    %163 = vector.load %arg5[%c8_190, %c0_191, %c0_192] : memref<9x8x8xbf16, #tpu.memory_space<vmem>>, vector<1x8x8xbf16>
    %164 = vector.shape_cast %163 : vector<1x8x8xbf16> to vector<8x8xbf16>
    %cst_193 = arith.constant dense<0.000000e+00> : vector<288x8xf32>
    %165 = tpu.matmul %162, %164, %cst_193 {dimension_numbers = #tpu.dot_dimension_numbers<[1], [0], [0], [1], [0, 0, 1, 1], [], []>} : vector<288x8xbf16>, vector<8x8xbf16>, vector<288x8xf32> -> vector<288x8xf32>
    %c0_194 = arith.constant 0 : index
    %c0_195 = arith.constant 0 : index
    %c0_196 = arith.constant 0 : index
    %166 = vector.load %arg7[%c0_194, %c0_195, %c0_196] : memref<1x288x8xf32, #tpu.memory_space<vmem>>, vector<1x288x8xf32>
    %167 = vector.shape_cast %166 : vector<1x288x8xf32> to vector<288x8xf32>
    %168 = arith.addf %167, %165 : vector<288x8xf32>
    %c0_197 = arith.constant 0 : index
    %c0_198 = arith.constant 0 : index
    %c0_199 = arith.constant 0 : index
    %169 = vector.load %arg7[%c0_197, %c0_198, %c0_199] : memref<1x288x8xf32, #tpu.memory_space<vmem>>, vector<1x288x8xf32>
    %170 = vector.shape_cast %169 : vector<1x288x8xf32> to vector<288x8xf32>
    %171 = vector.shape_cast %168 : vector<288x8xf32> to vector<1x288x8xf32>
    tpu.vector_store %arg7[%c0_197, %c0_198, %c0_199], %171 {strides = array<i32>} : memref<1x288x8xf32, #tpu.memory_space<vmem>>, vector<1x288x8xf32>,
    %c0_200 = arith.constant 0 : index
    %c0_201 = arith.constant 0 : index
    %c0_202 = arith.constant 0 : index
    %172 = vector.load %arg7[%c0_200, %c0_201, %c0_202] : memref<1x288x8xf32, #tpu.memory_space<vmem>>, vector<1x288x8xf32>
    %173 = vector.shape_cast %172 : vector<1x288x8xf32> to vector<288x8xf32>
    %c0_203 = arith.constant 0 : index
    %c0_204 = arith.constant 0 : index
    %174 = vector.load %arg6[%c0_203, %c0_204] : memref<1x8xf32, #tpu.memory_space<vmem>>, vector<1x8xf32>
    %175 = vector.broadcast %174 : vector<1x8xf32> to vector<288x8xf32>
    %176 = arith.addf %173, %175 : vector<288x8xf32>
    %cst_205 = arith.constant 0.000000e+00 : f32
    %177 = vector.broadcast %cst_205 : f32 to vector<288x8xf32>
    %178 = arith.maximumf %176, %177 : vector<288x8xf32>
    %c0_206 = arith.constant 0 : index
    %c0_207 = arith.constant 0 : index
    %c0_208 = arith.constant 0 : index
    %179 = vector.load %arg7[%c0_206, %c0_207, %c0_208] : memref<1x288x8xf32, #tpu.memory_space<vmem>>, vector<1x288x8xf32>
    %180 = vector.shape_cast %179 : vector<1x288x8xf32> to vector<288x8xf32>
    %181 = vector.shape_cast %178 : vector<288x8xf32> to vector<1x288x8xf32>
    tpu.vector_store %arg7[%c0_206, %c0_207, %c0_208], %181 {strides = array<i32>} : memref<1x288x8xf32, #tpu.memory_space<vmem>>, vector<1x288x8xf32>,
    return
  }
  func.func @transform_0(%arg0: i32) -> (i32, i32, i32) {
    %c0_i32 = arith.constant 0 : i32
    %c0_i32_0 = arith.constant 0 : i32
    %c0_i32_1 = arith.constant 0 : i32
    return %arg0, %c0_i32, %c0_i32_0 : i32, i32, i32
  }
  func.func @transform_1(%arg0: i32) -> (i32, i32) {
    %c0_i32 = arith.constant 0 : i32
    %c0_i32_0 = arith.constant 0 : i32
    %c0_i32_1 = arith.constant 0 : i32
    return %c0_i32, %c0_i32_0 : i32, i32
  }
  func.func @transform_2(%arg0: i32) -> (i32, i32, i32) {
    %c0_i32 = arith.constant 0 : i32
    %c0_i32_0 = arith.constant 0 : i32
    %c0_i32_1 = arith.constant 0 : i32
    %c0_i32_2 = arith.constant 0 : i32
    return %c0_i32, %c0_i32_0, %c0_i32_1 : i32, i32, i32
  }
  func.func @transform_3(%arg0: i32) -> (i32, i32) {
    %c0_i32 = arith.constant 0 : i32
    %c0_i32_0 = arith.constant 0 : i32
    %c0_i32_1 = arith.constant 0 : i32
    return %c0_i32, %c0_i32_0 : i32, i32
  }
  func.func @transform_4(%arg0: i32) -> (i32, i32, i32) {
    %c0_i32 = arith.constant 0 : i32
    %c0_i32_0 = arith.constant 0 : i32
    %c0_i32_1 = arith.constant 0 : i32
    %c0_i32_2 = arith.constant 0 : i32
    return %c0_i32, %c0_i32_0, %c0_i32_1 : i32, i32, i32
  }
  func.func @transform_5(%arg0: i32) -> (i32, i32) {
    %c0_i32 = arith.constant 0 : i32
    %c0_i32_0 = arith.constant 0 : i32
    %c0_i32_1 = arith.constant 0 : i32
    return %c0_i32, %c0_i32_0 : i32, i32
  }
  func.func @transform_6(%arg0: i32) -> (i32, i32, i32) {
    %c0_i32 = arith.constant 0 : i32
    %c0_i32_0 = arith.constant 0 : i32
    %c0_i32_1 = arith.constant 0 : i32
    return %arg0, %c0_i32, %c0_i32_0 : i32, i32, i32
  }
}

</mosaic_0001>

<bundles_post_ra>
// kernel: tpu_custom_call.1
= control target key start
LH: loop header
LB: loop body
LE: loop exit
PB: predicated region body
PF: predicated region fallthrough
CT: control target
= control target key end

     0   :  { %s13385_s21 = smov 0   ;;  %s16591_s0 = inlined_call_operand.vmem [shape: bf16[2,332,16], index: 0, kind: input, shape index: {}]   ;;  %s16592_s1 = inlined_call_operand.vmem [shape: f32[288,1], index: 1, kind: input, shape index: {}]   ;;  %s16593_s2 = inlined_call_operand.vmem [shape: bf16[9,16,8], index: 2, kind: input, shape index: {}]   ;;  %s16594_s3 = inlined_call_operand.vmem [shape: f32[1,8], index: 3, kind: input, shape index: {}]   ;;  %s16595_s4 = inlined_call_operand.vmem [shape: bf16[9,8,8], index: 4, kind: input, shape index: {}]   ;;  %s16596_s5 = inlined_call_operand.vmem [shape: f32[1,8], index: 5, kind: input, shape index: {}]   ;;  %s16597_s6 = inlined_call_operand.vmem [shape: f32[2,288,8], index: 6, kind: output, shape index: {}]  }
   0x1 LB: > { %s11161_s22 = sadd.s32 4294967295, %s13347_s21   ;;  %p11165_p0 = scmp.ge.s32.totalorder %s13347_s21, 1  ;;  %s13347_s21 = sphi %s13385_s21, %s16_s21  }
   0x2   : > { %p212_p1 = scmp.lt.s32.totalorder %s13347_s21, 3 }
   0x4   : > { %p213_p2 = pnand %p11165_p0, %p212_p1 }
   0x6   : > { %216 = sbr.rel (%p213_p2) target bundleno = 1190 (0x4a6), region = 44 }
   0xd   : > { %v12989_v0 = vld [vmem:[%s16593_s2] sm:$0xff]   ;;  %p242_p3 = scmp.lt.s32.totalorder %s11161_s22, 1  ;;  %v12991_v1 = vld [vmem:[%s16593_s2 + $0x10] sm:$0xff]   ;;  %v12993_v2 = vld [vmem:[%s16593_s2 + $0x8] sm:$0xff]   ;;  %vm387_vm0 = vcmask 130048   ;;  %vm1416_vm2 = vcmask 1046528  }
   0xe   : > { %12283 = vmatprep.subr.bf16.mxu0 %v12989_v0  ;;  %12321 = vmatprep.subr.bf16.mxu1 %v12993_v2  ;;  %v13023_v3 = vld [vmem:[%s16593_s2 + $0x18] sm:$0xff]   ;;  %v13416_v4 = vld [vmem:[%s16593_s2 + $0x20] sm:$0xff]   ;;  %vm789_vm1 = vsmask.f32 7424  ;;  %vm2447_vm3 = vsmask.f32 6400 }
   0xf   : > { %s16617_s22 = smov (!%p242_p3, %s11161_s22), 1  ;;  %12284 = vmatpush3.bf16.msra.mxu0 %v12989_v0  ;;  %12322 = vmatpush3.bf16.msra.mxu1 %v12993_v2  ;;  %vm3096_vm4 = vcmask 1045504   ;;  %vm5544_vm5 = vcmask 60416   ;;  %vm5547_vm6 = vcmask 58368   ;;  %vm5548_vm7 = vsmask.f32 1280 }
  0x10   : > { %s12976_s29 = smul.u32 168, %s16617_s22  ;;  %12359 = vmatprep.subr.bf16.mxu0 %v12991_v1  ;;  %12397 = vmatprep.subr.bf16.mxu1 %v13023_v3  ;;  %vm13735_vm8 = vmand %vm5547_vm6, %vm5548_vm7  ;;  %vm619_vm9 = vcmask 64512   ;;  %vm4127_vm10 = vsmask.f32 5376  ;;  %vm4776_vm11 = vcmask 1044480   ;;  %vm6273_vm12 = vcmask 1043456  }
  0x11   : > { %vm5643_vm13 = vsmask.f32 5392  ;;  %vm6041_vm14 = vcmask 60417   ;;  %vm6042_vm15 = vsmask.f32 7942  ;;  %s12977_s12 = smul.u32 288, %s16617_s22 }
  0x12   : > { %s13411_s10 = scalar_lea.vmem %s16591_s0, %s12976_s29  ;;  %vm14564_vm6 = vmor %vm5548_vm7, %vm5643_vm13 }
  0x13   : > { %v12990_v5 = vld [vmem:[%s13411_s10] sm:$0xff]   ;;  %v12992_v6 = vld [vmem:[%s13411_s10 + $0x8] sm:$0xff]   ;;  %v12994_v7 = vld [vmem:[%s13411_s10 + $0x10] sm:$0xff]   ;;  %s15267_s14 = scalar_lea.vmem %s16597_s6, %s12977_s12 }
  0x14   : > { %12285 = vmatprep.mubr.msk.bf16.mxu0 %vm387_vm0, %v12990_v5  ;;  %v12995_v8 = vld [vmem:[%s13411_s10] sm:$0xff]   ;;  %v12996_v9 = vld [vmem:[%s13411_s10 + $0x8] sm:$0xff]   ;;  %v12997_v10 = vld [vmem:[%s13411_s10 + $0x18] sm:$0xff]  }
  0x15   : > { %12286 = vmatmul.mubr.msk.bf16.vlgmr.msra.gmra.mrb[0].mxu0 %vm387_vm0, %v12992_v6  ;;  %v791_v11 = vshrl.u32 %v12995_v8, 16  ;;  %v793_v12 = vshll.u32 %v12995_v8, 16  ;;  %v798_v13 = vshll.u32 %v12996_v9, 16  ;;  %v802_v14 = vshrl.u32 %v12996_v9, 16  ;;  %v12998_v15 = vld [vmem:[%s13411_s10 + $0x10] sm:$0xff]   ;;  %v12999_v18 = vld [vmem:[%s13411_s10 + $0x20] sm:$0xff]  }
  0x16   : > { %12360 = vmatpush3.bf16.msra.mxu0 %v12991_v1  ;;  %12289 = vmatprep.mubr.msk.bf16.mxu0 %vm387_vm0, %v12994_v7  ;;  %v13000_v19 = vld [vmem:[%s13411_s10 + $0x18] sm:$0xff]   ;;  %v806_v20 = vshll.u32 %v12998_v15, 16  ;;  %v810_v21 = vshrl.u32 %v12998_v15, 16  ;;  %v13002_v26 = vld [vmem:[%s13411_s10 + $0x20] sm:$0xff]   ;;  %v13004_v33 = vld [vmem:[%s13411_s10 + $0x28] sm:$0xff]  }
  0x17   : > { %12435 = vmatprep.subr.bf16.mxu0 %v13416_v4  ;;  %v795_v16 = vrot.slane %v793_v12, 1  ;;  %v800_v17 = vrot.slane %v798_v13, 1  ;;  %v814_v24 = vshll.u32 %v13000_v19, 16  ;;  %v818_v29 = vshrl.u32 %v13000_v19, 16  ;;  %v13001_v36 = vld [vmem:[%s13411_s10 + $0x28] sm:$0xff]   ;;  %v13003_v39 = vld [vmem:[%s13411_s10 + $0x30] sm:$0xff]  }
  0x18   : > { %v808_v25 = vrot.slane %v806_v20, 1  ;;  %v822_v32 = vshll.u32 %v13002_v26, 16  ;;  %v826_v34 = vshrl.u32 %v13002_v26, 16  ;;  %v830_v40 = vshll.u32 %v13004_v33, 16  ;;  %v13006_v41 = vld [vmem:[%s13411_s10 + $0x30] sm:$0xff]   ;;  %v13008_v45 = vld [vmem:[%s13411_s10 + $0x38] sm:$0xff]  }
  0x19   : > { %v796_v22 = vor.u32 %v795_v16, %v791_v11  ;;  %v804_v23 = vor.u32 %v802_v14, %v800_v17  ;;  %v816_v28 = vrot.slane %v814_v24, 1  ;;  %v838_v44 = vshll.u32 %v13006_v41, 16  ;;  %v13010_v51 = vld [vmem:[%s13411_s10 + $0x40] sm:$0xff]   ;;  %v13005_v52 = vld [vmem:[%s13411_s10 + $0x38] sm:$0xff]   ;;  %v13012_v55 = vld [vmem:[%s13411_s10 + $0x48] sm:$0xff]  }
  0x1a   : > { %v812_v31 = vor.u32 %v810_v21, %v808_v25  ;;  %v824_v38 = vrot.slane %v822_v32, 1  ;;  %v832_v43 = vrot.slane %v830_v40, 1  ;;  %v834_v47 = vshrl.u32 %v13004_v33, 16  ;;  %v13007_v56 = vld [vmem:[%s13411_s10 + $0x40] sm:$0xff]   ;;  %v13014_v2 = vld [vmem:[%s13411_s10 + $0x50] sm:$0xff]   ;;  %v13016_v9 = vld [vmem:[%s13411_s10 + $0x58] sm:$0xff]  }
  0x1b   : > { %v801_v27 = vsel %vm789_vm1, %v796_v22, %v800_v17  ;;  %v809_v30 = vsel %vm789_vm1, %v804_v23, %v808_v25  ;;  %v820_v37 = vor.u32 %v818_v29, %v816_v28  ;;  %v842_v49 = vshrl.u32 %v13006_v41, 16  ;;  %v13011_v6 = vld [vmem:[%s13411_s10 + $0x50] sm:$0xff]   ;;  %v13018_v16 = vld [vmem:[%s13411_s10 + $0x60] sm:$0xff]   ;;  %v13013_v17 = vld [vmem:[%s13411_s10 + $0x58] sm:$0xff]  }
  0x1c   : > { %12323 = vmatprep.mubr.msk.bf16.mxu1 %vm387_vm0, %v801_v27  ;;  %v817_v35 = vsel %vm789_vm1, %v812_v31, %v816_v28  ;;  %v828_v42 = vor.u32 %v826_v34, %v824_v38  ;;  %v846_v50 = vshll.u32 %v13008_v45, 16  ;;  %v840_v53 = vrot.slane %v838_v44, 1  ;;  %v13020_v19 = vld [vmem:[%s13411_s10 + $0x68] sm:$0xff]   ;;  %v13015_v21 = vld [vmem:[%s13411_s10 + $0x60] sm:$0xff]   ;;  %v13022_v31 = vld [vmem:[%s13411_s10 + $0x70] sm:$0xff]  }
  0x1d   : > { %12290 = vmatmul.mubr.msk.bf16.gmra.mrb[4].mxu0 %vm387_vm0, %v12997_v10  ;;  %12324 = vmatmul.mubr.msk.bf16.vlgmr.msra.gmra.mrb[0].mxu1 %vm387_vm0, %v809_v30  ;;  %v825_v46 = vsel %vm789_vm1, %v820_v37, %v824_v38  ;;  %v836_v54 = vor.u32 %v834_v47, %v832_v43  ;;  %v854_v59 = vshll.u32 %v13010_v51, 16  ;;  %v850_v61 = vshrl.u32 %v13008_v45, 16  ;;  %v13017_v32 = vld [vmem:[%s13411_s10 + $0x68] sm:$0xff]   ;;  %v13025_v34 = vld [vmem:[%s13411_s10 + $0x78] sm:$0xff]   ;;  %v13027_v47 = vld [vmem:[%s13411_s10 + $0x80] sm:$0xff]  }
  0x1e   : > { %12293 = vmatprep.mubr.msk.bf16.mxu0 %vm387_vm0, %v12999_v18  ;;  %12398 = vmatpush3.bf16.msra.mxu1 %v13023_v3  ;;  %v833_v48 = vsel %vm789_vm1, %v828_v42, %v832_v43  ;;  %v844_v57 = vor.u32 %v842_v49, %v840_v53  ;;  %v848_v58 = vrot.slane %v846_v50, 1  ;;  %v858_v62 = vshrl.u32 %v13010_v51, 16  ;;  %v13009_v3 = vld [vmem:[%s13411_s10 + $0x48] sm:$0xff]   ;;  %v13021_v44 = vld [vmem:[%s13411_s10 + $0x78] sm:$0xff]  }
  0x1f   : > { %12327 = vmatprep.mubr.msk.bf16.mxu1 %vm387_vm0, %v817_v35  ;;  %v841_v60 = vsel %vm789_vm1, %v836_v54, %v840_v53  ;;  %v862_v63 = vshll.u32 %v13012_v55, 16  ;;  %v856_v1 = vrot.slane %v854_v59, 1  ;;  %v870_v10 = vshll.u32 %v13014_v2, 16  ;;  %v13019_v35 = vld [vmem:[%s13411_s10 + $0x70] sm:$0xff]   ;;  %v13028_v50 = vld [vmem:[%s13411_s10 + $0x88] sm:$0xff]  }
  0x20   : > { %v849_v0 = vsel %vm789_vm1, %v844_v57, %v848_v58  ;;  %v852_v5 = vor.u32 %v850_v61, %v848_v58  ;;  %v866_v12 = vshrl.u32 %v13012_v55, 16  ;;  %v874_v14 = vshrl.u32 %v13014_v2, 16  ;;  %v13030_v53 = vld [vmem:[%s13411_s10 + $0x8] sm:$0xff]   ;;  %v13033_v2 = vld [vmem:[%s13411_s10 + $0x10] sm:$0xff]  }
  0x21   : > { %v860_v7 = vor.u32 %v858_v62, %v856_v1  ;;  %v864_v8 = vrot.slane %v862_v63, 1  ;;  %v878_v15 = vshll.u32 %v13016_v9, 16  ;;  %v872_v18 = vrot.slane %v870_v10, 1  ;;  %v13026_v63 = vld [vmem:[%s13411_s10 + $0x88] sm:$0xff]  }
  0x22   : > { %v857_v11 = vsel %vm789_vm1, %v852_v5, %v856_v1  ;;  %v886_v24 = vshll.u32 %v13018_v16, 16  ;;  %v882_v26 = vshrl.u32 %v13016_v9, 16  ;;  %v890_v27 = vshrl.u32 %v13018_v16, 16 }
  0x23   : > { %v865_v13 = vsel %vm789_vm1, %v860_v7, %v864_v8  ;;  %v868_v20 = vor.u32 %v866_v12, %v864_v8  ;;  %v876_v22 = vor.u32 %v874_v14, %v872_v18  ;;  %v880_v23 = vrot.slane %v878_v15, 1  ;;  %v13034_v7 = vld [vmem:[%s13411_s10 + $0x18] sm:$0xff]   ;;  %v13037_v12 = vld [vmem:[%s13411_s10 + $0x10] sm:$0xff]   ;;  %v13036_v14 = vld [vmem:[%s13411_s10 + $0x8] sm:$0xfe]  }
  0x24   : > { %v894_v28 = vshll.u32 %v13020_v19, 16  ;;  %v888_v30 = vrot.slane %v886_v24, 1  ;;  %v902_v38 = vshll.u32 %v13022_v31, 16  ;;  %v898_v40 = vshrl.u32 %v13020_v19, 16  ;;  %v13063_v24 = vld [vmem:[%s16593_s2 + $0x28] sm:$0xff]  }
  0x25   : > { %12294 = vmatmul.mubr.msk.bf16.gmra.mrb[8].mxu0 %vm387_vm0, %v13001_v36  ;;  %12328 = vmatmul.mubr.msk.bf16.gmra.mrb[4].mxu1 %vm387_vm0, %v825_v46  ;;  %v873_v25 = vsel %vm789_vm1, %v868_v20, %v872_v18  ;;  %v881_v29 = vsel %vm789_vm1, %v876_v22, %v880_v23  ;;  %v884_v33 = vor.u32 %v882_v26, %v880_v23  ;;  %v910_v41 = vshll.u32 %v13025_v34, 16  ;;  %v13024_v46 = vld [vmem:[%s13411_s10 + $0x80] sm:$0xff]   ;;  %v13039_v23 = vld [vmem:[%s13411_s10 + $0x28] sm:$0xff]   ;;  %v13038_v26 = vld [vmem:[%s13411_s10 + $0x18] sm:$0xff]  }
  0x26   : > { %12297 = vmatprep.mubr.msk.bf16.mxu0 %vm387_vm0, %v13003_v39  ;;  %12331 = vmatprep.mubr.msk.bf16.mxu1 %vm387_vm0, %v833_v48  ;;  %v892_v36 = vor.u32 %v890_v27, %v888_v30  ;;  %v896_v37 = vrot.slane %v894_v28, 1  ;;  %v906_v43 = vshrl.u32 %v13022_v31, 16  ;;  %v904_v45 = vrot.slane %v902_v38, 1  ;;  %v13035_v18 = vld [vmem:[%s13411_s10 + $0x20] sm:$0xff]   ;;  %v13042_v38 = vld [vmem:[%s13411_s10 + $0x28] sm:$0xff]  }
  0x27   : > { %v889_v39 = vsel %vm789_vm1, %v884_v33, %v888_v30  ;;  %v912_v49 = vrot.slane %v910_v41, 1  ;;  %v918_v54 = vshll.u32 %v13027_v47, 16  ;;  %v922_v58 = vshrl.u32 %v13027_v47, 16  ;;  %12473 = vmatprep.subr.bf16.mxu1 %v13063_v24  ;;  %v13040_v33 = vld [vmem:[%s13411_s10 + $0x30] sm:$0xff]  }
  0x28   : > { %v897_v42 = vsel %vm789_vm1, %v892_v36, %v896_v37  ;;  %v900_v48 = vor.u32 %v898_v40, %v896_v37  ;;  %v908_v51 = vor.u32 %v906_v43, %v904_v45  ;;  %v926_v59 = vshll.u32 %v13028_v50, 16  ;;  %v13043_v36 = vld [vmem:[%s13411_s10 + $0x38] sm:$0xff]   ;;  %v13045_v41 = vld [vmem:[%s13411_s10 + $0x30] sm:$0xff]  }
  0x29   : > { %v1418_v62 = vrot.slane %v13030_v53, 1  ;;  %v930_v8 = vshrl.u32 %v13028_v50, 16  ;;  %v1422_v15 = vrot.slane %v13034_v7, 1  ;;  %v1932_v20 = vrot.slane %v13036_v14, 1  ;;  %v13046_v50 = vld [vmem:[%s13411_s10 + $0x38] sm:$0xff]   ;;  %v13049_v53 = vld [vmem:[%s13411_s10 + $0x40] sm:$0xff]  }
  0x2a   : > { %v905_v55 = vsel %vm789_vm1, %v900_v48, %v904_v45  ;;  %v913_v57 = vsel %vm789_vm1, %v908_v51, %v912_v49  ;;  %v928_v5 = vrot.slane %v926_v59, 1  ;;  %v1424_v27 = vrot.slane %v13035_v18, 1  ;;  %v13044_v45 = vld [vmem:[%s13411_s10 + $0x40] sm:$0xff]   ;;  %v13047_v48 = vld [vmem:[%s13411_s10 + $0x48] sm:$0xff]   ;;  %v13056_v18 = vld [vmem:[%s13411_s10 + $0x70] sm:$0xff]  }
  0x2b   : > { %v1426_v30 = vrot.slane %v13039_v23, 1  ;;  %v1935_v31 = vrot.slane %v13038_v26, 1  ;;  %v1939_v43 = vrot.slane %v13042_v38, 1  ;;  %v1432_v51 = vrot.slane %v13044_v45, 1  ;;  %v13058_v23 = vld [vmem:[%s13411_s10 + $0x68] sm:$0xff]   ;;  %v13061_v26 = vld [vmem:[%s13411_s10 + $0x70] sm:$0xff]  }
  0x2c   : > { %v932_v16 = vor.u32 %v930_v8, %v928_v5  ;;  %v13065_v38 = vld [vmem:[%s13411_s10 + $0x90] ss:$0 sps:$4 sm:$0x11]  }
  0x2d   : > { %12298 = vmatmul.mubr.msk.bf16.gmra.mrb[12].mxu0 %vm387_vm0, %v13005_v52  ;;  %12332 = vmatmul.mubr.msk.bf16.gmra.mrb[8].mxu1 %vm387_vm0, %v841_v60  ;;  %v13029_v52 = vld [vmem:[%s13411_s10] sm:$0xfe]   ;;  %v13032_v60 = vld [vmem:[%s13411_s10 + $0x90] ss:$0 sps:$4 sm:$0x11]  }
  0x2e   : > { %12301 = vmatprep.mubr.msk.bf16.mxu0 %vm387_vm0, %v13007_v56  ;;  %12335 = vmatprep.mubr.msk.bf16.mxu1 %vm387_vm0, %v849_v0  ;;  %v914_v56 = vshrl.u32 %v13025_v34, 16  ;;  %v1417_v61 = vrot.slane %v13029_v52, 1  ;;  %v920_v0 = vrot.slane %v918_v54, 1  ;;  %v934_v9 = vshll.u32 %v13032_v60, 16  ;;  %v13051_v60 = vld [vmem:[%s13411_s10 + $0x58] sm:$0xff]  }
  0x2f   : > { %v1434_v54 = vrot.slane %v13047_v48, 1 }
  0x30   : > { %v916_v1 = vor.u32 %v914_v56, %v912_v49 }
  0x31   : > { %v1435_v59 = vsel %vm1416_vm2, %v1432_v51, %v1434_v54 }
  0x32   : > { %v921_v10 = vsel %vm789_vm1, %v916_v1, %v920_v0  ;;  %v13053_v1 = vld [vmem:[%s13411_s10 + $0x50] sm:$0xff]  }
  0x33   : > { %v1949_v7 = vrot.slane %v13053_v1, 1  ;;  %v13072_v1 = vld [vmem:[%s13411_s10 + $0x90] sm:$0xff]  }
  0x35   : > { %12302 = vmatmul.mubr.msk.bf16.gmra.mrb[16].mxu0 %vm387_vm0, %v13009_v3  ;;  %12336 = vmatmul.mubr.msk.bf16.gmra.mrb[12].mxu1 %vm387_vm0, %v857_v11  ;;  %v924_v3 = vor.u32 %v922_v58, %v920_v0  ;;  %v1420_v11 = vrot.slane %v13033_v2, 1  ;;  %v1945_v58 = vrot.slane %v13049_v53, 1  ;;  %v1438_v2 = vrot.slane %v13051_v60, 1 }
  0x36   : > { %12305 = vmatprep.mubr.msk.bf16.mxu0 %vm387_vm0, %v13011_v6  ;;  %12339 = vmatprep.mubr.msk.bf16.mxu1 %vm387_vm0, %v865_v13  ;;  %v1419_v6 = vsel %vm1416_vm2, %v1417_v61, %v1418_v62 }
  0x37   : > { %v929_v13 = vsel %vm789_vm1, %v924_v3, %v928_v5  ;;  %v1421_v19 = vsel %vm1416_vm2, %v1418_v62, %v1420_v11  ;;  %v1423_v22 = vsel %vm1416_vm2, %v1420_v11, %v1422_v15  ;;  %v13050_v62 = vld [vmem:[%s13411_s10 + $0x48] sm:$0xff]   ;;  %v13052_v5 = vld [vmem:[%s13411_s10 + $0x60] sm:$0xff]  }
  0x38   : > { %v1947_v3 = vrot.slane %v13050_v62, 1  ;;  %v1440_v11 = vrot.slane %v13052_v5, 1 }
  0x3a   : > { %v1950_v14 = vsel %vm1416_vm2, %v1947_v3, %v1949_v7 }
  0x3d   : > { %12306 = vmatmul.mubr.msk.bf16.gmra.mrb[20].mxu0 %vm387_vm0, %v13013_v17  ;;  %12340 = vmatmul.mubr.msk.bf16.gmra.mrb[16].mxu1 %vm387_vm0, %v873_v25  ;;  %v936_v17 = vrot.slane %v934_v9, 1  ;;  %v13055_v9 = vld [vmem:[%s13411_s10 + $0x68] sm:$0xff]  }
  0x3e   : > { %12309 = vmatprep.mubr.msk.bf16.mxu0 %vm387_vm0, %v13015_v21  ;;  %12343 = vmatprep.mubr.msk.bf16.mxu1 %vm387_vm0, %v881_v29  ;;  %v1933_v21 = vrot.slane %v13037_v12, 1  ;;  %v13041_v29 = vld [vmem:[%s13411_s10 + $0x20] sm:$0xff]   ;;  %v13054_v12 = vld [vmem:[%s13411_s10 + $0x58] sm:$0xff]  }
  0x3f   : > { %v937_v25 = vsel %vm789_vm1, %v932_v16, %v936_v17  ;;  %v1937_v34 = vrot.slane %v13041_v29, 1  ;;  %v1951_v16 = vrot.slane %v13054_v12, 1  ;;  %v1441_v17 = vsel %vm1416_vm2, %v1438_v2, %v1440_v11 }
  0x40   : > { %v1934_v28 = vsel %vm1416_vm2, %v1932_v20, %v1933_v21  ;;  %v1936_v37 = vsel %vm1416_vm2, %v1933_v21, %v1935_v31  ;;  %v13059_v20 = vld [vmem:[%s13411_s10 + $0x78] sm:$0xff]   ;;  %v1955_v29 = vrot.slane %v13058_v23, 1  ;;  %v1965_v12 = vrot.slane %v13072_v1, 1  ;;  %v13085_v1 = vld [vmem:[%s13411_s10 + $0x30] sm:$0xff]  }
  0x41   : > { %v1938_v40 = vsel %vm1416_vm2, %v1935_v31, %v1937_v34  ;;  %v1940_v49 = vsel %vm1416_vm2, %v1937_v34, %v1939_v43  ;;  %v1957_v31 = vrot.slane %v13061_v26, 1 }
  0x45   : > { %12310 = vmatmul.mubr.msk.bf16.gmra.mrb[24].mxu0 %vm387_vm0, %v13017_v32  ;;  %12344 = vmatmul.mubr.msk.bf16.gmra.mrb[20].mxu1 %vm387_vm0, %v889_v39  ;;  %v13535_v32 = vld [vmem:[%s16593_s2 + $0x30] sm:$0xff]   ;;  %v1428_v39 = vrot.slane %v13040_v33, 1 }
  0x46   : > { %12313 = vmatprep.mubr.msk.bf16.mxu0 %vm387_vm0, %v13019_v35  ;;  %12347 = vmatprep.mubr.msk.bf16.mxu1 %vm387_vm0, %v897_v42  ;;  %v1427_v35 = vsel %vm1416_vm2, %v1424_v27, %v1426_v30  ;;  %v1430_v42 = vrot.slane %v13043_v36, 1  ;;  %v13069_v33 = vld [vmem:[%s13411_s10 + $0x10] sm:$0xff]  }
  0x47   : > { %v2460_v45 = vshll.u32 %v13069_v33, 16 }
  0x48   : > { %v1431_v47 = vsel %vm1416_vm2, %v1428_v39, %v1430_v42  ;;  %v1433_v56 = vsel %vm1416_vm2, %v1430_v42, %v1432_v51  ;;  %v13071_v51 = vld [vmem:[%s13411_s10 + $0x18] sm:$0xff]  }
  0x49   : > { %v2469_v62 = vshll.u32 %v13071_v51, 16 }
  0x4d   : > { %12314 = vmatmul.mubr.msk.bf16.gmra.mrb[28].mxu0 %vm387_vm0, %v13021_v44  ;;  %12348 = vmatmul.mubr.msk.bf16.gmra.mrb[24].mxu1 %vm387_vm0, %v905_v55  ;;  %v1429_v44 = vsel %vm1416_vm2, %v1426_v30, %v1428_v39  ;;  %v1943_v55 = vrot.slane %v13046_v50, 1  ;;  %v13609_v39 = vld [vmem:[%s16593_s2 + $0x38] sm:$0xff]   ;;  %v13067_v50 = vld [vmem:[%s13411_s10 + $0x88] sm:$0xff]  }
  0x4e   : > { %12317 = vmatprep.mubr.msk.bf16.mxu0 %vm387_vm0, %v13024_v46  ;;  %12351 = vmatprep.mubr.msk.bf16.mxu1 %vm387_vm0, %v913_v57  ;;  %v1941_v46 = vrot.slane %v13045_v41, 1  ;;  %v13048_v57 = vld [vmem:[%s13411_s10 + $0x50] sm:$0xff]   ;;  %v1958_v41 = vsel %vm1416_vm2, %v1955_v29, %v1957_v31 }
  0x4f   : > { %v1946_v0 = vsel %vm1416_vm2, %v1943_v55, %v1945_v58 }
  0x50   : > { %v1942_v52 = vsel %vm1416_vm2, %v1939_v43, %v1941_v46  ;;  %v1944_v61 = vsel %vm1416_vm2, %v1941_v46, %v1943_v55  ;;  %v13066_v43 = vld [vmem:[%s13411_s10 + $0x80] sm:$0xff]  }
  0x51   : > { %v1961_v53 = vrot.slane %v13066_v43, 1 }
  0x55   : > { %12318 = vmatmul.mubr.msk.bf16.gmra.mrb[32].mxu0 %vm387_vm0, %v13026_v63  ;;  %12352 = vmatmul.mubr.msk.bf16.gmra.mrb[28].mxu1 %vm387_vm0, %v921_v10  ;;  %v1436_v63 = vrot.slane %v13048_v57, 1  ;;  %v1948_v10 = vsel %vm1416_vm2, %v1945_v58, %v1947_v3  ;;  %v2462_v58 = vrot.slane %v2460_v45, 2 }
  0x56   : > { %12361 = vmatprep.mubr.msk.bf16.mxu0 %vm387_vm0, %v1419_v6  ;;  %12355 = vmatprep.mubr.msk.bf16.mxu1 %vm387_vm0, %v929_v13  ;;  %v13057_v13 = vld [vmem:[%s13411_s10 + $0x60] sm:$0xff]  }
  0x57   : > { %v1437_v6 = vsel %vm1416_vm2, %v1434_v54, %v1436_v63  ;;  %v1439_v8 = vsel %vm1416_vm2, %v1436_v63, %v1438_v2 }
  0x5d   : > { %12362 = vmatmul.mubr.msk.bf16.vlgmr.msra.gmra.mrb[36].mxu0 %vm387_vm0, %v1421_v19  ;;  %12356 = vmatmul.mubr.msk.bf16.gmra.mrb[32].mxu1 %vm387_vm0, %v937_v25  ;;  %v1953_v19 = vrot.slane %v13057_v13, 1  ;;  %v13079_v13 = vld [vmem:[%s13411_s10 + $0x30] sm:$0xff]  }
  0x5e   : > { %12436 = vmatpush3.bf16.msra.mxu0 %v13416_v4  ;;  %12365 = vmatprep.mubr.msk.bf16.mxu0 %vm387_vm0, %v1423_v22  ;;  %v1425_v4 = vsel %vm1416_vm2, %v1422_v15, %v1424_v27  ;;  %v1442_v15 = vrot.slane %v13055_v9, 1  ;;  %v1952_v22 = vsel %vm1416_vm2, %v1949_v7, %v1951_v16  ;;  %v1446_v27 = vrot.slane %v13059_v20, 1  ;;  %v13075_v7 = vld [vmem:[%s13411_s10 + $0x28] sm:$0xff]  }
  0x5f   : > { %12399 = vmatprep.mubr.msk.bf16.mxu1 %vm387_vm0, %v1934_v28  ;;  %12511 = vmatprep.subr.bf16.mxu0 %v13535_v32  ;;  %v1954_v25 = vsel %vm1416_vm2, %v1951_v16, %v1953_v19  ;;  %v13060_v28 = vld [vmem:[%s13411_s10 + $0x80] sm:$0xff]   ;;  %v2471_v9 = vrot.slane %v2469_v62, 2 }
  0x60   : > { %v1443_v21 = vsel %vm1416_vm2, %v1440_v11, %v1442_v15  ;;  %v1448_v36 = vrot.slane %v13060_v28, 1  ;;  %v2496_v28 = vshll.u32 %v13079_v13, 16 }
  0x65   : > { %12366 = vmatmul.mubr.msk.bf16.gmra.mrb[40].mxu0 %vm387_vm0, %v1425_v4  ;;  %12400 = vmatmul.mubr.msk.bf16.vlgmr.msra.gmra.mrb[36].mxu1 %vm387_vm0, %v1936_v37  ;;  %v13064_v4 = vld [vmem:[%s13411_s10 + $0x88] sm:$0xff]   ;;  %v13062_v37 = vld [vmem:[%s13411_s10 + $0x78] sm:$0xff]  }
  0x66   : > { %12369 = vmatprep.mubr.msk.bf16.mxu0 %vm387_vm0, %v1427_v35  ;;  %12403 = vmatprep.mubr.msk.bf16.mxu1 %vm387_vm0, %v1938_v40  ;;  %v13068_v35 = vld [vmem:[%s13411_s10 + $0x8] sm:$0xfe]   ;;  %v1956_v40 = vsel %vm1416_vm2, %v1953_v19, %v1955_v29  ;;  %v1450_v42 = vrot.slane %v13064_v4, 1  ;;  %v1959_v48 = vrot.slane %v13062_v37, 1  ;;  %v13080_v4 = vld [vmem:[%s13411_s10 + $0x38] sm:$0xff]   ;;  %v2498_v37 = vrot.slane %v2496_v28, 2 }
  0x67   : > { %12474 = vmatpush3.bf16.msra.mxu1 %v13063_v24  ;;  %v1444_v24 = vrot.slane %v13056_v18, 1  ;;  %v2449_v46 = vshrl.u32 %v13068_v35, 16  ;;  %v2487_v18 = vshll.u32 %v13075_v7, 16  ;;  %v13076_v19 = vld [vmem:[%s13411_s10 + $0x8] sm:$0xfc]   ;;  %v2502_v45 = vshrl.u32 %v13080_v4, 16 }
  0x68   : > { %12549 = vmatprep.subr.bf16.mxu1 %v13609_v39  ;;  %v1451_v55 = vsel %vm1416_vm2, %v1448_v36, %v1450_v42  ;;  %v1960_v60 = vsel %vm1416_vm2, %v1957_v31, %v1959_v48  ;;  %v1962_v63 = vsel %vm1416_vm2, %v1959_v48, %v1961_v53 }
  0x69   : > { %v1445_v30 = vsel %vm1416_vm2, %v1442_v15, %v1444_v24  ;;  %v1447_v34 = vsel %vm1416_vm2, %v1444_v24, %v1446_v27  ;;  %v2493_v24 = vshrl.u32 %v13079_v13, 16  ;;  %v2489_v29 = vrot.slane %v2487_v18, 2  ;;  %v13086_v18 = vld [vmem:[%s13411_s10 + $0x38] sm:$0xff]  }
  0x6d   : > { %12370 = vmatmul.mubr.msk.bf16.gmra.mrb[44].mxu0 %vm387_vm0, %v1429_v44  ;;  %12404 = vmatmul.mubr.msk.bf16.gmra.mrb[40].mxu1 %vm387_vm0, %v1940_v49  ;;  %v2457_v44 = vshrl.u32 %v13069_v33, 16  ;;  %v1452_v49 = vrot.slane %v13065_v38, 1  ;;  %v13651_v38 = vld [vmem:[%s16593_s2 + $0x40] sm:$0xff]  }
  0x6e   : > { %12373 = vmatprep.mubr.msk.bf16.mxu0 %vm387_vm0, %v1431_v47  ;;  %12407 = vmatprep.mubr.msk.bf16.mxu1 %vm387_vm0, %v1942_v52  ;;  %v2452_v47 = vshll.u32 %v13068_v35, 16  ;;  %v1449_v52 = vsel %vm1416_vm2, %v1446_v27, %v1448_v36  ;;  %v13083_v35 = vld [vmem:[%s13411_s10 + $0x40] sm:$0xff]  }
  0x6f   : > { %v2459_v54 = vrot.slane %v2457_v44, 1  ;;  %v1453_v11 = vsel %vm1416_vm2, %v1450_v42, %v1452_v49  ;;  %v13081_v42 = vld [vmem:[%s13411_s10 + $0x20] sm:$0xff]   ;;  %v2511_v48 = vshrl.u32 %v13083_v35, 16  ;;  %v2514_v49 = vshll.u32 %v13083_v35, 16  ;;  %v13090_v35 = vld [vmem:[%s13411_s10 + $0x48] sm:$0xff]  }
  0x70   : > { %v2454_v57 = vrot.slane %v2452_v47, 2 }
  0x71   : > { %v2463_v3 = vor.u32 %v2462_v58, %v2459_v54  ;;  %v13087_v58 = vld [vmem:[%s13411_s10 + $0x50] sm:$0xff]  }
  0x75   : > { %12374 = vmatmul.mubr.msk.bf16.gmra.mrb[48].mxu0 %vm387_vm0, %v1433_v56  ;;  %12408 = vmatmul.mubr.msk.bf16.gmra.mrb[44].mxu1 %vm387_vm0, %v1944_v61  ;;  %v2451_v56 = vrot.slane %v2449_v46, 1  ;;  %v2466_v61 = vshrl.u32 %v13071_v51, 16  ;;  %v2505_v46 = vshll.u32 %v13080_v4, 16  ;;  %v3102_v51 = vrot.slane %v13081_v42, 2 }
  0x76   : > { %12377 = vmatprep.mubr.msk.bf16.mxu0 %vm387_vm0, %v1435_v59  ;;  %12411 = vmatprep.mubr.msk.bf16.mxu1 %vm387_vm0, %v1946_v0  ;;  %v13074_v59 = vld [vmem:[%s13411_s10 + $0x20] sm:$0xff]   ;;  %v1963_v0 = vrot.slane %v13067_v50, 1  ;;  %v13084_v50 = vld [vmem:[%s13411_s10 + $0x48] sm:$0xff]  }
  0x77   : > { %v2455_v2 = vor.u32 %v2454_v57, %v2451_v56  ;;  %v2475_v5 = vshrl.u32 %v13074_v59, 16  ;;  %v2507_v54 = vrot.slane %v2505_v46, 2  ;;  %v2513_v56 = vrot.slane %v2511_v48, 1 }
  0x78   : > { %v1964_v20 = vsel %vm1416_vm2, %v1961_v53, %v1963_v0  ;;  %v1966_v23 = vsel %vm1416_vm2, %v1963_v0, %v1965_v12  ;;  %v2504_v53 = vrot.slane %v2502_v45, 1  ;;  %v2516_v57 = vrot.slane %v2514_v49, 2 }
  0x79   : > { %v2477_v15 = vrot.slane %v2475_v5, 1  ;;  %v2532_v5 = vshll.u32 %v13087_v58, 16 }
  0x7d   : > { %12378 = vmatmul.mubr.msk.bf16.gmra.mrb[52].mxu0 %vm387_vm0, %v1437_v6  ;;  %12412 = vmatmul.mubr.msk.bf16.gmra.mrb[48].mxu1 %vm387_vm0, %v1948_v10  ;;  %v2478_v6 = vshll.u32 %v13074_v59, 16  ;;  %v13073_v10 = vld [vmem:[%s13411_s10 + $0x98] ss:$0 sps:$4 sm:$0x11]   ;;  %v13082_v59 = vld [vmem:[%s13411_s10 + $0x28] sm:$0xff]  }
  0x7e   : > { %12381 = vmatprep.mubr.msk.bf16.mxu0 %vm387_vm0, %v1439_v8  ;;  %12415 = vmatprep.mubr.msk.bf16.mxu1 %vm387_vm0, %v1950_v14  ;;  %v2468_v8 = vrot.slane %v2466_v61, 1  ;;  %v2464_v14 = vsel %vm2447_vm3, %v2455_v2, %v2463_v3  ;;  %v2523_v61 = vshll.u32 %v13084_v50, 16  ;;  %v2517_v2 = vor.u32 %v2516_v57, %v2513_v56  ;;  %v13094_v56 = vld [vmem:[%s13411_s10 + $0x58] sm:$0xff]  }
  0x7f   : > { %v2480_v16 = vrot.slane %v2478_v6, 2  ;;  %v3104_v6 = vrot.slane %v13082_v59, 2 }
  0x81   : > { %v2481_v26 = vor.u32 %v2480_v16, %v2477_v15  ;;  %v2534_v15 = vrot.slane %v2532_v5, 2  ;;  %v3105_v16 = vsel %vm3096_vm4, %v3102_v51, %v3104_v6 }
  0x85   : > { %12382 = vmatmul.mubr.msk.bf16.gmra.mrb[56].mxu0 %vm387_vm0, %v1441_v17  ;;  %12416 = vmatmul.mubr.msk.bf16.gmra.mrb[52].mxu1 %vm387_vm0, %v1952_v22  ;;  %v2484_v17 = vshrl.u32 %v13075_v7, 16  ;;  %v2472_v22 = vor.u32 %v2471_v9, %v2468_v8  ;;  %v2525_v8 = vrot.slane %v2523_v61, 2  ;;  %v13088_v9 = vld [vmem:[%s13411_s10 + $0x58] sm:$0xff]   ;;  %v13097_v61 = vld [vmem:[%s13411_s10 + $0x60] sm:$0xff]  }
  0x86   : > { %12385 = vmatprep.mubr.msk.bf16.mxu0 %vm387_vm0, %v1443_v21  ;;  %12419 = vmatprep.mubr.msk.bf16.mxu1 %vm387_vm0, %v1954_v25  ;;  %v13077_v21 = vld [vmem:[%s13411_s10 + $0x10] sm:$0xff]   ;;  %v1967_v25 = vrot.slane %v13073_v10, 1 }
  0x87   : > { %v2486_v27 = vrot.slane %v2484_v17, 1  ;;  %v3098_v31 = vrot.slane %v13077_v21, 2  ;;  %v2473_v33 = vsel %vm2447_vm3, %v2463_v3, %v2472_v22  ;;  %v2482_v36 = vsel %vm2447_vm3, %v2472_v22, %v2481_v26  ;;  %v13089_v21 = vld [vmem:[%s13411_s10 + $0x40] sm:$0xff]  }
  0x88   : > { %v2529_v3 = vshrl.u32 %v13087_v58, 16 }
  0x89   : > { %v2490_v43 = vor.u32 %v2489_v29, %v2486_v27 }
  0x8d   : > { %12386 = vmatmul.mubr.msk.bf16.gmra.mrb[60].mxu0 %vm387_vm0, %v1445_v30  ;;  %12420 = vmatmul.mubr.msk.bf16.gmra.mrb[56].mxu1 %vm387_vm0, %v1956_v40  ;;  %v3097_v30 = vrot.slane %v13076_v19, 2  ;;  %v13078_v40 = vld [vmem:[%s13411_s10 + $0x18] sm:$0xff]   ;;  %v2538_v19 = vshrl.u32 %v13088_v9, 16 }
  0x8e   : > { %12389 = vmatprep.mubr.msk.bf16.mxu0 %vm387_vm0, %v1447_v34  ;;  %12423 = vmatprep.mubr.msk.bf16.mxu1 %vm387_vm0, %v1958_v41  ;;  %v2495_v34 = vrot.slane %v2493_v24, 1  ;;  %v1968_v41 = vsel %vm1416_vm2, %v1965_v12, %v1967_v25  ;;  %v13091_v12 = vld [vmem:[%s13411_s10 + $0x60] sm:$0xff]   ;;  %v13092_v25 = vld [vmem:[%s13411_s10 + $0x68] sm:$0xff]  }
  0x8f   : > { %v3099_v44 = vsel %vm3096_vm4, %v3097_v30, %v3098_v31  ;;  %v2547_v22 = vshrl.u32 %v13091_v12, 16  ;;  %v2540_v28 = vrot.slane %v2538_v19, 1  ;;  %v3110_v30 = vrot.slane %v13089_v21, 2 }
  0x90   : > { %v2499_v47 = vor.u32 %v2498_v37, %v2495_v34  ;;  %v13095_v34 = vld [vmem:[%s13411_s10 + $0x70] sm:$0xff]  }
  0x91   : > { %v2549_v4 = vrot.slane %v2547_v22, 1  ;;  %v2565_v45 = vshrl.u32 %v13095_v34, 16  ;;  %v2568_v46 = vshll.u32 %v13095_v34, 16  ;;  %v13105_v22 = vld [vmem:[%s13411_s10 + $0x98] ss:$0 sps:$4 sm:$0x33]  }
  0x92   : > { %v16600_v34 = vmov 0 }
  0x93   : > { %v16601_v34 = vsel %vm13735_vm8, 4294967295, %v16600_v34 }
  0x94   : > { %16602 = vst [vmem:[#allocation4_spill] sm:$0xff] %v16601_v34 }
  0x95   : > { %12390 = vmatmul.mubr.msk.bf16.gmra.mrb[64].mxu0 %vm387_vm0, %v1449_v52  ;;  %12424 = vmatmul.mubr.msk.bf16.gmra.mrb[60].mxu1 %vm387_vm0, %v1960_v60  ;;  %v2491_v52 = vsel %vm2447_vm3, %v2481_v26, %v2490_v43  ;;  %v2520_v60 = vshrl.u32 %v13084_v50, 16  ;;  %v3108_v26 = vrot.slane %v13086_v18, 2  ;;  %v13096_v50 = vld [vmem:[%s13411_s10 + $0x78] sm:$0xff]  }
  0x96   : > { %12393 = vmatprep.mubr.msk.bf16.mxu0 %vm387_vm0, %v1451_v55  ;;  %12427 = vmatprep.mubr.msk.bf16.mxu1 %vm387_vm0, %v1962_v63  ;;  %v2500_v55 = vsel %vm2447_vm3, %v2490_v43, %v2499_v47  ;;  %v2508_v63 = vor.u32 %v2507_v54, %v2504_v53  ;;  %v13093_v43 = vld [vmem:[%s13411_s10 + $0x50] sm:$0xff]   ;;  %v2567_v54 = vrot.slane %v2565_v45, 1  ;;  %v2574_v59 = vshrl.u32 %v13096_v50, 16 }
  0x97   : > { %v2522_v7 = vrot.slane %v2520_v60, 1  ;;  %v3111_v42 = vsel %vm3096_vm4, %v3108_v26, %v3110_v30  ;;  %v2577_v60 = vshll.u32 %v13096_v50, 16  ;;  %v13108_v45 = vld [vmem:[%s13411_s10 + $0x10] sm:$0xfc]  }
  0x98   : > { %v2509_v10 = vsel %vm2447_vm3, %v2499_v47, %v2508_v63  ;;  %v2518_v13 = vsel %vm2447_vm3, %v2508_v63, %v2517_v2  ;;  %v3112_v47 = vrot.slane %v13090_v35, 2  ;;  %v5550_v35 = vld [vmem:[#allocation3 + $0x8] sm:$0x3] }
  0x99   : > { %v2526_v17 = vor.u32 %v2525_v8, %v2522_v7  ;;  %v13104_v7 = vld [vmem:[%s13411_s10 + $0x90] sm:$0xff]   ;;  %v2576_v8 = vrot.slane %v2574_v59, 1  ;;  %v13117_v59 = vld [vmem:[%s13411_s10 + $0x18] sm:$0xff]  }
  0x9a   : > { %v3113_v57 = vsel %vm3096_vm4, %v3110_v30, %v3112_v47  ;;  %v2601_v18 = vshrl.u32 %v13104_v7, 16  ;;  %v2604_v19 = vshll.u32 %v13104_v7, 16  ;;  %v13111_v7 = vld [vmem:[%s13411_s10 + $0x20] sm:$0xff]  }
  0x9b   : > { %v2527_v27 = vsel %vm2447_vm3, %v2517_v2, %v2526_v17  ;;  %v13100_v2 = vld [vmem:[%s13411_s10 + $0x88] sm:$0xff]  }
  0x9c   : > { %v2606_v30 = vrot.slane %v2604_v19, 2 }
  0x9d   : > { %12394 = vmatmul.mubr.msk.bf16.gmra.mrb[68].mxu0 %vm387_vm0, %v1453_v11  ;;  %12428 = vmatmul.mubr.msk.bf16.gmra.mrb[64].mxu1 %vm387_vm0, %v1964_v20  ;;  %v3106_v11 = vrot.slane %v13085_v1, 2  ;;  %v2541_v20 = vshll.u32 %v13088_v9, 16  ;;  %v2579_v9 = vrot.slane %v2577_v60, 2  ;;  %v5277_v60 = vld [vmem:[%s16592_s1 + $0x18] sm:$0xff] }
  0x9e   : > { %12437 = vmatprep.mubr.msk.bf16.mxu0 %vm387_vm0, %v2464_v14  ;;  %12431 = vmatprep.mubr.msk.bf16.mxu1 %vm387_vm0, %v1966_v23  ;;  %v2531_v14 = vrot.slane %v2529_v3, 1  ;;  %v2550_v23 = vshll.u32 %v13091_v12, 16  ;;  %v3116_v3 = vrot.slane %v13094_v56, 2  ;;  %v13769_v56 = vld [vmem:[%s13411_s10 + $0x90] sm:$0xff]  }
  0x9f   : > { %v2543_v29 = vrot.slane %v2541_v20, 2  ;;  %v3109_v37 = vsel %vm3096_vm4, %v3106_v11, %v3108_v26 }
  0xa0   : > { %v2535_v24 = vor.u32 %v2534_v15, %v2531_v14  ;;  %v2592_v14 = vshrl.u32 %v13100_v2, 16  ;;  %v2595_v15 = vshll.u32 %v13100_v2, 16  ;;  %v5279_v2 = vld [vmem:[%s16592_s1 + $0x28] sm:$0xff] }
  0xa2   : > { %v2597_v26 = vrot.slane %v2595_v15, 2  ;;  %v5281_v15 = vld [vmem:[%s16592_s1 + $0x38] sm:$0xff] }
  0xa5   : > { %12438 = vmatmul.mubr.msk.bf16.vlgmr.msra.gmra.mrb[72].mxu0 %vm387_vm0, %v2473_v33  ;;  %12432 = vmatmul.mubr.msk.bf16.gmra.mrb[68].mxu1 %vm387_vm0, %v1968_v41  ;;  %v2552_v33 = vrot.slane %v2550_v23, 2  ;;  %v2544_v41 = vor.u32 %v2543_v29, %v2540_v28  ;;  %v2603_v29 = vrot.slane %v2601_v18, 1  ;;  %v3615_v18 = vrot.slane %v13111_v7, 2 }
  0xa6   : > { %12512 = vmatpush3.bf16.msra.mxu0 %v13535_v32  ;;  %12441 = vmatprep.mubr.msk.bf16.mxu0 %vm387_vm0, %v2482_v36  ;;  %v3100_v32 = vrot.slane %v13078_v40, 2  ;;  %v2556_v36 = vshrl.u32 %v13092_v25, 16  ;;  %v2559_v40 = vshll.u32 %v13092_v25, 16  ;;  %v2594_v25 = vrot.slane %v2592_v14, 1  ;;  %v13797_v14 = vld [vmem:[%s13411_s10 + $0x28] sm:$0xff]  }
  0xa7   : > { %12587 = vmatprep.subr.bf16.mxu0 %v13651_v38  ;;  %12475 = vmatprep.mubr.msk.bf16.mxu1 %vm387_vm0, %v3099_v44  ;;  %v2553_v44 = vor.u32 %v2552_v33, %v2549_v4  ;;  %v2610_v4 = vshrl.u32 %v13105_v22, 16  ;;  %v13732_v33 = vld [vmem:[%s13411_s10 + $0x80] sm:$0xff]  }
  0xa8   : > { %v3101_v62 = vsel %vm3096_vm4, %v3098_v31, %v3100_v32  ;;  %v3103_v0 = vsel %vm3096_vm4, %v3100_v32, %v3102_v51  ;;  %v2536_v31 = vsel %vm2447_vm3, %v2526_v17, %v2535_v24  ;;  %v2558_v48 = vrot.slane %v2556_v36, 1 }
  0xa9   : > { %v2561_v49 = vrot.slane %v2559_v40, 2  ;;  %v2545_v32 = vsel %vm2447_vm3, %v2535_v24, %v2544_v41  ;;  %v3114_v51 = vrot.slane %v13093_v43, 2  ;;  %v2554_v53 = vsel %vm2447_vm3, %v2544_v41, %v2553_v44 }
  0xaa   : > { %v13349_v36 = vmov 0   ;;  %v2613_v41 = vshll.u32 %v13105_v22, 16  ;;  %v2598_v43 = vor.u32 %v2597_v26, %v2594_v25  ;;  %v13121_v25 = vld [vmem:[%s13411_s10 + $0x28] sm:$0xff]   ;;  %v3617_v26 = vrot.slane %v13797_v14, 2 }
  0xab   : > { %v2562_v58 = vor.u32 %v2561_v49, %v2558_v48  ;;  %v3117_v17 = vsel %vm3096_vm4, %v3114_v51, %v3116_v3  ;;  %12987 = vset.pattern.permute.xlu0 %v13349_v36  ;;  %5545 = vst.msk [vmem:[#allocation3] sm:$0xf] %vm5544_vm5, %v13349_v36  ;;  %5546 = vst.msk [vmem:[#allocation3 + $0x4] sm:$0xf] %vm5544_vm5, %v13349_v36  ;;  %12988 = vset.pattern.permute.xlu1 %v13349_v36  ;;  %v5276_v48 = vld [vmem:[%s16592_s1 + $0x10] sm:$0xff]  ;;  %v5275_v49 = vld [vmem:[%s16592_s1 + $0x8] sm:$0xff] }
  0xac   : > { %6088 = vst.msk [vmem:[#allocation3 + $0x9c] sm:$0xf] %vm5544_vm5, %v13349_v36  ;;  %6089 = vst.msk [vmem:[#allocation3 + $0xa0] sm:$0xf] %vm5544_vm5, %v13349_v36  ;;  %5322 = vperm.xlu1 %12988, %v5276_v48   ;;  %v5286_v48 = vld [vmem:[%s16592_s1 + $0x60] sm:$0xff] }
  0xad   : > { %12442 = vmatmul.mubr.msk.bf16.gmra.mrb[76].mxu0 %vm387_vm0, %v2491_v52  ;;  %12476 = vmatmul.mubr.msk.bf16.vlgmr.msra.gmra.mrb[72].mxu1 %vm387_vm0, %v3101_v62  ;;  %v13099_v52 = vld [vmem:[%s13411_s10 + $0x80] sm:$0xff]   ;;  %v3115_v62 = vsel %vm3096_vm4, %v3112_v47, %v3114_v51  ;;  %v2563_v5 = vsel %vm2447_vm3, %v2553_v44, %v2562_v58  ;;  %v2607_v47 = vor.u32 %v2606_v30, %v2603_v29  ;;  %v2615_v51 = vrot.slane %v2613_v41, 2  ;;  %v5284_v29 = vld [vmem:[%s16592_s1 + $0x50] sm:$0xff] }
  0xae   : > { %12445 = vmatprep.mubr.msk.bf16.mxu0 %vm387_vm0, %v2500_v55  ;;  %12479 = vmatprep.mubr.msk.bf16.mxu1 %vm387_vm0, %v3103_v0  ;;  %v2570_v55 = vrot.slane %v2568_v46, 2  ;;  %v2583_v63 = vshrl.u32 %v13099_v52, 16  ;;  %v2586_v0 = vshll.u32 %v13099_v52, 16  ;;  %v13754_v46 = vld [vmem:[%s13411_s10 + $0x18] sm:$0xff]  }
  0xaf   : > { %12550 = vmatpush3.bf16.msra.mxu1 %v13609_v39  ;;  %v3107_v39 = vsel %vm3096_vm4, %v3104_v6, %v3106_v11  ;;  %v3118_v6 = vrot.slane %v13097_v61, 2  ;;  %v5278_v61 = vld [vmem:[%s16592_s1 + $0x20] sm:$0xff] }
  0xb0   : > { %v2571_v1 = vor.u32 %v2570_v55, %v2567_v54  ;;  %v2588_v11 = vrot.slane %v2586_v0, 2  ;;  %v2608_v54 = vsel %vm2447_vm3, %v2598_v43, %v2607_v47  ;;  %v13107_v55 = vld [vmem:[%s13411_s10 + $0x88] sm:$0xff]   ;;  %v13116_v0 = vld [vmem:[%s13411_s10 + $0x10] sm:$0xfc]   ;;  %5327 = vperm.xlu1 %12988, %v5277_v60  }
  0xb1   : > { %v3119_v20 = vsel %vm3096_vm4, %v3116_v3, %v3118_v6  ;;  %v5280_v3 = vld [vmem:[%s16592_s1 + $0x30] sm:$0xff] }
  0xb2   : > { %v2572_v12 = vsel %vm2447_vm3, %v2562_v58, %v2571_v1  ;;  %v3613_v58 = vrot.slane %v13754_v46, 2  ;;  %v13830_v46 = vld [vmem:[%s13411_s10 + $0x38] sm:$0xff]   ;;  %v5288_v60 = vld [vmem:[%s16592_s1 + $0x70] sm:$0xff] }
  0xb4   : > { %5337 = vperm.xlu1 %12988, %v5279_v2  }
  0xb5   : > { %12446 = vmatmul.mubr.msk.bf16.gmra.mrb[80].mxu0 %vm387_vm0, %v2509_v10  ;;  %12480 = vmatmul.mubr.msk.bf16.gmra.mrb[76].mxu1 %vm387_vm0, %v3105_v16  ;;  %v2585_v10 = vrot.slane %v2583_v63, 1  ;;  %v13718_v16 = vld [vmem:[%s13411_s10 + $0x70] sm:$0xff]  }
  0xb6   : > { %12449 = vmatprep.mubr.msk.bf16.mxu0 %vm387_vm0, %v2518_v13  ;;  %12483 = vmatprep.mubr.msk.bf16.mxu1 %vm387_vm0, %v3107_v39  ;;  %v13098_v13 = vld [vmem:[%s13411_s10 + $0x68] sm:$0xff]   ;;  %v2580_v39 = vor.u32 %v2579_v9, %v2576_v8  ;;  %v3122_v24 = vrot.slane %v13718_v16, 2  ;;  %v3130_v8 = vrot.slane %v13769_v56, 2  ;;  %v4129_v9 = vshrl.u32 %v13116_v0, 16  ;;  %v5282_v16 = vld [vmem:[%s16592_s1 + $0x40] sm:$0xff]  ;;  %v13125_v56 = vld [vmem:[%s13411_s10 + $0x38] sm:$0xff]  }
  0xb7   : > { %v2589_v21 = vor.u32 %v2588_v11, %v2585_v10  ;;  %v3120_v23 = vrot.slane %v13098_v13, 2  ;;  %v4132_v10 = vshll.u32 %v13116_v0, 16  ;;  %v4137_v11 = vshrl.u32 %v13117_v59, 16 }
  0xb8   : > { %5347 = vperm.xlu1 %12988, %v5281_v15   ;;  %v4173_v7 = vshrl.u32 %v13125_v56, 16 }
  0xb9   : > { %v2590_v28 = vsel %vm2447_vm3, %v2580_v39, %v2589_v21  ;;  %v3121_v40 = vsel %vm3096_vm4, %v3118_v6, %v3120_v23  ;;  %v3123_v44 = vsel %vm3096_vm4, %v3120_v23, %v3122_v24  ;;  %v2599_v52 = vsel %vm2447_vm3, %v2589_v21, %v2598_v43 }
  0xba   : > { %v3128_v6 = vrot.slane %v13107_v55, 2  ;;  %v4131_v21 = vrot.slane %v4129_v9, 2  ;;  %v4134_v22 = vrot.slane %v4132_v10, 3  ;;  %v4139_v23 = vrot.slane %v4137_v11, 2 }
  0xbb   : > { %v4158_v43 = vshll.u32 %v13121_v25, 16 }
  0xbc   : > { %v3131_v19 = vsel %vm3096_vm4, %v3128_v6, %v3130_v8 }
  0xbd   : > { %12450 = vmatmul.mubr.msk.bf16.gmra.mrb[84].mxu0 %vm387_vm0, %v2527_v27  ;;  %12484 = vmatmul.mubr.msk.bf16.gmra.mrb[80].mxu1 %vm387_vm0, %v3109_v37  ;;  %v2581_v27 = vsel %vm2447_vm3, %v2571_v1, %v2580_v39  ;;  %v5274_v37 = vld [vmem:[%s16592_s1] sm:$0xff]  ;;  %v13113_v39 = vld [vmem:[%s13411_s10 + $0x98] ss:$0 sps:$4 sm:$0x33]   ;;  %v4160_v55 = vrot.slane %v4158_v43, 3 }
  0xbe   : > { %12453 = vmatprep.mubr.msk.bf16.mxu0 %vm387_vm0, %v2536_v31  ;;  %12487 = vmatprep.mubr.msk.bf16.mxu1 %vm387_vm0, %v3111_v42  ;;  %v13102_v31 = vld [vmem:[%s13411_s10 + $0x78] sm:$0xff]   ;;  %v5551_v42 = vsel %vm13735_vm8, 0, %v5550_v35 }
  0xbf   : > { %5312 = vperm.xlu0 %12987, %v5274_v37   ;;  %5552 = vst [vmem:[#allocation3 + $0x8] sm:$0x3] %v5551_v42  ;;  %v3124_v50 = vrot.slane %v13102_v31, 2  ;;  %v3616_v31 = vsel %vm3096_vm4, %v3613_v58, %v3615_v18  ;;  %v13115_v37 = vld [vmem:[%s13411_s10 + $0x30] sm:$0xff]   ;;  %v4155_v42 = vshrl.u32 %v13121_v25, 16 }
  0xc3   : > { %5317 = vperm.xlu0 %12987, %v5275_v49  }
  0xc5   : > { %12454 = vmatmul.mubr.msk.bf16.gmra.mrb[88].mxu0 %vm387_vm0, %v2545_v32  ;;  %12488 = vmatmul.mubr.msk.bf16.gmra.mrb[84].mxu1 %vm387_vm0, %v3113_v57  ;;  %v2612_v32 = vrot.slane %v2610_v4, 1  ;;  %v3612_v57 = vrot.slane %v13108_v45, 2  ;;  %v3132_v4 = vrot.slane %v13113_v39, 2  ;;  %v3618_v45 = vsel %vm3096_vm4, %v3615_v18, %v3617_v26  ;;  %v5289_v18 = vld [vmem:[%s16592_s1 + $0x78] sm:$0xff] }
  0xc6   : > { %12457 = vmatprep.mubr.msk.bf16.mxu0 %vm387_vm0, %v2554_v53  ;;  %12491 = vmatprep.mubr.msk.bf16.mxu1 %vm387_vm0, %v3115_v62  ;;  %v3126_v53 = vrot.slane %v13732_v33, 2  ;;  %v3125_v62 = vsel %vm3096_vm4, %v3122_v24, %v3124_v50 }
  0xc7   : > { %v2616_v63 = vor.u32 %v2615_v51, %v2612_v32  ;;  %5332 = vperm.xlu0 %12987, %v5278_v61   ;;  %v3614_v13 = vsel %vm3096_vm4, %v3612_v57, %v3613_v58  ;;  %v3133_v49 = vsel %vm3096_vm4, %v3130_v8, %v3132_v4  ;;  %v13122_v51 = vld [vmem:[%s13411_s10 + $0x30] sm:$0xff]   ;;  %v3621_v57 = vrot.slane %v13830_v46, 2 }
  0xc8   : > { %v3127_v1 = vsel %vm3096_vm4, %v3124_v50, %v3126_v53  ;;  %v4164_v0 = vshrl.u32 %v13122_v51, 16  ;;  %v4176_v8 = vshll.u32 %v13125_v56, 16 }
  0xcb   : > { %5342 = vperm.xlu0 %12987, %v5280_v3  }
  0xcd   : > { %12458 = vmatmul.mubr.msk.bf16.gmra.mrb[92].mxu0 %vm387_vm0, %v2563_v5  ;;  %12492 = vmatmul.mubr.msk.bf16.gmra.mrb[88].mxu1 %vm387_vm0, %v3117_v17  ;;  %v2617_v5 = vsel %vm2447_vm3, %v2607_v47, %v2616_v63  ;;  %v3129_v17 = vsel %vm3096_vm4, %v3126_v53, %v3128_v6  ;;  %v5285_v47 = vld [vmem:[%s16592_s1 + $0x58] sm:$0xff] }
  0xce   : > { %12461 = vmatprep.mubr.msk.bf16.mxu0 %vm387_vm0, %v2572_v12  ;;  %12495 = vmatprep.mubr.msk.bf16.mxu1 %vm387_vm0, %v3119_v20  ;;  %v4140_v12 = vshll.u32 %v13117_v59, 16  ;;  %v13118_v20 = vld [vmem:[%s13411_s10 + $0x20] sm:$0xff]  }
  0xcf   : > { %5352 = vperm.xlu0 %12987, %v5282_v16   ;;  %v4146_v33 = vshrl.u32 %v13118_v20, 16  ;;  %v4149_v35 = vshll.u32 %v13118_v20, 16  ;;  %v13850_v59 = vld [vmem:[%s13411_s10 + $0x40] sm:$0xff]  }
  0xd0   : > { %v4142_v24 = vrot.slane %v4140_v12, 3 }
  0xd1   : > { %v4148_v50 = vrot.slane %v4146_v33, 2  ;;  %v4151_v32 = vrot.slane %v4149_v35, 3  ;;  %v13893_v35 = vld [vmem:[%s13411_s10 + $0x50] sm:$0xff]  }
  0xd2   : > { %v13825_v41 = vor.u32 %v4142_v24, %v4139_v23  ;;  %v13126_v24 = vld [vmem:[%s13411_s10 + $0x40] sm:$0xff]  }
  0xd3   : > { %5362 = vperm.xlu0 %12987, %v5284_v29   ;;  %v4152_v63 = vor.u32 %v4151_v32, %v4148_v50  ;;  %v4178_v29 = vrot.slane %v4176_v8, 3  ;;  %v4182_v43 = vshrl.u32 %v13126_v24, 16 }
  0xd5   : > { %12462 = vmatmul.mubr.msk.bf16.gmra.mrb[96].mxu0 %vm387_vm0, %v2581_v27  ;;  %12496 = vmatmul.mubr.msk.bf16.gmra.mrb[92].mxu1 %vm387_vm0, %v3121_v40  ;;  %v4135_v40 = vor.u32 %v4134_v22, %v4131_v21  ;;  %v4153_v21 = vsel %vm4127_vm10, %v13825_v41, %v4152_v63  ;;  %v4166_v22 = vrot.slane %v4164_v0, 2 }
  0xd6   : > { %12465 = vmatprep.mubr.msk.bf16.mxu0 %vm387_vm0, %v2590_v28  ;;  %12499 = vmatprep.mubr.msk.bf16.mxu1 %vm387_vm0, %v3123_v44  ;;  %v5283_v28 = vld [vmem:[%s16592_s1 + $0x48] sm:$0xff] }
  0xd7   : > { %5357 = vperm.xlu1 %12988, %v5283_v28   ;;  %v4144_v53 = vsel %vm4127_vm10, %v4135_v40, %v13825_v41  ;;  %5372 = vperm.xlu0 %12987, %v5286_v48   ;;  %v4175_v28 = vrot.slane %v4173_v7, 2 }
  0xdb   : > { %5367 = vperm.xlu1 %12988, %v5285_v47   ;;  %5382 = vperm.xlu0 %12987, %v5288_v60  }
  0xdd   : > { %12466 = vmatmul.mubr.msk.bf16.gmra.mrb[100].mxu0 %vm387_vm0, %v2599_v52  ;;  %12500 = vmatmul.mubr.msk.bf16.gmra.mrb[96].mxu1 %vm387_vm0, %v3125_v62  ;;  %v3619_v52 = vrot.slane %v13115_v37, 2  ;;  %v5292_v37 = vld [vmem:[%s16592_s1 + $0x90] sm:$0xff] }
  0xde   : > { %12469 = vmatprep.mubr.msk.bf16.mxu0 %vm387_vm0, %v2608_v54  ;;  %12503 = vmatprep.mubr.msk.bf16.mxu1 %vm387_vm0, %v3127_v1  ;;  %v4157_v54 = vrot.slane %v4155_v42, 2  ;;  %v4167_v1 = vshll.u32 %v13122_v51, 16 }
  0xdf   : > { %v3622_v12 = vsel %vm3096_vm4, %v3619_v52, %v3621_v57 }
  0xe0   : > { %v13862_v6 = vor.u32 %v4160_v55, %v4157_v54  ;;  %v4169_v23 = vrot.slane %v4167_v1, 3  ;;  %v13915_v55 = vld [vmem:[%s13411_s10 + $0x58] sm:$0xff]   ;;  %v13130_v1 = vld [vmem:[%s13411_s10 + $0x50] sm:$0xff]  }
  0xe2   : > { %v4170_v42 = vor.u32 %v4169_v23, %v4166_v22 }
  0xe5   : > { %12470 = vmatmul.mubr.msk.bf16.gmra.mrb[104].mxu0 %vm387_vm0, %v2617_v5  ;;  %12504 = vmatmul.mubr.msk.bf16.gmra.mrb[100].mxu1 %vm387_vm0, %v3129_v17  ;;  %v3620_v5 = vsel %vm3096_vm4, %v3617_v26, %v3619_v52  ;;  %v3623_v17 = vrot.slane %v13850_v59, 2  ;;  %v5293_v59 = vld [vmem:[%s16592_s1 + $0x98] sm:$0xff] }
  0xe6   : > { %12513 = vmatprep.mubr.msk.bf16.mxu0 %vm387_vm0, %v3614_v13  ;;  %12507 = vmatprep.mubr.msk.bf16.mxu1 %vm387_vm0, %v3131_v19  ;;  %v13869_v13 = vld [vmem:[%s13411_s10 + $0x48] sm:$0xff]   ;;  %v5290_v19 = vld [vmem:[%s16592_s1 + $0x80] sm:$0xff] }
  0xe7   : > { %v3625_v4 = vrot.slane %v13869_v13, 2  ;;  %5392 = vperm.xlu0 %12987, %v5290_v19   ;;  %v3624_v48 = vsel %vm3096_vm4, %v3621_v57, %v3623_v17  ;;  %v4203_v19 = vshll.u32 %v13130_v1, 16 }
  0xe8   : > { %v12287_v27 = vpop.f32.mrb[0].mxu0 }
  0xe9   : > { %622 = vst.msk [vmem:[#allocation2 + $0x10] sm:$0xff] %vm619_vm9, %v12287_v27  ;;  %v476_v30 = vpop.f32.mrb[1].mxu0  ;;  %v4162_v27 = vsel %vm4127_vm10, %v4152_v63, %v13862_v6  ;;  %v3626_v54 = vsel %vm3096_vm4, %v3623_v17, %v3625_v4  ;;  %v4184_v63 = vrot.slane %v4182_v43, 2  ;;  %v4205_v43 = vrot.slane %v4203_v19, 3 }
  0xea   : > { %620 = vst.msk [vmem:[#allocation2] sm:$0xff] %vm619_vm9, %v476_v30  ;;  %v12288_v36 = vpop.f32.mrb[2].mxu0  ;;  %v13129_v30 = vld [vmem:[%s13411_s10 + $0x48] sm:$0xff]  }
  0xeb   : > { %623 = vst.msk [vmem:[#allocation2 + $0x18] sm:$0xff] %vm619_vm9, %v12288_v36  ;;  %v479_v44 = vpop.f32.mrb[3].mxu0  ;;  %v5291_v36 = vld [vmem:[%s16592_s1 + $0x88] sm:$0xff]  ;;  %v4191_v50 = vshrl.u32 %v13129_v30, 16  ;;  %v4194_v32 = vshll.u32 %v13129_v30, 16  ;;  %5402 = vperm.xlu0 %12987, %v5292_v37  }
  0xec   : > { %621 = vst.msk [vmem:[#allocation2 + $0x8] sm:$0xff] %vm619_vm9, %v479_v44  ;;  %v4185_v44 = vshll.u32 %v13126_v24, 16  ;;  %v13961_v30 = vld [vmem:[%s13411_s10 + $0x68] sm:$0xff]  }
  0xed   : > { %12514 = vmatmul.mubr.msk.bf16.vlgmr.msra.gmra.mrb[108].mxu0 %vm387_vm0, %v3616_v31  ;;  %12508 = vmatmul.mubr.msk.bf16.gmra.mrb[104].mxu1 %vm387_vm0, %v3133_v49  ;;  %v13908_v49 = vor.u32 %v4178_v29, %v4175_v28  ;;  %v4193_v7 = vrot.slane %v4191_v50, 2  ;;  %v4196_v8 = vrot.slane %v4194_v32, 3 }
  0xee   : > { %12588 = vmatpush3.bf16.msra.mxu0 %v13651_v38  ;;  %12517 = vmatprep.mubr.msk.bf16.mxu0 %vm387_vm0, %v3618_v45  ;;  %v5287_v38 = vld [vmem:[%s16592_s1 + $0x68] sm:$0xff]  ;;  %v4187_v0 = vrot.slane %v4185_v44, 3  ;;  %v13134_v44 = vld [vmem:[%s13411_s10 + $0x60] sm:$0xff]  }
  0xef   : > { %12551 = vmatprep.mubr.msk.bf16.mxu1 %vm387_vm0, %v4144_v53  ;;  %5377 = vperm.xlu1 %12988, %v5287_v38   ;;  %v5294_v38 = vld [vmem:[%s16592_s1 + $0xa0] sm:$0xff]  ;;  %v13954_v23 = vor.u32 %v4196_v8, %v4193_v7 }
  0xf0   : > { %v12291_v58 = vpop.f32.mrb[4].mxu0  ;;  %v1177_v61 = vld [vmem:[#allocation2 + $0x10] sm:$0xff]  ;;  %v12325_v9 = vpop.f32.mrb[0].mxu1  ;;  %5412 = vperm.xlu0 %12987, %v5294_v38   ;;  %v4188_v17 = vor.u32 %v4187_v0, %v4184_v63  ;;  %v4221_v38 = vshll.u32 %v13134_v44, 16 }
  0xf1   : > { %626 = vst.msk [vmem:[#allocation2 + $0x30] sm:$0xff] %vm619_vm9, %v12291_v58  ;;  %v492_v62 = vpop.f32.mrb[5].mxu0  ;;  %v1175_v2 = vld [vmem:[#allocation2] sm:$0xff]  ;;  %v1213_v14 = vadd.f32 %v12325_v9, %v1177_v61  ;;  %v1032_v15 = vpop.f32.mrb[1].mxu1  ;;  %v3627_v58 = vrot.slane %v13893_v35, 2  ;;  %v13133_v9 = vld [vmem:[%s13411_s10 + $0x58] sm:$0xff]  }
  0xf2   : > { %624 = vst.msk [vmem:[#allocation2 + $0x20] sm:$0xff] %vm619_vm9, %v492_v62  ;;  %v12292_v3 = vpop.f32.mrb[6].mxu0  ;;  %v1178_v10 = vld [vmem:[#allocation2 + $0x18] sm:$0xff]  ;;  %v1211_v39 = vadd.f32 %v1175_v2, %v1032_v15  ;;  %v12326_v20 = vpop.f32.mrb[2].mxu1  ;;  %v4171_v62 = vsel %vm4127_vm10, %v13862_v6, %v4170_v42  ;;  %v4209_v24 = vshrl.u32 %v13133_v9, 16  ;;  %v4223_v19 = vrot.slane %v4221_v38, 3 }
  0xf3   : > { %627 = vst.msk [vmem:[#allocation2 + $0x38] sm:$0xff] %vm619_vm9, %v12292_v3  ;;  %v495_v11 = vpop.f32.mrb[7].mxu0  ;;  %v1176_v16 = vld [vmem:[#allocation2 + $0x8] sm:$0xff]  ;;  %5387 = vperm.xlu1 %12988, %v5289_v18   ;;  %1249 = vst.msk [vmem:[#allocation2 + $0x10] sm:$0xff] %vm619_vm9, %v1213_v14  ;;  %v1214_v25 = vadd.f32 %v12326_v20, %v1178_v10  ;;  %v1035_v26 = vpop.f32.mrb[3].mxu1  ;;  %v3629_v10 = vrot.slane %v13915_v55, 2  ;;  %v3628_v22 = vsel %vm3096_vm4, %v3625_v4, %v3627_v58 }
  0xf4   : > { %625 = vst.msk [vmem:[#allocation2 + $0x28] sm:$0xff] %vm619_vm9, %v495_v11  ;;  %1247 = vst.msk [vmem:[#allocation2] sm:$0xff] %vm619_vm9, %v1211_v39  ;;  %v1212_v31 = vadd.f32 %v1176_v16, %v1035_v26  ;;  %v5295_v14 = vld [vmem:[%s16592_s1 + $0xa8] sm:$0xff]  ;;  %v4200_v18 = vshrl.u32 %v13130_v1, 16  ;;  %v5296_v39 = vld [vmem:[%s16592_s1 + $0xb0] sm:$0xff]  ;;  %v4211_v50 = vrot.slane %v4209_v24, 2 }
  0xf5   : > { %12518 = vmatmul.mubr.msk.bf16.gmra.mrb[112].mxu0 %vm387_vm0, %v3620_v5  ;;  %1250 = vst.msk [vmem:[#allocation2 + $0x18] sm:$0xff] %vm619_vm9, %v1214_v25  ;;  %12552 = vmatmul.mubr.msk.bf16.vlgmr.msra.gmra.mrb[108].mxu1 %vm387_vm0, %v4153_v21  ;;  %v4180_v5 = vsel %vm4127_vm10, %v4170_v42, %v13908_v49  ;;  %v4212_v25 = vshll.u32 %v13133_v9, 16  ;;  %v3630_v29 = vsel %vm3096_vm4, %v3627_v58, %v3629_v10  ;;  %v5297_v35 = vld [vmem:[%s16592_s1 + $0xb8] sm:$0xff] }
  0xf6   : > { %12521 = vmatprep.mubr.msk.bf16.mxu0 %vm387_vm0, %v3622_v12  ;;  %1248 = vst.msk [vmem:[#allocation2 + $0x8] sm:$0xff] %vm619_vm9, %v1212_v31  ;;  %12555 = vmatprep.mubr.msk.bf16.mxu1 %vm387_vm0, %v4162_v27  ;;  %v13939_v12 = vld [vmem:[%s13411_s10 + $0x60] sm:$0xff]   ;;  %v4202_v42 = vrot.slane %v4200_v18, 2  ;;  %v14007_v9 = vld [vmem:[%s13411_s10 + $0x78] sm:$0xff]  }
  0xf7   : > { %5397 = vperm.xlu1 %12988, %v5291_v36   ;;  %5422 = vperm.xlu0 %12987, %v5296_v39   ;;  %v5298_v36 = vld [vmem:[%s16592_s1 + $0xc0] sm:$0xff]  ;;  %v4214_v32 = vrot.slane %v4212_v25, 3  ;;  %v13138_v39 = vld [vmem:[%s13411_s10 + $0x70] sm:$0xff]  }
  0xf8   : > { %v12295_v33 = vpop.f32.mrb[8].mxu0  ;;  %v1181_v40 = vld [vmem:[#allocation2 + $0x30] sm:$0xff]  ;;  %v12329_v51 = vpop.f32.mrb[4].mxu1  ;;  %v4206_v58 = vor.u32 %v4205_v43, %v4202_v42 }
  0xf9   : > { %630 = vst.msk [vmem:[#allocation2 + $0x50] sm:$0xff] %vm619_vm9, %v12295_v33  ;;  %v508_v41 = vpop.f32.mrb[9].mxu0  ;;  %v1179_v45 = vld [vmem:[#allocation2 + $0x20] sm:$0xff]  ;;  %v1217_v46 = vadd.f32 %v12329_v51, %v1181_v40  ;;  %v1048_v56 = vpop.f32.mrb[5].mxu1  ;;  %v3631_v33 = vrot.slane %v13939_v12, 2  ;;  %v13137_v51 = vld [vmem:[%s13411_s10 + $0x68] sm:$0xff]   ;;  %v14000_v0 = vor.u32 %v4214_v32, %v4211_v50 }
  0xfa   : > { %628 = vst.msk [vmem:[#allocation2 + $0x40] sm:$0xff] %vm619_vm9, %v508_v41  ;;  %v12296_v47 = vpop.f32.mrb[10].mxu0  ;;  %v1182_v52 = vld [vmem:[#allocation2 + $0x38] sm:$0xff]  ;;  %v1215_v60 = vadd.f32 %v1179_v45, %v1048_v56  ;;  %v12330_v61 = vpop.f32.mrb[6].mxu1  ;;  %v4189_v41 = vsel %vm4127_vm10, %v13908_v49, %v4188_v17  ;;  %v4227_v1 = vshrl.u32 %v13137_v51, 16 }
  0xfb   : > { %631 = vst.msk [vmem:[#allocation2 + $0x58] sm:$0xff] %vm619_vm9, %v12296_v47  ;;  %v511_v53 = vpop.f32.mrb[11].mxu0  ;;  %v1180_v57 = vld [vmem:[#allocation2 + $0x28] sm:$0xff]  ;;  %5407 = vperm.xlu1 %12988, %v5293_v59   ;;  %1253 = vst.msk [vmem:[#allocation2 + $0x30] sm:$0xff] %vm619_vm9, %v1217_v46  ;;  %v1218_v2 = vadd.f32 %v12330_v61, %v1182_v52  ;;  %v1051_v3 = vpop.f32.mrb[7].mxu1  ;;  %v3633_v52 = vrot.slane %v13961_v30, 2  ;;  %5432 = vperm.xlu0 %12987, %v5298_v36   ;;  %v3632_v63 = vsel %vm3096_vm4, %v3629_v10, %v3631_v33 }
  0xfc   : > { %629 = vst.msk [vmem:[#allocation2 + $0x48] sm:$0xff] %vm619_vm9, %v511_v53  ;;  %1251 = vst.msk [vmem:[#allocation2 + $0x20] sm:$0xff] %vm619_vm9, %v1215_v60  ;;  %v1216_v6 = vadd.f32 %v1180_v57, %v1051_v3  ;;  %v5299_v46 = vld [vmem:[%s16592_s1 + $0xc8] sm:$0xff]  ;;  %v4218_v59 = vshrl.u32 %v13134_v44, 16  ;;  %v5300_v60 = vld [vmem:[%s16592_s1 + $0xd0] sm:$0xff]  ;;  %v4229_v24 = vrot.slane %v4227_v1, 2 }
  0xfd   : > { %12522 = vmatmul.mubr.msk.bf16.gmra.mrb[116].mxu0 %vm387_vm0, %v3624_v48  ;;  %1254 = vst.msk [vmem:[#allocation2 + $0x38] sm:$0xff] %vm619_vm9, %v1218_v2  ;;  %12556 = vmatmul.mubr.msk.bf16.gmra.mrb[112].mxu1 %vm387_vm0, %v4171_v62  ;;  %v4198_v48 = vsel %vm4127_vm10, %v4188_v17, %v13954_v23  ;;  %v4230_v2 = vshll.u32 %v13137_v51, 16  ;;  %v3634_v8 = vsel %vm3096_vm4, %v3631_v33, %v3633_v52  ;;  %v5301_v12 = vld [vmem:[%s16592_s1 + $0xd8] sm:$0xff]  ;;  %v4239_v36 = vshll.u32 %v13138_v39, 16  ;;  %v14053_v51 = vld [vmem:[%s13411_s10 + $0x88] sm:$0xff]  }
  0xfe   : > { %12525 = vmatprep.mubr.msk.bf16.mxu0 %vm387_vm0, %v3626_v54  ;;  %1252 = vst.msk [vmem:[#allocation2 + $0x28] sm:$0xff] %vm619_vm9, %v1216_v6  ;;  %12559 = vmatprep.mubr.msk.bf16.mxu1 %vm387_vm0, %v4180_v5  ;;  %v13985_v54 = vld [vmem:[%s13411_s10 + $0x70] sm:$0xff]   ;;  %v4207_v17 = vsel %vm4127_vm10, %v13954_v23, %v4206_v58  ;;  %v4220_v18 = vrot.slane %v4218_v59, 2 }
  0xff   : > { %5417 = vperm.xlu1 %12988, %v5295_v14   ;;  %5442 = vperm.xlu0 %12987, %v5300_v60   ;;  %v5302_v14 = vld [vmem:[%s16592_s1 + $0xe0] sm:$0xff]  ;;  %v4232_v25 = vrot.slane %v4230_v2, 3  ;;  %v4241_v38 = vrot.slane %v4239_v36, 3  ;;  %v13146_v36 = vld [vmem:[%s13411_s10 + $0x90] sm:$0xff]  }
 0x100   : > { %v12299_v11 = vpop.f32.mrb[12].mxu0  ;;  %v1185_v15 = vld [vmem:[#allocation2 + $0x50] sm:$0xff]  ;;  %v12333_v26 = vpop.f32.mrb[8].mxu1  ;;  %v4224_v33 = vor.u32 %v4223_v19, %v4220_v18  ;;  %v13142_v60 = vld [vmem:[%s13411_s10 + $0x80] sm:$0xff]  }
 0x101   : > { %634 = vst.msk [vmem:[#allocation2 + $0x70] sm:$0xff] %vm619_vm9, %v12299_v11  ;;  %v524_v16 = vpop.f32.mrb[13].mxu0  ;;  %v1183_v20 = vld [vmem:[#allocation2 + $0x40] sm:$0xff]  ;;  %v1221_v13 = vadd.f32 %v12333_v26, %v1185_v15  ;;  %v1064_v31 = vpop.f32.mrb[9].mxu1  ;;  %v3635_v11 = vrot.slane %v13985_v54, 2  ;;  %v13141_v26 = vld [vmem:[%s13411_s10 + $0x78] sm:$0xff]   ;;  %v14046_v43 = vor.u32 %v4232_v25, %v4229_v24 }
 0x102   : > { %632 = vst.msk [vmem:[#allocation2 + $0x60] sm:$0xff] %vm619_vm9, %v524_v16  ;;  %v12300_v21 = vpop.f32.mrb[14].mxu0  ;;  %v1186_v27 = vld [vmem:[#allocation2 + $0x58] sm:$0xff]  ;;  %v1219_v37 = vadd.f32 %v1183_v20, %v1064_v31  ;;  %v12334_v40 = vpop.f32.mrb[10].mxu1  ;;  %v4245_v44 = vshrl.u32 %v13141_v26, 16 }
 0x103   : > { %635 = vst.msk [vmem:[#allocation2 + $0x78] sm:$0xff] %vm619_vm9, %v12300_v21  ;;  %v527_v28 = vpop.f32.mrb[15].mxu0  ;;  %v1184_v4 = vld [vmem:[#allocation2 + $0x48] sm:$0xff]  ;;  %5427 = vperm.xlu1 %12988, %v5297_v35   ;;  %1257 = vst.msk [vmem:[#allocation2 + $0x50] sm:$0xff] %vm619_vm9, %v1221_v13  ;;  %v1222_v45 = vadd.f32 %v12334_v40, %v1186_v27  ;;  %v1067_v47 = vpop.f32.mrb[11].mxu1  ;;  %v3637_v27 = vrot.slane %v14007_v9, 2  ;;  %5452 = vperm.xlu0 %12987, %v5302_v14   ;;  %v3636_v42 = vsel %vm3096_vm4, %v3633_v52, %v3635_v11 }
 0x104   : > { %633 = vst.msk [vmem:[#allocation2 + $0x68] sm:$0xff] %vm619_vm9, %v527_v28  ;;  %1255 = vst.msk [vmem:[#allocation2 + $0x40] sm:$0xff] %vm619_vm9, %v1219_v37  ;;  %v1220_v49 = vadd.f32 %v1184_v4, %v1067_v47  ;;  %v5303_v13 = vld [vmem:[%s16592_s1 + $0xe8] sm:$0xff]  ;;  %v4236_v35 = vshrl.u32 %v13138_v39, 16  ;;  %v5304_v37 = vld [vmem:[%s16592_s1 + $0xf0] sm:$0xff]  ;;  %v4247_v1 = vrot.slane %v4245_v44, 2 }
 0x105   : > { %12526 = vmatmul.mubr.msk.bf16.gmra.mrb[120].mxu0 %vm387_vm0, %v3628_v22  ;;  %1258 = vst.msk [vmem:[#allocation2 + $0x58] sm:$0xff] %vm619_vm9, %v1222_v45  ;;  %12560 = vmatmul.mubr.msk.bf16.gmra.mrb[116].mxu1 %vm387_vm0, %v4189_v41  ;;  %v4216_v22 = vsel %vm4127_vm10, %v4206_v58, %v14000_v0  ;;  %v4248_v45 = vshll.u32 %v13141_v26, 16  ;;  %v3638_v32 = vsel %vm3096_vm4, %v3635_v11, %v3637_v27  ;;  %v5305_v54 = vld [vmem:[%s16592_s1 + $0xf8] sm:$0xff]  ;;  %v4257_v14 = vshll.u32 %v13142_v60, 16 }
 0x106   : > { %12529 = vmatprep.mubr.msk.bf16.mxu0 %vm387_vm0, %v3630_v29  ;;  %1256 = vst.msk [vmem:[#allocation2 + $0x48] sm:$0xff] %vm619_vm9, %v1220_v49  ;;  %12563 = vmatprep.mubr.msk.bf16.mxu1 %vm387_vm0, %v4198_v48  ;;  %v14031_v29 = vld [vmem:[%s13411_s10 + $0x80] sm:$0xff]   ;;  %v4225_v58 = vsel %vm4127_vm10, %v14000_v0, %v4224_v33  ;;  %v4238_v59 = vrot.slane %v4236_v35, 2  ;;  %v14099_v26 = vld [vmem:[%s13411_s10 + $0x98] sm:$0xff]  }
 0x107   : > { %5437 = vperm.xlu1 %12988, %v5299_v46   ;;  %5462 = vperm.xlu0 %12987, %v5304_v37   ;;  %v5306_v46 = vld [vmem:[%s16592_s1 + $0x100] sm:$0xff]  ;;  %v4250_v2 = vrot.slane %v4248_v45, 3  ;;  %v4259_v35 = vrot.slane %v4257_v14, 3  ;;  %v13150_v45 = vld [vmem:[%s13411_s10 + $0x98] sm:$0xff]  }
 0x108   : > { %v12303_v53 = vpop.f32.mrb[16].mxu0  ;;  %v1189_v56 = vld [vmem:[#allocation2 + $0x70] sm:$0xff]  ;;  %v12337_v3 = vpop.f32.mrb[12].mxu1  ;;  %v4242_v11 = vor.u32 %v4241_v38, %v4238_v59  ;;  %v4284_v59 = vshll.u32 %v13150_v45, 16 }
 0x109   : > { %638 = vst.msk [vmem:[#allocation2 + $0x90] sm:$0xff] %vm619_vm9, %v12303_v53  ;;  %v540_v57 = vpop.f32.mrb[17].mxu0  ;;  %v1187_v61 = vld [vmem:[#allocation2 + $0x60] sm:$0xff]  ;;  %v1225_v55 = vadd.f32 %v12337_v3, %v1189_v56  ;;  %v1080_v6 = vpop.f32.mrb[13].mxu1  ;;  %v3639_v53 = vrot.slane %v14031_v29, 2  ;;  %v13145_v3 = vld [vmem:[%s13411_s10 + $0x88] sm:$0xff]   ;;  %v14092_v19 = vor.u32 %v4250_v2, %v4247_v1 }
 0x10a   : > { %636 = vst.msk [vmem:[#allocation2 + $0x80] sm:$0xff] %vm619_vm9, %v540_v57  ;;  %v12304_v62 = vpop.f32.mrb[18].mxu0  ;;  %v1190_v5 = vld [vmem:[#allocation2 + $0x78] sm:$0xff]  ;;  %v1223_v15 = vadd.f32 %v1187_v61, %v1080_v6  ;;  %v12338_v16 = vpop.f32.mrb[14].mxu1  ;;  %v4263_v39 = vshrl.u32 %v13145_v3, 16 }
 0x10b   : > { %639 = vst.msk [vmem:[#allocation2 + $0x98] sm:$0xff] %vm619_vm9, %v12304_v62  ;;  %v543_v7 = vpop.f32.mrb[19].mxu0  ;;  %v1188_v10 = vld [vmem:[#allocation2 + $0x68] sm:$0xff]  ;;  %5447 = vperm.xlu1 %12988, %v5301_v12   ;;  %1261 = vst.msk [vmem:[#allocation2 + $0x70] sm:$0xff] %vm619_vm9, %v1225_v55  ;;  %v1226_v20 = vadd.f32 %v12338_v16, %v1190_v5  ;;  %v1083_v21 = vpop.f32.mrb[15].mxu1  ;;  %v3641_v5 = vrot.slane %v14053_v51, 2  ;;  %5472 = vperm.xlu0 %12987, %v5306_v46   ;;  %v3640_v18 = vsel %vm3096_vm4, %v3637_v27, %v3639_v53 }
 0x10c   : > { %637 = vst.msk [vmem:[#allocation2 + $0x88] sm:$0xff] %vm619_vm9, %v543_v7  ;;  %1259 = vst.msk [vmem:[#allocation2 + $0x60] sm:$0xff] %vm619_vm9, %v1223_v15  ;;  %v1224_v23 = vadd.f32 %v1188_v10, %v1083_v21  ;;  %v5307_v55 = vld [vmem:[%s16592_s1 + $0x108] sm:$0xff]  ;;  %v4254_v12 = vshrl.u32 %v13142_v60, 16  ;;  %v5308_v15 = vld [vmem:[%s16592_s1 + $0x110] sm:$0xff] }
 0x10d   : > { %12530 = vmatmul.mubr.msk.bf16.gmra.mrb[124].mxu0 %vm387_vm0, %v3632_v63  ;;  %1262 = vst.msk [vmem:[#allocation2 + $0x78] sm:$0xff] %vm619_vm9, %v1226_v20  ;;  %12564 = vmatmul.mubr.msk.bf16.gmra.mrb[120].mxu1 %vm387_vm0, %v4207_v17  ;;  %v4234_v63 = vsel %vm4127_vm10, %v4224_v33, %v14046_v43  ;;  %v4266_v20 = vshll.u32 %v13145_v3, 16  ;;  %v3642_v25 = vsel %vm3096_vm4, %v3639_v53, %v3641_v5  ;;  %v5309_v29 = vld [vmem:[%s16592_s1 + $0x118] sm:$0xff]  ;;  %v4275_v53 = vshll.u32 %v13146_v36, 16 }
 0x10e   : > { %12533 = vmatprep.mubr.msk.bf16.mxu0 %vm387_vm0, %v3634_v8  ;;  %1260 = vst.msk [vmem:[#allocation2 + $0x68] sm:$0xff] %vm619_vm9, %v1224_v23  ;;  %12567 = vmatprep.mubr.msk.bf16.mxu1 %vm387_vm0, %v4216_v22  ;;  %v14077_v8 = vld [vmem:[%s13411_s10 + $0x90] sm:$0xff]   ;;  %v4256_v33 = vrot.slane %v4254_v12, 2  ;;  %v14137_v1 = vld [vmem:[%s13411_s10 + $0x18] sm:$0xff]  }
 0x10f   : > { %5457 = vperm.xlu1 %12988, %v5303_v13   ;;  %5482 = vperm.xlu0 %12987, %v5308_v15   ;;  %v4268_v44 = vrot.slane %v4266_v20, 3 }
 0x110   : > { %v12307_v28 = vpop.f32.mrb[20].mxu0  ;;  %v1193_v31 = vld [vmem:[#allocation2 + $0x90] sm:$0xff]  ;;  %v12341_v47 = vpop.f32.mrb[16].mxu1 }
 0x111   : > { %642 = vst.msk [vmem:[#allocation2 + $0xb0] sm:$0xff] %vm619_vm9, %v12307_v28  ;;  %v556_v4 = vpop.f32.mrb[21].mxu0  ;;  %v1191_v40 = vld [vmem:[#allocation2 + $0x80] sm:$0xff]  ;;  %v1229_v30 = vadd.f32 %v12341_v47, %v1193_v31  ;;  %v1096_v49 = vpop.f32.mrb[17].mxu1  ;;  %v3643_v28 = vrot.slane %v14077_v8, 2  ;;  %v3645_v47 = vrot.slane %v14099_v26, 2 }
 0x112   : > { %640 = vst.msk [vmem:[#allocation2 + $0xa0] sm:$0xff] %vm619_vm9, %v556_v4  ;;  %v12308_v41 = vpop.f32.mrb[22].mxu0  ;;  %v1194_v48 = vld [vmem:[#allocation2 + $0x98] sm:$0xff]  ;;  %v1227_v56 = vadd.f32 %v1191_v40, %v1096_v49  ;;  %v12342_v57 = vpop.f32.mrb[18].mxu1  ;;  %v4243_v4 = vsel %vm4127_vm10, %v14046_v43, %v4242_v11  ;;  %v4260_v49 = vor.u32 %v4259_v35, %v4256_v33  ;;  %v14164_v35 = vld [vmem:[%s13411_s10 + $0x28] sm:$0xff]  }
 0x113   : > { %643 = vst.msk [vmem:[#allocation2 + $0xb8] sm:$0xff] %vm619_vm9, %v12308_v41  ;;  %v559_v50 = vpop.f32.mrb[23].mxu0  ;;  %v1192_v52 = vld [vmem:[#allocation2 + $0x88] sm:$0xff]  ;;  %5467 = vperm.xlu1 %12988, %v5305_v54   ;;  %1265 = vst.msk [vmem:[#allocation2 + $0x90] sm:$0xff] %vm619_vm9, %v1229_v30  ;;  %v1230_v61 = vadd.f32 %v12342_v57, %v1194_v48  ;;  %v1099_v62 = vpop.f32.mrb[19].mxu1  ;;  %v4252_v41 = vsel %vm4127_vm10, %v4242_v11, %v14092_v19 }
 0x114   : > { %641 = vst.msk [vmem:[#allocation2 + $0xa8] sm:$0xff] %vm619_vm9, %v559_v50  ;;  %1263 = vst.msk [vmem:[#allocation2 + $0x80] sm:$0xff] %vm619_vm9, %v1227_v56  ;;  %v1228_v0 = vadd.f32 %v1192_v52, %v1099_v62  ;;  %v14120_v50 = vld [vmem:[%s13411_s10 + $0xa0] ss:$0 sps:$4 sm:$0x33]   ;;  %v4272_v52 = vshrl.u32 %v13146_v36, 16  ;;  %v3644_v56 = vsel %vm3096_vm4, %v3641_v5, %v3643_v28  ;;  %v3646_v62 = vsel %vm3096_vm4, %v3643_v28, %v3645_v47 }
 0x115   : > { %12534 = vmatmul.mubr.msk.bf16.gmra.mrb[128].mxu0 %vm387_vm0, %v3636_v42  ;;  %1266 = vst.msk [vmem:[#allocation2 + $0x98] sm:$0xff] %vm619_vm9, %v1230_v61  ;;  %12568 = vmatmul.mubr.msk.bf16.gmra.mrb[124].mxu1 %vm387_vm0, %v4225_v58  ;;  %v4265_v42 = vrot.slane %v4263_v39, 2  ;;  %v4281_v58 = vshrl.u32 %v13150_v45, 16  ;;  %v4261_v8 = vsel %vm4127_vm10, %v14092_v19, %v4260_v49  ;;  %v4778_v19 = vrot.slane %v14137_v1, 3  ;;  %v13149_v28 = vld [vmem:[%s13411_s10 + $0x20] sm:$0xff]  }
 0x116   : > { %12537 = vmatprep.mubr.msk.bf16.mxu0 %vm387_vm0, %v3638_v32  ;;  %1264 = vst.msk [vmem:[#allocation2 + $0x88] sm:$0xff] %vm619_vm9, %v1228_v0  ;;  %12571 = vmatprep.mubr.msk.bf16.mxu1 %vm387_vm0, %v4234_v63  ;;  %v13147_v63 = vld [vmem:[%s13411_s10 + $0x10] sm:$0xf8]   ;;  %v3647_v0 = vrot.slane %v14120_v50, 2 }
 0x117   : > { %5477 = vperm.xlu1 %12988, %v5307_v55   ;;  %v14129_v57 = vor.u32 %v4268_v44, %v4265_v42  ;;  %v4274_v55 = vrot.slane %v4272_v52, 2  ;;  %v4283_v15 = vrot.slane %v4281_v58, 2  ;;  %v1693_v52 = vld [vmem:[#allocation2 + $0x10] sm:$0xff] }
 0x118   : > { %v12311_v7 = vpop.f32.mrb[24].mxu0  ;;  %v1197_v6 = vld [vmem:[#allocation2 + $0xb0] sm:$0xff]  ;;  %v12345_v21 = vpop.f32.mrb[20].mxu1 }
 0x119   : > { %646 = vst.msk [vmem:[#allocation2 + $0xd0] sm:$0xff] %vm619_vm9, %v12311_v7  ;;  %v572_v10 = vpop.f32.mrb[25].mxu0  ;;  %v1195_v16 = vld [vmem:[#allocation2 + $0xa0] sm:$0xff]  ;;  %v1233_v9 = vadd.f32 %v12345_v21, %v1197_v6  ;;  %v1112_v23 = vpop.f32.mrb[21].mxu1  ;;  %v4277_v6 = vrot.slane %v4275_v53, 3  ;;  %v4270_v14 = vsel %vm4127_vm10, %v4260_v49, %v14129_v57 }
 0x11a   : > { %644 = vst.msk [vmem:[#allocation2 + $0xc0] sm:$0xff] %vm619_vm9, %v572_v10  ;;  %v12312_v17 = vpop.f32.mrb[26].mxu0  ;;  %v1198_v22 = vld [vmem:[#allocation2 + $0xb8] sm:$0xff]  ;;  %v1231_v13 = vadd.f32 %v1195_v16, %v1112_v23  ;;  %v12346_v31 = vpop.f32.mrb[22].mxu1  ;;  %v4286_v16 = vrot.slane %v4284_v59, 3 }
 0x11b   : > { %647 = vst.msk [vmem:[#allocation2 + $0xd8] sm:$0xff] %vm619_vm9, %v12312_v17  ;;  %v575_v24 = vpop.f32.mrb[27].mxu0  ;;  %v1196_v27 = vld [vmem:[#allocation2 + $0xa8] sm:$0xff]  ;;  %5487 = vperm.xlu1 %12988, %v5309_v29   ;;  %1269 = vst.msk [vmem:[#allocation2 + $0xb0] sm:$0xff] %vm619_vm9, %v1233_v9  ;;  %v1234_v37 = vadd.f32 %v12346_v31, %v1198_v22  ;;  %v1115_v40 = vpop.f32.mrb[23].mxu1  ;;  %v4278_v22 = vor.u32 %v4277_v6, %v4274_v55 }
 0x11c   : > { %645 = vst.msk [vmem:[#allocation2 + $0xc8] sm:$0xff] %vm619_vm9, %v575_v24  ;;  %1267 = vst.msk [vmem:[#allocation2 + $0xa0] sm:$0xff] %vm619_vm9, %v1231_v13  ;;  %v1232_v43 = vadd.f32 %v1196_v27, %v1115_v40  ;;  %v13151_v10 = vld [vmem:[%s13411_s10 + $0xa0] ss:$0 sps:$4 sm:$0x77]   ;;  %v3648_v27 = vsel %vm3096_vm4, %v3645_v47, %v3647_v0  ;;  %v4287_v29 = vor.u32 %v4286_v16, %v4283_v15 }
 0x11d   : > { %12538 = vmatmul.mubr.msk.bf16.gmra.mrb[132].mxu0 %vm387_vm0, %v3640_v18  ;;  %1270 = vst.msk [vmem:[#allocation2 + $0xb8] sm:$0xff] %vm619_vm9, %v1234_v37  ;;  %12572 = vmatmul.mubr.msk.bf16.gmra.mrb[128].mxu1 %vm387_vm0, %v4243_v4  ;;  %v4777_v18 = vrot.slane %v13147_v63, 3  ;;  %v4290_v24 = vshrl.u32 %v13151_v10, 16  ;;  %v4279_v42 = vsel %vm4127_vm10, %v14129_v57, %v4278_v22 }
 0x11e   : > { %12541 = vmatprep.mubr.msk.bf16.mxu0 %vm387_vm0, %v3642_v25  ;;  %1268 = vst.msk [vmem:[#allocation2 + $0xa8] sm:$0xff] %vm619_vm9, %v1232_v43  ;;  %12575 = vmatprep.mubr.msk.bf16.mxu1 %vm387_vm0, %v4252_v41  ;;  %v4293_v25 = vshll.u32 %v13151_v10, 16  ;;  %v4288_v50 = vsel %vm4127_vm10, %v4278_v22, %v4287_v29  ;;  %v1695_v22 = vld [vmem:[#allocation2 + $0x20] sm:$0xff] }
 0x11f   : > { %v4779_v33 = vsel %vm4776_vm11, %v4777_v18, %v4778_v19  ;;  %v4292_v44 = vrot.slane %v4290_v24, 2 }
 0x120   : > { %v12315_v48 = vpop.f32.mrb[28].mxu0  ;;  %v1201_v32 = vld [vmem:[#allocation2 + $0xd0] sm:$0xff]  ;;  %v12349_v38 = vpop.f32.mrb[24].mxu1  ;;  %v4295_v45 = vrot.slane %v4293_v25, 3 }
 0x121   : > { %650 = vst.msk [vmem:[#allocation2 + $0xf0] sm:$0xff] %vm619_vm9, %v12315_v48  ;;  %v588_v30 = vpop.f32.mrb[29].mxu0  ;;  %v1199_v54 = vld [vmem:[#allocation2 + $0xc0] sm:$0xff]  ;;  %v1237_v51 = vadd.f32 %v12349_v38, %v1201_v32  ;;  %v1128_v2 = vpop.f32.mrb[25].mxu1  ;;  %v4780_v48 = vrot.slane %v13149_v28, 3 }
 0x122   : > { %648 = vst.msk [vmem:[#allocation2 + $0xe0] sm:$0xff] %vm619_vm9, %v588_v30  ;;  %v12316_v46 = vpop.f32.mrb[30].mxu0  ;;  %v1202_v60 = vld [vmem:[#allocation2 + $0xd8] sm:$0xff]  ;;  %v1235_v5 = vadd.f32 %v1199_v54, %v1128_v2  ;;  %v12350_v7 = vpop.f32.mrb[26].mxu1  ;;  %v4782_v30 = vrot.slane %v14164_v35, 3  ;;  %v4296_v57 = vor.u32 %v4295_v45, %v4292_v44  ;;  %v13155_v28 = vld [vmem:[%s13411_s10 + $0x40] sm:$0xff]  }
 0x123   : > { %651 = vst.msk [vmem:[#allocation2 + $0xf8] sm:$0xff] %vm619_vm9, %v12316_v46  ;;  %v591_v61 = vpop.f32.mrb[31].mxu0  ;;  %v1200_v3 = vld [vmem:[#allocation2 + $0xc8] sm:$0xff]  ;;  %1273 = vst.msk [vmem:[#allocation2 + $0xd0] sm:$0xff] %vm619_vm9, %v1237_v51  ;;  %v1238_v11 = vadd.f32 %v12350_v7, %v1202_v60  ;;  %v1131_v12 = vpop.f32.mrb[27].mxu1  ;;  %v1694_v60 = vld [vmem:[#allocation2 + $0x18] sm:$0xff] }
 0x124   : > { %649 = vst.msk [vmem:[#allocation2 + $0xe8] sm:$0xff] %vm619_vm9, %v591_v61  ;;  %1271 = vst.msk [vmem:[#allocation2 + $0xc0] sm:$0xff] %vm619_vm9, %v1235_v5  ;;  %v1236_v17 = vadd.f32 %v1200_v3, %v1131_v12  ;;  %v4781_v61 = vsel %vm4776_vm11, %v4778_v19, %v4780_v48  ;;  %v1692_v3 = vld [vmem:[#allocation2 + $0x8] sm:$0xff]  ;;  %v4783_v0 = vsel %vm4776_vm11, %v4780_v48, %v4782_v30  ;;  %v14184_v5 = vld [vmem:[%s13411_s10 + $0x38] sm:$0xff]   ;;  %v4788_v48 = vrot.slane %v13155_v28, 3 }
 0x125   : > { %12542 = vmatmul.mubr.msk.bf16.gmra.mrb[136].mxu0 %vm387_vm0, %v3644_v56  ;;  %1274 = vst.msk [vmem:[#allocation2 + $0xd8] sm:$0xff] %vm619_vm9, %v1238_v11  ;;  %12576 = vmatmul.mubr.msk.bf16.gmra.mrb[132].mxu1 %vm387_vm0, %v4261_v8  ;;  %v1691_v56 = vld [vmem:[#allocation2] sm:$0xff]  ;;  %v4297_v12 = vsel %vm4127_vm10, %v4287_v29, %v4296_v57  ;;  %v4786_v18 = vrot.slane %v14184_v5, 3  ;;  %v1702_v57 = vld [vmem:[#allocation2 + $0x58] sm:$0xff] }
 0x126   : > { %12545 = vmatprep.mubr.msk.bf16.mxu0 %vm387_vm0, %v3646_v62  ;;  %1272 = vst.msk [vmem:[#allocation2 + $0xc8] sm:$0xff] %vm619_vm9, %v1236_v17  ;;  %12579 = vmatprep.mubr.msk.bf16.mxu1 %vm387_vm0, %v4270_v14  ;;  %v13153_v62 = vld [vmem:[%s13411_s10 + $0x30] sm:$0xff]  }
 0x127   : > { %v4784_v16 = vrot.slane %v13153_v62, 3 }
 0x128   : > { %v12319_v39 = vpop.f32.mrb[32].mxu0  ;;  %v1205_v20 = vld [vmem:[#allocation2 + $0xf0] sm:$0xff]  ;;  %v12353_v13 = vpop.f32.mrb[28].mxu1 }
 0x129   : > { %654 = vst.msk [vmem:[#allocation2 + $0x110] sm:$0xff] %vm619_vm9, %v12319_v39  ;;  %v604_v21 = vpop.f32.mrb[33].mxu0  ;;  %v1203_v9 = vld [vmem:[#allocation2 + $0xe0] sm:$0xff]  ;;  %v1241_v36 = vadd.f32 %v12353_v13, %v1205_v20  ;;  %v1144_v37 = vpop.f32.mrb[29].mxu1  ;;  %v1697_v39 = vld [vmem:[#allocation2 + $0x30] sm:$0xff]  ;;  %v4787_v35 = vsel %vm4776_vm11, %v4784_v16, %v4786_v18 }
 0x12a   : > { %652 = vst.msk [vmem:[#allocation2 + $0x100] sm:$0xff] %vm619_vm9, %v604_v21  ;;  %v12320_v23 = vpop.f32.mrb[34].mxu0  ;;  %v1206_v31 = vld [vmem:[#allocation2 + $0xf8] sm:$0xff]  ;;  %v1239_v41 = vadd.f32 %v1203_v9, %v1144_v37  ;;  %v12354_v26 = vpop.f32.mrb[30].mxu1 }
 0x12b   : > { %655 = vst.msk [vmem:[#allocation2 + $0x118] sm:$0xff] %vm619_vm9, %v12320_v23  ;;  %v607_v4 = vpop.f32.mrb[35].mxu0  ;;  %v1204_v40 = vld [vmem:[#allocation2 + $0xe8] sm:$0xff]  ;;  %1277 = vst.msk [vmem:[#allocation2 + $0xf0] sm:$0xff] %vm619_vm9, %v1241_v36  ;;  %v1242_v43 = vadd.f32 %v12354_v26, %v1206_v31  ;;  %v1147_v47 = vpop.f32.mrb[31].mxu1  ;;  %v1698_v9 = vld [vmem:[#allocation2 + $0x38] sm:$0xff] }
 0x12c   : > { %653 = vst.msk [vmem:[#allocation2 + $0x108] sm:$0xff] %vm619_vm9, %v607_v4  ;;  %1275 = vst.msk [vmem:[#allocation2 + $0xe0] sm:$0xff] %vm619_vm9, %v1239_v41  ;;  %v1240_v32 = vadd.f32 %v1204_v40, %v1147_v47  ;;  %v1696_v4 = vld [vmem:[#allocation2 + $0x28] sm:$0xff] }
 0x12d   : > { %12546 = vmatmul.mubr.msk.bf16.gmra.mrb[140].mxu0 %vm387_vm0, %v3648_v27  ;;  %1278 = vst.msk [vmem:[#allocation2 + $0xf8] sm:$0xff] %vm619_vm9, %v1242_v43  ;;  %12580 = vmatmul.mubr.msk.bf16.gmra.mrb[136].mxu1 %vm387_vm0, %v4279_v42  ;;  %v4785_v27 = vsel %vm4776_vm11, %v4782_v30, %v4784_v16  ;;  %v14203_v36 = vld [vmem:[%s13411_s10 + $0x48] sm:$0xff]  }
 0x12e   : > { %12589 = vmatprep.mubr.msk.bf16.mxu0 %vm387_vm0, %v4779_v33  ;;  %1276 = vst.msk [vmem:[#allocation2 + $0xe8] sm:$0xff] %vm619_vm9, %v1240_v32  ;;  %12583 = vmatprep.mubr.msk.bf16.mxu1 %vm387_vm0, %v4288_v50  ;;  %v4790_v32 = vrot.slane %v14203_v36, 3 }
 0x130   : > { %v12363_v49 = vpop.f32.mrb[36].mxu0  ;;  %v1209_v53 = vld [vmem:[#allocation2 + $0x110] sm:$0xff]  ;;  %v12357_v63 = vpop.f32.mrb[32].mxu1 }
 0x131   : > { %v1729_v54 = vadd.f32 %v12363_v49, %v1693_v52  ;;  %v1548_v46 = vpop.f32.mrb[37].mxu0  ;;  %v1207_v58 = vld [vmem:[#allocation2 + $0x100] sm:$0xff]  ;;  %v1245_v7 = vadd.f32 %v12357_v63, %v1209_v53  ;;  %v1160_v8 = vpop.f32.mrb[33].mxu1  ;;  %v1701_v49 = vld [vmem:[#allocation2 + $0x50] sm:$0xff]  ;;  %v1700_v63 = vld [vmem:[#allocation2 + $0x48] sm:$0xff] }
 0x132   : > { %v1727_v59 = vadd.f32 %v1691_v56, %v1548_v46  ;;  %v12364_v38 = vpop.f32.mrb[38].mxu0  ;;  %v1210_v1 = vld [vmem:[#allocation2 + $0x118] sm:$0xff]  ;;  %v1243_v10 = vadd.f32 %v1207_v58, %v1160_v8  ;;  %v12358_v11 = vpop.f32.mrb[34].mxu1 }
 0x133   : > { %1765 = vst.msk [vmem:[#allocation2 + $0x10] sm:$0xff] %vm619_vm9, %v1729_v54  ;;  %v1730_v51 = vadd.f32 %v12364_v38, %v1694_v60  ;;  %v1551_v2 = vpop.f32.mrb[39].mxu0  ;;  %v1208_v55 = vld [vmem:[#allocation2 + $0x108] sm:$0xff]  ;;  %1281 = vst.msk [vmem:[#allocation2 + $0x110] sm:$0xff] %vm619_vm9, %v1245_v7  ;;  %v1246_v14 = vadd.f32 %v12358_v11, %v1210_v1  ;;  %v1163_v15 = vpop.f32.mrb[35].mxu1  ;;  %v1699_v54 = vld [vmem:[#allocation2 + $0x40] sm:$0xff] }
 0x134   : > { %1763 = vst.msk [vmem:[#allocation2] sm:$0xff] %vm619_vm9, %v1727_v59  ;;  %v1728_v6 = vadd.f32 %v1692_v3, %v1551_v2  ;;  %1279 = vst.msk [vmem:[#allocation2 + $0x100] sm:$0xff] %vm619_vm9, %v1243_v10  ;;  %v1244_v17 = vadd.f32 %v1208_v55, %v1163_v15  ;;  %v4789_v59 = vsel %vm4776_vm11, %v4786_v18, %v4788_v48  ;;  %v13157_v38 = vld [vmem:[%s13411_s10 + $0x50] sm:$0xff]   ;;  %v14220_v2 = vld [vmem:[%s13411_s10 + $0x58] sm:$0xff]  }
 0x135   : > { %1766 = vst.msk [vmem:[#allocation2 + $0x18] sm:$0xff] %vm619_vm9, %v1730_v51  ;;  %12590 = vmatmul.mubr.msk.bf16.vlgmr.msra.gmra.mrb[144].mxu0 %vm387_vm0, %v4781_v61  ;;  %1282 = vst.msk [vmem:[#allocation2 + $0x118] sm:$0xff] %vm619_vm9, %v1246_v14  ;;  %12584 = vmatmul.mubr.msk.bf16.gmra.mrb[140].mxu1 %vm387_vm0, %v4297_v12  ;;  %v4791_v51 = vsel %vm4776_vm11, %v4788_v48, %v4790_v32  ;;  %v4792_v12 = vrot.slane %v13157_v38, 3  ;;  %v4794_v15 = vrot.slane %v14220_v2, 3 }
 0x136   : > { %1764 = vst.msk [vmem:[#allocation2 + $0x8] sm:$0xff] %vm619_vm9, %v1728_v6  ;;  %12593 = vmatprep.mubr.msk.bf16.mxu0 %vm387_vm0, %v4783_v0  ;;  %1280 = vst.msk [vmem:[#allocation2 + $0x108] sm:$0xff] %vm619_vm9, %v1244_v17  ;;  %v1705_v17 = vld [vmem:[#allocation2 + $0x70] sm:$0xff] }
 0x138   : > { %v12367_v19 = vpop.f32.mrb[40].mxu0  ;;  %v12401_v13 = vpop.f32.mrb[36].mxu1 }
 0x139   : > { %v1733_v20 = vadd.f32 %v12367_v19, %v1697_v39  ;;  %v1564_v21 = vpop.f32.mrb[41].mxu0  ;;  %v2063_v41 = vpop.f32.mrb[37].mxu1  ;;  %v1703_v39 = vld [vmem:[#allocation2 + $0x60] sm:$0xff] }
 0x13a   : > { %v1731_v24 = vadd.f32 %v1695_v22, %v1564_v21  ;;  %v12368_v25 = vpop.f32.mrb[42].mxu0  ;;  %v2208_v23 = vld [vmem:[#allocation2 + $0x10] sm:$0xff]  ;;  %v12402_v44 = vpop.f32.mrb[38].mxu1  ;;  %v1706_v22 = vld [vmem:[#allocation2 + $0x78] sm:$0xff] }
 0x13b   : > { %1769 = vst.msk [vmem:[#allocation2 + $0x30] sm:$0xff] %vm619_vm9, %v1733_v20  ;;  %v1734_v29 = vadd.f32 %v12368_v25, %v1698_v9  ;;  %v1567_v31 = vpop.f32.mrb[43].mxu0  ;;  %v2206_v33 = vld [vmem:[#allocation2] sm:$0xff]  ;;  %v2244_v37 = vadd.f32 %v12401_v13, %v2208_v23  ;;  %v2066_v47 = vpop.f32.mrb[39].mxu1  ;;  %v4793_v25 = vsel %vm4776_vm11, %v4790_v32, %v4792_v12 }
 0x13c   : > { %1767 = vst.msk [vmem:[#allocation2 + $0x20] sm:$0xff] %vm619_vm9, %v1731_v24  ;;  %v1732_v40 = vadd.f32 %v1696_v4, %v1567_v31  ;;  %v2209_v26 = vld [vmem:[#allocation2 + $0x18] sm:$0xff]  ;;  %v2242_v42 = vadd.f32 %v2206_v33, %v2063_v41  ;;  %v13159_v9 = vld [vmem:[%s13411_s10 + $0x60] sm:$0xff]   ;;  %v4795_v31 = vsel %vm4776_vm11, %v4792_v12, %v4794_v15  ;;  %v14237_v4 = vld [vmem:[%s13411_s10 + $0x68] sm:$0xff]  }
 0x13d   : > { %1770 = vst.msk [vmem:[#allocation2 + $0x38] sm:$0xff] %vm619_vm9, %v1734_v29  ;;  %v2207_v45 = vld [vmem:[#allocation2 + $0x8] sm:$0xff]  ;;  %12594 = vmatmul.mubr.msk.bf16.gmra.mrb[148].mxu0 %vm387_vm0, %v4785_v27  ;;  %2280 = vst.msk [vmem:[#allocation2 + $0x10] sm:$0xff] %vm619_vm9, %v2244_v37  ;;  %v2245_v43 = vadd.f32 %v12402_v44, %v2209_v26 }
 0x13e   : > { %1768 = vst.msk [vmem:[#allocation2 + $0x28] sm:$0xff] %vm619_vm9, %v1732_v40  ;;  %12597 = vmatprep.mubr.msk.bf16.mxu0 %vm387_vm0, %v4787_v35  ;;  %2278 = vst.msk [vmem:[#allocation2] sm:$0xff] %vm619_vm9, %v2242_v42  ;;  %v2243_v50 = vadd.f32 %v2207_v45, %v2066_v47  ;;  %v1704_v29 = vld [vmem:[#allocation2 + $0x68] sm:$0xff]  ;;  %v4796_v45 = vrot.slane %v13159_v9, 3  ;;  %v4798_v47 = vrot.slane %v14237_v4, 3 }
 0x13f   : > { %2281 = vst.msk [vmem:[#allocation2 + $0x18] sm:$0xff] %vm619_vm9, %v2245_v43 }
 0x140   : > { %v12371_v30 = vpop.f32.mrb[44].mxu0  ;;  %2279 = vst.msk [vmem:[#allocation2 + $0x8] sm:$0xff] %vm619_vm9, %v2243_v50  ;;  %v12405_v61 = vpop.f32.mrb[40].mxu1  ;;  %v1709_v50 = vld [vmem:[#allocation2 + $0x90] sm:$0xff] }
 0x141   : > { %v1737_v52 = vadd.f32 %v12371_v30, %v1701_v49  ;;  %v1580_v53 = vpop.f32.mrb[45].mxu0  ;;  %v2079_v5 = vpop.f32.mrb[41].mxu1  ;;  %v1707_v49 = vld [vmem:[#allocation2 + $0x80] sm:$0xff] }
 0x142   : > { %v1735_v46 = vadd.f32 %v1699_v54, %v1580_v53  ;;  %v12372_v56 = vpop.f32.mrb[46].mxu0  ;;  %v2212_v58 = vld [vmem:[#allocation2 + $0x30] sm:$0xff]  ;;  %v12406_v55 = vpop.f32.mrb[42].mxu1  ;;  %v1710_v54 = vld [vmem:[#allocation2 + $0x98] sm:$0xff] }
 0x143   : > { %1773 = vst.msk [vmem:[#allocation2 + $0x50] sm:$0xff] %vm619_vm9, %v1737_v52  ;;  %v1738_v60 = vadd.f32 %v12372_v56, %v1702_v57  ;;  %v1583_v62 = vpop.f32.mrb[47].mxu0  ;;  %v2210_v1 = vld [vmem:[#allocation2 + $0x20] sm:$0xff]  ;;  %v2248_v3 = vadd.f32 %v12405_v61, %v2212_v58  ;;  %v2082_v11 = vpop.f32.mrb[43].mxu1  ;;  %v4797_v56 = vsel %vm4776_vm11, %v4794_v15, %v4796_v45  ;;  %v13161_v57 = vld [vmem:[%s13411_s10 + $0x70] sm:$0xff]  }
 0x144   : > { %1771 = vst.msk [vmem:[#allocation2 + $0x40] sm:$0xff] %vm619_vm9, %v1735_v46  ;;  %v1736_v0 = vadd.f32 %v1700_v63, %v1583_v62  ;;  %v2213_v7 = vld [vmem:[#allocation2 + $0x38] sm:$0xff]  ;;  %v2246_v8 = vadd.f32 %v2210_v1, %v2079_v5  ;;  %v4799_v62 = vsel %vm4776_vm11, %v4796_v45, %v4798_v47 }
 0x145   : > { %1774 = vst.msk [vmem:[#allocation2 + $0x58] sm:$0xff] %vm619_vm9, %v1738_v60  ;;  %v2211_v6 = vld [vmem:[#allocation2 + $0x28] sm:$0xff]  ;;  %12598 = vmatmul.mubr.msk.bf16.gmra.mrb[152].mxu0 %vm387_vm0, %v4789_v59  ;;  %2284 = vst.msk [vmem:[#allocation2 + $0x30] sm:$0xff] %vm619_vm9, %v2248_v3  ;;  %v2249_v10 = vadd.f32 %v12406_v55, %v2213_v7  ;;  %v14254_v63 = vld [vmem:[%s13411_s10 + $0x78] sm:$0xff]  }
 0x146   : > { %1772 = vst.msk [vmem:[#allocation2 + $0x48] sm:$0xff] %vm619_vm9, %v1736_v0  ;;  %12601 = vmatprep.mubr.msk.bf16.mxu0 %vm387_vm0, %v4791_v51  ;;  %2282 = vst.msk [vmem:[#allocation2 + $0x20] sm:$0xff] %vm619_vm9, %v2246_v8  ;;  %v2247_v14 = vadd.f32 %v2211_v6, %v2082_v11  ;;  %v1708_v60 = vld [vmem:[#allocation2 + $0x88] sm:$0xff]  ;;  %v4800_v6 = vrot.slane %v13161_v57, 3  ;;  %v4802_v11 = vrot.slane %v14254_v63, 3 }
 0x147   : > { %2285 = vst.msk [vmem:[#allocation2 + $0x38] sm:$0xff] %vm619_vm9, %v2249_v10 }
 0x148   : > { %v12375_v16 = vpop.f32.mrb[48].mxu0  ;;  %2283 = vst.msk [vmem:[#allocation2 + $0x28] sm:$0xff] %vm619_vm9, %v2247_v14  ;;  %v12409_v27 = vpop.f32.mrb[44].mxu1  ;;  %v1713_v14 = vld [vmem:[#allocation2 + $0xb0] sm:$0xff] }
 0x149   : > { %v1741_v18 = vadd.f32 %v12375_v16, %v1705_v17  ;;  %v1596_v19 = vpop.f32.mrb[49].mxu0  ;;  %v2095_v36 = vpop.f32.mrb[45].mxu1  ;;  %v1711_v17 = vld [vmem:[#allocation2 + $0xa0] sm:$0xff] }
 0x14a   : > { %v1739_v20 = vadd.f32 %v1703_v39, %v1596_v19  ;;  %v12376_v21 = vpop.f32.mrb[50].mxu0  ;;  %v2216_v24 = vld [vmem:[#allocation2 + $0x50] sm:$0xff]  ;;  %v12410_v41 = vpop.f32.mrb[46].mxu1  ;;  %v1714_v39 = vld [vmem:[#allocation2 + $0xb8] sm:$0xff] }
 0x14b   : > { %1777 = vst.msk [vmem:[#allocation2 + $0x70] sm:$0xff] %vm619_vm9, %v1741_v18  ;;  %v1742_v23 = vadd.f32 %v12376_v21, %v1706_v22  ;;  %v1599_v28 = vpop.f32.mrb[51].mxu0  ;;  %v2214_v13 = vld [vmem:[#allocation2 + $0x40] sm:$0xff]  ;;  %v2252_v33 = vadd.f32 %v12409_v27, %v2216_v24  ;;  %v2098_v44 = vpop.f32.mrb[47].mxu1  ;;  %v4801_v21 = vsel %vm4776_vm11, %v4798_v47, %v4800_v6 }
 0x14c   : > { %1775 = vst.msk [vmem:[#allocation2 + $0x60] sm:$0xff] %vm619_vm9, %v1739_v20  ;;  %v1740_v35 = vadd.f32 %v1704_v29, %v1599_v28  ;;  %v2217_v37 = vld [vmem:[#allocation2 + $0x58] sm:$0xff]  ;;  %v2250_v40 = vadd.f32 %v2214_v13, %v2095_v36  ;;  %v13163_v22 = vld [vmem:[%s13411_s10 + $0x80] sm:$0xff]   ;;  %v4803_v28 = vsel %vm4776_vm11, %v4800_v6, %v4802_v11  ;;  %v14271_v29 = vld [vmem:[%s13411_s10 + $0x88] sm:$0xff]  }
 0x14d   : > { %1778 = vst.msk [vmem:[#allocation2 + $0x78] sm:$0xff] %vm619_vm9, %v1742_v23  ;;  %v2215_v26 = vld [vmem:[#allocation2 + $0x48] sm:$0xff]  ;;  %12602 = vmatmul.mubr.msk.bf16.gmra.mrb[156].mxu0 %vm387_vm0, %v4793_v25  ;;  %2288 = vst.msk [vmem:[#allocation2 + $0x50] sm:$0xff] %vm619_vm9, %v2252_v33  ;;  %v2253_v42 = vadd.f32 %v12410_v41, %v2217_v37 }
 0x14e   : > { %1776 = vst.msk [vmem:[#allocation2 + $0x68] sm:$0xff] %vm619_vm9, %v1740_v35  ;;  %12605 = vmatprep.mubr.msk.bf16.mxu0 %vm387_vm0, %v4795_v31  ;;  %2286 = vst.msk [vmem:[#allocation2 + $0x40] sm:$0xff] %vm619_vm9, %v2250_v40  ;;  %v2251_v43 = vadd.f32 %v2215_v26, %v2098_v44  ;;  %v1712_v23 = vld [vmem:[#allocation2 + $0xa8] sm:$0xff]  ;;  %v4804_v26 = vrot.slane %v13163_v22, 3  ;;  %v4806_v44 = vrot.slane %v14271_v29, 3 }
 0x14f   : > { %2289 = vst.msk [vmem:[#allocation2 + $0x58] sm:$0xff] %vm619_vm9, %v2253_v42 }
 0x150   : > { %v12379_v48 = vpop.f32.mrb[52].mxu0  ;;  %2287 = vst.msk [vmem:[#allocation2 + $0x48] sm:$0xff] %vm619_vm9, %v2251_v43  ;;  %v12413_v59 = vpop.f32.mrb[48].mxu1  ;;  %v1717_v43 = vld [vmem:[#allocation2 + $0xd0] sm:$0xff] }
 0x151   : > { %v1745_v32 = vadd.f32 %v12379_v48, %v1709_v50  ;;  %v1612_v30 = vpop.f32.mrb[53].mxu0  ;;  %v2111_v2 = vpop.f32.mrb[49].mxu1  ;;  %v1715_v50 = vld [vmem:[#allocation2 + $0xc0] sm:$0xff] }
 0x152   : > { %v1743_v52 = vadd.f32 %v1707_v49, %v1612_v30  ;;  %v12380_v53 = vpop.f32.mrb[54].mxu0  ;;  %v2220_v46 = vld [vmem:[#allocation2 + $0x70] sm:$0xff]  ;;  %v12414_v5 = vpop.f32.mrb[50].mxu1  ;;  %v1718_v49 = vld [vmem:[#allocation2 + $0xd8] sm:$0xff] }
 0x153   : > { %1781 = vst.msk [vmem:[#allocation2 + $0x90] sm:$0xff] %vm619_vm9, %v1745_v32  ;;  %v1746_v58 = vadd.f32 %v12380_v53, %v1710_v54  ;;  %v1615_v38 = vpop.f32.mrb[55].mxu0  ;;  %v2218_v61 = vld [vmem:[#allocation2 + $0x60] sm:$0xff]  ;;  %v2256_v1 = vadd.f32 %v12413_v59, %v2220_v46  ;;  %v2114_v55 = vpop.f32.mrb[51].mxu1  ;;  %v4805_v53 = vsel %vm4776_vm11, %v4802_v11, %v4804_v26  ;;  %v13165_v54 = vld [vmem:[%s13411_s10 + $0x90] sm:$0xff]  }
 0x154   : > { %1779 = vst.msk [vmem:[#allocation2 + $0x80] sm:$0xff] %vm619_vm9, %v1743_v52  ;;  %v1744_v51 = vadd.f32 %v1708_v60, %v1615_v38  ;;  %v2221_v3 = vld [vmem:[#allocation2 + $0x78] sm:$0xff]  ;;  %v2254_v0 = vadd.f32 %v2218_v61, %v2111_v2  ;;  %v4807_v38 = vsel %vm4776_vm11, %v4804_v26, %v4806_v44  ;;  %v13167_v11 = vld [vmem:[%s13411_s10 + $0xa0] ss:$0 sps:$4 sm:$0x77]  }
 0x155   : > { %1782 = vst.msk [vmem:[#allocation2 + $0x98] sm:$0xff] %vm619_vm9, %v1746_v58  ;;  %v2219_v7 = vld [vmem:[#allocation2 + $0x68] sm:$0xff]  ;;  %12606 = vmatmul.mubr.msk.bf16.gmra.mrb[160].mxu0 %vm387_vm0, %v4797_v56  ;;  %2292 = vst.msk [vmem:[#allocation2 + $0x70] sm:$0xff] %vm619_vm9, %v2256_v1  ;;  %v2257_v8 = vadd.f32 %v12414_v5, %v2221_v3  ;;  %v14288_v60 = vld [vmem:[%s13411_s10 + $0x98] sm:$0xff]  }
 0x156   : > { %1780 = vst.msk [vmem:[#allocation2 + $0x88] sm:$0xff] %vm619_vm9, %v1744_v51  ;;  %12609 = vmatprep.mubr.msk.bf16.mxu0 %vm387_vm0, %v4799_v62  ;;  %2290 = vst.msk [vmem:[#allocation2 + $0x60] sm:$0xff] %vm619_vm9, %v2254_v0  ;;  %v2255_v10 = vadd.f32 %v2219_v7, %v2114_v55  ;;  %v1716_v58 = vld [vmem:[#allocation2 + $0xc8] sm:$0xff]  ;;  %v4808_v7 = vrot.slane %v13165_v54, 3  ;;  %v4810_v55 = vrot.slane %v14288_v60, 3 }
 0x157   : > { %2293 = vst.msk [vmem:[#allocation2 + $0x78] sm:$0xff] %vm619_vm9, %v2257_v8  ;;  %v1724_v54 = vld [vmem:[#allocation2 + $0x108] sm:$0xff] }
 0x158   : > { %v12383_v12 = vpop.f32.mrb[56].mxu0  ;;  %2291 = vst.msk [vmem:[#allocation2 + $0x68] sm:$0xff] %vm619_vm9, %v2255_v10  ;;  %v12417_v25 = vpop.f32.mrb[52].mxu1  ;;  %v1721_v10 = vld [vmem:[#allocation2 + $0xf0] sm:$0xff] }
 0x159   : > { %v1749_v15 = vadd.f32 %v12383_v12, %v1713_v14  ;;  %v1628_v16 = vpop.f32.mrb[57].mxu0  ;;  %v2127_v4 = vpop.f32.mrb[53].mxu1 }
 0x15a   : > { %v1747_v18 = vadd.f32 %v1711_v17, %v1628_v16  ;;  %v12384_v19 = vpop.f32.mrb[58].mxu0  ;;  %v2224_v20 = vld [vmem:[#allocation2 + $0x90] sm:$0xff]  ;;  %v12418_v36 = vpop.f32.mrb[54].mxu1  ;;  %v6128_v16 = vld [vmem:[%s16595_s4] sm:$0xf] }
 0x15b   : > { %1785 = vst.msk [vmem:[#allocation2 + $0xb0] sm:$0xff] %vm619_vm9, %v1749_v15  ;;  %v1750_v24 = vadd.f32 %v12384_v19, %v1714_v39  ;;  %v1631_v9 = vpop.f32.mrb[59].mxu0  ;;  %v2222_v27 = vld [vmem:[#allocation2 + $0x80] sm:$0xff]  ;;  %v2260_v13 = vadd.f32 %v12417_v25, %v2224_v20  ;;  %v2130_v41 = vpop.f32.mrb[55].mxu1  ;;  %v1722_v19 = vld [vmem:[#allocation2 + $0xf8] sm:$0xff]  ;;  %v4809_v20 = vsel %vm4776_vm11, %v4806_v44, %v4808_v7  ;;  %12967 = vmatprep.subr.msk.bf16.mxu1 %vm6273_vm12, %v6128_v16 }
 0x15c   : > { %1783 = vst.msk [vmem:[#allocation2 + $0xa0] sm:$0xff] %vm619_vm9, %v1747_v18  ;;  %v1748_v31 = vadd.f32 %v1712_v23, %v1631_v9  ;;  %v2225_v33 = vld [vmem:[#allocation2 + $0x98] sm:$0xff]  ;;  %v2258_v35 = vadd.f32 %v2222_v27, %v2127_v4  ;;  %v1719_v15 = vld [vmem:[#allocation2 + $0xe0] sm:$0xff]  ;;  %v1720_v9 = vld [vmem:[#allocation2 + $0xe8] sm:$0xff]  ;;  %v4811_v27 = vsel %vm4776_vm11, %v4808_v7, %v4810_v55 }
 0x15d   : > { %1786 = vst.msk [vmem:[#allocation2 + $0xb8] sm:$0xff] %vm619_vm9, %v1750_v24  ;;  %v2223_v37 = vld [vmem:[#allocation2 + $0x88] sm:$0xff]  ;;  %12610 = vmatmul.mubr.msk.bf16.gmra.mrb[164].mxu0 %vm387_vm0, %v4801_v21  ;;  %2296 = vst.msk [vmem:[#allocation2 + $0x90] sm:$0xff] %vm619_vm9, %v2260_v13  ;;  %v2261_v40 = vadd.f32 %v12418_v36, %v2225_v33  ;;  %v6275_v21 = vsel %vm6273_vm12, %v6128_v16, 0 }
 0x15e   : > { %1784 = vst.msk [vmem:[#allocation2 + $0xa8] sm:$0xff] %vm619_vm9, %v1748_v31  ;;  %12613 = vmatprep.mubr.msk.bf16.mxu0 %vm387_vm0, %v4803_v28  ;;  %2294 = vst.msk [vmem:[#allocation2 + $0x80] sm:$0xff] %vm619_vm9, %v2258_v35  ;;  %v2259_v42 = vadd.f32 %v2223_v37, %v2130_v41  ;;  %12626 = vmatpush3.bf16.msra.mxu1 %v6275_v21 }
 0x15f   : > { %2297 = vst.msk [vmem:[#allocation2 + $0x98] sm:$0xff] %vm619_vm9, %v2261_v40  ;;  %v4812_v40 = vrot.slane %v13167_v11, 3 }
 0x160   : > { %v12387_v45 = vpop.f32.mrb[60].mxu0  ;;  %2295 = vst.msk [vmem:[#allocation2 + $0x88] sm:$0xff] %vm619_vm9, %v2259_v42  ;;  %v12421_v56 = vpop.f32.mrb[56].mxu1  ;;  %v1725_v42 = vld [vmem:[#allocation2 + $0x110] sm:$0xff] }
 0x161   : > { %v1753_v47 = vadd.f32 %v12387_v45, %v1717_v43  ;;  %v1644_v48 = vpop.f32.mrb[61].mxu0  ;;  %v2143_v63 = vpop.f32.mrb[57].mxu1  ;;  %v1723_v43 = vld [vmem:[#allocation2 + $0x100] sm:$0xff] }
 0x162   : > { %v1751_v32 = vadd.f32 %v1715_v50, %v1644_v48  ;;  %v12388_v30 = vpop.f32.mrb[62].mxu0  ;;  %v2228_v52 = vld [vmem:[#allocation2 + $0xb0] sm:$0xff]  ;;  %v12422_v2 = vpop.f32.mrb[58].mxu1  ;;  %v1726_v50 = vld [vmem:[#allocation2 + $0x118] sm:$0xff] }
 0x163   : > { %1789 = vst.msk [vmem:[#allocation2 + $0xd0] sm:$0xff] %vm619_vm9, %v1753_v47  ;;  %v1754_v46 = vadd.f32 %v12388_v30, %v1718_v49  ;;  %v1647_v57 = vpop.f32.mrb[63].mxu0  ;;  %v2226_v59 = vld [vmem:[#allocation2 + $0xa0] sm:$0xff]  ;;  %v2264_v61 = vadd.f32 %v12421_v56, %v2228_v52  ;;  %v2146_v5 = vpop.f32.mrb[59].mxu1  ;;  %v4813_v30 = vsel %vm4776_vm11, %v4810_v55, %v4812_v40  ;;  %v2860_v40 = vld [vmem:[#allocation2 + $0x28] sm:$0xff] }
 0x164   : > { %1787 = vst.msk [vmem:[#allocation2 + $0xc0] sm:$0xff] %vm619_vm9, %v1751_v32  ;;  %v1752_v62 = vadd.f32 %v1716_v58, %v1647_v57  ;;  %v2229_v1 = vld [vmem:[#allocation2 + $0xb8] sm:$0xff]  ;;  %v2262_v51 = vadd.f32 %v2226_v59, %v2143_v63 }
 0x165   : > { %1790 = vst.msk [vmem:[#allocation2 + $0xd8] sm:$0xff] %vm619_vm9, %v1754_v46  ;;  %v2227_v3 = vld [vmem:[#allocation2 + $0xa8] sm:$0xff]  ;;  %12614 = vmatmul.mubr.msk.bf16.gmra.mrb[168].mxu0 %vm387_vm0, %v4805_v53  ;;  %2300 = vst.msk [vmem:[#allocation2 + $0xb0] sm:$0xff] %vm619_vm9, %v2264_v61  ;;  %v2265_v0 = vadd.f32 %v12422_v2, %v2229_v1  ;;  %v2857_v2 = vld [vmem:[#allocation2 + $0x10] sm:$0xff] }
 0x166   : > { %1788 = vst.msk [vmem:[#allocation2 + $0xc8] sm:$0xff] %vm619_vm9, %v1752_v62  ;;  %12617 = vmatprep.mubr.msk.bf16.mxu0 %vm387_vm0, %v4807_v38  ;;  %2298 = vst.msk [vmem:[#allocation2 + $0xa0] sm:$0xff] %vm619_vm9, %v2262_v51  ;;  %v2263_v8 = vadd.f32 %v2227_v3, %v2146_v5  ;;  %v2855_v5 = vld [vmem:[#allocation2] sm:$0xff] }
 0x167   : > { %2301 = vst.msk [vmem:[#allocation2 + $0xb8] sm:$0xff] %vm619_vm9, %v2265_v0 }
 0x168   : > { %v12391_v6 = vpop.f32.mrb[64].mxu0  ;;  %2299 = vst.msk [vmem:[#allocation2 + $0xa8] sm:$0xff] %vm619_vm9, %v2263_v8  ;;  %v12425_v24 = vpop.f32.mrb[60].mxu1 }
 0x169   : > { %v1757_v12 = vadd.f32 %v12391_v6, %v1721_v10  ;;  %v1660_v14 = vpop.f32.mrb[65].mxu0  ;;  %v2159_v13 = vpop.f32.mrb[61].mxu1  ;;  %v2858_v6 = vld [vmem:[#allocation2 + $0x18] sm:$0xff] }
 0x16a   : > { %v1755_v17 = vadd.f32 %v1719_v15, %v1660_v14  ;;  %v12392_v18 = vpop.f32.mrb[66].mxu0  ;;  %v2232_v39 = vld [vmem:[#allocation2 + $0xd0] sm:$0xff]  ;;  %v12426_v33 = vpop.f32.mrb[62].mxu1  ;;  %v2856_v15 = vld [vmem:[#allocation2 + $0x8] sm:$0xff] }
 0x16b   : > { %1793 = vst.msk [vmem:[#allocation2 + $0xf0] sm:$0xff] %vm619_vm9, %v1757_v12  ;;  %v1758_v22 = vadd.f32 %v12392_v18, %v1722_v19  ;;  %v1663_v25 = vpop.f32.mrb[67].mxu0  ;;  %v2230_v23 = vld [vmem:[#allocation2 + $0xc0] sm:$0xff]  ;;  %v2268_v28 = vadd.f32 %v12425_v24, %v2232_v39  ;;  %v2162_v37 = vpop.f32.mrb[63].mxu1 }
 0x16c   : > { %1791 = vst.msk [vmem:[#allocation2 + $0xe0] sm:$0xff] %vm619_vm9, %v1755_v17  ;;  %v1756_v29 = vadd.f32 %v1720_v9, %v1663_v25  ;;  %v2233_v31 = vld [vmem:[#allocation2 + $0xd8] sm:$0xff]  ;;  %v2266_v4 = vadd.f32 %v2230_v23, %v2159_v13  ;;  %v2861_v23 = vld [vmem:[#allocation2 + $0x30] sm:$0xff] }
 0x16d   : > { %1794 = vst.msk [vmem:[#allocation2 + $0xf8] sm:$0xff] %vm619_vm9, %v1758_v22  ;;  %v2231_v35 = vld [vmem:[#allocation2 + $0xc8] sm:$0xff]  ;;  %12618 = vmatmul.mubr.msk.bf16.gmra.mrb[172].mxu0 %vm387_vm0, %v4809_v20  ;;  %2304 = vst.msk [vmem:[#allocation2 + $0xd0] sm:$0xff] %vm619_vm9, %v2268_v28  ;;  %v2269_v36 = vadd.f32 %v12426_v33, %v2233_v31 }
 0x16e   : > { %1792 = vst.msk [vmem:[#allocation2 + $0xe8] sm:$0xff] %vm619_vm9, %v1756_v29  ;;  %12621 = vmatprep.mubr.msk.bf16.mxu0 %vm387_vm0, %v4811_v27  ;;  %2302 = vst.msk [vmem:[#allocation2 + $0xc0] sm:$0xff] %vm619_vm9, %v2266_v4  ;;  %v2267_v41 = vadd.f32 %v2231_v35, %v2162_v37  ;;  %v2859_v29 = vld [vmem:[#allocation2 + $0x20] sm:$0xff]  ;;  %v2862_v4 = vld [vmem:[#allocation2 + $0x38] sm:$0xff] }
 0x16f   : > { %2305 = vst.msk [vmem:[#allocation2 + $0xd8] sm:$0xff] %vm619_vm9, %v2269_v36 }
 0x170   : > { %v12395_v26 = vpop.f32.mrb[68].mxu0  ;;  %2303 = vst.msk [vmem:[#allocation2 + $0xc8] sm:$0xff] %vm619_vm9, %v2267_v41  ;;  %v12429_v52 = vpop.f32.mrb[64].mxu1 }
 0x171   : > { %v1761_v44 = vadd.f32 %v12395_v26, %v1725_v42  ;;  %v1676_v45 = vpop.f32.mrb[69].mxu0  ;;  %v2175_v58 = vpop.f32.mrb[65].mxu1 }
 0x172   : > { %v1759_v47 = vadd.f32 %v1723_v43, %v1676_v45  ;;  %v12396_v48 = vpop.f32.mrb[70].mxu0  ;;  %v2236_v32 = vld [vmem:[#allocation2 + $0xf0] sm:$0xff]  ;;  %v12430_v60 = vpop.f32.mrb[66].mxu1 }
 0x173   : > { %1797 = vst.msk [vmem:[#allocation2 + $0x110] sm:$0xff] %vm619_vm9, %v1761_v44  ;;  %v1762_v49 = vadd.f32 %v12396_v48, %v1726_v50  ;;  %v1679_v53 = vpop.f32.mrb[71].mxu0  ;;  %v2234_v46 = vld [vmem:[#allocation2 + $0xe0] sm:$0xff]  ;;  %v2272_v56 = vadd.f32 %v12429_v52, %v2236_v32  ;;  %v2178_v63 = vpop.f32.mrb[67].mxu1  ;;  %v2865_v52 = vld [vmem:[#allocation2 + $0x50] sm:$0xff] }
 0x174   : > { %1795 = vst.msk [vmem:[#allocation2 + $0x100] sm:$0xff] %vm619_vm9, %v1759_v47  ;;  %v1760_v57 = vadd.f32 %v1724_v54, %v1679_v53  ;;  %v2237_v59 = vld [vmem:[#allocation2 + $0xf8] sm:$0xff]  ;;  %v2270_v38 = vadd.f32 %v2234_v46, %v2175_v58  ;;  %v2863_v46 = vld [vmem:[#allocation2 + $0x40] sm:$0xff] }
 0x175   : > { %1798 = vst.msk [vmem:[#allocation2 + $0x118] sm:$0xff] %vm619_vm9, %v1762_v49  ;;  %v2235_v61 = vld [vmem:[#allocation2 + $0xe8] sm:$0xff]  ;;  %12622 = vmatmul.mubr.msk.bf16.gmra.mrb[176].mxu0 %vm387_vm0, %v4813_v30  ;;  %2308 = vst.msk [vmem:[#allocation2 + $0xf0] sm:$0xff] %vm619_vm9, %v2272_v56  ;;  %v2273_v62 = vadd.f32 %v12430_v60, %v2237_v59  ;;  %v2866_v58 = vld [vmem:[#allocation2 + $0x58] sm:$0xff] }
 0x176   : > { %1796 = vst.msk [vmem:[#allocation2 + $0x108] sm:$0xff] %vm619_vm9, %v1760_v57  ;;  %2306 = vst.msk [vmem:[#allocation2 + $0xe0] sm:$0xff] %vm619_vm9, %v2270_v38  ;;  %v2271_v1 = vadd.f32 %v2235_v61, %v2178_v63 }
 0x177   : > { %2309 = vst.msk [vmem:[#allocation2 + $0xf8] sm:$0xff] %vm619_vm9, %v2273_v62  ;;  %v2864_v62 = vld [vmem:[#allocation2 + $0x48] sm:$0xff]  ;;  %vm14553_vm0 = vmand %vm6041_vm14, %vm6042_vm15 }
 0x178   : > { %v12439_v51 = vpop.f32.mrb[72].mxu0  ;;  %2307 = vst.msk [vmem:[#allocation2 + $0xe8] sm:$0xff] %vm619_vm9, %v2271_v1  ;;  %v12433_v10 = vpop.f32.mrb[68].mxu1 }
 0x179   : > { %v2893_v3 = vadd.f32 %v12439_v51, %v2857_v2  ;;  %v2712_v0 = vpop.f32.mrb[73].mxu0  ;;  %v2191_v17 = vpop.f32.mrb[69].mxu1 }
 0x17a   : > { %v2891_v7 = vadd.f32 %v2855_v5, %v2712_v0  ;;  %v2240_v8 = vld [vmem:[#allocation2 + $0x110] sm:$0xff]  ;;  %v12440_v55 = vpop.f32.mrb[74].mxu0  ;;  %v12434_v20 = vpop.f32.mrb[70].mxu1 }
 0x17b   : > { %2929 = vst.msk [vmem:[#allocation2 + $0x10] sm:$0xff] %vm619_vm9, %v2893_v3  ;;  %v2894_v11 = vadd.f32 %v12440_v55, %v2858_v6  ;;  %v2238_v12 = vld [vmem:[#allocation2 + $0x100] sm:$0xff]  ;;  %v2715_v14 = vpop.f32.mrb[75].mxu0  ;;  %v2276_v16 = vadd.f32 %v12433_v10, %v2240_v8  ;;  %v2194_v24 = vpop.f32.mrb[71].mxu1 }
 0x17c   : > { %2927 = vst.msk [vmem:[#allocation2] sm:$0xff] %vm619_vm9, %v2891_v7  ;;  %v2892_v18 = vadd.f32 %v2856_v15, %v2715_v14  ;;  %v2241_v19 = vld [vmem:[#allocation2 + $0x118] sm:$0xff]  ;;  %v2274_v39 = vadd.f32 %v2238_v12, %v2191_v17  ;;  %v2867_v15 = vld [vmem:[#allocation2 + $0x60] sm:$0xff] }
 0x17d   : > { %2930 = vst.msk [vmem:[#allocation2 + $0x18] sm:$0xff] %vm619_vm9, %v2894_v11  ;;  %v2239_v21 = vld [vmem:[#allocation2 + $0x108] sm:$0xff]  ;;  %2312 = vst.msk [vmem:[#allocation2 + $0x110] sm:$0xff] %vm619_vm9, %v2276_v16  ;;  %v2277_v22 = vadd.f32 %v12434_v20, %v2241_v19  ;;  %v2869_v11 = vld [vmem:[#allocation2 + $0x70] sm:$0xff] }
 0x17e   : > { %2928 = vst.msk [vmem:[#allocation2 + $0x8] sm:$0xff] %vm619_vm9, %v2892_v18  ;;  %2310 = vst.msk [vmem:[#allocation2 + $0x100] sm:$0xff] %vm619_vm9, %v2274_v39  ;;  %v2275_v25 = vadd.f32 %v2239_v21, %v2194_v24  ;;  %v2870_v18 = vld [vmem:[#allocation2 + $0x78] sm:$0xff] }
 0x17f   : > { %2313 = vst.msk [vmem:[#allocation2 + $0x118] sm:$0xff] %vm619_vm9, %v2277_v22  ;;  %v2868_v22 = vld [vmem:[#allocation2 + $0x68] sm:$0xff] }
 0x180   : > { %v12443_v9 = vpop.f32.mrb[76].mxu0  ;;  %2311 = vst.msk [vmem:[#allocation2 + $0x108] sm:$0xff] %vm619_vm9, %v2275_v25  ;;  %v12477_v36 = vpop.f32.mrb[72].mxu1 }
 0x181   : > { %v2897_v27 = vadd.f32 %v12443_v9, %v2861_v23  ;;  %v2728_v28 = vpop.f32.mrb[77].mxu0  ;;  %v3228_v44 = vpop.f32.mrb[73].mxu1 }
 0x182   : > { %v2895_v13 = vadd.f32 %v2859_v29, %v2728_v28  ;;  %v12444_v31 = vpop.f32.mrb[78].mxu0  ;;  %v3373_v33 = vld [vmem:[#allocation2 + $0x10] sm:$0xff]  ;;  %v12478_v47 = vpop.f32.mrb[74].mxu1 }
 0x183   : > { %2933 = vst.msk [vmem:[#allocation2 + $0x30] sm:$0xff] %vm619_vm9, %v2897_v27  ;;  %v2898_v35 = vadd.f32 %v12444_v31, %v2862_v4  ;;  %v2731_v37 = vpop.f32.mrb[79].mxu0  ;;  %v3371_v41 = vld [vmem:[#allocation2] sm:$0xff]  ;;  %v3409_v26 = vadd.f32 %v12477_v36, %v3373_v33  ;;  %v3231_v32 = vpop.f32.mrb[75].mxu1  ;;  %v2873_v36 = vld [vmem:[#allocation2 + $0x90] sm:$0xff] }
 0x184   : > { %2931 = vst.msk [vmem:[#allocation2 + $0x20] sm:$0xff] %vm619_vm9, %v2895_v13  ;;  %v2896_v42 = vadd.f32 %v2860_v40, %v2731_v37  ;;  %v3374_v45 = vld [vmem:[#allocation2 + $0x18] sm:$0xff]  ;;  %v3407_v43 = vadd.f32 %v3371_v41, %v3228_v44  ;;  %v2871_v41 = vld [vmem:[#allocation2 + $0x80] sm:$0xff] }
 0x185   : > { %2934 = vst.msk [vmem:[#allocation2 + $0x38] sm:$0xff] %vm619_vm9, %v2898_v35  ;;  %v3372_v48 = vld [vmem:[#allocation2 + $0x8] sm:$0xff]  ;;  %3445 = vst.msk [vmem:[#allocation2 + $0x10] sm:$0xff] %vm619_vm9, %v3409_v26  ;;  %v3410_v50 = vadd.f32 %v12478_v47, %v3374_v45  ;;  %v2874_v44 = vld [vmem:[#allocation2 + $0x98] sm:$0xff] }
 0x186   : > { %2932 = vst.msk [vmem:[#allocation2 + $0x28] sm:$0xff] %vm619_vm9, %v2896_v42  ;;  %3443 = vst.msk [vmem:[#allocation2] sm:$0xff] %vm619_vm9, %v3407_v43  ;;  %v3408_v30 = vadd.f32 %v3372_v48, %v3231_v32 }
 0x187   : > { %3446 = vst.msk [vmem:[#allocation2 + $0x18] sm:$0xff] %vm619_vm9, %v3410_v50  ;;  %v2872_v50 = vld [vmem:[#allocation2 + $0x88] sm:$0xff] }
 0x188   : > { %v12447_v49 = vpop.f32.mrb[80].mxu0  ;;  %3444 = vst.msk [vmem:[#allocation2 + $0x8] sm:$0xff] %vm619_vm9, %v3408_v30  ;;  %v12481_v60 = vpop.f32.mrb[76].mxu1 }
 0x189   : > { %v2901_v53 = vadd.f32 %v12447_v49, %v2865_v52  ;;  %v2744_v54 = vpop.f32.mrb[81].mxu0  ;;  %v3244_v2 = vpop.f32.mrb[77].mxu1 }
 0x18a   : > { %v2899_v56 = vadd.f32 %v2863_v46, %v2744_v54  ;;  %v12448_v57 = vpop.f32.mrb[82].mxu0  ;;  %v3377_v59 = vld [vmem:[#allocation2 + $0x30] sm:$0xff]  ;;  %v12482_v5 = vpop.f32.mrb[78].mxu1 }
 0x18b   : > { %2937 = vst.msk [vmem:[#allocation2 + $0x50] sm:$0xff] %vm619_vm9, %v2901_v53  ;;  %v2902_v38 = vadd.f32 %v12448_v57, %v2866_v58  ;;  %v2747_v61 = vpop.f32.mrb[83].mxu0  ;;  %v3375_v63 = vld [vmem:[#allocation2 + $0x20] sm:$0xff]  ;;  %v3413_v1 = vadd.f32 %v12481_v60, %v3377_v59  ;;  %v3247_v55 = vpop.f32.mrb[79].mxu1  ;;  %v2877_v60 = vld [vmem:[#allocation2 + $0xb0] sm:$0xff] }
 0x18c   : > { %2935 = vst.msk [vmem:[#allocation2 + $0x40] sm:$0xff] %vm619_vm9, %v2899_v56  ;;  %v2900_v51 = vadd.f32 %v2864_v62, %v2747_v61  ;;  %v3378_v3 = vld [vmem:[#allocation2 + $0x38] sm:$0xff]  ;;  %v3411_v0 = vadd.f32 %v3375_v63, %v3244_v2  ;;  %v2875_v63 = vld [vmem:[#allocation2 + $0xa0] sm:$0xff] }
 0x18d   : > { %2938 = vst.msk [vmem:[#allocation2 + $0x58] sm:$0xff] %vm619_vm9, %v2902_v38  ;;  %v3376_v7 = vld [vmem:[#allocation2 + $0x28] sm:$0xff]  ;;  %3449 = vst.msk [vmem:[#allocation2 + $0x30] sm:$0xff] %vm619_vm9, %v3413_v1  ;;  %v3414_v8 = vadd.f32 %v12482_v5, %v3378_v3  ;;  %v2878_v2 = vld [vmem:[#allocation2 + $0xb8] sm:$0xff] }
 0x18e   : > { %2936 = vst.msk [vmem:[#allocation2 + $0x48] sm:$0xff] %vm619_vm9, %v2900_v51  ;;  %3447 = vst.msk [vmem:[#allocation2 + $0x20] sm:$0xff] %vm619_vm9, %v3411_v0  ;;  %v3412_v6 = vadd.f32 %v3376_v7, %v3247_v55 }
 0x18f   : > { %3450 = vst.msk [vmem:[#allocation2 + $0x38] sm:$0xff] %vm619_vm9, %v3414_v8  ;;  %v2876_v8 = vld [vmem:[#allocation2 + $0xa8] sm:$0xff] }
 0x190   : > { %v12451_v10 = vpop.f32.mrb[84].mxu0  ;;  %3448 = vst.msk [vmem:[#allocation2 + $0x28] sm:$0xff] %vm619_vm9, %v3412_v6  ;;  %v12485_v20 = vpop.f32.mrb[80].mxu1 }
 0x191   : > { %v2905_v12 = vadd.f32 %v12451_v10, %v2869_v11  ;;  %v2760_v14 = vpop.f32.mrb[85].mxu0  ;;  %v3260_v23 = vpop.f32.mrb[81].mxu1 }
 0x192   : > { %v2903_v16 = vadd.f32 %v2867_v15, %v2760_v14  ;;  %v12452_v17 = vpop.f32.mrb[86].mxu0  ;;  %v3381_v19 = vld [vmem:[#allocation2 + $0x50] sm:$0xff]  ;;  %v12486_v29 = vpop.f32.mrb[82].mxu1 }
 0x193   : > { %2941 = vst.msk [vmem:[#allocation2 + $0x70] sm:$0xff] %vm619_vm9, %v2905_v12  ;;  %v2906_v39 = vadd.f32 %v12452_v17, %v2870_v18  ;;  %v2763_v21 = vpop.f32.mrb[87].mxu0  ;;  %v3379_v24 = vld [vmem:[#allocation2 + $0x40] sm:$0xff]  ;;  %v3417_v25 = vadd.f32 %v12485_v20, %v3381_v19  ;;  %v3263_v4 = vpop.f32.mrb[83].mxu1  ;;  %v2881_v20 = vld [vmem:[#allocation2 + $0xd0] sm:$0xff] }
 0x194   : > { %2939 = vst.msk [vmem:[#allocation2 + $0x60] sm:$0xff] %vm619_vm9, %v2903_v16  ;;  %v2904_v9 = vadd.f32 %v2868_v22, %v2763_v21  ;;  %v3382_v27 = vld [vmem:[#allocation2 + $0x58] sm:$0xff]  ;;  %v3415_v28 = vadd.f32 %v3379_v24, %v3260_v23  ;;  %v2879_v24 = vld [vmem:[#allocation2 + $0xc0] sm:$0xff] }
 0x195   : > { %2942 = vst.msk [vmem:[#allocation2 + $0x78] sm:$0xff] %vm619_vm9, %v2906_v39  ;;  %v3380_v13 = vld [vmem:[#allocation2 + $0x48] sm:$0xff]  ;;  %3453 = vst.msk [vmem:[#allocation2 + $0x50] sm:$0xff] %vm619_vm9, %v3417_v25  ;;  %v3418_v31 = vadd.f32 %v12486_v29, %v3382_v27  ;;  %v2882_v23 = vld [vmem:[#allocation2 + $0xd8] sm:$0xff] }
 0x196   : > { %2940 = vst.msk [vmem:[#allocation2 + $0x68] sm:$0xff] %vm619_vm9, %v2904_v9  ;;  %3451 = vst.msk [vmem:[#allocation2 + $0x40] sm:$0xff] %vm619_vm9, %v3415_v28  ;;  %v3416_v33 = vadd.f32 %v3380_v13, %v3263_v4 }
 0x197   : > { %3454 = vst.msk [vmem:[#allocation2 + $0x58] sm:$0xff] %vm619_vm9, %v3418_v31  ;;  %v2880_v31 = vld [vmem:[#allocation2 + $0xc8] sm:$0xff] }
 0x198   : > { %v12455_v35 = vpop.f32.mrb[88].mxu0  ;;  %3452 = vst.msk [vmem:[#allocation2 + $0x48] sm:$0xff] %vm619_vm9, %v3416_v33  ;;  %v12489_v47 = vpop.f32.mrb[84].mxu1 }
 0x199   : > { %v2909_v37 = vadd.f32 %v12455_v35, %v2873_v36  ;;  %v2776_v40 = vpop.f32.mrb[89].mxu0  ;;  %v3276_v52 = vpop.f32.mrb[85].mxu1 }
 0x19a   : > { %v2907_v26 = vadd.f32 %v2871_v41, %v2776_v40  ;;  %v12456_v42 = vpop.f32.mrb[90].mxu0  ;;  %v3385_v45 = vld [vmem:[#allocation2 + $0x70] sm:$0xff]  ;;  %v12490_v46 = vpop.f32.mrb[86].mxu1 }
 0x19b   : > { %2945 = vst.msk [vmem:[#allocation2 + $0x90] sm:$0xff] %vm619_vm9, %v2909_v37  ;;  %v2910_v43 = vadd.f32 %v12456_v42, %v2874_v44  ;;  %v2779_v48 = vpop.f32.mrb[91].mxu0  ;;  %v3383_v32 = vld [vmem:[#allocation2 + $0x60] sm:$0xff]  ;;  %v3421_v30 = vadd.f32 %v12489_v47, %v3385_v45  ;;  %v3279_v58 = vpop.f32.mrb[87].mxu1  ;;  %v2885_v47 = vld [vmem:[#allocation2 + $0xf0] sm:$0xff] }
 0x19c   : > { %2943 = vst.msk [vmem:[#allocation2 + $0x80] sm:$0xff] %vm619_vm9, %v2907_v26  ;;  %v2908_v49 = vadd.f32 %v2872_v50, %v2779_v48  ;;  %v3386_v53 = vld [vmem:[#allocation2 + $0x78] sm:$0xff]  ;;  %v3419_v54 = vadd.f32 %v3383_v32, %v3276_v52  ;;  %v2883_v32 = vld [vmem:[#allocation2 + $0xe0] sm:$0xff] }
 0x19d   : > { %2946 = vst.msk [vmem:[#allocation2 + $0x98] sm:$0xff] %vm619_vm9, %v2910_v43  ;;  %v3384_v56 = vld [vmem:[#allocation2 + $0x68] sm:$0xff]  ;;  %3457 = vst.msk [vmem:[#allocation2 + $0x70] sm:$0xff] %vm619_vm9, %v3421_v30  ;;  %v3422_v57 = vadd.f32 %v12490_v46, %v3386_v53  ;;  %v2886_v52 = vld [vmem:[#allocation2 + $0xf8] sm:$0xff] }
 0x19e   : > { %2944 = vst.msk [vmem:[#allocation2 + $0x88] sm:$0xff] %vm619_vm9, %v2908_v49  ;;  %3455 = vst.msk [vmem:[#allocation2 + $0x60] sm:$0xff] %vm619_vm9, %v3419_v54  ;;  %v3420_v59 = vadd.f32 %v3384_v56, %v3279_v58 }
 0x19f   : > { %3458 = vst.msk [vmem:[#allocation2 + $0x78] sm:$0xff] %vm619_vm9, %v3422_v57  ;;  %v2884_v57 = vld [vmem:[#allocation2 + $0xe8] sm:$0xff] }
 0x1a0   : > { %v12459_v38 = vpop.f32.mrb[92].mxu0  ;;  %3456 = vst.msk [vmem:[#allocation2 + $0x68] sm:$0xff] %vm619_vm9, %v3420_v59  ;;  %v12493_v5 = vpop.f32.mrb[88].mxu1 }
 0x1a1   : > { %v2913_v61 = vadd.f32 %v12459_v38, %v2877_v60  ;;  %v2792_v62 = vpop.f32.mrb[93].mxu0  ;;  %v3292_v11 = vpop.f32.mrb[89].mxu1 }
 0x1a2   : > { %v2911_v1 = vadd.f32 %v2875_v63, %v2792_v62  ;;  %v12460_v51 = vpop.f32.mrb[94].mxu0  ;;  %v3389_v3 = vld [vmem:[#allocation2 + $0x90] sm:$0xff]  ;;  %v12494_v15 = vpop.f32.mrb[90].mxu1  ;;  %v13168_v62 = vld [vmem:[#allocation3] sm:$0xff]  }
 0x1a3   : > { %2949 = vst.msk [vmem:[#allocation2 + $0xb0] sm:$0xff] %vm619_vm9, %v2913_v61  ;;  %v2914_v0 = vadd.f32 %v12460_v51, %v2878_v2  ;;  %v2795_v7 = vpop.f32.mrb[95].mxu0  ;;  %v3387_v55 = vld [vmem:[#allocation2 + $0x80] sm:$0xff]  ;;  %v3425_v6 = vadd.f32 %v12493_v5, %v3389_v3  ;;  %v3295_v18 = vpop.f32.mrb[91].mxu1  ;;  %12627 = vmatprep.mubr.msk.bf16.mxu1 %vm619_vm9, %v13168_v62 }
 0x1a4   : > { %2947 = vst.msk [vmem:[#allocation2 + $0xa0] sm:$0xff] %vm619_vm9, %v2911_v1  ;;  %v2912_v10 = vadd.f32 %v2876_v8, %v2795_v7  ;;  %v3390_v12 = vld [vmem:[#allocation2 + $0x98] sm:$0xff]  ;;  %v3423_v14 = vadd.f32 %v3387_v55, %v3292_v11  ;;  %v2889_v7 = vld [vmem:[#allocation2 + $0x110] sm:$0xff]  ;;  %v11598_v8 = vld [vmem:[%s16595_s4 + $0x4] sm:$0xf] }
 0x1a5   : > { %2950 = vst.msk [vmem:[#allocation2 + $0xb8] sm:$0xff] %vm619_vm9, %v2914_v0  ;;  %v3388_v16 = vld [vmem:[#allocation2 + $0x88] sm:$0xff]  ;;  %3461 = vst.msk [vmem:[#allocation2 + $0x90] sm:$0xff] %vm619_vm9, %v3425_v6  ;;  %v3426_v17 = vadd.f32 %v12494_v15, %v3390_v12  ;;  %12968 = vmatprep.subr.msk.bf16.mxu0 %vm6273_vm12, %v11598_v8  ;;  %v6825_v11 = vsel %vm6273_vm12, %v11598_v8, 0  ;;  %v2890_v15 = vld [vmem:[#allocation2 + $0x118] sm:$0xff] }
 0x1a6   : > { %2948 = vst.msk [vmem:[#allocation2 + $0xa8] sm:$0xff] %vm619_vm9, %v2912_v10  ;;  %3459 = vst.msk [vmem:[#allocation2 + $0x80] sm:$0xff] %vm619_vm9, %v3423_v14  ;;  %v3424_v19 = vadd.f32 %v3388_v16, %v3295_v18  ;;  %v2887_v10 = vld [vmem:[#allocation2 + $0x100] sm:$0xff]  ;;  %12664 = vmatpush3.bf16.msra.mxu0 %v6825_v11 }
 0x1a7   : > { %3462 = vst.msk [vmem:[#allocation2 + $0x98] sm:$0xff] %vm619_vm9, %v3426_v17 }
 0x1a8   : > { %v12463_v39 = vpop.f32.mrb[96].mxu0  ;;  %3460 = vst.msk [vmem:[#allocation2 + $0x88] sm:$0xff] %vm619_vm9, %v3424_v19  ;;  %v12497_v29 = vpop.f32.mrb[92].mxu1 }
 0x1a9   : > { %v2917_v21 = vadd.f32 %v12463_v39, %v2881_v20  ;;  %v2808_v22 = vpop.f32.mrb[97].mxu0  ;;  %v3308_v36 = vpop.f32.mrb[93].mxu1  ;;  %v2888_v39 = vld [vmem:[#allocation2 + $0x108] sm:$0xff] }
 0x1aa   : > { %v2915_v25 = vadd.f32 %v2879_v24, %v2808_v22  ;;  %v12464_v9 = vpop.f32.mrb[98].mxu0  ;;  %v3393_v27 = vld [vmem:[#allocation2 + $0xb0] sm:$0xff]  ;;  %v12498_v41 = vpop.f32.mrb[94].mxu1 }
 0x1ab   : > { %2953 = vst.msk [vmem:[#allocation2 + $0xd0] sm:$0xff] %vm619_vm9, %v2917_v21  ;;  %v2918_v28 = vadd.f32 %v12464_v9, %v2882_v23  ;;  %v2811_v13 = vpop.f32.mrb[99].mxu0  ;;  %v3391_v4 = vld [vmem:[#allocation2 + $0xa0] sm:$0xff]  ;;  %v3429_v33 = vadd.f32 %v12497_v29, %v3393_v27  ;;  %v3311_v44 = vpop.f32.mrb[95].mxu1 }
 0x1ac   : > { %2951 = vst.msk [vmem:[#allocation2 + $0xc0] sm:$0xff] %vm619_vm9, %v2915_v25  ;;  %v2916_v35 = vadd.f32 %v2880_v31, %v2811_v13  ;;  %v3394_v37 = vld [vmem:[#allocation2 + $0xb8] sm:$0xff]  ;;  %v3427_v40 = vadd.f32 %v3391_v4, %v3308_v36  ;;  %v3888_v4 = vld [vmem:[#allocation2 + $0x10] sm:$0xff]  ;;  %v3886_v36 = vld [vmem:[#allocation2] sm:$0xff] }
 0x1ad   : > { %2954 = vst.msk [vmem:[#allocation2 + $0xd8] sm:$0xff] %vm619_vm9, %v2918_v28  ;;  %v3392_v26 = vld [vmem:[#allocation2 + $0xa8] sm:$0xff]  ;;  %3465 = vst.msk [vmem:[#allocation2 + $0xb0] sm:$0xff] %vm619_vm9, %v3429_v33  ;;  %v3430_v42 = vadd.f32 %v12498_v41, %v3394_v37 }
 0x1ae   : > { %2952 = vst.msk [vmem:[#allocation2 + $0xc8] sm:$0xff] %vm619_vm9, %v2916_v35  ;;  %3463 = vst.msk [vmem:[#allocation2 + $0xa0] sm:$0xff] %vm619_vm9, %v3427_v40  ;;  %v3428_v45 = vadd.f32 %v3392_v26, %v3311_v44  ;;  %v3889_v26 = vld [vmem:[#allocation2 + $0x18] sm:$0xff] }
 0x1af   : > { %3466 = vst.msk [vmem:[#allocation2 + $0xb8] sm:$0xff] %vm619_vm9, %v3430_v42 }
 0x1b0   : > { %v12467_v43 = vpop.f32.mrb[100].mxu0  ;;  %3464 = vst.msk [vmem:[#allocation2 + $0xa8] sm:$0xff] %vm619_vm9, %v3428_v45  ;;  %v12501_v46 = vpop.f32.mrb[96].mxu1 }
 0x1b1   : > { %v2921_v48 = vadd.f32 %v12467_v43, %v2885_v47  ;;  %v2824_v50 = vpop.f32.mrb[101].mxu0  ;;  %v3324_v60 = vpop.f32.mrb[97].mxu1  ;;  %v3887_v47 = vld [vmem:[#allocation2 + $0x8] sm:$0xff] }
 0x1b2   : > { %v2919_v30 = vadd.f32 %v2883_v32, %v2824_v50  ;;  %v12468_v49 = vpop.f32.mrb[102].mxu0  ;;  %v3397_v53 = vld [vmem:[#allocation2 + $0xd0] sm:$0xff]  ;;  %v12502_v1 = vpop.f32.mrb[98].mxu1 }
 0x1b3   : > { %2957 = vst.msk [vmem:[#allocation2 + $0xf0] sm:$0xff] %vm619_vm9, %v2921_v48  ;;  %v2922_v54 = vadd.f32 %v12468_v49, %v2886_v52  ;;  %v2827_v56 = vpop.f32.mrb[103].mxu0  ;;  %v3395_v58 = vld [vmem:[#allocation2 + $0xc0] sm:$0xff]  ;;  %v3433_v59 = vadd.f32 %v12501_v46, %v3397_v53  ;;  %v3327_v3 = vpop.f32.mrb[99].mxu1 }
 0x1b4   : > { %2955 = vst.msk [vmem:[#allocation2 + $0xe0] sm:$0xff] %vm619_vm9, %v2919_v30  ;;  %v2920_v38 = vadd.f32 %v2884_v57, %v2827_v56  ;;  %v3398_v61 = vld [vmem:[#allocation2 + $0xd8] sm:$0xff]  ;;  %v3431_v63 = vadd.f32 %v3395_v58, %v3324_v60  ;;  %v3892_v58 = vld [vmem:[#allocation2 + $0x30] sm:$0xff] }
 0x1b5   : > { %2958 = vst.msk [vmem:[#allocation2 + $0xf8] sm:$0xff] %vm619_vm9, %v2922_v54  ;;  %v3396_v51 = vld [vmem:[#allocation2 + $0xc8] sm:$0xff]  ;;  %3469 = vst.msk [vmem:[#allocation2 + $0xd0] sm:$0xff] %vm619_vm9, %v3433_v59  ;;  %v3434_v2 = vadd.f32 %v12502_v1, %v3398_v61  ;;  %v3890_v61 = vld [vmem:[#allocation2 + $0x20] sm:$0xff] }
 0x1b6   : > { %2956 = vst.msk [vmem:[#allocation2 + $0xe8] sm:$0xff] %vm619_vm9, %v2920_v38  ;;  %3467 = vst.msk [vmem:[#allocation2 + $0xc0] sm:$0xff] %vm619_vm9, %v3431_v63  ;;  %v3432_v0 = vadd.f32 %v3396_v51, %v3327_v3  ;;  %v14416_v59 = vld [vmem:[%s16595_s4 + $0x8] sm:$0xf]  ;;  %v3893_v1 = vld [vmem:[#allocation2 + $0x38] sm:$0xff] }
 0x1b7   : > { %3470 = vst.msk [vmem:[#allocation2 + $0xd8] sm:$0xff] %vm619_vm9, %v3434_v2  ;;  %12969 = vmatprep.subr.msk.bf16.mxu1 %vm6273_vm12, %v14416_v59 }
 0x1b8   : > { %v12471_v5 = vpop.f32.mrb[104].mxu0  ;;  %3468 = vst.msk [vmem:[#allocation2 + $0xc8] sm:$0xff] %vm619_vm9, %v3432_v0  ;;  %v12505_v18 = vpop.f32.mrb[100].mxu1 }
 0x1b9   : > { %v2925_v55 = vadd.f32 %v12471_v5, %v2889_v7  ;;  %v2840_v6 = vpop.f32.mrb[105].mxu0  ;;  %v3340_v24 = vpop.f32.mrb[101].mxu1  ;;  %v3891_v5 = vld [vmem:[#allocation2 + $0x28] sm:$0xff] }
 0x1ba   : > { %v2923_v12 = vadd.f32 %v2887_v10, %v2840_v6  ;;  %v12472_v14 = vpop.f32.mrb[106].mxu0  ;;  %v3401_v16 = vld [vmem:[#allocation2 + $0xf0] sm:$0xff]  ;;  %v12506_v23 = vpop.f32.mrb[102].mxu1 }
 0x1bb   : > { %2961 = vst.msk [vmem:[#allocation2 + $0x110] sm:$0xff] %vm619_vm9, %v2925_v55  ;;  %v2926_v17 = vadd.f32 %v12472_v14, %v2890_v15  ;;  %v2843_v19 = vpop.f32.mrb[107].mxu0  ;;  %v3399_v20 = vld [vmem:[#allocation2 + $0xe0] sm:$0xff]  ;;  %v3437_v21 = vadd.f32 %v12505_v18, %v3401_v16  ;;  %v3343_v29 = vpop.f32.mrb[103].mxu1 }
 0x1bc   : > { %2959 = vst.msk [vmem:[#allocation2 + $0x100] sm:$0xff] %vm619_vm9, %v2923_v12  ;;  %v2924_v22 = vadd.f32 %v2888_v39, %v2843_v19  ;;  %v3402_v25 = vld [vmem:[#allocation2 + $0xf8] sm:$0xff]  ;;  %v3435_v9 = vadd.f32 %v3399_v20, %v3340_v24  ;;  %v3896_v19 = vld [vmem:[#allocation2 + $0x50] sm:$0xff] }
 0x1bd   : > { %2962 = vst.msk [vmem:[#allocation2 + $0x118] sm:$0xff] %vm619_vm9, %v2926_v17  ;;  %v3400_v27 = vld [vmem:[#allocation2 + $0xe8] sm:$0xff]  ;;  %3473 = vst.msk [vmem:[#allocation2 + $0xf0] sm:$0xff] %vm619_vm9, %v3437_v21  ;;  %v3438_v28 = vadd.f32 %v12506_v23, %v3402_v25  ;;  %v3894_v21 = vld [vmem:[#allocation2 + $0x40] sm:$0xff] }
 0x1be   : > { %2960 = vst.msk [vmem:[#allocation2 + $0x108] sm:$0xff] %vm619_vm9, %v2924_v22  ;;  %3471 = vst.msk [vmem:[#allocation2 + $0xe0] sm:$0xff] %vm619_vm9, %v3435_v9  ;;  %v3436_v13 = vadd.f32 %v3400_v27, %v3343_v29  ;;  %v3897_v25 = vld [vmem:[#allocation2 + $0x58] sm:$0xff]  ;;  %v3895_v29 = vld [vmem:[#allocation2 + $0x48] sm:$0xff] }
 0x1bf   : > { %3474 = vst.msk [vmem:[#allocation2 + $0xf8] sm:$0xff] %vm619_vm9, %v3438_v28 }
 0x1c0   : > { %v12515_v31 = vpop.f32.mrb[108].mxu0  ;;  %3472 = vst.msk [vmem:[#allocation2 + $0xe8] sm:$0xff] %vm619_vm9, %v3436_v13  ;;  %v12509_v42 = vpop.f32.mrb[104].mxu1 }
 0x1c1   : > { %v3924_v33 = vadd.f32 %v12515_v31, %v3888_v4  ;;  %v3743_v35 = vpop.f32.mrb[109].mxu0  ;;  %v3356_v50 = vpop.f32.mrb[105].mxu1 }
 0x1c2   : > { %v3922_v37 = vadd.f32 %v3886_v36, %v3743_v35  ;;  %v3405_v40 = vld [vmem:[#allocation2 + $0x110] sm:$0xff]  ;;  %v12516_v41 = vpop.f32.mrb[110].mxu0  ;;  %v12510_v52 = vpop.f32.mrb[106].mxu1 }
 0x1c3   : > { %3960 = vst.msk [vmem:[#allocation2 + $0x10] sm:$0xff] %vm619_vm9, %v3924_v33  ;;  %v3925_v44 = vadd.f32 %v12516_v41, %v3889_v26  ;;  %v3403_v45 = vld [vmem:[#allocation2 + $0x100] sm:$0xff]  ;;  %v3746_v43 = vpop.f32.mrb[111].mxu0  ;;  %v3441_v48 = vadd.f32 %v12509_v42, %v3405_v40  ;;  %v3359_v46 = vpop.f32.mrb[107].mxu1 }
 0x1c4   : > { %3958 = vst.msk [vmem:[#allocation2] sm:$0xff] %vm619_vm9, %v3922_v37  ;;  %v3923_v32 = vadd.f32 %v3887_v47, %v3746_v43  ;;  %v3406_v30 = vld [vmem:[#allocation2 + $0x118] sm:$0xff]  ;;  %v3439_v49 = vadd.f32 %v3403_v45, %v3356_v50  ;;  %v3900_v45 = vld [vmem:[#allocation2 + $0x70] sm:$0xff] }
 0x1c5   : > { %3961 = vst.msk [vmem:[#allocation2 + $0x18] sm:$0xff] %vm619_vm9, %v3925_v44  ;;  %v3404_v53 = vld [vmem:[#allocation2 + $0x108] sm:$0xff]  ;;  %3477 = vst.msk [vmem:[#allocation2 + $0x110] sm:$0xff] %vm619_vm9, %v3441_v48  ;;  %v3442_v54 = vadd.f32 %v12510_v52, %v3406_v30  ;;  %v3898_v48 = vld [vmem:[#allocation2 + $0x60] sm:$0xff] }
 0x1c6   : > { %3959 = vst.msk [vmem:[#allocation2 + $0x8] sm:$0xff] %vm619_vm9, %v3923_v32  ;;  %3475 = vst.msk [vmem:[#allocation2 + $0x100] sm:$0xff] %vm619_vm9, %v3439_v49  ;;  %v3440_v56 = vadd.f32 %v3404_v53, %v3359_v46  ;;  %v3901_v30 = vld [vmem:[#allocation2 + $0x78] sm:$0xff]  ;;  %v3899_v46 = vld [vmem:[#allocation2 + $0x68] sm:$0xff] }
 0x1c7   : > { %3478 = vst.msk [vmem:[#allocation2 + $0x118] sm:$0xff] %vm619_vm9, %v3442_v54 }
 0x1c8   : > { %v12519_v57 = vpop.f32.mrb[112].mxu0  ;;  %3476 = vst.msk [vmem:[#allocation2 + $0x108] sm:$0xff] %vm619_vm9, %v3440_v56  ;;  %v12553_v3 = vpop.f32.mrb[108].mxu1 }
 0x1c9   : > { %v3928_v38 = vadd.f32 %v12519_v57, %v3892_v58  ;;  %v3759_v60 = vpop.f32.mrb[113].mxu0  ;;  %v4392_v6 = vpop.f32.mrb[109].mxu1 }
 0x1ca   : > { %v3926_v62 = vadd.f32 %v3890_v61, %v3759_v60  ;;  %v12520_v63 = vpop.f32.mrb[114].mxu0  ;;  %v4537_v51 = vld [vmem:[#allocation2 + $0x10] sm:$0xff]  ;;  %v12554_v12 = vpop.f32.mrb[110].mxu1 }
 0x1cb   : > { %3964 = vst.msk [vmem:[#allocation2 + $0x30] sm:$0xff] %vm619_vm9, %v3928_v38  ;;  %v3929_v2 = vadd.f32 %v12520_v63, %v3893_v1  ;;  %v3762_v0 = vpop.f32.mrb[115].mxu0  ;;  %v4535_v7 = vld [vmem:[#allocation2] sm:$0xff]  ;;  %v4573_v8 = vadd.f32 %v12553_v3, %v4537_v51  ;;  %v4395_v16 = vpop.f32.mrb[111].mxu1 }
 0x1cc   : > { %3962 = vst.msk [vmem:[#allocation2 + $0x20] sm:$0xff] %vm619_vm9, %v3926_v62  ;;  %v3927_v55 = vadd.f32 %v3891_v5, %v3762_v0  ;;  %v4538_v10 = vld [vmem:[#allocation2 + $0x18] sm:$0xff]  ;;  %v4571_v11 = vadd.f32 %v4535_v7, %v4392_v6  ;;  %v3904_v0 = vld [vmem:[#allocation2 + $0x90] sm:$0xff] }
 0x1cd   : > { %3965 = vst.msk [vmem:[#allocation2 + $0x38] sm:$0xff] %vm619_vm9, %v3929_v2  ;;  %v4536_v14 = vld [vmem:[#allocation2 + $0x8] sm:$0xff]  ;;  %4609 = vst.msk [vmem:[#allocation2 + $0x10] sm:$0xff] %vm619_vm9, %v4573_v8  ;;  %v4574_v15 = vadd.f32 %v12554_v12, %v4538_v10  ;;  %v3902_v8 = vld [vmem:[#allocation2 + $0x80] sm:$0xff] }
 0x1ce   : > { %3963 = vst.msk [vmem:[#allocation2 + $0x28] sm:$0xff] %vm619_vm9, %v3927_v55  ;;  %4607 = vst.msk [vmem:[#allocation2] sm:$0xff] %vm619_vm9, %v4571_v11  ;;  %v4572_v17 = vadd.f32 %v4536_v14, %v4395_v16  ;;  %v3905_v10 = vld [vmem:[#allocation2 + $0x98] sm:$0xff]  ;;  %v3903_v16 = vld [vmem:[#allocation2 + $0x88] sm:$0xff] }
 0x1cf   : > { %4610 = vst.msk [vmem:[#allocation2 + $0x18] sm:$0xff] %vm619_vm9, %v4574_v15 }
 0x1d0   : > { %v12523_v18 = vpop.f32.mrb[116].mxu0  ;;  %4608 = vst.msk [vmem:[#allocation2 + $0x8] sm:$0xff] %vm619_vm9, %v4572_v17  ;;  %v12557_v27 = vpop.f32.mrb[112].mxu1 }
 0x1d1   : > { %v3932_v39 = vadd.f32 %v12523_v18, %v3896_v19  ;;  %v3775_v20 = vpop.f32.mrb[117].mxu0  ;;  %v4408_v33 = vpop.f32.mrb[113].mxu1 }
 0x1d2   : > { %v3930_v22 = vadd.f32 %v3894_v21, %v3775_v20  ;;  %v12524_v24 = vpop.f32.mrb[118].mxu0  ;;  %v4541_v9 = vld [vmem:[#allocation2 + $0x30] sm:$0xff]  ;;  %v12558_v37 = vpop.f32.mrb[114].mxu1 }
 0x1d3   : > { %3968 = vst.msk [vmem:[#allocation2 + $0x50] sm:$0xff] %vm619_vm9, %v3932_v39  ;;  %v3933_v23 = vadd.f32 %v12524_v24, %v3897_v25  ;;  %v3778_v28 = vpop.f32.mrb[119].mxu0  ;;  %v4539_v13 = vld [vmem:[#allocation2 + $0x20] sm:$0xff]  ;;  %v4577_v31 = vadd.f32 %v12557_v27, %v4541_v9  ;;  %v4411_v26 = vpop.f32.mrb[115].mxu1 }
 0x1d4   : > { %3966 = vst.msk [vmem:[#allocation2 + $0x40] sm:$0xff] %vm619_vm9, %v3930_v22  ;;  %v3931_v4 = vadd.f32 %v3895_v29, %v3778_v28  ;;  %v4542_v35 = vld [vmem:[#allocation2 + $0x38] sm:$0xff]  ;;  %v4575_v36 = vadd.f32 %v4539_v13, %v4408_v33  ;;  %v3908_v28 = vld [vmem:[#allocation2 + $0xb0] sm:$0xff] }
 0x1d5   : > { %3969 = vst.msk [vmem:[#allocation2 + $0x58] sm:$0xff] %vm619_vm9, %v3933_v23  ;;  %v4540_v40 = vld [vmem:[#allocation2 + $0x28] sm:$0xff]  ;;  %4613 = vst.msk [vmem:[#allocation2 + $0x30] sm:$0xff] %vm619_vm9, %v4577_v31  ;;  %v4578_v41 = vadd.f32 %v12558_v37, %v4542_v35  ;;  %v3906_v31 = vld [vmem:[#allocation2 + $0xa0] sm:$0xff] }
 0x1d6   : > { %3967 = vst.msk [vmem:[#allocation2 + $0x48] sm:$0xff] %vm619_vm9, %v3931_v4  ;;  %4611 = vst.msk [vmem:[#allocation2 + $0x20] sm:$0xff] %vm619_vm9, %v4575_v36  ;;  %v4576_v42 = vadd.f32 %v4540_v40, %v4411_v26  ;;  %v3909_v35 = vld [vmem:[#allocation2 + $0xb8] sm:$0xff]  ;;  %v3907_v26 = vld [vmem:[#allocation2 + $0xa8] sm:$0xff] }
 0x1d7   : > { %4614 = vst.msk [vmem:[#allocation2 + $0x38] sm:$0xff] %vm619_vm9, %v4578_v41 }
 0x1d8   : > { %v12527_v44 = vpop.f32.mrb[120].mxu0  ;;  %4612 = vst.msk [vmem:[#allocation2 + $0x28] sm:$0xff] %vm619_vm9, %v4576_v42  ;;  %v12561_v53 = vpop.f32.mrb[116].mxu1 }
 0x1d9   : > { %v3936_v43 = vadd.f32 %v12527_v44, %v3900_v45  ;;  %v3791_v47 = vpop.f32.mrb[121].mxu0  ;;  %v4424_v38 = vpop.f32.mrb[117].mxu1 }
 0x1da   : > { %v3934_v50 = vadd.f32 %v3898_v48, %v3791_v47  ;;  %v12528_v32 = vpop.f32.mrb[122].mxu0  ;;  %v4545_v49 = vld [vmem:[#allocation2 + $0x50] sm:$0xff]  ;;  %v12562_v62 = vpop.f32.mrb[118].mxu1 }
 0x1db   : > { %3972 = vst.msk [vmem:[#allocation2 + $0x70] sm:$0xff] %vm619_vm9, %v3936_v43  ;;  %v3937_v52 = vadd.f32 %v12528_v32, %v3901_v30  ;;  %v3794_v54 = vpop.f32.mrb[123].mxu0  ;;  %v4543_v56 = vld [vmem:[#allocation2 + $0x40] sm:$0xff]  ;;  %v4581_v57 = vadd.f32 %v12561_v53, %v4545_v49  ;;  %v4427_v51 = vpop.f32.mrb[119].mxu1 }
 0x1dc   : > { %3970 = vst.msk [vmem:[#allocation2 + $0x60] sm:$0xff] %vm619_vm9, %v3934_v50  ;;  %v3935_v58 = vadd.f32 %v3899_v46, %v3794_v54  ;;  %v4546_v60 = vld [vmem:[#allocation2 + $0x58] sm:$0xff]  ;;  %v4579_v61 = vadd.f32 %v4543_v56, %v4424_v38  ;;  %v3912_v54 = vld [vmem:[#allocation2 + $0xd0] sm:$0xff] }
 0x1dd   : > { %3973 = vst.msk [vmem:[#allocation2 + $0x78] sm:$0xff] %vm619_vm9, %v3937_v52  ;;  %v4544_v63 = vld [vmem:[#allocation2 + $0x48] sm:$0xff]  ;;  %4617 = vst.msk [vmem:[#allocation2 + $0x50] sm:$0xff] %vm619_vm9, %v4581_v57  ;;  %v4582_v1 = vadd.f32 %v12562_v62, %v4546_v60  ;;  %v3910_v57 = vld [vmem:[#allocation2 + $0xc0] sm:$0xff] }
 0x1de   : > { %3971 = vst.msk [vmem:[#allocation2 + $0x68] sm:$0xff] %vm619_vm9, %v3935_v58  ;;  %4615 = vst.msk [vmem:[#allocation2 + $0x40] sm:$0xff] %vm619_vm9, %v4579_v61  ;;  %v4580_v2 = vadd.f32 %v4544_v63, %v4427_v51  ;;  %v3913_v60 = vld [vmem:[#allocation2 + $0xd8] sm:$0xff]  ;;  %v3911_v51 = vld [vmem:[#allocation2 + $0xc8] sm:$0xff] }
 0x1df   : > { %4618 = vst.msk [vmem:[#allocation2 + $0x58] sm:$0xff] %vm619_vm9, %v4582_v1 }
 0x1e0   : > { %v12531_v3 = vpop.f32.mrb[124].mxu0  ;;  %4616 = vst.msk [vmem:[#allocation2 + $0x48] sm:$0xff] %vm619_vm9, %v4580_v2  ;;  %v12565_v14 = vpop.f32.mrb[120].mxu1 }
 0x1e1   : > { %v3940_v5 = vadd.f32 %v12531_v3, %v3904_v0  ;;  %v3807_v7 = vpop.f32.mrb[125].mxu0  ;;  %v4440_v39 = vpop.f32.mrb[121].mxu1 }
 0x1e2   : > { %v3938_v55 = vadd.f32 %v3902_v8, %v3807_v7  ;;  %v12532_v6 = vpop.f32.mrb[126].mxu0  ;;  %v4549_v11 = vld [vmem:[#allocation2 + $0x70] sm:$0xff]  ;;  %v12566_v22 = vpop.f32.mrb[122].mxu1 }
 0x1e3   : > { %3976 = vst.msk [vmem:[#allocation2 + $0x90] sm:$0xff] %vm619_vm9, %v3940_v5  ;;  %v3941_v12 = vadd.f32 %v12532_v6, %v3905_v10  ;;  %v3810_v15 = vpop.f32.mrb[127].mxu0  ;;  %v4547_v17 = vld [vmem:[#allocation2 + $0x60] sm:$0xff]  ;;  %v4585_v18 = vadd.f32 %v12565_v14, %v4549_v11  ;;  %v4443_v9 = vpop.f32.mrb[123].mxu1 }
 0x1e4   : > { %3974 = vst.msk [vmem:[#allocation2 + $0x80] sm:$0xff] %vm619_vm9, %v3938_v55  ;;  %v3939_v19 = vadd.f32 %v3903_v16, %v3810_v15  ;;  %v4550_v20 = vld [vmem:[#allocation2 + $0x78] sm:$0xff]  ;;  %v4583_v21 = vadd.f32 %v4547_v17, %v4440_v39  ;;  %v3916_v15 = vld [vmem:[#allocation2 + $0xf0] sm:$0xff] }
 0x1e5   : > { %3977 = vst.msk [vmem:[#allocation2 + $0x98] sm:$0xff] %vm619_vm9, %v3941_v12  ;;  %v4548_v24 = vld [vmem:[#allocation2 + $0x68] sm:$0xff]  ;;  %4621 = vst.msk [vmem:[#allocation2 + $0x70] sm:$0xff] %vm619_vm9, %v4585_v18  ;;  %v4586_v25 = vadd.f32 %v12566_v22, %v4550_v20  ;;  %v3914_v18 = vld [vmem:[#allocation2 + $0xe0] sm:$0xff] }
 0x1e6   : > { %3975 = vst.msk [vmem:[#allocation2 + $0x88] sm:$0xff] %vm619_vm9, %v3939_v19  ;;  %4619 = vst.msk [vmem:[#allocation2 + $0x60] sm:$0xff] %vm619_vm9, %v4583_v21  ;;  %v4584_v23 = vadd.f32 %v4548_v24, %v4443_v9  ;;  %v3917_v20 = vld [vmem:[#allocation2 + $0xf8] sm:$0xff]  ;;  %v3915_v9 = vld [vmem:[#allocation2 + $0xe8] sm:$0xff] }
 0x1e7   : > { %4622 = vst.msk [vmem:[#allocation2 + $0x78] sm:$0xff] %vm619_vm9, %v4586_v25 }
 0x1e8   : > { %v12535_v27 = vpop.f32.mrb[128].mxu0  ;;  %4620 = vst.msk [vmem:[#allocation2 + $0x68] sm:$0xff] %vm619_vm9, %v4584_v23  ;;  %v12569_v40 = vpop.f32.mrb[124].mxu1 }
 0x1e9   : > { %v3944_v29 = vadd.f32 %v12535_v27, %v3908_v28  ;;  %v3823_v13 = vpop.f32.mrb[129].mxu0  ;;  %v4456_v43 = vpop.f32.mrb[125].mxu1 }
 0x1ea   : > { %v3942_v4 = vadd.f32 %v3906_v31, %v3823_v13  ;;  %v12536_v33 = vpop.f32.mrb[130].mxu0  ;;  %v4553_v36 = vld [vmem:[#allocation2 + $0x90] sm:$0xff]  ;;  %v12570_v50 = vpop.f32.mrb[126].mxu1 }
 0x1eb   : > { %3980 = vst.msk [vmem:[#allocation2 + $0xb0] sm:$0xff] %vm619_vm9, %v3944_v29  ;;  %v3945_v37 = vadd.f32 %v12536_v33, %v3909_v35  ;;  %v3826_v41 = vpop.f32.mrb[131].mxu0  ;;  %v4551_v42 = vld [vmem:[#allocation2 + $0x80] sm:$0xff]  ;;  %v4589_v44 = vadd.f32 %v12569_v40, %v4553_v36  ;;  %v4459_v49 = vpop.f32.mrb[127].mxu1 }
 0x1ec   : > { %3978 = vst.msk [vmem:[#allocation2 + $0xa0] sm:$0xff] %vm619_vm9, %v3942_v4  ;;  %v3943_v45 = vadd.f32 %v3907_v26, %v3826_v41  ;;  %v4554_v47 = vld [vmem:[#allocation2 + $0x98] sm:$0xff]  ;;  %v4587_v48 = vadd.f32 %v4551_v42, %v4456_v43  ;;  %v3920_v41 = vld [vmem:[#allocation2 + $0x110] sm:$0xff]  ;;  %v14476_v26 = vpop.permute.xlu0 %5312 }
 0x1ed   : > { %3981 = vst.msk [vmem:[#allocation2 + $0xb8] sm:$0xff] %vm619_vm9, %v3945_v37  ;;  %v4552_v32 = vld [vmem:[#allocation2 + $0x88] sm:$0xff]  ;;  %4625 = vst.msk [vmem:[#allocation2 + $0x90] sm:$0xff] %vm619_vm9, %v4589_v44  ;;  %v4590_v30 = vadd.f32 %v12570_v50, %v4554_v47 }
 0x1ee   : > { %3979 = vst.msk [vmem:[#allocation2 + $0xa8] sm:$0xff] %vm619_vm9, %v3943_v45  ;;  %4623 = vst.msk [vmem:[#allocation2 + $0x80] sm:$0xff] %vm619_vm9, %v4587_v48  ;;  %v4588_v52 = vadd.f32 %v4552_v32, %v4459_v49  ;;  %v3918_v45 = vld [vmem:[#allocation2 + $0x100] sm:$0xff]  ;;  %v3921_v48 = vld [vmem:[#allocation2 + $0x118] sm:$0xff] }
 0x1ef   : > { %4626 = vst.msk [vmem:[#allocation2 + $0x98] sm:$0xff] %vm619_vm9, %v4590_v30 }
 0x1f0   : > { %v12539_v53 = vpop.f32.mrb[132].mxu0  ;;  %4624 = vst.msk [vmem:[#allocation2 + $0x88] sm:$0xff] %vm619_vm9, %v4588_v52  ;;  %v12573_v63 = vpop.f32.mrb[128].mxu1  ;;  %v3919_v52 = vld [vmem:[#allocation2 + $0x108] sm:$0xff] }
 0x1f1   : > { %v3948_v46 = vadd.f32 %v12539_v53, %v3912_v54  ;;  %v3839_v56 = vpop.f32.mrb[133].mxu0  ;;  %v4472_v5 = vpop.f32.mrb[129].mxu1 }
 0x1f2   : > { %v3946_v58 = vadd.f32 %v3910_v57, %v3839_v56  ;;  %v12540_v38 = vpop.f32.mrb[134].mxu0  ;;  %v4557_v61 = vld [vmem:[#allocation2 + $0xb0] sm:$0xff]  ;;  %v12574_v55 = vpop.f32.mrb[130].mxu1 }
 0x1f3   : > { %3984 = vst.msk [vmem:[#allocation2 + $0xd0] sm:$0xff] %vm619_vm9, %v3948_v46  ;;  %v3949_v62 = vadd.f32 %v12540_v38, %v3913_v60  ;;  %v3842_v1 = vpop.f32.mrb[135].mxu0  ;;  %v4555_v2 = vld [vmem:[#allocation2 + $0xa0] sm:$0xff]  ;;  %v4593_v3 = vadd.f32 %v12573_v63, %v4557_v61  ;;  %v4475_v11 = vpop.f32.mrb[131].mxu1 }
 0x1f4   : > { %3982 = vst.msk [vmem:[#allocation2 + $0xc0] sm:$0xff] %vm619_vm9, %v3946_v58  ;;  %v3947_v0 = vadd.f32 %v3911_v51, %v3842_v1  ;;  %v4558_v7 = vld [vmem:[#allocation2 + $0xb8] sm:$0xff]  ;;  %v4591_v8 = vadd.f32 %v4555_v2, %v4472_v5  ;;  %v14482_v61 = vpop.permute.xlu1 %5322  ;;  %v14486_v1 = vpop.permute.xlu0 %5317 }
 0x1f5   : > { %3985 = vst.msk [vmem:[#allocation2 + $0xd8] sm:$0xff] %vm619_vm9, %v3949_v62  ;;  %v4556_v6 = vld [vmem:[#allocation2 + $0xa8] sm:$0xff]  ;;  %4629 = vst.msk [vmem:[#allocation2 + $0xb0] sm:$0xff] %vm619_vm9, %v4593_v3  ;;  %v4594_v10 = vadd.f32 %v12574_v55, %v4558_v7  ;;  %v5053_v3 = vld [vmem:[#allocation2 + $0x10] sm:$0xff] }
 0x1f6   : > { %3983 = vst.msk [vmem:[#allocation2 + $0xc8] sm:$0xff] %vm619_vm9, %v3947_v0  ;;  %4627 = vst.msk [vmem:[#allocation2 + $0xa0] sm:$0xff] %vm619_vm9, %v4591_v8  ;;  %v4592_v12 = vadd.f32 %v4556_v6, %v4475_v11  ;;  %v5051_v7 = vld [vmem:[#allocation2] sm:$0xff] }
 0x1f7   : > { %4630 = vst.msk [vmem:[#allocation2 + $0xb8] sm:$0xff] %vm619_vm9, %v4594_v10  ;;  %v5054_v10 = vld [vmem:[#allocation2 + $0x18] sm:$0xff] }
 0x1f8   : > { %v12543_v14 = vpop.f32.mrb[136].mxu0  ;;  %4628 = vst.msk [vmem:[#allocation2 + $0xa8] sm:$0xff] %vm619_vm9, %v4592_v12  ;;  %v12577_v24 = vpop.f32.mrb[132].mxu1 }
 0x1f9   : > { %v3952_v16 = vadd.f32 %v12543_v14, %v3916_v15  ;;  %v3855_v17 = vpop.f32.mrb[137].mxu0  ;;  %v4488_v29 = vpop.f32.mrb[133].mxu1 }
 0x1fa   : > { %v3950_v19 = vadd.f32 %v3914_v18, %v3855_v17  ;;  %v12544_v39 = vpop.f32.mrb[138].mxu0  ;;  %v4561_v21 = vld [vmem:[#allocation2 + $0xd0] sm:$0xff]  ;;  %v12578_v4 = vpop.f32.mrb[134].mxu1 }
 0x1fb   : > { %3988 = vst.msk [vmem:[#allocation2 + $0xf0] sm:$0xff] %vm619_vm9, %v3952_v16  ;;  %v3953_v22 = vadd.f32 %v12544_v39, %v3917_v20  ;;  %v3858_v25 = vpop.f32.mrb[139].mxu0  ;;  %v4559_v23 = vld [vmem:[#allocation2 + $0xc0] sm:$0xff]  ;;  %v4597_v27 = vadd.f32 %v12577_v24, %v4561_v21  ;;  %v4491_v36 = vpop.f32.mrb[135].mxu1  ;;  %v5052_v16 = vld [vmem:[#allocation2 + $0x8] sm:$0xff] }
 0x1fc   : > { %3986 = vst.msk [vmem:[#allocation2 + $0xe0] sm:$0xff] %vm619_vm9, %v3950_v19  ;;  %v3951_v28 = vadd.f32 %v3915_v9, %v3858_v25  ;;  %v4562_v13 = vld [vmem:[#allocation2 + $0xd8] sm:$0xff]  ;;  %v4595_v31 = vadd.f32 %v4559_v23, %v4488_v29  ;;  %v5328_v17 = vpop.permute.xlu1 %5327  ;;  %v14493_v21 = vpop.permute.xlu0 %5332 }
 0x1fd   : > { %3989 = vst.msk [vmem:[#allocation2 + $0xf8] sm:$0xff] %vm619_vm9, %v3953_v22  ;;  %v4560_v33 = vld [vmem:[#allocation2 + $0xc8] sm:$0xff]  ;;  %4633 = vst.msk [vmem:[#allocation2 + $0xd0] sm:$0xff] %vm619_vm9, %v4597_v27  ;;  %v4598_v35 = vadd.f32 %v12578_v4, %v4562_v13  ;;  %v5057_v13 = vld [vmem:[#allocation2 + $0x30] sm:$0xff] }
 0x1fe   : > { %3987 = vst.msk [vmem:[#allocation2 + $0xe8] sm:$0xff] %vm619_vm9, %v3951_v28  ;;  %4631 = vst.msk [vmem:[#allocation2 + $0xc0] sm:$0xff] %vm619_vm9, %v4595_v31  ;;  %v4596_v37 = vadd.f32 %v4560_v33, %v4491_v36  ;;  %v14502_v28 = vld [vmem:[%s16594_s3] ss:$0 sm:$0xff] }
 0x1ff   : > { %4634 = vst.msk [vmem:[#allocation2 + $0xd8] sm:$0xff] %vm619_vm9, %v4598_v35  ;;  %v5055_v33 = vld [vmem:[#allocation2 + $0x20] sm:$0xff] }
 0x200   : > { %v12547_v40 = vpop.f32.mrb[140].mxu0  ;;  %4632 = vst.msk [vmem:[#allocation2 + $0xc8] sm:$0xff] %vm619_vm9, %v4596_v37  ;;  %v12581_v30 = vpop.f32.mrb[136].mxu1 }
 0x201   : > { %v3956_v42 = vadd.f32 %v12547_v40, %v3920_v41  ;;  %v3871_v44 = vpop.f32.mrb[141].mxu0  ;;  %v4504_v56 = vpop.f32.mrb[137].mxu1  ;;  %v5058_v41 = vld [vmem:[#allocation2 + $0x38] sm:$0xff] }
 0x202   : > { %v3954_v43 = vadd.f32 %v3918_v45, %v3871_v44  ;;  %v12548_v47 = vpop.f32.mrb[142].mxu0  ;;  %v4565_v50 = vld [vmem:[#allocation2 + $0xf0] sm:$0xff]  ;;  %v12582_v38 = vpop.f32.mrb[138].mxu1 }
 0x203   : > { %3992 = vst.msk [vmem:[#allocation2 + $0x110] sm:$0xff] %vm619_vm9, %v3956_v42  ;;  %v3957_v32 = vadd.f32 %v12548_v47, %v3921_v48  ;;  %v3874_v49 = vpop.f32.mrb[143].mxu0  ;;  %v4563_v53 = vld [vmem:[#allocation2 + $0xe0] sm:$0xff]  ;;  %v4601_v54 = vadd.f32 %v12581_v30, %v4565_v50  ;;  %v4507_v63 = vpop.f32.mrb[139].mxu1  ;;  %v5056_v48 = vld [vmem:[#allocation2 + $0x28] sm:$0xff] }
 0x204   : > { %3990 = vst.msk [vmem:[#allocation2 + $0x100] sm:$0xff] %vm619_vm9, %v3954_v43  ;;  %v3955_v46 = vadd.f32 %v3919_v52, %v3874_v49  ;;  %v4566_v57 = vld [vmem:[#allocation2 + $0xf8] sm:$0xff]  ;;  %v4599_v58 = vadd.f32 %v4563_v53, %v4504_v56  ;;  %v14506_v35 = vpop.permute.xlu1 %5337  ;;  %v14508_v42 = vpop.permute.xlu0 %5342 }
 0x205   : > { %3993 = vst.msk [vmem:[#allocation2 + $0x118] sm:$0xff] %vm619_vm9, %v3957_v32  ;;  %v4564_v60 = vld [vmem:[#allocation2 + $0xe8] sm:$0xff]  ;;  %4637 = vst.msk [vmem:[#allocation2 + $0xf0] sm:$0xff] %vm619_vm9, %v4601_v54  ;;  %v4602_v62 = vadd.f32 %v12582_v38, %v4566_v57  ;;  %v14516_v54 = vld [vmem:[#allocation3] sm:$0xff]  }
 0x206   : > { %3991 = vst.msk [vmem:[#allocation2 + $0x108] sm:$0xff] %vm619_vm9, %v3955_v46  ;;  %4635 = vst.msk [vmem:[#allocation2 + $0xe0] sm:$0xff] %vm619_vm9, %v4599_v58  ;;  %v4600_v51 = vadd.f32 %v4564_v60, %v4507_v63 }
 0x207   : > { %4638 = vst.msk [vmem:[#allocation2 + $0xf8] sm:$0xff] %vm619_vm9, %v4602_v62 }
 0x208   : > { %v12591_v2 = vpop.f32.mrb[144].mxu0  ;;  %4636 = vst.msk [vmem:[#allocation2 + $0xe8] sm:$0xff] %vm619_vm9, %v4600_v51  ;;  %v12585_v11 = vpop.f32.mrb[140].mxu1  ;;  %v5061_v51 = vld [vmem:[#allocation2 + $0x50] sm:$0xff] }
 0x209   : > { %v5089_v0 = vadd.f32 %v12591_v2, %v5053_v3  ;;  %v4908_v5 = vpop.f32.mrb[145].mxu0  ;;  %v4520_v19 = vpop.f32.mrb[141].mxu1  ;;  %v14526_v2 = vsel %vm6273_vm12, %v14416_v59, 0 }
 0x20a   : > { %v5087_v8 = vadd.f32 %v5051_v7, %v4908_v5  ;;  %v4569_v55 = vld [vmem:[#allocation2 + $0x110] sm:$0xff]  ;;  %v12592_v6 = vpop.f32.mrb[146].mxu0  ;;  %v12586_v24 = vpop.f32.mrb[142].mxu1 }
 0x20b   : > { %5125 = vst.msk [vmem:[#allocation2 + $0x10] sm:$0xff] %vm619_vm9, %v5089_v0  ;;  %v5090_v12 = vadd.f32 %v12592_v6, %v5054_v10  ;;  %v4567_v14 = vld [vmem:[#allocation2 + $0x100] sm:$0xff]  ;;  %v4911_v15 = vpop.f32.mrb[147].mxu0  ;;  %v4605_v18 = vadd.f32 %v12585_v11, %v4569_v55  ;;  %v4523_v23 = vpop.f32.mrb[143].mxu1  ;;  %v6625_v55 = vshll.u32 %v14516_v54, 16 }
 0x20c   : > { %5123 = vst.msk [vmem:[#allocation2] sm:$0xff] %vm619_vm9, %v5087_v8  ;;  %v5088_v39 = vadd.f32 %v5052_v16, %v4911_v15  ;;  %v4570_v20 = vld [vmem:[#allocation2 + $0x118] sm:$0xff]  ;;  %v4603_v22 = vadd.f32 %v4567_v14, %v4520_v19  ;;  %v14521_v38 = vpop.permute.xlu1 %5347  ;;  %v14528_v3 = vpop.permute.xlu0 %5352  ;;  %v5059_v8 = vld [vmem:[#allocation2 + $0x40] sm:$0xff]  ;;  %v6623_v14 = vshrl.u32 %v14516_v54, 16  ;;  %v11712_v54 = vld [vmem:[%s16595_s4 + $0x10] sm:$0xf] }
 0x20d   : > { %5126 = vst.msk [vmem:[#allocation2 + $0x18] sm:$0xff] %vm619_vm9, %v5090_v12  ;;  %v4568_v25 = vld [vmem:[#allocation2 + $0x108] sm:$0xff]  ;;  %4641 = vst.msk [vmem:[#allocation2 + $0x110] sm:$0xff] %vm619_vm9, %v4605_v18  ;;  %v4606_v9 = vadd.f32 %v12586_v24, %v4570_v20 }
 0x20e   : > { %5124 = vst.msk [vmem:[#allocation2 + $0x8] sm:$0xff] %vm619_vm9, %v5088_v39  ;;  %4639 = vst.msk [vmem:[#allocation2 + $0x100] sm:$0xff] %vm619_vm9, %v4603_v22  ;;  %v4604_v27 = vadd.f32 %v4568_v25, %v4523_v23 }
 0x20f   : > { %4642 = vst.msk [vmem:[#allocation2 + $0x118] sm:$0xff] %vm619_vm9, %v4606_v9 }
 0x210   : > { %v12595_v29 = vpop.f32.mrb[148].mxu0  ;;  %4640 = vst.msk [vmem:[#allocation2 + $0x108] sm:$0xff] %vm619_vm9, %v4604_v27 }
 0x211   : > { %v5093_v31 = vadd.f32 %v12595_v29, %v5057_v13  ;;  %v4924_v4 = vpop.f32.mrb[149].mxu0  ;;  %v14544_v29 = vrot.slane %v6625_v55, 1  ;;  %v14546_v13 = vpop.permute.xlu1 %5357 }
 0x212   : > { %v5161_v36 = vld [vmem:[#allocation2 + $0x10] sm:$0xff]  ;;  %v5091_v37 = vadd.f32 %v5055_v33, %v4924_v4  ;;  %v12596_v40 = vpop.f32.mrb[150].mxu0 }
 0x213   : > { %v5204_v44 = vadd.f32 %v14502_v28, %v5161_v36  ;;  %v5159_v45 = vld [vmem:[#allocation2] sm:$0xff]  ;;  %5129 = vst.msk [vmem:[#allocation2 + $0x30] sm:$0xff] %vm619_vm9, %v5093_v31  ;;  %v5094_v43 = vadd.f32 %v12596_v40, %v5058_v41  ;;  %v4927_v47 = vpop.f32.mrb[151].mxu0  ;;  %v5363_v40 = vpop.permute.xlu0 %5362  ;;  %v16603_v41 = vmov 0 }
 0x214   : > { %v5202_v50 = vadd.f32 %v14502_v28, %v5159_v45  ;;  %v5162_v32 = vld [vmem:[#allocation2 + $0x18] sm:$0xff]  ;;  %5127 = vst.msk [vmem:[#allocation2 + $0x20] sm:$0xff] %vm619_vm9, %v5091_v37  ;;  %v5092_v30 = vadd.f32 %v5056_v48, %v4927_v47  ;;  %v11674_v37 = vld [vmem:[%s16595_s4 + $0xc] sm:$0xf]  ;;  %v16604_v41 = vsel %vm14553_vm0, 4294967295, %v16603_v41 }
 0x215   : > { %v5240_v49 = vmax.f32 %v5204_v44, 0.0  ;;  %v5205_v52 = vadd.f32 %v14502_v28, %v5162_v32  ;;  %v5160_v53 = vld [vmem:[#allocation2 + $0x8] sm:$0xff]  ;;  %5130 = vst.msk [vmem:[#allocation2 + $0x38] sm:$0xff] %vm619_vm9, %v5094_v43  ;;  %16605 = vst [vmem:[#allocation5_spill] sm:$0xff] %v16604_v41  ;;  %12970 = vmatprep.subr.msk.bf16.mxu0 %vm6273_vm12, %v11674_v37 }
 0x216   : > { %v5238_v46 = vmax.f32 %v5202_v50, 0.0  ;;  %v5203_v56 = vadd.f32 %v14502_v28, %v5160_v53  ;;  %5128 = vst.msk [vmem:[#allocation2 + $0x28] sm:$0xff] %vm619_vm9, %v5092_v30  ;;  %v6044_v44 = vld [vmem:[#allocation3 + $0x8] sm:$0xe] }
 0x217   : > { %v5492_v57 = vmul.f32 %v14482_v61, %v5240_v49  ;;  %v5241_v58 = vmax.f32 %v5205_v52, 0.0  ;;  %v5062_v52 = vld [vmem:[#allocation2 + $0x58] sm:$0xff] }
 0x218   : > { %v5490_v60 = vmul.f32 %v14476_v26, %v5238_v46  ;;  %v5239_v62 = vmax.f32 %v5203_v56, 0.0  ;;  %v12599_v63 = vpop.f32.mrb[152].mxu0 }
 0x219   : > { %v11907_v0 = vpack.c.bf16 %v5492_v57, %v5492_v57  ;;  %v5493_v5 = vmul.f32 %v5328_v17, %v5241_v58  ;;  %v5097_v7 = vadd.f32 %v12599_v63, %v5061_v51  ;;  %v4940_v61 = vpop.f32.mrb[153].mxu0 }
 0x21a   : > { %v11905_v6 = vpack.c.bf16 %v5490_v60, %v5490_v60  ;;  %v5491_v26 = vmul.f32 %v14486_v1, %v5239_v62  ;;  %v5165_v10 = vld [vmem:[#allocation2 + $0x30] sm:$0xff]  ;;  %v5095_v11 = vadd.f32 %v5059_v8, %v4940_v61  ;;  %v12600_v12 = vpop.f32.mrb[154].mxu0 }
 0x21b   : > { %v5665_v15 = vshrl.u32 %v11907_v0, 16  ;;  %v5668_v59 = vshll.u32 %v11907_v0, 16  ;;  %v14533_v16 = vpack.c.bf16 %v5493_v5, %v5493_v5  ;;  %v5208_v18 = vadd.f32 %v14502_v28, %v5165_v10  ;;  %v5163_v17 = vld [vmem:[#allocation2 + $0x20] sm:$0xff]  ;;  %5133 = vst.msk [vmem:[#allocation2 + $0x50] sm:$0xff] %vm619_vm9, %v5097_v7  ;;  %v4943_v19 = vpop.f32.mrb[155].mxu0 }
 0x21c   : > { %v5646_v39 = vshrl.u32 %v11905_v6, 16  ;;  %v5649_v20 = vshll.u32 %v11905_v6, 16  ;;  %v11906_v22 = vpack.c.bf16 %v5491_v26, %v5491_v26  ;;  %v5206_v1 = vadd.f32 %v14502_v28, %v5163_v17  ;;  %5131 = vst.msk [vmem:[#allocation2 + $0x40] sm:$0xff] %vm619_vm9, %v5095_v11  ;;  %v5166_v23 = vld [vmem:[#allocation2 + $0x38] sm:$0xff]  ;;  %v5060_v26 = vld [vmem:[#allocation2 + $0x48] sm:$0xff]  ;;  %v14577_v11 = vpop.permute.xlu1 %5367 }
 0x21d   : > { %v14539_v24 = vrot.slane %v5665_v15, 6  ;;  %v14541_v25 = vrot.slane %v5668_v59, 7  ;;  %v5675_v9 = vshrl.u32 %v14533_v16, 16  ;;  %v5164_v27 = vld [vmem:[#allocation2 + $0x28] sm:$0xff]  ;;  %v5678_v43 = vshll.u32 %v14533_v16, 16 }
 0x21e   : > { %v5648_v31 = vrot.slane %v5646_v39, 6  ;;  %v5651_v4 = vrot.slane %v5649_v20, 7  ;;  %v5655_v33 = vshrl.u32 %v11906_v22, 16  ;;  %v5658_v36 = vshll.u32 %v11906_v22, 16 }
 0x21f   : > { %v14557_v45 = vrot.slane %v5675_v9, 6  ;;  %v5244_v47 = vmax.f32 %v5208_v18, 0.0  ;;  %v5242_v48 = vmax.f32 %v5206_v1, 0.0  ;;  %v5209_v49 = vadd.f32 %v14502_v28, %v5166_v23  ;;  %v14584_v18 = vpop.permute.xlu0 %5372 }
 0x220   : > { %v5652_v50 = vor.u32 %v5651_v4, %v5648_v31  ;;  %v5657_v32 = vrot.slane %v5655_v33, 6  ;;  %v5660_v30 = vrot.slane %v5658_v36, 7  ;;  %v12603_v53 = vpop.f32.mrb[156].mxu0  ;;  %v5207_v58 = vadd.f32 %v14502_v28, %v5164_v27 }
 0x221   : > { %v5496_v56 = vmul.f32 %v14508_v42, %v5244_v47  ;;  %v5494_v57 = vmul.f32 %v14493_v21, %v5242_v48  ;;  %v5098_v60 = vadd.f32 %v12600_v12, %v5062_v52  ;;  %v4956_v62 = vpop.f32.mrb[157].mxu0  ;;  %v5245_v5 = vmax.f32 %v5209_v49, 0.0  ;;  %v5065_v47 = vld [vmem:[#allocation2 + $0x70] sm:$0xff]  ;;  %v5063_v48 = vld [vmem:[#allocation2 + $0x60] sm:$0xff]  ;;  %v5064_v52 = vld [vmem:[#allocation2 + $0x68] sm:$0xff] }
 0x222   : > { %v5653_v63 = vrot.slane %v5652_v50, 4  ;;  %v6045_v51 = vsel %vm14553_vm0, %v5652_v50, %v6044_v44  ;;  %v14573_v0 = vor.u32 %v5660_v30, %v5657_v32  ;;  %v5169_v7 = vld [vmem:[#allocation2 + $0x50] sm:$0xff]  ;;  %v12604_v61 = vpop.f32.mrb[158].mxu0  ;;  %v5243_v6 = vmax.f32 %v5207_v58, 0.0  ;;  %v5066_v50 = vld [vmem:[#allocation2 + $0x78] sm:$0xff]  ;;  %v14598_v58 = vpop.permute.xlu1 %5377 }
 0x223   : > { %6046 = vst [vmem:[#allocation3 + $0x8] sm:$0xe] %v6045_v51  ;;  %v11911_v8 = vpack.c.bf16 %v5496_v56, %v5496_v56  ;;  %v11909_v55 = vpack.c.bf16 %v5494_v57, %v5494_v57  ;;  %v5212_v42 = vadd.f32 %v14502_v28, %v5169_v7  ;;  %v5167_v21 = vld [vmem:[#allocation2 + $0x40] sm:$0xff]  ;;  %5134 = vst.msk [vmem:[#allocation2 + $0x58] sm:$0xff] %vm619_vm9, %v5098_v60  ;;  %v4959_v10 = vpop.f32.mrb[159].mxu0  ;;  %v14589_v31 = vrot.slane %v5678_v43, 7 }
 0x224   : > { %v5662_v12 = vsel %vm14564_vm6, %v5653_v63, %v14573_v0  ;;  %v5497_v15 = vmul.f32 %v14521_v38, %v5245_v5  ;;  %v5210_v59 = vadd.f32 %v14502_v28, %v5167_v21  ;;  %v5096_v16 = vadd.f32 %v5060_v26, %v4943_v19  ;;  %v5069_v56 = vld [vmem:[#allocation2 + $0x90] sm:$0xff] }
 0x225   : > { %6047 = vst.msk [vmem:[#allocation3 + $0xc] sm:$0xf] %vm5544_vm5, %v5662_v12  ;;  %v5705_v17 = vshrl.u32 %v11911_v8, 16  ;;  %v5708_v39 = vshll.u32 %v11911_v8, 16  ;;  %v5685_v20 = vshrl.u32 %v11909_v55, 16  ;;  %v5688_v22 = vshll.u32 %v11909_v55, 16  ;;  %v14604_v8 = vpop.permute.xlu0 %5382 }
 0x226   : > { %v11912_v1 = vpack.c.bf16 %v5497_v15, %v5497_v15  ;;  %v5495_v9 = vmul.f32 %v14506_v35, %v5243_v6  ;;  %v5248_v23 = vmax.f32 %v5212_v42, 0.0  ;;  %v5246_v27 = vmax.f32 %v5210_v59, 0.0  ;;  %5132 = vst.msk [vmem:[#allocation2 + $0x48] sm:$0xff] %vm619_vm9, %v5096_v16  ;;  %v5070_v15 = vld [vmem:[#allocation2 + $0x98] sm:$0xff] }
 0x227   : > { %v14591_v38 = vrot.slane %v5705_v17, 6  ;;  %v14593_v19 = vrot.slane %v5708_v39, 7  ;;  %v14595_v4 = vrot.slane %v5685_v20, 6  ;;  %v5101_v30 = vadd.f32 %v12603_v53, %v5065_v47 }
 0x228   : > { %v5715_v33 = vshrl.u32 %v11912_v1, 16  ;;  %v5718_v36 = vshll.u32 %v11912_v1, 16  ;;  %v11910_v37 = vpack.c.bf16 %v5495_v9, %v5495_v9  ;;  %v5500_v44 = vmul.f32 %v5363_v40, %v5248_v23  ;;  %v12607_v35 = vpop.f32.mrb[160].mxu0  ;;  %v5068_v1 = vld [vmem:[#allocation2 + $0x88] sm:$0xff] }
 0x229   : > { %v5498_v32 = vmul.f32 %v14528_v3, %v5246_v27  ;;  %v5099_v49 = vadd.f32 %v5063_v48, %v4956_v62  ;;  %v5102_v43 = vadd.f32 %v12604_v61, %v5066_v50  ;;  %v4972_v57 = vpop.f32.mrb[161].mxu0  ;;  %v14600_v60 = vrot.slane %v5688_v22, 7  ;;  %5137 = vst.msk [vmem:[#allocation2 + $0x70] sm:$0xff] %vm619_vm9, %v5101_v30  ;;  %v5067_v61 = vld [vmem:[#allocation2 + $0x80] sm:$0xff]  ;;  %v5388_v48 = vpop.permute.xlu1 %5387  ;;  %v5073_v30 = vld [vmem:[#allocation2 + $0xb0] sm:$0xff] }
 0x22a   : > { %v14602_v63 = vrot.slane %v5715_v33, 6  ;;  %v5695_v51 = vshrl.u32 %v11910_v37, 16  ;;  %v5698_v40 = vshll.u32 %v11910_v37, 16  ;;  %v5170_v5 = vld [vmem:[#allocation2 + $0x58] sm:$0xff]  ;;  %v12608_v7 = vpop.f32.mrb[162].mxu0  ;;  %v11915_v55 = vpack.c.bf16 %v5500_v44, %v5500_v44 }
 0x22b   : > { %v11913_v3 = vpack.c.bf16 %v5498_v32, %v5498_v32  ;;  %v5213_v53 = vadd.f32 %v14502_v28, %v5170_v5  ;;  %5135 = vst.msk [vmem:[#allocation2 + $0x60] sm:$0xff] %vm619_vm9, %v5099_v49  ;;  %5138 = vst.msk [vmem:[#allocation2 + $0x78] sm:$0xff] %vm619_vm9, %v5102_v43  ;;  %v5100_v62 = vadd.f32 %v5064_v52, %v4959_v10  ;;  %v4975_v6 = vpop.f32.mrb[163].mxu0  ;;  %v14610_v42 = vrot.slane %v5718_v36, 7 }
 0x22c   : > { %v14612_v21 = vrot.slane %v5695_v51, 6  ;;  %v5105_v26 = vadd.f32 %v12607_v35, %v5069_v56  ;;  %v5103_v12 = vadd.f32 %v5067_v61, %v4972_v57  ;;  %v13169_v59 = vld [vmem:[#allocation3 + $0x8] sm:$0xff]   ;;  %v5745_v16 = vshrl.u32 %v11915_v55, 16  ;;  %v5071_v56 = vld [vmem:[#allocation2 + $0xa0] sm:$0xff] }
 0x22d   : > { %v5748_v17 = vshll.u32 %v11915_v55, 16  ;;  %v5725_v39 = vshrl.u32 %v11913_v3, 16  ;;  %v5728_v20 = vshll.u32 %v11913_v3, 16  ;;  %v5168_v22 = vld [vmem:[#allocation2 + $0x48] sm:$0xff]  ;;  %5136 = vst.msk [vmem:[#allocation2 + $0x68] sm:$0xff] %vm619_vm9, %v5100_v62  ;;  %v5249_v9 = vmax.f32 %v5213_v53, 0.0  ;;  %12628 = vmatmul.mubr.msk.bf16.vlgmr.msra.gmra.mrb[144].mxu1 %vm619_vm9, %v13169_v59 }
 0x22e   : > { %v5211_v10 = vadd.f32 %v14502_v28, %v5168_v22  ;;  %5141 = vst.msk [vmem:[#allocation2 + $0x90] sm:$0xff] %vm619_vm9, %v5105_v26  ;;  %5139 = vst.msk [vmem:[#allocation2 + $0x80] sm:$0xff] %vm619_vm9, %v5103_v12  ;;  %v5106_v23 = vadd.f32 %v12608_v7, %v5070_v15  ;;  %v5104_v27 = vadd.f32 %v5068_v1, %v4975_v6  ;;  %v14619_v33 = vrot.slane %v5698_v40, 7  ;;  %v14626_v44 = vld [vmem:[#allocation3 + $0x8] sm:$0xff]   ;;  %v14669_v1 = vpop.permute.xlu1 %5397 }
 0x22f   : > { %v14621_v36 = vrot.slane %v5745_v16, 6  ;;  %v14623_v37 = vrot.slane %v5748_v17, 7  ;;  %12702 = vmatpush3.bf16.msra.mxu1 %v14526_v2  ;;  %v14631_v47 = vor.u32 %v14544_v29, %v6623_v14  ;;  %v5501_v50 = vmul.f32 %v14577_v11, %v5249_v9  ;;  %v14644_v14 = vpop.permute.xlu0 %5392 }
 0x230   : > { %v5247_v35 = vmax.f32 %v5211_v10, 0.0  ;;  %5142 = vst.msk [vmem:[#allocation2 + $0x98] sm:$0xff] %vm619_vm9, %v5106_v23  ;;  %5140 = vst.msk [vmem:[#allocation2 + $0x88] sm:$0xff] %vm619_vm9, %v5104_v27  ;;  %v12611_v32 = vpop.f32.mrb[164].mxu0  ;;  %v5663_v49 = vrot.slane %v14573_v0, 4  ;;  %v14639_v2 = vor.u32 %v14541_v25, %v14539_v24  ;;  %v14646_v29 = vrot.slane %v5725_v39, 6  ;;  %12971 = vmatprep.subr.msk.bf16.mxu1 %vm6273_vm12, %v11712_v54 }
 0x231   : > { %v14648_v11 = vrot.slane %v5728_v20, 7  ;;  %v5109_v43 = vadd.f32 %v12611_v32, %v5073_v30  ;;  %v4988_v52 = vpop.f32.mrb[165].mxu0  ;;  %v14652_v0 = vor.u32 %v14589_v31, %v14557_v45  ;;  %v11916_v24 = vpack.c.bf16 %v5501_v50, %v5501_v50  ;;  %v5173_v57 = vld [vmem:[#allocation2 + $0x70] sm:$0xff] }
 0x232   : > { %v5499_v25 = vmul.f32 %v14546_v13, %v5247_v35  ;;  %v5171_v51 = vld [vmem:[#allocation2 + $0x60] sm:$0xff]  ;;  %v5174_v40 = vld [vmem:[#allocation2 + $0x78] sm:$0xff]  ;;  %v5107_v5 = vadd.f32 %v5071_v56, %v4988_v52  ;;  %v5672_v7 = vsel %vm14564_vm6, %v5663_v49, %v14639_v2  ;;  %v12612_v55 = vpop.f32.mrb[166].mxu0  ;;  %v5216_v3 = vadd.f32 %v14502_v28, %v5173_v57 }
 0x233   : > { %v5214_v53 = vadd.f32 %v14502_v28, %v5171_v51  ;;  %v5217_v45 = vadd.f32 %v14502_v28, %v5174_v40  ;;  %5145 = vst.msk [vmem:[#allocation2 + $0xb0] sm:$0xff] %vm619_vm9, %v5109_v43  ;;  %v5074_v13 = vld [vmem:[#allocation2 + $0xb8] sm:$0xff]  ;;  %v14664_v31 = vpop.f32.mrb[167].mxu0  ;;  %v5755_v61 = vshrl.u32 %v11916_v24, 16  ;;  %v5758_v6 = vshll.u32 %v11916_v24, 16  ;;  %v5403_v50 = vpop.permute.xlu0 %5402 }
 0x234   : > { %6048 = vst.msk [vmem:[#allocation3 + $0x10] sm:$0xf] %vm5544_vm5, %v5672_v7  ;;  %v11914_v26 = vpack.c.bf16 %v5499_v25, %v5499_v25  ;;  %v5172_v12 = vld [vmem:[#allocation2 + $0x68] sm:$0xff]  ;;  %v5110_v15 = vadd.f32 %v12612_v55, %v5074_v13  ;;  %v5252_v59 = vmax.f32 %v5216_v3, 0.0  ;;  %v5673_v23 = vrot.slane %v14639_v2, 4 }
 0x235   : > { %5143 = vst.msk [vmem:[#allocation2 + $0xa0] sm:$0xff] %vm619_vm9, %v5107_v5  ;;  %v5250_v16 = vmax.f32 %v5214_v53, 0.0  ;;  %v5253_v17 = vmax.f32 %v5217_v45, 0.0  ;;  %v5215_v39 = vadd.f32 %v14502_v28, %v5172_v12  ;;  %v5177_v20 = vld [vmem:[#allocation2 + $0x90] sm:$0xff]  ;;  %v5175_v22 = vld [vmem:[#allocation2 + $0x80] sm:$0xff]  ;;  %v14671_v9 = vrot.slane %v5755_v61, 6  ;;  %v5408_v12 = vpop.permute.xlu1 %5407 }
 0x236   : > { %v14673_v10 = vrot.slane %v5758_v6, 7  ;;  %5146 = vst.msk [vmem:[#allocation2 + $0xb8] sm:$0xff] %vm619_vm9, %v5110_v15  ;;  %v5504_v35 = vmul.f32 %v14604_v8, %v5252_v59  ;;  %v5735_v52 = vshrl.u32 %v11914_v26, 16  ;;  %v5738_v56 = vshll.u32 %v11914_v26, 16 }
 0x237   : > { %v5502_v32 = vmul.f32 %v14584_v18, %v5250_v16  ;;  %v5505_v30 = vmul.f32 %v5388_v48, %v5253_v17  ;;  %v5251_v49 = vmax.f32 %v5215_v39, 0.0  ;;  %v5178_v54 = vld [vmem:[#allocation2 + $0x98] sm:$0xff]  ;;  %v5176_v43 = vld [vmem:[#allocation2 + $0x88] sm:$0xff]  ;;  %v5220_v24 = vadd.f32 %v14502_v28, %v5177_v20  ;;  %v5413_v17 = vpop.permute.xlu0 %5412 }
 0x238   : > { %v5218_v25 = vadd.f32 %v14502_v28, %v5175_v22  ;;  %v14682_v57 = vpop.f32.mrb[168].mxu0  ;;  %v11919_v51 = vpack.c.bf16 %v5504_v35, %v5504_v35  ;;  %v5221_v55 = vadd.f32 %v14502_v28, %v5178_v54  ;;  %v5219_v3 = vadd.f32 %v14502_v28, %v5176_v43 }
 0x239   : > { %v11917_v40 = vpack.c.bf16 %v5502_v32, %v5502_v32  ;;  %v11920_v5 = vpack.c.bf16 %v5505_v30, %v5505_v30  ;;  %v5503_v7 = vmul.f32 %v14598_v58, %v5251_v49  ;;  %v14685_v8 = vpop.f32.mrb[169].mxu0  ;;  %v5256_v18 = vmax.f32 %v5220_v24, 0.0 }
 0x23a   : > { %v5254_v48 = vmax.f32 %v5218_v25, 0.0  ;;  %v14689_v53 = vpop.f32.mrb[170].mxu0  ;;  %v5785_v45 = vshrl.u32 %v11919_v51, 16  ;;  %v5788_v13 = vshll.u32 %v11919_v51, 16  ;;  %v14693_v39 = vrot.slane %v5735_v52, 6  ;;  %v5181_v32 = vld [vmem:[#allocation2 + $0xb0] sm:$0xff] }
 0x23b   : > { %v5765_v61 = vshrl.u32 %v11917_v40, 16  ;;  %v5768_v6 = vshll.u32 %v11917_v40, 16  ;;  %v14691_v26 = vpop.f32.mrb[171].mxu0  ;;  %v5795_v15 = vshrl.u32 %v11920_v5, 16  ;;  %v5798_v59 = vshll.u32 %v11920_v5, 16 }
 0x23c   : > { %v11918_v58 = vpack.c.bf16 %v5503_v7, %v5503_v7  ;;  %v5508_v16 = vmul.f32 %v5403_v50, %v5256_v18  ;;  %v14695_v20 = vrot.slane %v5738_v56, 7  ;;  %v14697_v22 = vrot.slane %v5785_v45, 6  ;;  %v5179_v30 = vld [vmem:[#allocation2 + $0xa0] sm:$0xff] }
 0x23d   : > { %v14699_v35 = vrot.slane %v5788_v13, 7  ;;  %v14701_v49 = vrot.slane %v5765_v61, 6  ;;  %v14703_v54 = vrot.slane %v5768_v6, 7  ;;  %v5506_v50 = vmul.f32 %v14644_v14, %v5254_v48 }
 0x23e   : > { %v5775_v43 = vshrl.u32 %v11918_v58, 16  ;;  %v5778_v24 = vshll.u32 %v11918_v58, 16  ;;  %v11923_v25 = vpack.c.bf16 %v5508_v16, %v5508_v16  ;;  %v5257_v51 = vmax.f32 %v5221_v55, 0.0  ;;  %v14716_v16 = vpop.permute.xlu1 %5417 }
 0x23f   : > { %v5255_v52 = vmax.f32 %v5219_v3, 0.0  ;;  %v14706_v40 = vrot.slane %v5795_v15, 6  ;;  %v14708_v56 = vrot.slane %v5798_v59, 7  ;;  %v5224_v5 = vadd.f32 %v14502_v28, %v5181_v32  ;;  %v5182_v15 = vld [vmem:[#allocation2 + $0xb8] sm:$0xff]  ;;  %v5423_v32 = vpop.permute.xlu0 %5422 }
 0x240   : > { %v5222_v7 = vadd.f32 %v14502_v28, %v5179_v30  ;;  %v14712_v18 = vpop.f32.mrb[172].mxu0  ;;  %v5825_v45 = vshrl.u32 %v11923_v25, 16  ;;  %v5828_v13 = vshll.u32 %v11923_v25, 16  ;;  %v11921_v61 = vpack.c.bf16 %v5506_v50, %v5506_v50 }
 0x241   : > { %16608 = vst [vmem:[#allocation6_spill] sm:$0xff] %v14706_v40  ;;  %16609 = vst [vmem:[#allocation7_spill] sm:$0xff] %v14708_v56  ;;  %v5509_v6 = vmul.f32 %v5408_v12, %v5257_v51  ;;  %v14714_v58 = vpop.f32.mrb[173].mxu0  ;;  %v5507_v14 = vmul.f32 %v14669_v1, %v5255_v52  ;;  %v5260_v48 = vmax.f32 %v5224_v5, 0.0  ;;  %v5682_v3 = vsel %vm14564_vm6, %v5673_v23, %v14652_v0 }
 0x242   : > { %v5258_v55 = vmax.f32 %v5222_v7, 0.0  ;;  %v14724_v59 = vpop.f32.mrb[174].mxu0  ;;  %v14726_v30 = vrot.slane %v5775_v43, 6  ;;  %v14728_v12 = vrot.slane %v5778_v24, 7  ;;  %v5805_v25 = vshrl.u32 %v11921_v61, 16  ;;  %v5072_v7 = vld [vmem:[#allocation2 + $0xa8] sm:$0xff] }
 0x243   : > { %v5808_v50 = vshll.u32 %v11921_v61, 16  ;;  %6049 = vst.msk [vmem:[#allocation3 + $0x14] sm:$0xf] %vm5544_vm5, %v5682_v3  ;;  %v14731_v1 = vpop.f32.mrb[175].mxu0  ;;  %v11924_v51 = vpack.c.bf16 %v5509_v6, %v5509_v6  ;;  %v11922_v52 = vpack.c.bf16 %v5507_v14, %v5507_v14  ;;  %v5512_v2 = vmul.f32 %v5423_v32, %v5260_v48 }
 0x244   : > { %v5510_v5 = vmul.f32 %v5413_v17, %v5258_v55  ;;  %v14733_v23 = vrot.slane %v5825_v45, 6  ;;  %v14735_v27 = vrot.slane %v5828_v13, 7  ;;  %v5225_v43 = vadd.f32 %v14502_v28, %v5182_v15  ;;  %v5428_v55 = vpop.permute.xlu1 %5427 }
 0x245   : > { %v5108_v24 = vadd.f32 %v5072_v7, %v14664_v31  ;;  %v5835_v62 = vshrl.u32 %v11924_v51, 16  ;;  %v5838_v41 = vshll.u32 %v11924_v51, 16  ;;  %v5815_v61 = vshrl.u32 %v11922_v52, 16 }
 0x246   : > { %v5818_v34 = vshll.u32 %v11922_v52, 16  ;;  %v11927_v3 = vpack.c.bf16 %v5512_v2, %v5512_v2  ;;  %v11925_v56 = vpack.c.bf16 %v5510_v5, %v5510_v5  ;;  %v5261_v40 = vmax.f32 %v5225_v43, 0.0 }
 0x247   : > { %5144 = vst.msk [vmem:[#allocation2 + $0xa8] sm:$0xff] %vm619_vm9, %v5108_v24  ;;  %v16610_v17 = vshll.u32 %v14626_v44, 16  ;;  %v14742_v45 = vrot.slane %v5805_v25, 6  ;;  %v14744_v13 = vrot.slane %v5808_v50, 7  ;;  %v14746_v14 = vrot.slane %v5835_v62, 6 }
 0x248   : > { %v14748_v48 = vrot.slane %v5838_v41, 7  ;;  %v14750_v31 = vpop.f32.mrb[176].mxu0  ;;  %v14752_v15 = vrot.slane %v5815_v61, 6  ;;  %v14754_v32 = vrot.slane %v5818_v34, 7  ;;  %v5865_v51 = vshrl.u32 %v11927_v3, 16 }
 0x249   : > { %v6632_v6 = vrot.slane %v16610_v17, 1  ;;  %v5868_v52 = vshll.u32 %v11927_v3, 16  ;;  %v14756_v2 = vpop.f32.mrb[177].mxu0  ;;  %v5845_v5 = vshrl.u32 %v11925_v56, 16  ;;  %v5513_v7 = vmul.f32 %v5428_v55, %v5261_v40  ;;  %v5077_v3 = vld [vmem:[#allocation2 + $0xd0] sm:$0xff] }
 0x24a   : > { %v13170_v25 = vld [vmem:[#allocation3 + $0x10] sm:$0xff]   ;;  %v14760_v50 = vrot.slane %v5865_v51, 6  ;;  %v5848_v41 = vshll.u32 %v11925_v56, 16  ;;  %v16611_v43 = vshrl.u32 %v14626_v44, 16  ;;  %v5683_v61 = vrot.slane %v14652_v0, 4  ;;  %v14768_v17 = vpop.f32.mrb[178].mxu0 }
 0x24b   : > { %v6633_v62 = vsel %vm789_vm1, %v14631_v47, %v6632_v6  ;;  %v14765_v34 = vld [vmem:[#allocation3 + $0x10] sm:$0xff]   ;;  %12631 = vmatprep.mubr.msk.bf16.mxu1 %vm619_vm9, %v13170_v25  ;;  %v14771_v40 = vpack.c.bf16 %v5513_v7, %v5513_v7  ;;  %v5691_v47 = vor.u32 %v14600_v60, %v14595_v4  ;;  %v5701_v44 = vor.u32 %v14619_v33, %v14612_v21  ;;  %v14778_v55 = vpop.f32.mrb[179].mxu0 }
 0x24c   : > { %v6636_v24 = vor.u32 %v16611_v43, %v6632_v6  ;;  %12665 = vmatprep.mubr.msk.bf16.mxu0 %vm619_vm9, %v6633_v62  ;;  %v5113_v56 = vadd.f32 %v14682_v57, %v5077_v3  ;;  %v5075_v6 = vld [vmem:[#allocation2 + $0xc0] sm:$0xff]  ;;  %v6638_v0 = vshll.u32 %v14765_v34, 16  ;;  %v5711_v25 = vor.u32 %v14593_v19, %v14591_v38 }
 0x24d   : > { %v5111_v51 = vadd.f32 %v5075_v6, %v14685_v8  ;;  %v5721_v7 = vor.u32 %v14610_v42, %v14602_v63  ;;  %v14786_v62 = vrot.slane %v5868_v52, 7  ;;  %v14788_v4 = vrot.slane %v5845_v5, 6  ;;  %v5078_v63 = vld [vmem:[#allocation2 + $0xd8] sm:$0xff]  ;;  %v5076_v6 = vld [vmem:[#allocation2 + $0xc8] sm:$0xff] }
 0x24e   : > { %v5180_v60 = vld [vmem:[#allocation2 + $0xa8] sm:$0xff]  ;;  %v5692_v21 = vsel %vm14564_vm6, %v5683_v61, %v5691_v47  ;;  %v5693_v33 = vrot.slane %v5691_v47, 4  ;;  %5149 = vst.msk [vmem:[#allocation2 + $0xd0] sm:$0xff] %vm619_vm9, %v5113_v56  ;;  %v14794_v8 = vrot.slane %v6638_v0, 1  ;;  %v5703_v38 = vrot.slane %v5701_v44, 4  ;;  %v14804_v61 = vpop.permute.xlu0 %5432 }
 0x24f   : > { %v5223_v57 = vadd.f32 %v14502_v28, %v5180_v60  ;;  %6050 = vst.msk [vmem:[#allocation3 + $0x18] sm:$0xf] %vm5544_vm5, %v5692_v21  ;;  %v5713_v19 = vrot.slane %v5711_v25, 4  ;;  %v14798_v42 = vrot.slane %v5848_v41, 7  ;;  %v5875_v52 = vshrl.u32 %v14771_v40, 16 }
 0x250   : > { %5147 = vst.msk [vmem:[#allocation2 + $0xc0] sm:$0xff] %vm619_vm9, %v5111_v51  ;;  %v5702_v5 = vsel %vm14564_vm6, %v5693_v33, %v5701_v44  ;;  %v5114_v43 = vadd.f32 %v14689_v53, %v5078_v63  ;;  %v6641_v47 = vsel %vm789_vm1, %v6636_v24, %v14794_v8  ;;  %v5712_v56 = vsel %vm14564_vm6, %v5703_v38, %v5711_v25  ;;  %v5081_v51 = vld [vmem:[#allocation2 + $0xf0] sm:$0xff]  ;;  %v5079_v25 = vld [vmem:[#allocation2 + $0xe0] sm:$0xff] }
 0x251   : > { %v5259_v3 = vmax.f32 %v5223_v57, 0.0  ;;  %6051 = vst.msk [vmem:[#allocation3 + $0x1c] sm:$0xf] %vm5544_vm5, %v5702_v5  ;;  %v5722_v41 = vsel %vm14564_vm6, %v5713_v19, %v5721_v7  ;;  %v5878_v0 = vshll.u32 %v14771_v40, 16  ;;  %12666 = vmatmul.mubr.msk.bf16.vlgmr.msra.gmra.mrb[180].mxu0 %vm619_vm9, %v6641_v47  ;;  %6052 = vst.msk [vmem:[#allocation3 + $0x20] sm:$0xf] %vm5544_vm5, %v5712_v56  ;;  %v5112_v53 = vadd.f32 %v5076_v6, %v14691_v26  ;;  %v14826_v57 = vpop.permute.xlu1 %5437 }
 0x252   : > { %6053 = vst.msk [vmem:[#allocation3 + $0x24] sm:$0xf] %vm5544_vm5, %v5722_v41  ;;  %v5723_v24 = vrot.slane %v5721_v7, 4  ;;  %v5731_v44 = vor.u32 %v14648_v11, %v14646_v29  ;;  %v5741_v40 = vor.u32 %v14695_v20, %v14693_v39  ;;  %v5117_v21 = vadd.f32 %v14712_v18, %v5081_v51  ;;  %v5080_v19 = vld [vmem:[#allocation2 + $0xe8] sm:$0xff]  ;;  %v5083_v51 = vld [vmem:[#allocation2 + $0x100] sm:$0xff] }
 0x253   : > { %5150 = vst.msk [vmem:[#allocation2 + $0xd8] sm:$0xff] %vm619_vm9, %v5114_v43  ;;  %v5511_v60 = vmul.f32 %v14716_v16, %v5259_v3  ;;  %v5115_v33 = vadd.f32 %v5079_v25, %v14714_v58  ;;  %v14828_v38 = vrot.slane %v5875_v52, 6  ;;  %5148 = vst.msk [vmem:[#allocation2 + $0xc8] sm:$0xff] %vm619_vm9, %v5112_v53  ;;  %v5751_v26 = vor.u32 %v14623_v37, %v14621_v36  ;;  %v5082_v16 = vld [vmem:[#allocation2 + $0xf8] sm:$0xff]  ;;  %v5085_v43 = vld [vmem:[#allocation2 + $0x110] sm:$0xff]  ;;  %v5443_v3 = vpop.permute.xlu0 %5442 }
 0x254   : > { %v5732_v29 = vsel %vm14564_vm6, %v5723_v24, %v5731_v44  ;;  %v5733_v11 = vrot.slane %v5731_v44, 4  ;;  %5153 = vst.msk [vmem:[#allocation2 + $0xf0] sm:$0xff] %vm619_vm9, %v5117_v21  ;;  %v5743_v20 = vrot.slane %v5741_v40, 4  ;;  %v5761_v18 = vor.u32 %v14673_v10, %v14671_v9 }
 0x255   : > { %v11926_v7 = vpack.c.bf16 %v5511_v60, %v5511_v60  ;;  %v5185_v39 = vld [vmem:[#allocation2 + $0xd0] sm:$0xff]  ;;  %6054 = vst.msk [vmem:[#allocation3 + $0x28] sm:$0xf] %vm5544_vm5, %v5732_v29  ;;  %v5118_v58 = vadd.f32 %v14724_v59, %v5082_v16  ;;  %v5753_v37 = vrot.slane %v5751_v26, 4  ;;  %v5116_v5 = vadd.f32 %v5080_v19, %v14731_v1  ;;  %v5448_v25 = vpop.permute.xlu1 %5447 }
 0x256   : > { %5151 = vst.msk [vmem:[#allocation2 + $0xe0] sm:$0xff] %vm619_vm9, %v5115_v33  ;;  %v5228_v63 = vadd.f32 %v14502_v28, %v5185_v39  ;;  %v5742_v36 = vsel %vm14564_vm6, %v5733_v11, %v5741_v40  ;;  %v6642_v41 = vshrl.u32 %v14765_v34, 16  ;;  %v5752_v9 = vsel %vm14564_vm6, %v5743_v20, %v5751_v26 }
 0x257   : > { %v5183_v52 = vld [vmem:[#allocation2 + $0xc0] sm:$0xff]  ;;  %v5855_v47 = vshrl.u32 %v11926_v7, 16  ;;  %6055 = vst.msk [vmem:[#allocation3 + $0x2c] sm:$0xf] %vm5544_vm5, %v5742_v36  ;;  %v5762_v6 = vsel %vm14564_vm6, %v5753_v37, %v5761_v18  ;;  %6056 = vst.msk [vmem:[#allocation3 + $0x30] sm:$0xf] %vm5544_vm5, %v5752_v9  ;;  %v14858_v34 = vor.u32 %v14703_v54, %v14701_v49  ;;  %v5121_v44 = vadd.f32 %v14750_v31, %v5085_v43  ;;  %v5453_v20 = vpop.permute.xlu0 %5452 }
 0x258   : > { %v5226_v56 = vadd.f32 %v14502_v28, %v5183_v52  ;;  %5154 = vst.msk [vmem:[#allocation2 + $0xf8] sm:$0xff] %vm619_vm9, %v5118_v58  ;;  %v13174_v10 = vld [vmem:[#allocation3 + $0x18] sm:$0xff]   ;;  %v5264_v59 = vmax.f32 %v5228_v63, 0.0  ;;  %5152 = vst.msk [vmem:[#allocation2 + $0xe8] sm:$0xff] %vm619_vm9, %v5116_v5  ;;  %v5858_v1 = vshll.u32 %v11926_v7, 16  ;;  %v14861_v60 = vrot.slane %v5878_v0, 7 }
 0x259   : > { %v13175_v24 = vld [vmem:[#allocation3 + $0x20] sm:$0xff]   ;;  %6057 = vst.msk [vmem:[#allocation3 + $0x34] sm:$0xf] %vm5544_vm5, %v5762_v6  ;;  %12632 = vmatmul.mubr.msk.bf16.gmra.mrb[148].mxu1 %vm619_vm9, %v13174_v10  ;;  %v13176_v33 = vld [vmem:[#allocation3 + $0x18] sm:$0xff]   ;;  %v6644_v29 = vor.u32 %v6642_v41, %v14794_v8  ;;  %v5119_v11 = vadd.f32 %v5083_v51, %v14756_v2  ;;  %v5763_v31 = vrot.slane %v5761_v18, 4  ;;  %v14871_v0 = vor.u32 %v14728_v12, %v14726_v30 }
 0x25a   : > { %v5262_v53 = vmax.f32 %v5226_v56, 0.0  ;;  %v5516_v40 = vmul.f32 %v5443_v3, %v5264_v59  ;;  %v5186_v21 = vld [vmem:[#allocation2 + $0xd8] sm:$0xff]  ;;  %12635 = vmatprep.mubr.msk.bf16.mxu1 %vm619_vm9, %v13175_v24  ;;  %v5184_v54 = vld [vmem:[#allocation2 + $0xc8] sm:$0xff]  ;;  %5157 = vst.msk [vmem:[#allocation2 + $0x110] sm:$0xff] %vm619_vm9, %v5121_v44  ;;  %v14874_v16 = vrot.slane %v5855_v47, 6  ;;  %v6646_v2 = vshll.u32 %v13176_v33, 16  ;;  %v5458_v56 = vpop.permute.xlu1 %5457 }
 0x25b   : > { %v5229_v49 = vadd.f32 %v14502_v28, %v5186_v21  ;;  %v5227_v8 = vadd.f32 %v14502_v28, %v5184_v54  ;;  %v14877_v39 = vld [vmem:[#allocation3 + $0x20] sm:$0xff]   ;;  %5155 = vst.msk [vmem:[#allocation2 + $0x100] sm:$0xff] %vm619_vm9, %v5119_v11  ;;  %v14880_v58 = vrot.slane %v5858_v1, 7  ;;  %v5772_v30 = vsel %vm14564_vm6, %v5763_v31, %v14858_v34 }
 0x25c   : > { %v5514_v26 = vmul.f32 %v14804_v61, %v5262_v53  ;;  %v11931_v7 = vpack.c.bf16 %v5516_v40, %v5516_v40  ;;  %v5189_v61 = vld [vmem:[#allocation2 + $0xf0] sm:$0xff]  ;;  %v6648_v63 = vrot.slane %v6646_v2, 1  ;;  %v14888_v28 = vld [vmem:[%s16594_s3] ss:$0 sm:$0xff]  ;;  %v5773_v36 = vrot.slane %v14858_v34, 4 }
 0x25d   : > { %v5265_v19 = vmax.f32 %v5229_v49, 0.0  ;;  %v5263_v12 = vmax.f32 %v5227_v8, 0.0  ;;  %v5232_v52 = vadd.f32 %v14888_v28, %v5189_v61  ;;  %6058 = vst.msk [vmem:[#allocation3 + $0x38] sm:$0xf] %vm5544_vm5, %v5772_v30  ;;  %v6650_v5 = vshrl.u32 %v13176_v33, 16  ;;  %v5187_v47 = vld [vmem:[#allocation2 + $0xe0] sm:$0xff] }
 0x25e   : > { %v11929_v18 = vpack.c.bf16 %v5514_v26, %v5514_v26  ;;  %v6654_v43 = vshll.u32 %v14877_v39, 16  ;;  %v13178_v3 = vld [vmem:[#allocation3 + $0x28] sm:$0xff]   ;;  %v5905_v41 = vshrl.u32 %v11931_v7, 16  ;;  %v5908_v9 = vshll.u32 %v11931_v7, 16 }
 0x25f   : > { %v5517_v37 = vmul.f32 %v5448_v25, %v5265_v19  ;;  %v5515_v10 = vmul.f32 %v14826_v57, %v5263_v12  ;;  %v6649_v59 = vsel %vm789_vm1, %v6644_v29, %v6648_v63  ;;  %v5190_v1 = vld [vmem:[#allocation2 + $0xf8] sm:$0xff]  ;;  %v6652_v44 = vor.u32 %v6650_v5, %v6648_v63  ;;  %v5188_v51 = vld [vmem:[#allocation2 + $0xe8] sm:$0xff]  ;;  %v5463_v57 = vpop.permute.xlu0 %5462  ;;  %v5468_v63 = vpop.permute.xlu1 %5467 }
 0x260   : > { %v13179_v6 = vld [vmem:[#allocation3 + $0x30] sm:$0xff]   ;;  %v5885_v53 = vshrl.u32 %v11929_v18, 16  ;;  %12669 = vmatprep.mubr.msk.bf16.mxu0 %vm619_vm9, %v6649_v59  ;;  %v5783_v25 = vrot.slane %v14871_v0, 4  ;;  %v6656_v21 = vrot.slane %v6654_v43, 1  ;;  %v5268_v33 = vmax.f32 %v5232_v52, 0.0  ;;  %v13180_v54 = vld [vmem:[#allocation3 + $0x28] sm:$0xff]  }
 0x261   : > { %v11932_v24 = vpack.c.bf16 %v5517_v37, %v5517_v37  ;;  %v11930_v40 = vpack.c.bf16 %v5515_v10, %v5515_v10  ;;  %12636 = vmatmul.mubr.msk.bf16.gmra.mrb[152].mxu1 %vm619_vm9, %v13178_v3  ;;  %v5230_v11 = vadd.f32 %v14888_v28, %v5187_v47  ;;  %v5888_v26 = vshll.u32 %v11929_v18, 16  ;;  %v13215_v46 = vld [vmem:[#allocation3 + $0x28] sm:$0xff]  }
 0x262   : > { %12639 = vmatprep.mubr.msk.bf16.mxu1 %vm619_vm9, %v13179_v6  ;;  %v5233_v29 = vadd.f32 %v14888_v28, %v5190_v1  ;;  %v5231_v49 = vadd.f32 %v14888_v28, %v5188_v51  ;;  %v14905_v31 = vor.u32 %v14699_v35, %v14697_v22  ;;  %v14907_v7 = vrot.slane %v5905_v41, 6  ;;  %v14915_v35 = vld [vmem:[#allocation3 + $0x30] sm:$0xff]  }
 0x263   : > { %v14909_v8 = vrot.slane %v5908_v9, 7  ;;  %v6657_v2 = vsel %vm789_vm1, %v6652_v44, %v6656_v21  ;;  %v5520_v61 = vmul.f32 %v5463_v57, %v5268_v33  ;;  %v14912_v19 = vrot.slane %v5885_v53, 6  ;;  %v5191_v57 = vld [vmem:[#allocation2 + $0x100] sm:$0xff] }
 0x264   : > { %v5915_v18 = vshrl.u32 %v11932_v24, 16  ;;  %12670 = vmatmul.mubr.msk.bf16.gmra.mrb[184].mxu0 %vm619_vm9, %v6657_v2  ;;  %v5266_v30 = vmax.f32 %v5230_v11, 0.0  ;;  %v5269_v12 = vmax.f32 %v5233_v29, 0.0  ;;  %v5918_v52 = vshll.u32 %v11932_v24, 16 }
 0x265   : > { %v5895_v37 = vshrl.u32 %v11930_v40, 16  ;;  %v11935_v5 = vpack.c.bf16 %v5520_v61, %v5520_v61  ;;  %v5267_v22 = vmax.f32 %v5231_v49, 0.0  ;;  %v5898_v43 = vshll.u32 %v11930_v40, 16 }
 0x266   : > { %v5518_v3 = vmul.f32 %v5453_v20, %v5266_v30  ;;  %v5521_v47 = vmul.f32 %v5468_v63, %v5269_v12  ;;  %v6662_v41 = vshll.u32 %v13180_v54, 16  ;;  %v6658_v6 = vshrl.u32 %v14877_v39, 16  ;;  %v5193_v20 = vld [vmem:[#allocation2 + $0x110] sm:$0xff] }
 0x267   : > { %v5945_v9 = vshrl.u32 %v11935_v5, 16  ;;  %v5948_v10 = vshll.u32 %v11935_v5, 16  ;;  %v5519_v59 = vmul.f32 %v5458_v56, %v5267_v22  ;;  %v14918_v1 = vrot.slane %v5888_v26, 7  ;;  %v5473_v26 = vpop.permute.xlu0 %5472 }
 0x268   : > { %v11933_v53 = vpack.c.bf16 %v5518_v3, %v5518_v3  ;;  %v14920_v44 = vpack.c.bf16 %v5521_v47, %v5521_v47  ;;  %v6664_v24 = vrot.slane %v6662_v41, 1  ;;  %v6660_v33 = vor.u32 %v6658_v6, %v6656_v21 }
 0x269   : > { %v14922_v51 = vpack.c.bf16 %v5519_v59, %v5519_v59  ;;  %v6666_v11 = vshrl.u32 %v13180_v54, 16  ;;  %v6670_v40 = vshll.u32 %v14915_v35, 16  ;;  %v14925_v29 = vrot.slane %v5915_v18, 6  ;;  %v16613_v59 = vld [vmem:[#allocation7_spill] sm:$0xff] }
 0x26a   : > { %v14927_v49 = vrot.slane %v5918_v52, 7  ;;  %v14929_v56 = vrot.slane %v5895_v37, 6  ;;  %v14931_v39 = vrot.slane %v5898_v43, 7  ;;  %v14933_v2 = vrot.slane %v5945_v9, 6  ;;  %v5086_v43 = vld [vmem:[#allocation2 + $0x118] sm:$0xff] }
 0x26b   : > { %v14935_v61 = vrot.slane %v5948_v10, 7  ;;  %v6665_v21 = vsel %vm789_vm1, %v6660_v33, %v6664_v24  ;;  %v6668_v54 = vor.u32 %v6666_v11, %v6664_v24  ;;  %v5925_v30 = vshrl.u32 %v11933_v53, 16  ;;  %v5084_v10 = vld [vmem:[#allocation2 + $0x108] sm:$0xff] }
 0x26c   : > { %v5928_v12 = vshll.u32 %v11933_v53, 16  ;;  %v5955_v63 = vshrl.u32 %v14920_v44, 16  ;;  %v5958_v18 = vshll.u32 %v14920_v44, 16  ;;  %12673 = vmatprep.mubr.msk.bf16.mxu0 %vm619_vm9, %v6665_v21  ;;  %v5935_v52 = vshrl.u32 %v14922_v51, 16 }
 0x26d   : > { %v5938_v37 = vshll.u32 %v14922_v51, 16  ;;  %v14943_v5 = vrot.slane %v6670_v40, 1  ;;  %v5782_v22 = vsel %vm14564_vm6, %v5773_v36, %v14871_v0  ;;  %v5236_v3 = vadd.f32 %v14888_v28, %v5193_v20  ;;  %v16612_v36 = vld [vmem:[#allocation6_spill] sm:$0xff]  ;;  %v5483_v51 = vpop.permute.xlu0 %5482 }
 0x26e   : > { %6059 = vst.msk [vmem:[#allocation3 + $0x3c] sm:$0xf] %vm5544_vm5, %v5782_v22  ;;  %v5234_v47 = vadd.f32 %v14888_v28, %v5191_v57  ;;  %v5792_v41 = vsel %vm14564_vm6, %v5783_v25, %v14905_v31  ;;  %v5793_v9 = vrot.slane %v14905_v31, 4  ;;  %v5801_v6 = vor.u32 %v16613_v59, %v16612_v36 }
 0x26f   : > { %v6673_v34 = vsel %vm789_vm1, %v6668_v54, %v14943_v5  ;;  %6060 = vst.msk [vmem:[#allocation3 + $0x40] sm:$0xf] %vm5544_vm5, %v5792_v41  ;;  %v5122_v53 = vadd.f32 %v14768_v17, %v5086_v43  ;;  %v5120_v44 = vadd.f32 %v5084_v10, %v14778_v55  ;;  %v14966_v24 = vrot.slane %v5925_v30, 6 }
 0x270   : > { %12674 = vmatmul.mubr.msk.bf16.gmra.mrb[188].mxu0 %vm619_vm9, %v6673_v34  ;;  %v5272_v0 = vmax.f32 %v5236_v3, 0.0  ;;  %v5270_v25 = vmax.f32 %v5234_v47, 0.0  ;;  %v5811_v31 = vor.u32 %v14744_v13, %v14742_v45  ;;  %v5802_v33 = vsel %vm14564_vm6, %v5793_v9, %v5801_v6 }
 0x271   : > { %5158 = vst.msk [vmem:[#allocation2 + $0x118] sm:$0xff] %vm619_vm9, %v5122_v53  ;;  %5156 = vst.msk [vmem:[#allocation2 + $0x108] sm:$0xff] %vm619_vm9, %v5120_v44  ;;  %v5803_v17 = vrot.slane %v5801_v6, 4  ;;  %v5821_v55 = vor.u32 %v14754_v32, %v14752_v15  ;;  %v5831_v11 = vor.u32 %v14735_v27, %v14733_v23  ;;  %v14979_v40 = vrot.slane %v5928_v12, 7 }
 0x272   : > { %v5524_v20 = vmul.f32 %v5483_v51, %v5272_v0  ;;  %v5522_v57 = vmul.f32 %v5473_v26, %v5270_v25  ;;  %6061 = vst.msk [vmem:[#allocation3 + $0x44] sm:$0xf] %vm5544_vm5, %v5802_v33  ;;  %v5813_v45 = vrot.slane %v5811_v31, 4  ;;  %v5841_v30 = vor.u32 %v14748_v48, %v14746_v14  ;;  %v5478_v33 = vpop.permute.xlu1 %5477 }
 0x273   : > { %v5812_v13 = vsel %vm14564_vm6, %v5803_v17, %v5811_v31  ;;  %v5823_v21 = vrot.slane %v5821_v55, 4  ;;  %v5833_v54 = vrot.slane %v5831_v11, 4  ;;  %v5851_v23 = vor.u32 %v14798_v42, %v14788_v4 }
 0x274   : > { %v14986_v22 = vpack.c.bf16 %v5524_v20, %v5524_v20  ;;  %v11937_v15 = vpack.c.bf16 %v5522_v57, %v5522_v57  ;;  %v5822_v27 = vsel %vm14564_vm6, %v5813_v45, %v5821_v55  ;;  %6062 = vst.msk [vmem:[#allocation3 + $0x48] sm:$0xf] %vm5544_vm5, %v5812_v13  ;;  %v5843_v48 = vrot.slane %v5841_v30, 4 }
 0x275   : > { %v13182_v32 = vld [vmem:[#allocation3 + $0x38] sm:$0xff]   ;;  %6063 = vst.msk [vmem:[#allocation3 + $0x4c] sm:$0xf] %vm5544_vm5, %v5822_v27  ;;  %v5832_v26 = vsel %vm14564_vm6, %v5823_v21, %v5831_v11  ;;  %v5842_v14 = vsel %vm14564_vm6, %v5833_v54, %v5841_v30  ;;  %v5861_v12 = vor.u32 %v14880_v58, %v14874_v16  ;;  %v15000_v43 = vrot.slane %v5955_v63, 6 }
 0x276   : > { %v15002_v3 = vrot.slane %v5958_v18, 7  ;;  %v5985_v47 = vshrl.u32 %v14986_v22, 16  ;;  %v6674_v4 = vshrl.u32 %v14915_v35, 16  ;;  %6064 = vst.msk [vmem:[#allocation3 + $0x50] sm:$0xf] %vm5544_vm5, %v5832_v26  ;;  %12640 = vmatmul.mubr.msk.bf16.gmra.mrb[156].mxu1 %vm619_vm9, %v13182_v32  ;;  %v13184_v42 = vld [vmem:[#allocation3 + $0x38] sm:$0xff]   ;;  %v5852_v41 = vsel %vm14564_vm6, %v5843_v48, %v5851_v23 }
 0x277   : > { %6065 = vst.msk [vmem:[#allocation3 + $0x54] sm:$0xf] %vm5544_vm5, %v5842_v14  ;;  %v5853_v9 = vrot.slane %v5851_v23, 4  ;;  %v5863_v16 = vrot.slane %v5861_v12, 4  ;;  %v5871_v58 = vor.u32 %v14786_v62, %v14760_v50  ;;  %v5937_v63 = vrot.slane %v5935_v52, 6 }
 0x278   : > { %v5940_v18 = vrot.slane %v5938_v37, 7  ;;  %v5988_v10 = vshll.u32 %v14986_v22, 16  ;;  %v5965_v35 = vshrl.u32 %v11937_v15, 16  ;;  %v5192_v34 = vld [vmem:[#allocation2 + $0x108] sm:$0xff]  ;;  %6066 = vst.msk [vmem:[#allocation3 + $0x58] sm:$0xf] %vm5544_vm5, %v5852_v41  ;;  %v6676_v6 = vor.u32 %v6674_v4, %v14943_v5 }
 0x279   : > { %v13183_v36 = vld [vmem:[#allocation3 + $0x40] sm:$0xff]   ;;  %v5235_v59 = vadd.f32 %v14888_v28, %v5192_v34  ;;  %v6678_v53 = vshll.u32 %v13184_v42, 16  ;;  %v5862_v44 = vsel %vm14564_vm6, %v5853_v9, %v5861_v12  ;;  %v15019_v0 = vrot.slane %v5985_v47, 6 }
 0x27a   : > { %v5968_v50 = vshll.u32 %v11937_v15, 16  ;;  %v13185_v62 = vld [vmem:[#allocation3 + $0x40] sm:$0xff]   ;;  %6067 = vst.msk [vmem:[#allocation3 + $0x5c] sm:$0xf] %vm5544_vm5, %v5862_v44  ;;  %v5872_v52 = vsel %vm14564_vm6, %v5863_v16, %v5871_v58  ;;  %v5873_v37 = vrot.slane %v5871_v58, 4  ;;  %12643 = vmatprep.mubr.msk.bf16.mxu1 %vm619_vm9, %v13183_v36  ;;  %v6682_v51 = vshrl.u32 %v13184_v42, 16 }
 0x27b   : > { %v5271_v25 = vmax.f32 %v5235_v59, 0.0  ;;  %v6680_v31 = vrot.slane %v6678_v53, 1  ;;  %v5881_v5 = vor.u32 %v14861_v60, %v14828_v38  ;;  %6068 = vst.msk [vmem:[#allocation3 + $0x60] sm:$0xf] %vm5544_vm5, %v5872_v52  ;;  %v6686_v17 = vshll.u32 %v13185_v62, 16 }
 0x27c   : > { %v13186_v55 = vld [vmem:[#allocation3 + $0x48] sm:$0xff]   ;;  %v5967_v11 = vrot.slane %v5965_v35, 6  ;;  %v5970_v21 = vrot.slane %v5968_v50, 7  ;;  %v5891_v27 = vor.u32 %v14918_v1, %v14912_v19  ;;  %v5901_v23 = vor.u32 %v14931_v39, %v14929_v56 }
 0x27d   : > { %v5523_v20 = vmul.f32 %v5478_v33, %v5271_v25  ;;  %v6681_v57 = vsel %vm789_vm1, %v6676_v6, %v6680_v31  ;;  %v6684_v45 = vor.u32 %v6682_v51, %v6680_v31  ;;  %v6688_v54 = vrot.slane %v6686_v17, 1  ;;  %v13188_v30 = vld [vmem:[#allocation3 + $0x48] sm:$0xff]   ;;  %v15066_v31 = vld [vmem:[%s16595_s4 + $0x14] sm:$0xf] }
 0x27e   : > { %v13187_v13 = vld [vmem:[#allocation3 + $0x50] sm:$0xff]   ;;  %12677 = vmatprep.mubr.msk.bf16.mxu0 %vm619_vm9, %v6681_v57  ;;  %v5882_v38 = vsel %vm14564_vm6, %v5873_v37, %v5881_v5  ;;  %12644 = vmatmul.mubr.msk.bf16.gmra.mrb[160].mxu1 %vm619_vm9, %v13186_v55  ;;  %v6690_v26 = vshrl.u32 %v13185_v62, 16  ;;  %v6694_v14 = vshll.u32 %v13188_v30, 16  ;;  %v5911_v48 = vor.u32 %v14909_v8, %v14907_v7  ;;  %v5194_v55 = vld [vmem:[#allocation2 + $0x118] sm:$0xff] }
 0x27f   : > { %v13189_v15 = vld [vmem:[#allocation3 + $0x50] sm:$0xff]   ;;  %v11938_v60 = vpack.c.bf16 %v5523_v20, %v5523_v20  ;;  %6069 = vst.msk [vmem:[#allocation3 + $0x64] sm:$0xf] %vm5544_vm5, %v5882_v38  ;;  %v6689_v32 = vsel %vm789_vm1, %v6684_v45, %v6688_v54  ;;  %12647 = vmatprep.mubr.msk.bf16.mxu1 %vm619_vm9, %v13187_v13  ;;  %v5921_v4 = vor.u32 %v14927_v49, %v14925_v29  ;;  %v6698_v39 = vshrl.u32 %v13188_v30, 16 }
 0x280   : > { %12678 = vmatmul.mubr.msk.bf16.gmra.mrb[192].mxu0 %vm619_vm9, %v6689_v32  ;;  %v5931_v19 = vor.u32 %v14979_v40, %v14966_v24  ;;  %v6692_v1 = vor.u32 %v6690_v26, %v6688_v54  ;;  %v6696_v56 = vrot.slane %v6694_v14, 1  ;;  %v6702_v42 = vshll.u32 %v13189_v15, 16 }
 0x281   : > { %v5975_v12 = vshrl.u32 %v11938_v60, 16  ;;  %v5978_v47 = vshll.u32 %v11938_v60, 16  ;;  %v13192_v41 = vld [vmem:[#allocation3 + $0x58] sm:$0xff]   ;;  %v5941_v58 = vor.u32 %v5940_v18, %v5937_v63  ;;  %v5951_v7 = vor.u32 %v14935_v61, %v14933_v2 }
 0x282   : > { %v13190_v16 = vld [vmem:[#allocation3 + $0x58] sm:$0xff]   ;;  %v5961_v8 = vor.u32 %v15002_v3, %v15000_v43  ;;  %v6697_v35 = vsel %vm789_vm1, %v6692_v1, %v6696_v56  ;;  %v6700_v29 = vor.u32 %v6698_v39, %v6696_v56  ;;  %v6704_v49 = vrot.slane %v6702_v42, 1 }
 0x283   : > { %v5977_v9 = vrot.slane %v5975_v12, 6  ;;  %v6706_v34 = vshrl.u32 %v13189_v15, 16  ;;  %v5980_v24 = vrot.slane %v5978_v47, 7  ;;  %12681 = vmatprep.mubr.msk.bf16.mxu0 %vm619_vm9, %v6697_v35  ;;  %v6710_v40 = vshll.u32 %v13192_v41, 16 }
 0x284   : > { %v6714_v36 = vshrl.u32 %v13192_v41, 16  ;;  %v5883_v59 = vrot.slane %v5881_v5, 4  ;;  %v6705_v6 = vsel %vm789_vm1, %v6700_v29, %v6704_v49  ;;  %v5893_v53 = vrot.slane %v5891_v27, 4  ;;  %v5488_v29 = vpop.permute.xlu1 %5487 }
 0x285   : > { %v6708_v18 = vor.u32 %v6706_v34, %v6704_v49  ;;  %v5971_v2 = vor.u32 %v5970_v21, %v5967_v11  ;;  %v6712_v61 = vrot.slane %v6710_v40, 1  ;;  %v5903_v44 = vrot.slane %v5901_v23, 4  ;;  %v13339_v21 = vld [vmem:[%s16595_s4 + $0xc] sm:$0xf] }
 0x286   : > { %v13191_v63 = vld [vmem:[#allocation3 + $0x60] sm:$0xff]   ;;  %12648 = vmatmul.mubr.msk.bf16.gmra.mrb[164].mxu1 %vm619_vm9, %v13190_v16  ;;  %v5892_v3 = vsel %vm14564_vm6, %v5883_v59, %v5891_v27  ;;  %v5913_v50 = vrot.slane %v5911_v48, 4  ;;  %v5902_v62 = vsel %vm14564_vm6, %v5893_v53, %v5901_v23  ;;  %v5923_v52 = vrot.slane %v5921_v4, 4 }
 0x287   : > { %v15055_v43 = vld [vmem:[#allocation3 + $0x60] sm:$0xff]   ;;  %12651 = vmatprep.mubr.msk.bf16.mxu1 %vm619_vm9, %v13191_v63  ;;  %6070 = vst.msk [vmem:[#allocation3 + $0x68] sm:$0xf] %vm5544_vm5, %v5892_v3  ;;  %v5933_v37 = vrot.slane %v5931_v19, 4  ;;  %v5943_v25 = vrot.slane %v5941_v58, 4  ;;  %v5990_v51 = vrot.slane %v5988_v10, 7  ;;  %v6713_v5 = vsel %vm789_vm1, %v6708_v18, %v6712_v61 }
 0x288   : > { %12682 = vmatmul.mubr.msk.bf16.gmra.mrb[196].mxu0 %vm619_vm9, %v6705_v6  ;;  %v6718_v33 = vshll.u32 %v15055_v43, 16  ;;  %6071 = vst.msk [vmem:[#allocation3 + $0x6c] sm:$0xf] %vm5544_vm5, %v5902_v62  ;;  %v5912_v17 = vsel %vm14564_vm6, %v5903_v44, %v5911_v48  ;;  %v6716_v11 = vor.u32 %v6714_v36, %v6712_v61  ;;  %v5922_v20 = vsel %vm14564_vm6, %v5913_v50, %v5921_v4  ;;  %v13203_v6 = vld [vmem:[#allocation3] sm:$0xfe]   ;;  %v13204_v3 = vld [vmem:[#allocation3 + $0x8] sm:$0xff]  }
 0x289   : > { %12685 = vmatprep.mubr.msk.bf16.mxu0 %vm619_vm9, %v6713_v5  ;;  %6072 = vst.msk [vmem:[#allocation3 + $0x70] sm:$0xf] %vm5544_vm5, %v5912_v17  ;;  %v5932_v22 = vsel %vm14564_vm6, %v5923_v52, %v5931_v19  ;;  %v5942_v10 = vsel %vm14564_vm6, %v5933_v37, %v5941_v58  ;;  %6073 = vst.msk [vmem:[#allocation3 + $0x74] sm:$0xf] %vm5544_vm5, %v5922_v20  ;;  %v5952_v45 = vsel %vm14564_vm6, %v5943_v25, %v5951_v7 }
 0x28a   : > { %v6720_v57 = vrot.slane %v6718_v33, 1  ;;  %6074 = vst.msk [vmem:[#allocation3 + $0x78] sm:$0xf] %vm5544_vm5, %v5932_v22  ;;  %6075 = vst.msk [vmem:[#allocation3 + $0x7c] sm:$0xf] %vm5544_vm5, %v5942_v10  ;;  %v5953_v13 = vrot.slane %v5951_v7, 4  ;;  %v5981_v38 = vor.u32 %v5980_v24, %v5977_v9  ;;  %v15095_v60 = vor.u32 %v5990_v51, %v15019_v0 }
 0x28b   : > { %v7847_v54 = vsel %vm6273_vm12, %v13339_v21, 0  ;;  %6076 = vst.msk [vmem:[#allocation3 + $0x80] sm:$0xf] %vm5544_vm5, %v5952_v45  ;;  %v5963_v30 = vrot.slane %v5961_v8, 4  ;;  %v5973_v15 = vrot.slane %v5971_v2, 4  ;;  %v5237_v27 = vadd.f32 %v14888_v28, %v5194_v55 }
 0x28c   : > { %12740 = vmatpush3.bf16.msra.mxu0 %v7847_v54  ;;  %v5962_v23 = vsel %vm14564_vm6, %v5953_v13, %v5961_v8  ;;  %v6721_v32 = vsel %vm789_vm1, %v6716_v11, %v6720_v57  ;;  %v5983_v0 = vrot.slane %v5981_v38, 4  ;;  %v6722_v19 = vshrl.u32 %v15055_v43, 16  ;;  %v13207_v13 = vld [vmem:[#allocation3 + $0x10] sm:$0xff]  }
 0x28d   : > { %12972 = vmatprep.subr.msk.bf16.mxu0 %vm6273_vm12, %v15066_v31  ;;  %6077 = vst.msk [vmem:[#allocation3 + $0x84] sm:$0xf] %vm5544_vm5, %v5962_v23  ;;  %v5972_v26 = vsel %vm14564_vm6, %v5963_v30, %v5971_v2  ;;  %v5982_v14 = vsel %vm14564_vm6, %v5973_v15, %v5981_v38  ;;  %v5273_v47 = vmax.f32 %v5237_v27, 0.0  ;;  %v7244_v5 = vrot.slane %v13203_v6, 1  ;;  %v13209_v54 = vld [vmem:[#allocation3 + $0x10] sm:$0xff]   ;;  %v13210_v27 = vld [vmem:[#allocation3 + $0x18] sm:$0xff]  }
 0x28e   : > { %6078 = vst.msk [vmem:[#allocation3 + $0x88] sm:$0xf] %vm5544_vm5, %v5972_v26  ;;  %6079 = vst.msk [vmem:[#allocation3 + $0x8c] sm:$0xf] %vm5544_vm5, %v5982_v14  ;;  %v5992_v48 = vsel %vm14564_vm6, %v5983_v0, %v15095_v60  ;;  %v6724_v41 = vor.u32 %v6722_v19, %v6720_v57  ;;  %v7245_v17 = vrot.slane %v13204_v3, 1  ;;  %v7247_v26 = vrot.slane %v13207_v13, 1 }
 0x28f   : > { %v13194_v28 = vld [vmem:[#allocation3 + $0x68] sm:$0xff]   ;;  %6080 = vst.msk [vmem:[#allocation3 + $0x90] sm:$0xf] %vm5544_vm5, %v5992_v48  ;;  %v5525_v36 = vmul.f32 %v5488_v29, %v5273_v47  ;;  %v7756_v14 = vrot.slane %v13209_v54, 1  ;;  %v13211_v48 = vld [vmem:[#allocation3 + $0x18] sm:$0xff]   ;;  %v13216_v6 = vld [vmem:[#allocation3 + $0x30] sm:$0xff]  }
 0x290   : > { %12686 = vmatmul.mubr.msk.bf16.gmra.mrb[200].mxu0 %vm619_vm9, %v6721_v32  ;;  %v13196_v12 = vld [vmem:[#allocation3 + $0x68] sm:$0xff]   ;;  %12652 = vmatmul.mubr.msk.bf16.gmra.mrb[168].mxu1 %vm619_vm9, %v13194_v28  ;;  %v13195_v4 = vld [vmem:[#allocation3 + $0x70] sm:$0xff]   ;;  %v7246_v21 = vsel %vm1416_vm2, %v7244_v5, %v7245_v17  ;;  %v7249_v28 = vrot.slane %v13210_v27, 1  ;;  %v6082_v29 = vld [vmem:[#allocation3 + $0x98] sm:$0x3]  ;;  %v7255_v3 = vrot.slane %v13216_v6, 1 }
 0x291   : > { %v6726_v1 = vshll.u32 %v13196_v12, 16  ;;  %v13197_v56 = vld [vmem:[#allocation3 + $0x70] sm:$0xff]   ;;  %v6730_v39 = vshrl.u32 %v13196_v12, 16  ;;  %12655 = vmatprep.mubr.msk.bf16.mxu1 %vm619_vm9, %v13195_v4  ;;  %v13198_v42 = vld [vmem:[#allocation3 + $0x78] sm:$0xff]   ;;  %v11940_v37 = vpack.c.bf16 %v5525_v36, %v5525_v36  ;;  %v13208_v38 = vld [vmem:[#allocation3 + $0x8] sm:$0xfe]  }
 0x292   : > { %v6734_v16 = vshll.u32 %v13197_v56, 16  ;;  %v13200_v7 = vld [vmem:[#allocation3 + $0x78] sm:$0xff]   ;;  %v6738_v8 = vshrl.u32 %v13197_v56, 16  ;;  %v13212_v12 = vld [vmem:[#allocation3 + $0x20] sm:$0xff]   ;;  %v7755_v4 = vrot.slane %v13208_v38, 1  ;;  %v7248_v56 = vsel %vm1416_vm2, %v7245_v17, %v7247_v26  ;;  %v13225_v13 = vld [vmem:[#allocation3 + $0x50] sm:$0xff]  }
 0x293   : > { %v6728_v9 = vrot.slane %v6726_v1, 1  ;;  %v6742_v40 = vshll.u32 %v13200_v7, 16  ;;  %v6746_v61 = vshrl.u32 %v13200_v7, 16  ;;  %v5995_v22 = vshrl.u32 %v11940_v37, 16  ;;  %v13340_v19 = vld [vmem:[%s16595_s4 + $0x10] sm:$0xf] }
 0x294   : > { %v13199_v58 = vld [vmem:[#allocation3 + $0x80] sm:$0xff]   ;;  %v6736_v24 = vrot.slane %v6734_v16, 1  ;;  %v5998_v10 = vshll.u32 %v11940_v37, 16  ;;  %v8491_v1 = vsel %vm6273_vm12, %v13340_v19, 0  ;;  %v5993_v16 = vrot.slane %v15095_v60, 4  ;;  %v13243_v6 = vld [vmem:[#allocation3 + $0x10] sm:$0xff]  }
 0x295   : > { %v13201_v35 = vld [vmem:[#allocation3 + $0x80] sm:$0xff]   ;;  %v6729_v49 = vsel %vm789_vm1, %v6724_v41, %v6728_v9  ;;  %v6732_v34 = vor.u32 %v6730_v39, %v6728_v9  ;;  %v13205_v63 = vld [vmem:[#allocation3 + $0x88] sm:$0xff]   ;;  %v6744_v2 = vrot.slane %v6742_v40, 1  ;;  %v5997_v23 = vrot.slane %v5995_v22, 6  ;;  %v15142_v39 = vld [vmem:[%s16595_s4 + $0x18] sm:$0xf] }
 0x296   : > { %12689 = vmatprep.mubr.msk.bf16.mxu0 %vm619_vm9, %v6729_v49  ;;  %v6750_v59 = vshll.u32 %v13201_v35, 16  ;;  %v6740_v53 = vor.u32 %v6738_v8, %v6736_v24  ;;  %v6758_v44 = vshll.u32 %v13205_v63, 16  ;;  %v13206_v52 = vld [vmem:[#allocation3 + $0x90] ss:$0 sps:$4 sm:$0x11]   ;;  %v6754_v25 = vshrl.u32 %v13201_v35, 16 }
 0x297   : > { %v6737_v18 = vsel %vm789_vm1, %v6732_v34, %v6736_v24  ;;  %v6748_v62 = vor.u32 %v6746_v61, %v6744_v2  ;;  %v13202_v33 = vld [vmem:[#allocation3 + $0x88] sm:$0xff]   ;;  %v6766_v20 = vshll.u32 %v13206_v52, 16  ;;  %v6762_v45 = vshrl.u32 %v13205_v63, 16  ;;  %v13213_v41 = vld [vmem:[#allocation3 + $0x20] sm:$0xff]   ;;  %v13218_v61 = vld [vmem:[#allocation3 + $0x38] sm:$0xff]  }
 0x298   : > { %12690 = vmatmul.mubr.msk.bf16.gmra.mrb[204].mxu0 %vm619_vm9, %v6737_v18  ;;  %12656 = vmatmul.mubr.msk.bf16.gmra.mrb[172].mxu1 %vm619_vm9, %v13198_v42  ;;  %v6752_v43 = vrot.slane %v6750_v59, 1  ;;  %v6745_v50 = vsel %vm789_vm1, %v6740_v53, %v6744_v2  ;;  %v6760_v51 = vrot.slane %v6758_v44, 1  ;;  %v6000_v32 = vrot.slane %v5998_v10, 7  ;;  %v13214_v9 = vld [vmem:[#allocation3 + $0x28] sm:$0xff]   ;;  %v13217_v2 = vld [vmem:[#allocation3 + $0x30] sm:$0xff]   ;;  %v13219_v52 = vld [vmem:[#allocation3 + $0x38] sm:$0xff]  }
 0x299   : > { %12659 = vmatprep.mubr.msk.bf16.mxu1 %vm619_vm9, %v13199_v58  ;;  %12693 = vmatprep.mubr.msk.bf16.mxu0 %vm619_vm9, %v6745_v50  ;;  %v6768_v15 = vrot.slane %v6766_v20, 1  ;;  %v7757_v42 = vsel %vm1416_vm2, %v7755_v4, %v7756_v14  ;;  %v7250_v58 = vsel %vm1416_vm2, %v7247_v26, %v7249_v28  ;;  %v7758_v8 = vrot.slane %v13211_v48, 1  ;;  %v13220_v37 = vld [vmem:[#allocation3 + $0x40] sm:$0xff]   ;;  %v13223_v22 = vld [vmem:[#allocation3 + $0x48] sm:$0xff]  }
 0x29a   : > { %v6756_v55 = vor.u32 %v6754_v25, %v6752_v43  ;;  %v6753_v11 = vsel %vm789_vm1, %v6748_v62, %v6752_v43  ;;  %v6764_v30 = vor.u32 %v6762_v45, %v6760_v51  ;;  %v6001_v47 = vor.u32 %v6000_v32, %v5997_v23  ;;  %v13221_v5 = vld [vmem:[#allocation3 + $0x40] sm:$0xff]   ;;  %v13224_v45 = vld [vmem:[#allocation3 + $0x50] sm:$0xff]  }
 0x29b   : > { %v7251_v35 = vrot.slane %v13212_v12, 1  ;;  %v7760_v49 = vrot.slane %v13213_v41, 1  ;;  %v7253_v60 = vrot.slane %v13214_v9, 1  ;;  %v7759_v36 = vsel %vm1416_vm2, %v7756_v14, %v7758_v8  ;;  %v13227_v14 = vld [vmem:[#allocation3 + $0x58] sm:$0xff]   ;;  %v13229_v12 = vld [vmem:[#allocation3 + $0x60] sm:$0xff]   ;;  %v13232_v41 = vld [vmem:[#allocation3 + $0x70] sm:$0xff]  }
 0x29c   : > { %v6761_v57 = vsel %vm789_vm1, %v6756_v55, %v6760_v51  ;;  %v6769_v0 = vsel %vm789_vm1, %v6764_v30, %v6768_v15  ;;  %v6002_v7 = vsel %vm14564_vm6, %v5993_v16, %v6001_v47  ;;  %v6003_v34 = vrot.slane %v6001_v47, 4  ;;  %v13226_v30 = vld [vmem:[#allocation3 + $0x58] sm:$0xff]   ;;  %v13230_v47 = vld [vmem:[#allocation3 + $0x68] sm:$0xff]  }
 0x29d   : > { %6081 = vst.msk [vmem:[#allocation3 + $0x94] sm:$0xf] %vm5544_vm5, %v6002_v7  ;;  %v7252_v59 = vsel %vm1416_vm2, %v7249_v28, %v7251_v35  ;;  %v9002_v63 = vsel %vm6273_vm12, %v15066_v31, 0  ;;  %v7761_v18 = vsel %vm1416_vm2, %v7758_v8, %v7760_v49  ;;  %v7254_v53 = vsel %vm1416_vm2, %v7251_v35, %v7253_v60  ;;  %v13234_v35 = vld [vmem:[#allocation3 + $0x78] sm:$0xff]  }
 0x29e   : > { %v6083_v40 = vsel %vm13735_vm8, %v6003_v34, %v6082_v29  ;;  %v7762_v43 = vrot.slane %v13215_v46, 1  ;;  %v7764_v44 = vrot.slane %v13217_v2, 1  ;;  %v7257_v31 = vrot.slane %v13218_v61, 1  ;;  %v15203_v29 = vld [vmem:[%s16595_s4 + $0x1c] sm:$0xf] }
 0x29f   : > { %6084 = vst [vmem:[#allocation3 + $0x98] sm:$0x3] %v6083_v40  ;;  %v7256_v62 = vsel %vm1416_vm2, %v7253_v60, %v7255_v3  ;;  %v7766_v17 = vrot.slane %v13219_v52, 1  ;;  %v7259_v55 = vrot.slane %v13220_v37, 1  ;;  %v7770_v15 = vrot.slane %v13223_v22, 1  ;;  %v13235_v46 = vld [vmem:[#allocation3 + $0x78] sm:$0xff]  }
 0x2a0   : > { %12694 = vmatmul.mubr.msk.bf16.gmra.mrb[208].mxu0 %vm619_vm9, %v6753_v11  ;;  %12660 = vmatmul.mubr.msk.bf16.gmra.mrb[176].mxu1 %vm619_vm9, %v13202_v33  ;;  %v7763_v50 = vsel %vm1416_vm2, %v7760_v49, %v7762_v43  ;;  %v7765_v25 = vsel %vm1416_vm2, %v7762_v43, %v7764_v44  ;;  %v7258_v51 = vsel %vm1416_vm2, %v7255_v3, %v7257_v31  ;;  %v13222_v33 = vld [vmem:[#allocation3 + $0x48] sm:$0xff]   ;;  %v7768_v11 = vrot.slane %v13221_v5, 1  ;;  %v13237_v43 = vld [vmem:[#allocation3 + $0x80] sm:$0xff]   ;;  %v13245_v22 = vld [vmem:[#allocation3 + $0x18] sm:$0xff]  }
 0x2a1   : > { %12703 = vmatprep.mubr.msk.bf16.mxu1 %vm619_vm9, %v7246_v21  ;;  %12697 = vmatprep.mubr.msk.bf16.mxu0 %vm619_vm9, %v6761_v57  ;;  %v7261_v20 = vrot.slane %v13222_v33, 1  ;;  %v7767_v10 = vsel %vm1416_vm2, %v7764_v44, %v7766_v17  ;;  %v7260_v57 = vsel %vm1416_vm2, %v7257_v31, %v7259_v55  ;;  %v7263_v38 = vrot.slane %v13224_v45, 1  ;;  %v13238_v3 = vld [vmem:[#allocation3 + $0x88] sm:$0xff]  }
 0x2a2   : > { %v7769_v21 = vsel %vm1416_vm2, %v7766_v17, %v7768_v11  ;;  %v7772_v27 = vrot.slane %v13225_v13, 1  ;;  %v7265_v23 = vrot.slane %v13226_v30, 1  ;;  %v7771_v32 = vsel %vm1416_vm2, %v7768_v11, %v7770_v15  ;;  %v13242_v44 = vld [vmem:[#allocation3 + $0x8] sm:$0xfe]  }
 0x2a3   : > { %v7262_v54 = vsel %vm1416_vm2, %v7259_v55, %v7261_v20  ;;  %v7264_v26 = vsel %vm1416_vm2, %v7261_v20, %v7263_v38  ;;  %v7774_v4 = vrot.slane %v13227_v14, 1  ;;  %v7271_v34 = vrot.slane %v13232_v41, 1  ;;  %v13239_v5 = vld [vmem:[#allocation3 + $0x88] sm:$0xff]   ;;  %v13247_v14 = vld [vmem:[#allocation3 + $0x10] sm:$0xff]  }
 0x2a4   : > { %v7773_v28 = vsel %vm1416_vm2, %v7770_v15, %v7772_v27  ;;  %v7266_v48 = vsel %vm1416_vm2, %v7263_v38, %v7265_v23  ;;  %v7782_v31 = vrot.slane %v13235_v46, 1  ;;  %v7784_v52 = vrot.slane %v13237_v43, 1  ;;  %v13241_v45 = vld [vmem:[#allocation3 + $0x90] sm:$0xff]  }
 0x2a5   : > { %v7775_v9 = vsel %vm1416_vm2, %v7772_v27, %v7774_v4  ;;  %v7277_v37 = vrot.slane %v13238_v3, 1  ;;  %v8267_v33 = vshrl.u32 %v13242_v44, 16  ;;  %v8270_v17 = vshll.u32 %v13242_v44, 16  ;;  %v13257_v3 = vld [vmem:[#allocation3 + $0x40] sm:$0xff]  }
 0x2a6   : > { %v6085_v49 = vld [vmem:[#allocation3 + $0x98] sm:$0xe]  ;;  %v8284_v27 = vshrl.u32 %v13245_v22, 16  ;;  %v15240_v44 = vld [vmem:[%s16595_s4 + $0x20] sm:$0xf] }
 0x2a7   : > { %v6086_v40 = vsel %vm14553_vm0, 0, %v6085_v49  ;;  %v8269_v15 = vrot.slane %v8267_v33, 1  ;;  %v8272_v38 = vrot.slane %v8270_v17, 2  ;;  %v8329_v33 = vshrl.u32 %v13257_v3, 16 }
 0x2a8   : > { %12698 = vmatmul.mubr.msk.bf16.gmra.mrb[212].mxu0 %vm619_vm9, %v6769_v0  ;;  %12704 = vmatmul.mubr.msk.bf16.vlgmr.msra.gmra.mrb[180].mxu1 %vm619_vm9, %v7248_v56  ;;  %v13228_v0 = vld [vmem:[#allocation3 + $0x60] sm:$0xff]   ;;  %v7269_v56 = vrot.slane %v13230_v47, 1  ;;  %6087 = vst [vmem:[#allocation3 + $0x98] sm:$0xe] %v6086_v40  ;;  %v8332_v17 = vshll.u32 %v13257_v3, 16 }
 0x2a9   : > { %12741 = vmatprep.mubr.msk.bf16.mxu0 %vm619_vm9, %v7757_v42  ;;  %12778 = vmatpush3.bf16.msra.mxu1 %v8491_v1  ;;  %v7267_v19 = vrot.slane %v13228_v0, 1  ;;  %v7776_v1 = vrot.slane %v13229_v12, 1  ;;  %v13231_v42 = vld [vmem:[#allocation3 + $0x68] sm:$0xff]   ;;  %v8273_v47 = vor.u32 %v8272_v38, %v8269_v15  ;;  %v8331_v15 = vrot.slane %v8329_v33, 1 }
 0x2aa   : > { %12707 = vmatprep.mubr.msk.bf16.mxu1 %vm619_vm9, %v7250_v58  ;;  %12973 = vmatprep.subr.msk.bf16.mxu1 %vm6273_vm12, %v15142_v39  ;;  %v13233_v58 = vld [vmem:[#allocation3 + $0x70] sm:$0xff]   ;;  %v7778_v60 = vrot.slane %v13231_v42, 1  ;;  %v13250_v0 = vld [vmem:[#allocation3 + $0x28] sm:$0xff]   ;;  %v8334_v38 = vrot.slane %v8332_v17, 2 }
 0x2ab   : > { %v7268_v16 = vsel %vm1416_vm2, %v7265_v23, %v7267_v19  ;;  %v7777_v7 = vsel %vm1416_vm2, %v7774_v4, %v7776_v1  ;;  %v7270_v8 = vsel %vm1416_vm2, %v7267_v19, %v7269_v56  ;;  %v8287_v23 = vshll.u32 %v13245_v22, 16  ;;  %v13253_v4 = vld [vmem:[#allocation3 + $0x30] sm:$0xff]  }
 0x2ac   : > { %v8305_v49 = vshll.u32 %v13250_v0, 16  ;;  %v8311_v24 = vshrl.u32 %v13253_v4, 16  ;;  %v8314_v40 = vshll.u32 %v13253_v4, 16 }
 0x2ad   : > { %v8289_v42 = vrot.slane %v8287_v23, 2 }
 0x2b0   : > { %12742 = vmatmul.mubr.msk.bf16.vlgmr.msra.gmra.mrb[216].mxu0 %vm619_vm9, %v7759_v36  ;;  %12708 = vmatmul.mubr.msk.bf16.gmra.mrb[184].mxu1 %vm619_vm9, %v7252_v59  ;;  %v7780_v36 = vrot.slane %v13233_v58, 1  ;;  %v7273_v59 = vrot.slane %v13234_v35, 1  ;;  %v8302_v35 = vshrl.u32 %v13250_v0, 16  ;;  %v8335_v0 = vor.u32 %v8334_v38, %v8331_v15  ;;  %v13267_v15 = vld [vmem:[#allocation3 + $0x60] sm:$0xff]  }
 0x2b1   : > { %12745 = vmatprep.mubr.msk.bf16.mxu0 %vm619_vm9, %v7761_v18  ;;  %12711 = vmatprep.mubr.msk.bf16.mxu1 %vm619_vm9, %v7254_v53  ;;  %v7779_v18 = vsel %vm1416_vm2, %v7776_v1, %v7778_v60  ;;  %v7272_v53 = vsel %vm1416_vm2, %v7269_v56, %v7271_v34  ;;  %v8286_v56 = vrot.slane %v8284_v27, 1  ;;  %v13261_v27 = vld [vmem:[#allocation3 + $0x50] sm:$0xff]  }
 0x2b2   : > { %12816 = vmatpush3.bf16.msra.mxu0 %v9002_v63  ;;  %v13236_v63 = vld [vmem:[#allocation3 + $0x80] sm:$0xff]   ;;  %v7781_v2 = vsel %vm1416_vm2, %v7778_v60, %v7780_v36  ;;  %v7274_v61 = vsel %vm1416_vm2, %v7271_v34, %v7273_v59  ;;  %v7783_v55 = vsel %vm1416_vm2, %v7780_v36, %v7782_v31 }
 0x2b3   : > { %12974 = vmatprep.subr.msk.bf16.mxu0 %vm6273_vm12, %v15203_v29  ;;  %v8290_v34 = vor.u32 %v8289_v42, %v8286_v56 }
 0x2b8   : > { %12746 = vmatmul.mubr.msk.bf16.gmra.mrb[220].mxu0 %vm619_vm9, %v7763_v50  ;;  %12712 = vmatmul.mubr.msk.bf16.gmra.mrb[188].mxu1 %vm619_vm9, %v7256_v62  ;;  %v7275_v50 = vrot.slane %v13236_v63, 1  ;;  %v8275_v62 = vshrl.u32 %v13243_v6, 16  ;;  %v13251_v63 = vld [vmem:[#allocation3 + $0x20] sm:$0xff]  }
 0x2b9   : > { %12749 = vmatprep.mubr.msk.bf16.mxu0 %vm619_vm9, %v7765_v25  ;;  %12715 = vmatprep.mubr.msk.bf16.mxu1 %vm619_vm9, %v7258_v51  ;;  %v8278_v25 = vshll.u32 %v13243_v6, 16  ;;  %v13240_v51 = vld [vmem:[#allocation3 + $0x90] ss:$0 sps:$4 sm:$0x11]   ;;  %v13249_v6 = vld [vmem:[#allocation3 + $0x18] sm:$0xff]  }
 0x2ba   : > { %v7276_v11 = vsel %vm1416_vm2, %v7273_v59, %v7275_v50  ;;  %v8277_v20 = vrot.slane %v8275_v62, 1  ;;  %v7279_v30 = vrot.slane %v13240_v51, 1  ;;  %v9513_v59 = vsel %vm6273_vm12, %v15142_v39, 0 }
 0x2bb   : > { %v8280_v13 = vrot.slane %v8278_v25, 2  ;;  %v8915_v25 = vrot.slane %v13251_v63, 2 }
 0x2bc   : > { %v7280_v1 = vsel %vm1416_vm2, %v7277_v37, %v7279_v30 }
 0x2c0   : > { %12750 = vmatmul.mubr.msk.bf16.gmra.mrb[224].mxu0 %vm619_vm9, %v7767_v10  ;;  %12716 = vmatmul.mubr.msk.bf16.gmra.mrb[192].mxu1 %vm619_vm9, %v7260_v57  ;;  %v7785_v10 = vsel %vm1416_vm2, %v7782_v31, %v7784_v52  ;;  %v7278_v57 = vsel %vm1416_vm2, %v7275_v50, %v7277_v37  ;;  %v8313_v31 = vrot.slane %v8311_v24, 1  ;;  %v8316_v50 = vrot.slane %v8314_v40, 2 }
 0x2c1   : > { %12753 = vmatprep.mubr.msk.bf16.mxu0 %vm619_vm9, %v7769_v21  ;;  %12719 = vmatprep.mubr.msk.bf16.mxu1 %vm619_vm9, %v7262_v54  ;;  %v13248_v21 = vld [vmem:[#allocation3 + $0x20] sm:$0xff]   ;;  %v7786_v54 = vrot.slane %v13239_v5, 1 }
 0x2c2   : > { %v8296_v12 = vshll.u32 %v13248_v21, 16 }
 0x2c3   : > { %v7787_v19 = vsel %vm1416_vm2, %v7784_v52, %v7786_v54  ;;  %v8913_v52 = vrot.slane %v13249_v6, 2 }
 0x2c8   : > { %12754 = vmatmul.mubr.msk.bf16.gmra.mrb[228].mxu0 %vm619_vm9, %v7771_v32  ;;  %12720 = vmatmul.mubr.msk.bf16.gmra.mrb[196].mxu1 %vm619_vm9, %v7264_v26  ;;  %v7788_v32 = vrot.slane %v13241_v45, 1  ;;  %v8281_v26 = vor.u32 %v8280_v13, %v8277_v20  ;;  %v15250_v20 = vld [vmem:[#allocation3 + $0x30] sm:$0xff]   ;;  %v13258_v13 = vld [vmem:[#allocation3 + $0x48] sm:$0xff]  }
 0x2c9   : > { %12757 = vmatprep.mubr.msk.bf16.mxu0 %vm619_vm9, %v7773_v28  ;;  %12723 = vmatprep.mubr.msk.bf16.mxu1 %vm619_vm9, %v7266_v48  ;;  %v13244_v28 = vld [vmem:[#allocation3 + $0x98] ss:$0 sps:$4 sm:$0x11]   ;;  %v8293_v48 = vshrl.u32 %v13248_v21, 16  ;;  %v10157_v21 = vsel %vm6273_vm12, %v15203_v29, 0 }
 0x2ca   : > { %v7789_v41 = vsel %vm1416_vm2, %v7786_v54, %v7788_v32  ;;  %v7790_v60 = vrot.slane %v13244_v28, 1  ;;  %v8291_v43 = vsel %vm2447_vm3, %v8281_v26, %v8290_v34  ;;  %v8916_v54 = vsel %vm3096_vm4, %v8913_v52, %v8915_v25 }
 0x2cb   : > { %v8295_v58 = vrot.slane %v8293_v48, 1  ;;  %v8347_v28 = vshrl.u32 %v13261_v27, 16  ;;  %v8350_v48 = vshll.u32 %v13261_v27, 16 }
 0x2d0   : > { %12758 = vmatmul.mubr.msk.bf16.gmra.mrb[232].mxu0 %vm619_vm9, %v7775_v9  ;;  %12724 = vmatmul.mubr.msk.bf16.gmra.mrb[200].mxu1 %vm619_vm9, %v7268_v16  ;;  %v8282_v9 = vsel %vm2447_vm3, %v8273_v47, %v8281_v26  ;;  %v13246_v16 = vld [vmem:[#allocation3 + $0x8] sm:$0xfc]   ;;  %v8338_v26 = vshrl.u32 %v13258_v13, 16  ;;  %v13259_v47 = vld [vmem:[#allocation3 + $0x40] sm:$0xff]  }
 0x2d1   : > { %12761 = vmatprep.mubr.msk.bf16.mxu0 %vm619_vm9, %v7777_v7  ;;  %12727 = vmatprep.mubr.msk.bf16.mxu1 %vm619_vm9, %v7270_v8  ;;  %v8298_v7 = vrot.slane %v8296_v12, 2  ;;  %v8911_v8 = vrot.slane %v13247_v14, 2  ;;  %v8910_v36 = vrot.slane %v13246_v16, 2  ;;  %v8341_v14 = vshll.u32 %v13258_v13, 16  ;;  %v13256_v12 = vld [vmem:[#allocation3 + $0x38] sm:$0xff]  }
 0x2d2   : > { %v8340_v56 = vrot.slane %v8338_v26, 1 }
 0x2d3   : > { %v8299_v46 = vor.u32 %v8298_v7, %v8295_v58  ;;  %v8912_v39 = vsel %vm3096_vm4, %v8910_v36, %v8911_v8  ;;  %v8914_v22 = vsel %vm3096_vm4, %v8911_v8, %v8913_v52  ;;  %v8343_v42 = vrot.slane %v8341_v14, 2 }
 0x2d4   : > { %v8349_v7 = vrot.slane %v8347_v28, 1  ;;  %v8352_v8 = vrot.slane %v8350_v48, 2 }
 0x2d5   : > { %v8300_v62 = vsel %vm2447_vm3, %v8290_v34, %v8299_v46  ;;  %v8921_v34 = vrot.slane %v13256_v12, 2  ;;  %v8344_v24 = vor.u32 %v8343_v42, %v8340_v56  ;;  %v13274_v42 = vld [vmem:[#allocation3 + $0x88] sm:$0xff]  }
 0x2d8   : > { %12762 = vmatmul.mubr.msk.bf16.gmra.mrb[236].mxu0 %vm619_vm9, %v7779_v18  ;;  %12728 = vmatmul.mubr.msk.bf16.gmra.mrb[204].mxu1 %vm619_vm9, %v7272_v53  ;;  %v13254_v18 = vld [vmem:[#allocation3 + $0x38] sm:$0xff]   ;;  %v8304_v53 = vrot.slane %v8302_v35, 1  ;;  %v13265_v35 = vld [vmem:[#allocation3 + $0x60] sm:$0xff]  }
 0x2d9   : > { %12765 = vmatprep.mubr.msk.bf16.mxu0 %vm619_vm9, %v7781_v2  ;;  %12731 = vmatprep.mubr.msk.bf16.mxu1 %vm619_vm9, %v7274_v61  ;;  %v8307_v2 = vrot.slane %v8305_v49, 2  ;;  %v7791_v61 = vsel %vm1416_vm2, %v7788_v32, %v7790_v60  ;;  %v8320_v51 = vshrl.u32 %v13254_v18, 16  ;;  %v8323_v5 = vshll.u32 %v13254_v18, 16  ;;  %v13260_v18 = vld [vmem:[#allocation3 + $0x48] sm:$0xff]  }
 0x2da   : > { %v8919_v32 = vrot.slane %v15250_v20, 2  ;;  %v8365_v6 = vshrl.u32 %v13265_v35, 16  ;;  %v8368_v63 = vshll.u32 %v13265_v35, 16 }
 0x2db   : > { %v8308_v37 = vor.u32 %v8307_v2, %v8304_v53  ;;  %v8325_v45 = vrot.slane %v8323_v5, 2  ;;  %v13266_v53 = vld [vmem:[#allocation3 + $0x68] sm:$0xff]  }
 0x2dc   : > { %v8922_v2 = vsel %vm3096_vm4, %v8919_v32, %v8921_v34  ;;  %v8370_v52 = vrot.slane %v8368_v63, 2  ;;  %v8377_v5 = vshll.u32 %v13266_v53, 16 }
 0x2e0   : > { %12766 = vmatmul.mubr.msk.bf16.gmra.mrb[240].mxu0 %vm619_vm9, %v7783_v55  ;;  %12732 = vmatmul.mubr.msk.bf16.gmra.mrb[208].mxu1 %vm619_vm9, %v7276_v11  ;;  %v8317_v55 = vor.u32 %v8316_v50, %v8313_v31  ;;  %v13252_v11 = vld [vmem:[#allocation3 + $0x28] sm:$0xff]   ;;  %v13263_v50 = vld [vmem:[#allocation3 + $0x50] sm:$0xff]  }
 0x2e1   : > { %12769 = vmatprep.mubr.msk.bf16.mxu0 %vm619_vm9, %v7785_v10  ;;  %12735 = vmatprep.mubr.msk.bf16.mxu1 %vm619_vm9, %v7278_v57  ;;  %v8309_v10 = vsel %vm2447_vm3, %v8299_v46, %v8308_v37  ;;  %v8322_v57 = vrot.slane %v8320_v51, 1  ;;  %v8917_v23 = vrot.slane %v13252_v11, 2  ;;  %v8353_v46 = vor.u32 %v8352_v8, %v8349_v7  ;;  %v13277_v8 = vld [vmem:[#allocation3 + $0x90] sm:$0xff]  }
 0x2e2   : > { %v8318_v30 = vsel %vm2447_vm3, %v8308_v37, %v8317_v55  ;;  %v13269_v37 = vld [vmem:[#allocation3 + $0x70] sm:$0xff]   ;;  %v8374_v51 = vshrl.u32 %v13266_v53, 16  ;;  %v8927_v17 = vrot.slane %v13263_v50, 2 }
 0x2e3   : > { %v8326_v29 = vor.u32 %v8325_v45, %v8322_v57  ;;  %v8920_v16 = vsel %vm3096_vm4, %v8917_v23, %v8919_v32  ;;  %v8354_v31 = vsel %vm2447_vm3, %v8344_v24, %v8353_v46  ;;  %v8383_v11 = vshrl.u32 %v13269_v37, 16  ;;  %v13270_v45 = vld [vmem:[#allocation3 + $0x78] sm:$0xff]  }
 0x2e4   : > { %v8386_v20 = vshll.u32 %v13269_v37, 16  ;;  %v8379_v57 = vrot.slane %v8377_v5, 2  ;;  %v8395_v26 = vshll.u32 %v13270_v45, 16 }
 0x2e5   : > { %v8336_v58 = vsel %vm2447_vm3, %v8326_v29, %v8335_v0  ;;  %v8385_v38 = vrot.slane %v8383_v11, 1 }
 0x2e6   : > { %v8388_v27 = vrot.slane %v8386_v20, 2  ;;  %v8397_v56 = vrot.slane %v8395_v26, 2  ;;  %v13282_v26 = vld [vmem:[#allocation3 + $0x18] sm:$0xff]  }
 0x2e8   : > { %12770 = vmatmul.mubr.msk.bf16.gmra.mrb[244].mxu0 %vm619_vm9, %v7787_v19  ;;  %12736 = vmatmul.mubr.msk.bf16.gmra.mrb[212].mxu1 %vm619_vm9, %v7280_v1  ;;  %v8918_v19 = vsel %vm3096_vm4, %v8915_v25, %v8917_v23  ;;  %v8327_v1 = vsel %vm2447_vm3, %v8317_v55, %v8326_v29  ;;  %v8925_v25 = vrot.slane %v13260_v18, 2  ;;  %v13273_v23 = vld [vmem:[#allocation3 + $0x80] sm:$0xff]   ;;  %v8392_v29 = vshrl.u32 %v13270_v45, 16 }
 0x2e9   : > { %12773 = vmatprep.mubr.msk.bf16.mxu0 %vm619_vm9, %v7789_v41  ;;  %12779 = vmatprep.mubr.msk.bf16.mxu1 %vm619_vm9, %v8282_v9  ;;  %v13262_v41 = vld [vmem:[#allocation3 + $0x58] sm:$0xff]   ;;  %v8389_v28 = vor.u32 %v8388_v27, %v8385_v38  ;;  %v8401_v48 = vshrl.u32 %v13273_v23, 16  ;;  %v8404_v12 = vshll.u32 %v13273_v23, 16 }
 0x2ea   : > { %v8356_v40 = vshrl.u32 %v13262_v41, 16  ;;  %v8359_v36 = vshll.u32 %v13262_v41, 16 }
 0x2eb   : > { %v8406_v7 = vrot.slane %v8404_v12, 2 }
 0x2ec   : > { %v8361_v3 = vrot.slane %v8359_v36, 2  ;;  %v8419_v36 = vshrl.u32 %v13277_v8, 16 }
 0x2f0   : > { %12774 = vmatmul.mubr.msk.bf16.gmra.mrb[248].mxu0 %vm619_vm9, %v7791_v61  ;;  %12780 = vmatmul.mubr.msk.bf16.vlgmr.msra.gmra.mrb[216].mxu1 %vm619_vm9, %v8291_v43  ;;  %v8345_v61 = vsel %vm2447_vm3, %v8335_v0, %v8344_v24  ;;  %v8358_v43 = vrot.slane %v8356_v40, 1  ;;  %v8931_v0 = vrot.slane %v13267_v15, 2  ;;  %v13276_v15 = vld [vmem:[#allocation3 + $0x88] sm:$0xff]  }
 0x2f1   : > { %12817 = vmatprep.mubr.msk.bf16.mxu0 %vm619_vm9, %v8912_v39  ;;  %12854 = vmatpush3.bf16.msra.mxu1 %v9513_v59  ;;  %v8923_v59 = vrot.slane %v13259_v47, 2  ;;  %v8941_v12 = vrot.slane %v13276_v15, 2 }
 0x2f2   : > { %12783 = vmatprep.mubr.msk.bf16.mxu1 %vm619_vm9, %v8300_v62  ;;  %12975 = vmatprep.subr.msk.bf16.mxu1 %vm6273_vm12, %v15240_v44  ;;  %v8367_v62 = vrot.slane %v8365_v6, 1  ;;  %v8362_v33 = vor.u32 %v8361_v3, %v8358_v43  ;;  %v15315_v3 = vld [vmem:[#allocation3 + $0x80] sm:$0xff]  }
 0x2f3   : > { %v8924_v39 = vsel %vm3096_vm4, %v8921_v34, %v8923_v59  ;;  %v8926_v13 = vsel %vm3096_vm4, %v8923_v59, %v8925_v25  ;;  %v8413_v34 = vshll.u32 %v13274_v42, 16  ;;  %v8422_v59 = vshll.u32 %v13277_v8, 16 }
 0x2f4   : > { %v8371_v55 = vor.u32 %v8370_v52, %v8367_v62  ;;  %v8939_v20 = vrot.slane %v15315_v3, 2 }
 0x2f5   : > { %v8415_v53 = vrot.slane %v8413_v34, 2  ;;  %v13286_v34 = vld [vmem:[#allocation3 + $0x20] sm:$0xff]  }
 0x2f6   : > { %v9953_v3 = vshll.u32 %v13286_v34, 16 }
 0x2f8   : > { %12818 = vmatmul.mubr.msk.bf16.vlgmr.msra.gmra.mrb[252].mxu0 %vm619_vm9, %v8914_v22  ;;  %12784 = vmatmul.mubr.msk.bf16.gmra.mrb[220].mxu1 %vm619_vm9, %v8309_v10  ;;  %v13264_v22 = vld [vmem:[#allocation3 + $0x58] sm:$0xff]   ;;  %v8376_v10 = vrot.slane %v8374_v51, 1 }
 0x2f9   : > { %12821 = vmatprep.mubr.msk.bf16.mxu0 %vm619_vm9, %v8916_v54  ;;  %12787 = vmatprep.mubr.msk.bf16.mxu1 %vm619_vm9, %v8318_v30  ;;  %v8928_v54 = vsel %vm3096_vm4, %v8925_v25, %v8927_v17  ;;  %v8372_v30 = vsel %vm2447_vm3, %v8362_v33, %v8371_v55  ;;  %v8929_v32 = vrot.slane %v13264_v22, 2 }
 0x2fa   : > { %12892 = vmatpush3.bf16.msra.mxu0 %v10157_v21  ;;  %v8363_v21 = vsel %vm2447_vm3, %v8353_v46, %v8362_v33  ;;  %v8380_v14 = vor.u32 %v8379_v57, %v8376_v10  ;;  %v13272_v46 = vld [vmem:[#allocation3 + $0x78] sm:$0xff]  }
 0x2fb   : > { %v8930_v47 = vsel %vm3096_vm4, %v8927_v17, %v8929_v32  ;;  %v8932_v41 = vsel %vm3096_vm4, %v8929_v32, %v8931_v0  ;;  %v8937_v52 = vrot.slane %v13272_v46, 2  ;;  %v13289_v46 = vld [vmem:[#allocation3 + $0x28] sm:$0xff]  }
 0x2fd   : > { %v8940_v23 = vsel %vm3096_vm4, %v8937_v52, %v8939_v20 }
 0x300   : > { %v12629_v4 = vpop.f32.mrb[144].mxu1  ;;  %12822 = vmatmul.mubr.msk.bf16.gmra.mrb[0].mxu0 %vm619_vm9, %v8918_v19  ;;  %12788 = vmatmul.mubr.msk.bf16.gmra.mrb[224].mxu1 %vm619_vm9, %v8327_v1  ;;  %v13268_v19 = vld [vmem:[#allocation3 + $0x68] sm:$0xff]   ;;  %v8394_v1 = vrot.slane %v8392_v29, 1  ;;  %v15336_v29 = vld [vmem:[#allocation3 + $0x90] sm:$0xff]  }
 0x301   : > { %6456 = vst.msk [vmem:[%s15267_s14 + $0x10] sm:$0xff] %vm619_vm9, %v12629_v4  ;;  %v6311_v9 = vpop.f32.mrb[145].mxu1  ;;  %12825 = vmatprep.mubr.msk.bf16.mxu0 %vm619_vm9, %v8920_v16  ;;  %12791 = vmatprep.mubr.msk.bf16.mxu1 %vm619_vm9, %v8336_v58  ;;  %v8381_v4 = vsel %vm2447_vm3, %v8371_v55, %v8380_v14  ;;  %v13271_v16 = vld [vmem:[#allocation3 + $0x70] sm:$0xff]   ;;  %v8403_v58 = vrot.slane %v8401_v48, 1  ;;  %v8933_v35 = vrot.slane %v13268_v19, 2  ;;  %v8943_v19 = vrot.slane %v15336_v29, 2 }
 0x302   : > { %6454 = vst.msk [vmem:[%s15267_s14] sm:$0xff] %vm619_vm9, %v6311_v9  ;;  %v12630_v49 = vpop.f32.mrb[146].mxu1  ;;  %v8390_v9 = vsel %vm2447_vm3, %v8380_v14, %v8389_v28  ;;  %v8935_v24 = vrot.slane %v13271_v16, 2  ;;  %v13285_v14 = vld [vmem:[#allocation3 + $0x18] sm:$0xff]  }
 0x303   : > { %6457 = vst.msk [vmem:[%s15267_s14 + $0x18] sm:$0xff] %vm619_vm9, %v12630_v49  ;;  %v6314_v60 = vpop.f32.mrb[147].mxu1  ;;  %v8398_v49 = vor.u32 %v8397_v56, %v8394_v1  ;;  %v8407_v40 = vor.u32 %v8406_v7, %v8403_v58  ;;  %v8934_v6 = vsel %vm3096_vm4, %v8931_v0, %v8933_v35  ;;  %v13281_v0 = vld [vmem:[#allocation3 + $0x10] sm:$0xfc]   ;;  %v9422_v1 = vrot.slane %v13282_v26, 2  ;;  %v15349_v58 = vld [vmem:[#allocation3 + $0x20] sm:$0xff]  }
 0x304   : > { %6455 = vst.msk [vmem:[%s15267_s14 + $0x8] sm:$0xff] %vm619_vm9, %v6314_v60  ;;  %v8410_v60 = vshrl.u32 %v13274_v42, 16  ;;  %v9941_v56 = vshrl.u32 %v13285_v14, 16  ;;  %v9944_v42 = vshll.u32 %v13285_v14, 16  ;;  %v9421_v16 = vrot.slane %v13281_v0, 2  ;;  %v13293_v14 = vld [vmem:[#allocation3 + $0x38] sm:$0xff]  }
 0x305   : > { %v8399_v63 = vsel %vm2447_vm3, %v8389_v28, %v8398_v49  ;;  %v8408_v43 = vsel %vm2447_vm3, %v8398_v49, %v8407_v40  ;;  %v13284_v28 = vld [vmem:[#allocation3 + $0x10] sm:$0xfc]  }
 0x306   : > { %v8412_v18 = vrot.slane %v8410_v60, 1  ;;  %v9933_v7 = vshrl.u32 %v13284_v28, 16  ;;  %v9936_v8 = vshll.u32 %v13284_v28, 16  ;;  %v13280_v60 = vld [vmem:[#allocation3 + $0x98] ss:$0 sps:$4 sm:$0x33]  }
 0x308   : > { %12826 = vmatmul.mubr.msk.bf16.gmra.mrb[4].mxu0 %vm619_vm9, %v8922_v2  ;;  %12792 = vmatmul.mubr.msk.bf16.gmra.mrb[228].mxu1 %vm619_vm9, %v8345_v61  ;;  %v13278_v2 = vld [vmem:[#allocation3 + $0x98] ss:$0 sps:$4 sm:$0x33]   ;;  %v8936_v61 = vsel %vm3096_vm4, %v8933_v35, %v8935_v24  ;;  %v7006_v50 = vld [vmem:[%s15267_s14 + $0x10] sm:$0xff]  ;;  %v8416_v51 = vor.u32 %v8415_v53, %v8412_v18  ;;  %v8942_v35 = vsel %vm3096_vm4, %v8939_v20, %v8941_v12  ;;  %v9935_v18 = vrot.slane %v9933_v7, 2 }
 0x309   : > { %12829 = vmatprep.mubr.msk.bf16.mxu0 %vm619_vm9, %v8924_v39  ;;  %12795 = vmatprep.mubr.msk.bf16.mxu1 %vm619_vm9, %v8354_v31  ;;  %v8421_v39 = vrot.slane %v8419_v36, 1  ;;  %v8424_v31 = vrot.slane %v8422_v59, 2  ;;  %v7004_v62 = vld [vmem:[%s15267_s14] sm:$0xff]  ;;  %v8428_v5 = vshrl.u32 %v13278_v2, 16  ;;  %v8431_v33 = vshll.u32 %v13278_v2, 16 }
 0x30a   : > { %v7007_v25 = vld [vmem:[%s15267_s14 + $0x18] sm:$0xff]  ;;  %v9943_v36 = vrot.slane %v9941_v56, 2  ;;  %v9946_v59 = vrot.slane %v9944_v42, 3  ;;  %v9938_v53 = vrot.slane %v9936_v8, 3  ;;  %v10668_v20 = vsel %vm6273_vm12, %v15240_v44, 0  ;;  %v13292_v8 = vld [vmem:[#allocation3 + $0x40] sm:$0xff]  }
 0x30b   : > { %v7005_v11 = vld [vmem:[%s15267_s14 + $0x8] sm:$0xff]  ;;  %v8425_v22 = vor.u32 %v8424_v31, %v8421_v39  ;;  %v8430_v38 = vrot.slane %v8428_v5, 1  ;;  %v8433_v27 = vrot.slane %v8431_v33, 2  ;;  %v9977_v56 = vshrl.u32 %v13293_v14, 16 }
 0x30c   : > { %v9980_v42 = vshll.u32 %v13293_v14, 16 }
 0x30d   : > { %v8426_v32 = vsel %vm2447_vm3, %v8416_v51, %v8425_v22 }
 0x310   : > { %12830 = vmatmul.mubr.msk.bf16.gmra.mrb[8].mxu0 %vm619_vm9, %v8926_v13  ;;  %12796 = vmatmul.mubr.msk.bf16.gmra.mrb[232].mxu1 %vm619_vm9, %v8363_v21 }
 0x311   : > { %12833 = vmatprep.mubr.msk.bf16.mxu0 %vm619_vm9, %v8928_v54  ;;  %12799 = vmatprep.mubr.msk.bf16.mxu1 %vm619_vm9, %v8372_v30  ;;  %v8938_v54 = vsel %vm3096_vm4, %v8935_v24, %v8937_v52  ;;  %v8417_v30 = vsel %vm2447_vm3, %v8407_v40, %v8416_v51  ;;  %v8944_v24 = vsel %vm3096_vm4, %v8941_v12, %v8943_v19  ;;  %v9962_v52 = vshll.u32 %v13289_v46, 16 }
 0x312   : > { %v9423_v40 = vsel %vm3096_vm4, %v9421_v16, %v9422_v1 }
 0x318   : > { %12834 = vmatmul.mubr.msk.bf16.gmra.mrb[12].mxu0 %vm619_vm9, %v8930_v47  ;;  %12800 = vmatmul.mubr.msk.bf16.gmra.mrb[236].mxu1 %vm619_vm9, %v8381_v4  ;;  %v8434_v47 = vor.u32 %v8433_v27, %v8430_v38 }
 0x319   : > { %12837 = vmatprep.mubr.msk.bf16.mxu0 %vm619_vm9, %v8932_v41  ;;  %12803 = vmatprep.mubr.msk.bf16.mxu1 %vm619_vm9, %v8390_v9 }
 0x31a   : > { %v8435_v49 = vsel %vm2447_vm3, %v8425_v22, %v8434_v47 }
 0x320   : > { %12838 = vmatmul.mubr.msk.bf16.gmra.mrb[16].mxu0 %vm619_vm9, %v8934_v6  ;;  %12804 = vmatmul.mubr.msk.bf16.gmra.mrb[240].mxu1 %vm619_vm9, %v8399_v63  ;;  %v15361_v6 = vld [vmem:[#allocation3 + $0x28] sm:$0xff]   ;;  %v9424_v63 = vrot.slane %v15349_v58, 2 }
 0x321   : > { %12841 = vmatprep.mubr.msk.bf16.mxu0 %vm619_vm9, %v8936_v61  ;;  %12807 = vmatprep.mubr.msk.bf16.mxu1 %vm619_vm9, %v8408_v43  ;;  %v8945_v61 = vrot.slane %v13280_v60, 2  ;;  %v9950_v43 = vshrl.u32 %v13286_v34, 16  ;;  %v9426_v51 = vrot.slane %v15361_v6, 2 }
 0x323   : > { %v9427_v0 = vsel %vm3096_vm4, %v9424_v63, %v9426_v51 }
 0x324   : > { %v12667_v37 = vpop.f32.mrb[180].mxu0 }
 0x325   : > { %v7042_v17 = vadd.f32 %v12667_v37, %v7006_v50  ;;  %v6861_v55 = vpop.f32.mrb[181].mxu0  ;;  %v9947_v50 = vor.u32 %v9946_v59, %v9943_v36  ;;  %v13297_v59 = vld [vmem:[#allocation3 + $0x48] sm:$0xff]  }
 0x326   : > { %v7040_v10 = vadd.f32 %v7004_v62, %v6861_v55  ;;  %v12668_v57 = vpop.f32.mrb[182].mxu0  ;;  %v9959_v62 = vshrl.u32 %v13289_v46, 16  ;;  %v9425_v55 = vsel %vm3096_vm4, %v9422_v1, %v9424_v63 }
 0x327   : > { %7078 = vst.msk [vmem:[%s15267_s14 + $0x10] sm:$0xff] %vm619_vm9, %v7042_v17  ;;  %v7043_v45 = vadd.f32 %v12668_v57, %v7007_v25  ;;  %v6864_v13 = vpop.f32.mrb[183].mxu0 }
 0x328   : > { %7076 = vst.msk [vmem:[%s15267_s14] sm:$0xff] %vm619_vm9, %v7040_v10  ;;  %v7041_v21 = vadd.f32 %v7005_v11, %v6864_v13  ;;  %12842 = vmatmul.mubr.msk.bf16.gmra.mrb[20].mxu0 %vm619_vm9, %v8938_v54  ;;  %12808 = vmatmul.mubr.msk.bf16.gmra.mrb[244].mxu1 %vm619_vm9, %v8417_v30  ;;  %v9939_v11 = vor.u32 %v9938_v53, %v9935_v18  ;;  %v9952_v13 = vrot.slane %v9950_v43, 2  ;;  %v13288_v54 = vld [vmem:[#allocation3 + $0x30] sm:$0xff]   ;;  %v9961_v27 = vrot.slane %v9959_v62, 2 }
 0x329   : > { %7079 = vst.msk [vmem:[%s15267_s14 + $0x18] sm:$0xff] %vm619_vm9, %v7043_v45  ;;  %12845 = vmatprep.mubr.msk.bf16.mxu0 %vm619_vm9, %v8940_v23  ;;  %12811 = vmatprep.mubr.msk.bf16.mxu1 %vm619_vm9, %v8426_v32  ;;  %v8946_v45 = vsel %vm3096_vm4, %v8943_v19, %v8945_v61  ;;  %v13290_v30 = vld [vmem:[#allocation3 + $0x30] sm:$0xff]   ;;  %v9964_v23 = vrot.slane %v9962_v52, 3  ;;  %v15384_v32 = vld [vmem:[#allocation3 + $0x38] sm:$0xff]   ;;  %v9428_v12 = vrot.slane %v13288_v54, 2 }
 0x32a   : > { %7077 = vst.msk [vmem:[%s15267_s14 + $0x8] sm:$0xff] %vm619_vm9, %v7041_v21  ;;  %v9955_v21 = vrot.slane %v9953_v3, 3  ;;  %v9948_v44 = vsel %vm4127_vm10, %v9939_v11, %v9947_v50  ;;  %v9968_v47 = vshrl.u32 %v13290_v30, 16  ;;  %v9430_v1 = vrot.slane %v15384_v32, 2 }
 0x32b   : > { %v9965_v19 = vor.u32 %v9964_v23, %v9961_v27  ;;  %v9429_v16 = vsel %vm3096_vm4, %v9426_v51, %v9428_v12  ;;  %v9432_v3 = vrot.slane %v13292_v8, 2  ;;  %v9998_v51 = vshll.u32 %v13297_v59, 16  ;;  %v13305_v8 = vld [vmem:[#allocation3 + $0x68] sm:$0xff]  }
 0x32c   : > { %v12633_v48 = vpop.f32.mrb[148].mxu1  ;;  %v9970_v58 = vrot.slane %v9968_v47, 2  ;;  %v9431_v34 = vsel %vm3096_vm4, %v9428_v12, %v9430_v1  ;;  %v13302_v47 = vld [vmem:[#allocation3 + $0x60] sm:$0xff]  }
 0x32d   : > { %6460 = vst.msk [vmem:[%s15267_s14 + $0x30] sm:$0xff] %vm619_vm9, %v12633_v48  ;;  %v6327_v4 = vpop.f32.mrb[149].mxu1  ;;  %v9956_v48 = vor.u32 %v9955_v21, %v9952_v13  ;;  %v10000_v54 = vrot.slane %v9998_v51, 3  ;;  %v13304_v51 = vld [vmem:[#allocation3 + $0x70] sm:$0xff]  }
 0x32e   : > { %6458 = vst.msk [vmem:[%s15267_s14 + $0x20] sm:$0xff] %vm619_vm9, %v6327_v4  ;;  %v12634_v41 = vpop.f32.mrb[150].mxu1  ;;  %v9971_v4 = vshll.u32 %v13290_v30, 16  ;;  %v15427_v30 = vld [vmem:[#allocation3 + $0x58] sm:$0xff]  }
 0x32f   : > { %6461 = vst.msk [vmem:[%s15267_s14 + $0x38] sm:$0xff] %vm619_vm9, %v12634_v41  ;;  %v6330_v9 = vpop.f32.mrb[151].mxu1  ;;  %v13294_v41 = vld [vmem:[#allocation3 + $0x40] sm:$0xff]   ;;  %v9966_v60 = vsel %vm4127_vm10, %v9956_v48, %v9965_v19 }
 0x330   : > { %6459 = vst.msk [vmem:[%s15267_s14 + $0x28] sm:$0xff] %vm619_vm9, %v6330_v9  ;;  %12846 = vmatmul.mubr.msk.bf16.gmra.mrb[24].mxu0 %vm619_vm9, %v8942_v35  ;;  %12812 = vmatmul.mubr.msk.bf16.gmra.mrb[248].mxu1 %vm619_vm9, %v8435_v49  ;;  %v9957_v9 = vsel %vm4127_vm10, %v9947_v50, %v9956_v48  ;;  %v9973_v7 = vrot.slane %v9971_v4, 3  ;;  %v15400_v35 = vld [vmem:[#allocation3 + $0x48] sm:$0xff]   ;;  %v9986_v63 = vshrl.u32 %v13294_v41, 16  ;;  %v9989_v18 = vshll.u32 %v13294_v41, 16 }
 0x331   : > { %12849 = vmatprep.mubr.msk.bf16.mxu0 %vm619_vm9, %v8944_v24  ;;  %12855 = vmatprep.mubr.msk.bf16.mxu1 %vm619_vm9, %v9423_v40  ;;  %v9979_v24 = vrot.slane %v9977_v56, 2  ;;  %v9982_v40 = vrot.slane %v9980_v42, 3 }
 0x332   : > { %v9974_v43 = vor.u32 %v9973_v7, %v9970_v58  ;;  %v15447_v7 = vld [vmem:[#allocation3 + $0x68] sm:$0xff]  }
 0x333   : > { %v9983_v62 = vor.u32 %v9982_v40, %v9979_v24  ;;  %v10022_v40 = vshrl.u32 %v13302_v47, 16 }
 0x334   : > { %v12637_v2 = vpop.f32.mrb[152].mxu1  ;;  %v7010_v39 = vld [vmem:[%s15267_s14 + $0x30] sm:$0xff]  ;;  %v9975_v11 = vsel %vm4127_vm10, %v9965_v19, %v9974_v43 }
 0x335   : > { %6464 = vst.msk [vmem:[%s15267_s14 + $0x50] sm:$0xff] %vm619_vm9, %v12637_v2  ;;  %v6343_v31 = vpop.f32.mrb[153].mxu1  ;;  %v7008_v37 = vld [vmem:[%s15267_s14 + $0x20] sm:$0xff] }
 0x336   : > { %6462 = vst.msk [vmem:[%s15267_s14 + $0x40] sm:$0xff] %vm619_vm9, %v6343_v31  ;;  %v12638_v25 = vpop.f32.mrb[154].mxu1  ;;  %v7011_v33 = vld [vmem:[%s15267_s14 + $0x38] sm:$0xff] }
 0x337   : > { %v12671_v5 = vpop.f32.mrb[184].mxu0  ;;  %6465 = vst.msk [vmem:[%s15267_s14 + $0x58] sm:$0xff] %vm619_vm9, %v12638_v25  ;;  %v6346_v17 = vpop.f32.mrb[155].mxu1  ;;  %v7009_v57 = vld [vmem:[%s15267_s14 + $0x28] sm:$0xff]  ;;  %v9995_v25 = vshrl.u32 %v13297_v59, 16 }
 0x338   : > { %v7046_v22 = vadd.f32 %v12671_v5, %v7010_v39  ;;  %v6877_v10 = vpop.f32.mrb[185].mxu0  ;;  %6463 = vst.msk [vmem:[%s15267_s14 + $0x48] sm:$0xff] %vm619_vm9, %v6346_v17  ;;  %12850 = vmatmul.mubr.msk.bf16.gmra.mrb[28].mxu0 %vm619_vm9, %v8946_v45  ;;  %12856 = vmatmul.mubr.msk.bf16.vlgmr.msra.gmra.mrb[252].mxu1 %vm619_vm9, %v9425_v55  ;;  %v9434_v39 = vrot.slane %v15400_v35, 2  ;;  %v9991_v17 = vrot.slane %v9989_v18, 3  ;;  %v13296_v55 = vld [vmem:[#allocation3 + $0x50] sm:$0xff]  }
 0x339   : > { %v7044_v15 = vadd.f32 %v7008_v37, %v6877_v10  ;;  %v12672_v38 = vpop.f32.mrb[186].mxu0  ;;  %12893 = vmatprep.mubr.msk.bf16.mxu0 %vm619_vm9, %v9948_v44  ;;  %12930 = vmatpush3.bf16.msra.mxu1 %v10668_v20  ;;  %v9433_v20 = vsel %vm3096_vm4, %v9430_v1, %v9432_v3  ;;  %v13301_v10 = vld [vmem:[#allocation3 + $0x58] sm:$0xff]   ;;  %v9997_v21 = vrot.slane %v9995_v25, 2  ;;  %v9436_v44 = vrot.slane %v13296_v55, 2  ;;  %v13300_v1 = vld [vmem:[#allocation3 + $0x60] sm:$0xff]  }
 0x33a   : > { %7082 = vst.msk [vmem:[%s15267_s14 + $0x30] sm:$0xff] %vm619_vm9, %v7046_v22  ;;  %v7047_v29 = vadd.f32 %v12672_v38, %v7011_v33  ;;  %v6880_v26 = vpop.f32.mrb[187].mxu0  ;;  %12859 = vmatprep.mubr.msk.bf16.mxu1 %vm619_vm9, %v9427_v0  ;;  %v9988_v33 = vrot.slane %v9986_v63, 2  ;;  %v13298_v22 = vld [vmem:[#allocation3 + $0x50] sm:$0xff]   ;;  %v9435_v45 = vsel %vm3096_vm4, %v9432_v3, %v9434_v39  ;;  %v10016_v14 = vshll.u32 %v13301_v10, 16  ;;  %v13309_v55 = vld [vmem:[#allocation3 + $0x78] sm:$0xff]  }
 0x33b   : > { %7080 = vst.msk [vmem:[%s15267_s14 + $0x20] sm:$0xff] %vm619_vm9, %v7044_v15  ;;  %v7045_v28 = vadd.f32 %v7009_v57, %v6880_v26  ;;  %v9984_v57 = vsel %vm4127_vm10, %v9974_v43, %v9983_v62  ;;  %v10004_v32 = vshrl.u32 %v13298_v22, 16  ;;  %v10013_v26 = vshrl.u32 %v13301_v10, 16 }
 0x33c   : > { %7083 = vst.msk [vmem:[%s15267_s14 + $0x38] sm:$0xff] %vm619_vm9, %v7047_v29  ;;  %v7014_v49 = vld [vmem:[%s15267_s14 + $0x50] sm:$0xff]  ;;  %v9992_v38 = vor.u32 %v9991_v17, %v9988_v33  ;;  %v10007_v29 = vshll.u32 %v13298_v22, 16  ;;  %v10001_v0 = vor.u32 %v10000_v54, %v9997_v21  ;;  %v9437_v12 = vsel %vm3096_vm4, %v9434_v39, %v9436_v44 }
 0x33d   : > { %7081 = vst.msk [vmem:[%s15267_s14 + $0x28] sm:$0xff] %vm619_vm9, %v7045_v28  ;;  %v7012_v36 = vld [vmem:[%s15267_s14 + $0x40] sm:$0xff]  ;;  %v9438_v28 = vrot.slane %v15427_v30, 2  ;;  %v10006_v4 = vrot.slane %v10004_v32, 2  ;;  %v10015_v56 = vrot.slane %v10013_v26, 2  ;;  %v10018_v42 = vrot.slane %v10016_v14, 3 }
 0x33e   : > { %v7015_v6 = vld [vmem:[%s15267_s14 + $0x58] sm:$0xff]  ;;  %v9993_v48 = vsel %vm4127_vm10, %v9983_v62, %v9992_v38  ;;  %v10009_v19 = vrot.slane %v10007_v29, 3  ;;  %v10002_v41 = vsel %vm4127_vm10, %v9992_v38, %v10001_v0  ;;  %v9442_v3 = vrot.slane %v15447_v7, 2 }
 0x33f   : > { %v7013_v61 = vld [vmem:[%s15267_s14 + $0x48] sm:$0xff]  ;;  %v10031_v39 = vshrl.u32 %v13305_v8, 16 }
 0x340   : > { %12894 = vmatmul.mubr.msk.bf16.vlgmr.msra.gmra.mrb[32].mxu0 %vm619_vm9, %v9957_v9  ;;  %12860 = vmatmul.mubr.msk.bf16.gmra.mrb[0].mxu1 %vm619_vm9, %v9429_v16  ;;  %v9439_v9 = vsel %vm3096_vm4, %v9436_v44, %v9438_v28  ;;  %v10010_v59 = vor.u32 %v10009_v19, %v10006_v4 }
 0x341   : > { %12897 = vmatprep.mubr.msk.bf16.mxu0 %vm619_vm9, %v9966_v60  ;;  %12863 = vmatprep.mubr.msk.bf16.mxu1 %vm619_vm9, %v9431_v34 }
 0x342   : > { %v10011_v33 = vsel %vm4127_vm10, %v10001_v0, %v10010_v59 }
 0x343   : > { %v12675_v46 = vpop.f32.mrb[188].mxu0 }
 0x344   : > { %v7050_v53 = vadd.f32 %v12675_v46, %v7014_v49  ;;  %v6893_v2 = vpop.f32.mrb[189].mxu0  ;;  %v9440_v46 = vrot.slane %v13300_v1, 2 }
 0x345   : > { %v7048_v31 = vadd.f32 %v7012_v36, %v6893_v2  ;;  %v12676_v50 = vpop.f32.mrb[190].mxu0  ;;  %v10025_v36 = vshll.u32 %v13302_v47, 16  ;;  %v10019_v2 = vor.u32 %v10018_v42, %v10015_v56 }
 0x346   : > { %7086 = vst.msk [vmem:[%s15267_s14 + $0x50] sm:$0xff] %vm619_vm9, %v7050_v53  ;;  %v7051_v52 = vadd.f32 %v12676_v50, %v7015_v6  ;;  %v6896_v37 = vpop.f32.mrb[191].mxu0  ;;  %v9441_v17 = vsel %vm3096_vm4, %v9438_v28, %v9440_v46  ;;  %v10049_v28 = vshrl.u32 %v13309_v55, 16 }
 0x347   : > { %7084 = vst.msk [vmem:[%s15267_s14 + $0x40] sm:$0xff] %vm619_vm9, %v7048_v31  ;;  %v7049_v5 = vadd.f32 %v7013_v61, %v6896_v37  ;;  %v10034_v31 = vshll.u32 %v13305_v8, 16  ;;  %v10024_v37 = vrot.slane %v10022_v40, 2  ;;  %v10027_v25 = vrot.slane %v10025_v36, 3  ;;  %v15509_v40 = vld [vmem:[#allocation3 + $0x88] sm:$0xff]  }
 0x348   : > { %7087 = vst.msk [vmem:[%s15267_s14 + $0x58] sm:$0xff] %vm619_vm9, %v7051_v52  ;;  %12898 = vmatmul.mubr.msk.bf16.gmra.mrb[36].mxu0 %vm619_vm9, %v9975_v11  ;;  %12864 = vmatmul.mubr.msk.bf16.gmra.mrb[4].mxu1 %vm619_vm9, %v9433_v20  ;;  %v10020_v11 = vsel %vm4127_vm10, %v10010_v59, %v10019_v2  ;;  %v9443_v20 = vsel %vm3096_vm4, %v9440_v46, %v9442_v3  ;;  %v13313_v36 = vld [vmem:[#allocation3 + $0x88] sm:$0xff]  }
 0x349   : > { %7085 = vst.msk [vmem:[%s15267_s14 + $0x48] sm:$0xff] %vm619_vm9, %v7049_v5  ;;  %v12641_v13 = vpop.f32.mrb[156].mxu1  ;;  %12901 = vmatprep.mubr.msk.bf16.mxu0 %vm619_vm9, %v9984_v57  ;;  %12867 = vmatprep.mubr.msk.bf16.mxu1 %vm619_vm9, %v9435_v45  ;;  %v13306_v5 = vld [vmem:[#allocation3 + $0x70] sm:$0xff]   ;;  %v10033_v57 = vrot.slane %v10031_v39, 2  ;;  %v10036_v45 = vrot.slane %v10034_v31, 3  ;;  %v10028_v30 = vor.u32 %v10027_v25, %v10024_v37  ;;  %v9450_v37 = vrot.slane %v15509_v40, 2 }
 0x34a   : > { %6468 = vst.msk [vmem:[%s15267_s14 + $0x70] sm:$0xff] %vm619_vm9, %v12641_v13  ;;  %v6359_v15 = vpop.f32.mrb[157].mxu1  ;;  %v15478_v13 = vld [vmem:[#allocation3 + $0x78] sm:$0xff]   ;;  %v10043_v0 = vshll.u32 %v13306_v5, 16  ;;  %v10067_v25 = vshrl.u32 %v13313_v36, 16 }
 0x34b   : > { %6466 = vst.msk [vmem:[%s15267_s14 + $0x60] sm:$0xff] %vm619_vm9, %v6359_v15  ;;  %v12642_v27 = vpop.f32.mrb[158].mxu1  ;;  %v9444_v15 = vrot.slane %v13304_v51, 2  ;;  %v10037_v4 = vor.u32 %v10036_v45, %v10033_v57  ;;  %v9446_v19 = vrot.slane %v15478_v13, 2  ;;  %v10029_v42 = vsel %vm4127_vm10, %v10019_v2, %v10028_v30  ;;  %v13314_v13 = vld [vmem:[#allocation3 + $0x90] sm:$0xff]  }
 0x34c   : > { %6469 = vst.msk [vmem:[%s15267_s14 + $0x78] sm:$0xff] %vm619_vm9, %v12642_v27  ;;  %v6362_v23 = vpop.f32.mrb[159].mxu1  ;;  %v10045_v8 = vrot.slane %v10043_v0, 3  ;;  %v10070_v51 = vshll.u32 %v13313_v36, 16  ;;  %v10079_v0 = vshll.u32 %v13314_v13, 16 }
 0x34d   : > { %6467 = vst.msk [vmem:[%s15267_s14 + $0x68] sm:$0xff] %vm619_vm9, %v6362_v23  ;;  %v10040_v23 = vshrl.u32 %v13306_v5, 16 }
 0x34e   : > { %v10081_v36 = vrot.slane %v10079_v0, 3 }
 0x34f   : > { %v10042_v7 = vrot.slane %v10040_v23, 2 }
 0x350   : > { %12902 = vmatmul.mubr.msk.bf16.gmra.mrb[40].mxu0 %vm619_vm9, %v9993_v48  ;;  %12868 = vmatmul.mubr.msk.bf16.gmra.mrb[8].mxu1 %vm619_vm9, %v9437_v12  ;;  %v10052_v48 = vshll.u32 %v13309_v55, 16 }
 0x351   : > { %v7018_v16 = vld [vmem:[%s15267_s14 + $0x70] sm:$0xff]  ;;  %v12645_v58 = vpop.f32.mrb[160].mxu1  ;;  %12905 = vmatprep.mubr.msk.bf16.mxu0 %vm619_vm9, %v10002_v41  ;;  %12871 = vmatprep.mubr.msk.bf16.mxu1 %vm619_vm9, %v9439_v9  ;;  %v9445_v41 = vsel %vm3096_vm4, %v9442_v3, %v9444_v15 }
 0x352   : > { %6472 = vst.msk [vmem:[%s15267_s14 + $0x90] sm:$0xff] %vm619_vm9, %v12645_v58  ;;  %v7016_v35 = vld [vmem:[%s15267_s14 + $0x60] sm:$0xff]  ;;  %v6375_v49 = vpop.f32.mrb[161].mxu1 }
 0x353   : > { %v12679_v60 = vpop.f32.mrb[192].mxu0  ;;  %6470 = vst.msk [vmem:[%s15267_s14 + $0x80] sm:$0xff] %vm619_vm9, %v6375_v49  ;;  %v7019_v34 = vld [vmem:[%s15267_s14 + $0x78] sm:$0xff]  ;;  %v12646_v24 = vpop.f32.mrb[162].mxu1  ;;  %v13310_v58 = vld [vmem:[#allocation3 + $0x80] sm:$0xff]   ;;  %v10054_v49 = vrot.slane %v10052_v48, 3 }
 0x354   : > { %v7054_v6 = vadd.f32 %v12679_v60, %v7018_v16  ;;  %v6909_v63 = vpop.f32.mrb[193].mxu0  ;;  %6473 = vst.msk [vmem:[%s15267_s14 + $0x98] sm:$0xff] %vm619_vm9, %v12646_v24  ;;  %v7017_v18 = vld [vmem:[%s15267_s14 + $0x68] sm:$0xff]  ;;  %v6378_v53 = vpop.f32.mrb[163].mxu1  ;;  %v13308_v16 = vld [vmem:[#allocation3 + $0x80] sm:$0xff]   ;;  %v10038_v60 = vsel %vm4127_vm10, %v10028_v30, %v10037_v4  ;;  %v10061_v31 = vshll.u32 %v13310_v58, 16 }
 0x355   : > { %v7052_v61 = vadd.f32 %v7016_v35, %v6909_v63  ;;  %v12680_v43 = vpop.f32.mrb[194].mxu0  ;;  %6471 = vst.msk [vmem:[%s15267_s14 + $0x88] sm:$0xff] %vm619_vm9, %v6378_v53  ;;  %v10051_v35 = vrot.slane %v10049_v28, 2  ;;  %v9448_v46 = vrot.slane %v13308_v16, 2  ;;  %v10046_v53 = vor.u32 %v10045_v8, %v10042_v7 }
 0x356   : > { %7090 = vst.msk [vmem:[%s15267_s14 + $0x70] sm:$0xff] %vm619_vm9, %v7054_v6  ;;  %v7055_v50 = vadd.f32 %v12680_v43, %v7019_v34  ;;  %v6912_v62 = vpop.f32.mrb[195].mxu0  ;;  %v9447_v34 = vsel %vm3096_vm4, %v9444_v15, %v9446_v19  ;;  %v10063_v45 = vrot.slane %v10061_v31, 3  ;;  %v10069_v15 = vrot.slane %v10067_v25, 2 }
 0x357   : > { %7088 = vst.msk [vmem:[%s15267_s14 + $0x60] sm:$0xff] %vm619_vm9, %v7052_v61  ;;  %v7053_v52 = vadd.f32 %v7017_v18, %v6912_v62  ;;  %v10058_v18 = vshrl.u32 %v13310_v58, 16  ;;  %v15516_v39 = vor.u32 %v10054_v49, %v10051_v35  ;;  %v9451_v30 = vsel %vm3096_vm4, %v9448_v46, %v9450_v37 }
 0x358   : > { %7091 = vst.msk [vmem:[%s15267_s14 + $0x78] sm:$0xff] %vm619_vm9, %v7055_v50  ;;  %12906 = vmatmul.mubr.msk.bf16.gmra.mrb[44].mxu0 %vm619_vm9, %v10011_v33  ;;  %12872 = vmatmul.mubr.msk.bf16.gmra.mrb[12].mxu1 %vm619_vm9, %v9441_v17 }
 0x359   : > { %7089 = vst.msk [vmem:[%s15267_s14 + $0x68] sm:$0xff] %vm619_vm9, %v7053_v52  ;;  %v7022_v22 = vld [vmem:[%s15267_s14 + $0x90] sm:$0xff]  ;;  %v12649_v10 = vpop.f32.mrb[164].mxu1  ;;  %12909 = vmatprep.mubr.msk.bf16.mxu0 %vm619_vm9, %v10020_v11  ;;  %12875 = vmatprep.mubr.msk.bf16.mxu1 %vm619_vm9, %v9443_v20  ;;  %v10060_v57 = vrot.slane %v10058_v18, 2 }
 0x35a   : > { %6476 = vst.msk [vmem:[%s15267_s14 + $0xb0] sm:$0xff] %vm619_vm9, %v12649_v10  ;;  %v7020_v21 = vld [vmem:[%s15267_s14 + $0x80] sm:$0xff]  ;;  %v6391_v54 = vpop.f32.mrb[165].mxu1  ;;  %v13312_v20 = vld [vmem:[#allocation3 + $0x90] sm:$0xff]   ;;  %v9449_v10 = vsel %vm3096_vm4, %v9446_v19, %v9448_v46 }
 0x35b   : > { %v12683_v38 = vpop.f32.mrb[196].mxu0  ;;  %6474 = vst.msk [vmem:[%s15267_s14 + $0xa0] sm:$0xff] %vm619_vm9, %v6391_v54  ;;  %v7023_v44 = vld [vmem:[%s15267_s14 + $0x98] sm:$0xff]  ;;  %v12650_v27 = vpop.f32.mrb[166].mxu1  ;;  %v10056_v54 = vsel %vm4127_vm10, %v10046_v53, %v15516_v39  ;;  %v10064_v23 = vor.u32 %v10063_v45, %v10060_v57 }
 0x35c   : > { %v7058_v32 = vadd.f32 %v12683_v38, %v7022_v22  ;;  %v6925_v29 = vpop.f32.mrb[197].mxu0  ;;  %6477 = vst.msk [vmem:[%s15267_s14 + $0xb8] sm:$0xff] %vm619_vm9, %v12650_v27  ;;  %v7021_v26 = vld [vmem:[%s15267_s14 + $0x88] sm:$0xff]  ;;  %v6394_v14 = vpop.f32.mrb[167].mxu1  ;;  %v10047_v22 = vsel %vm4127_vm10, %v10037_v4, %v10046_v53  ;;  %v10072_v38 = vrot.slane %v10070_v51, 3  ;;  %v9452_v27 = vrot.slane %v13312_v20, 2 }
 0x35d   : > { %v7056_v12 = vadd.f32 %v7020_v21, %v6925_v29  ;;  %v12684_v47 = vpop.f32.mrb[198].mxu0  ;;  %6475 = vst.msk [vmem:[%s15267_s14 + $0xa8] sm:$0xff] %vm619_vm9, %v6394_v14  ;;  %v15535_v21 = vld [vmem:[#allocation3 + $0x98] sm:$0xff]   ;;  %v10076_v14 = vshrl.u32 %v13314_v13, 16 }
 0x35e   : > { %7094 = vst.msk [vmem:[%s15267_s14 + $0x90] sm:$0xff] %vm619_vm9, %v7058_v32  ;;  %v7059_v1 = vadd.f32 %v12684_v47, %v7023_v44  ;;  %v6928_v56 = vpop.f32.mrb[199].mxu0  ;;  %v13317_v44 = vld [vmem:[#allocation3 + $0x98] sm:$0xff]   ;;  %v9454_v28 = vrot.slane %v15535_v21, 2  ;;  %v15551_v19 = vor.u32 %v10072_v38, %v10069_v15  ;;  %v9453_v58 = vsel %vm3096_vm4, %v9450_v37, %v9452_v27 }
 0x35f   : > { %7092 = vst.msk [vmem:[%s15267_s14 + $0x80] sm:$0xff] %vm619_vm9, %v7056_v12  ;;  %v7057_v9 = vadd.f32 %v7021_v26, %v6928_v56  ;;  %v10088_v56 = vshll.u32 %v13317_v44, 16  ;;  %v10078_v40 = vrot.slane %v10076_v14, 2  ;;  %v15575_v53 = vld [vmem:[#allocation3 + $0x18] sm:$0xff]  }
 0x360   : > { %7095 = vst.msk [vmem:[%s15267_s14 + $0x98] sm:$0xff] %vm619_vm9, %v7059_v1  ;;  %12910 = vmatmul.mubr.msk.bf16.gmra.mrb[48].mxu0 %vm619_vm9, %v10029_v42  ;;  %12876 = vmatmul.mubr.msk.bf16.gmra.mrb[16].mxu1 %vm619_vm9, %v9445_v41  ;;  %v10085_v1 = vshrl.u32 %v13317_v44, 16  ;;  %v10074_v46 = vsel %vm4127_vm10, %v10064_v23, %v15551_v19  ;;  %v13321_v44 = vld [vmem:[#allocation3 + $0x20] sm:$0xff]  }
 0x361   : > { %7093 = vst.msk [vmem:[%s15267_s14 + $0x88] sm:$0xff] %vm619_vm9, %v7057_v9  ;;  %v7026_v24 = vld [vmem:[%s15267_s14 + $0xb0] sm:$0xff]  ;;  %12913 = vmatprep.mubr.msk.bf16.mxu0 %vm619_vm9, %v10038_v60  ;;  %12879 = vmatprep.mubr.msk.bf16.mxu1 %vm619_vm9, %v9447_v34  ;;  %v13316_v60 = vld [vmem:[#allocation3 + $0xa0] ss:$0 sps:$4 sm:$0x33]   ;;  %v10065_v34 = vsel %vm4127_vm10, %v15516_v39, %v10064_v23  ;;  %v10090_v18 = vrot.slane %v10088_v56, 3 }
 0x362   : > { %v7024_v59 = vld [vmem:[%s15267_s14 + $0xa0] sm:$0xff] }
 0x363   : > { %v12687_v6 = vpop.f32.mrb[200].mxu0  ;;  %v7027_v63 = vld [vmem:[%s15267_s14 + $0xb8] sm:$0xff]  ;;  %v12653_v61 = vpop.f32.mrb[168].mxu1  ;;  %v7515_v56 = vld [vmem:[%s15267_s14] sm:$0xff] }
 0x364   : > { %v7062_v2 = vadd.f32 %v12687_v6, %v7026_v24  ;;  %v6941_v43 = vpop.f32.mrb[201].mxu0  ;;  %v7025_v3 = vld [vmem:[%s15267_s14 + $0xa8] sm:$0xff]  ;;  %6480 = vst.msk [vmem:[%s15267_s14 + $0xd0] sm:$0xff] %vm619_vm9, %v12653_v61  ;;  %v6407_v62 = vpop.f32.mrb[169].mxu1  ;;  %v9455_v6 = vsel %vm3096_vm4, %v9452_v27, %v9454_v28  ;;  %v13319_v61 = vld [vmem:[#allocation3 + $0x10] sm:$0xf8]  }
 0x365   : > { %v7060_v50 = vadd.f32 %v7024_v59, %v6941_v43  ;;  %v12688_v52 = vpop.f32.mrb[202].mxu0  ;;  %6478 = vst.msk [vmem:[%s15267_s14 + $0xc0] sm:$0xff] %vm619_vm9, %v6407_v62  ;;  %v12654_v33 = vpop.f32.mrb[170].mxu1  ;;  %v13318_v59 = vld [vmem:[#allocation3 + $0xa0] ss:$0 sps:$4 sm:$0x77]   ;;  %v10082_v43 = vor.u32 %v10081_v36, %v10078_v40 }
 0x366   : > { %7098 = vst.msk [vmem:[%s15267_s14 + $0xb0] sm:$0xff] %vm619_vm9, %v7062_v2  ;;  %v7063_v5 = vadd.f32 %v12688_v52, %v7027_v63  ;;  %v6944_v17 = vpop.f32.mrb[203].mxu0  ;;  %6481 = vst.msk [vmem:[%s15267_s14 + $0xd8] sm:$0xff] %vm619_vm9, %v12654_v33  ;;  %v6410_v11 = vpop.f32.mrb[171].mxu1  ;;  %v10087_v63 = vrot.slane %v10085_v1, 2  ;;  %v9456_v2 = vrot.slane %v13316_v60, 2 }
 0x367   : > { %7096 = vst.msk [vmem:[%s15267_s14 + $0xa0] sm:$0xff] %vm619_vm9, %v7060_v50  ;;  %v7061_v55 = vadd.f32 %v7025_v3, %v6944_v17  ;;  %6479 = vst.msk [vmem:[%s15267_s14 + $0xc8] sm:$0xff] %vm619_vm9, %v6410_v11  ;;  %v10094_v50 = vshrl.u32 %v13318_v59, 16  ;;  %v10097_v62 = vshll.u32 %v13318_v59, 16  ;;  %v10577_v33 = vrot.slane %v15575_v53, 3  ;;  %v7516_v40 = vld [vmem:[%s15267_s14 + $0x8] sm:$0xff] }
 0x368   : > { %7099 = vst.msk [vmem:[%s15267_s14 + $0xb8] sm:$0xff] %vm619_vm9, %v7063_v5  ;;  %12914 = vmatmul.mubr.msk.bf16.gmra.mrb[52].mxu0 %vm619_vm9, %v10047_v22  ;;  %12880 = vmatmul.mubr.msk.bf16.gmra.mrb[20].mxu1 %vm619_vm9, %v9449_v10  ;;  %v10091_v5 = vor.u32 %v10090_v18, %v10087_v63  ;;  %v9457_v22 = vsel %vm3096_vm4, %v9454_v28, %v9456_v2  ;;  %v10576_v21 = vrot.slane %v13319_v61, 3  ;;  %v13323_v63 = vld [vmem:[#allocation3 + $0x30] sm:$0xff]   ;;  %v15639_v53 = vld [vmem:[#allocation3 + $0x38] sm:$0xff]  }
 0x369   : > { %7097 = vst.msk [vmem:[%s15267_s14 + $0xa8] sm:$0xff] %vm619_vm9, %v7061_v55  ;;  %12917 = vmatprep.mubr.msk.bf16.mxu0 %vm619_vm9, %v10056_v54  ;;  %12883 = vmatprep.mubr.msk.bf16.mxu1 %vm619_vm9, %v9451_v30  ;;  %v10083_v54 = vsel %vm4127_vm10, %v15551_v19, %v10082_v43  ;;  %v10096_v15 = vrot.slane %v10094_v50, 2  ;;  %v10099_v38 = vrot.slane %v10097_v62, 3  ;;  %v10583_v2 = vrot.slane %v13323_v63, 3  ;;  %v7519_v62 = vld [vmem:[%s15267_s14 + $0x20] sm:$0xff] }
 0x36a   : > { %v10092_v27 = vsel %vm4127_vm10, %v10082_v43, %v10091_v5  ;;  %v10578_v23 = vsel %vm4776_vm11, %v10576_v21, %v10577_v33 }
 0x36b   : > { %v12691_v32 = vpop.f32.mrb[204].mxu0  ;;  %v7030_v29 = vld [vmem:[%s15267_s14 + $0xd0] sm:$0xff]  ;;  %v12657_v26 = vpop.f32.mrb[172].mxu1 }
 0x36c   : > { %v7066_v48 = vadd.f32 %v12691_v32, %v7030_v29  ;;  %6484 = vst.msk [vmem:[%s15267_s14 + $0xf0] sm:$0xff] %vm619_vm9, %v12657_v26  ;;  %v6957_v12 = vpop.f32.mrb[205].mxu0  ;;  %v7028_v47 = vld [vmem:[%s15267_s14 + $0xc0] sm:$0xff]  ;;  %v6423_v4 = vpop.f32.mrb[173].mxu1  ;;  %v15607_v32 = vld [vmem:[#allocation3 + $0x28] sm:$0xff]   ;;  %v10100_v29 = vor.u32 %v10099_v38, %v10096_v15  ;;  %v10579_v26 = vrot.slane %v13321_v44, 3 }
 0x36d   : > { %v7064_v42 = vadd.f32 %v7028_v47, %v6957_v12  ;;  %6482 = vst.msk [vmem:[%s15267_s14 + $0xe0] sm:$0xff] %vm619_vm9, %v6423_v4  ;;  %v12692_v41 = vpop.f32.mrb[206].mxu0  ;;  %v7031_v9 = vld [vmem:[%s15267_s14 + $0xd8] sm:$0xff]  ;;  %v12658_v16 = vpop.f32.mrb[174].mxu1  ;;  %v15666_v44 = vld [vmem:[#allocation3 + $0x48] sm:$0xff]  }
 0x36e   : > { %7102 = vst.msk [vmem:[%s15267_s14 + $0xd0] sm:$0xff] %vm619_vm9, %v7066_v48  ;;  %v7067_v7 = vadd.f32 %v12692_v41, %v7031_v9  ;;  %6485 = vst.msk [vmem:[%s15267_s14 + $0xf8] sm:$0xff] %vm619_vm9, %v12658_v16  ;;  %v6960_v8 = vpop.f32.mrb[207].mxu0  ;;  %v7029_v35 = vld [vmem:[%s15267_s14 + $0xc8] sm:$0xff]  ;;  %v6426_v49 = vpop.f32.mrb[175].mxu1  ;;  %v7517_v48 = vld [vmem:[%s15267_s14 + $0x10] sm:$0xff]  ;;  %v10101_v36 = vsel %vm4127_vm10, %v10091_v5, %v10100_v29  ;;  %v10580_v59 = vsel %vm4776_vm11, %v10577_v33, %v10579_v26 }
 0x36f   : > { %7100 = vst.msk [vmem:[%s15267_s14 + $0xc0] sm:$0xff] %vm619_vm9, %v7064_v42  ;;  %v7065_v24 = vadd.f32 %v7029_v35, %v6960_v8  ;;  %6483 = vst.msk [vmem:[%s15267_s14 + $0xe8] sm:$0xff] %vm619_vm9, %v6426_v49  ;;  %v10581_v42 = vrot.slane %v15607_v32, 3  ;;  %v7518_v8 = vld [vmem:[%s15267_s14 + $0x18] sm:$0xff] }
 0x370   : > { %7103 = vst.msk [vmem:[%s15267_s14 + $0xd8] sm:$0xff] %vm619_vm9, %v7067_v7  ;;  %12918 = vmatmul.mubr.msk.bf16.gmra.mrb[56].mxu0 %vm619_vm9, %v10065_v34  ;;  %12884 = vmatmul.mubr.msk.bf16.gmra.mrb[24].mxu1 %vm619_vm9, %v9453_v58  ;;  %v7522_v33 = vld [vmem:[%s15267_s14 + $0x38] sm:$0xff] }
 0x371   : > { %7101 = vst.msk [vmem:[%s15267_s14 + $0xc8] sm:$0xff] %vm619_vm9, %v7065_v24  ;;  %12921 = vmatprep.mubr.msk.bf16.mxu0 %vm619_vm9, %v10074_v46  ;;  %12887 = vmatprep.mubr.msk.bf16.mxu1 %vm619_vm9, %v9455_v6  ;;  %v10582_v18 = vsel %vm4776_vm11, %v10579_v26, %v10581_v42  ;;  %v7525_v26 = vld [vmem:[%s15267_s14 + $0x50] sm:$0xff] }
 0x373   : > { %v12695_v3 = vpop.f32.mrb[208].mxu0  ;;  %v7034_v39 = vld [vmem:[%s15267_s14 + $0xf0] sm:$0xff]  ;;  %v12661_v31 = vpop.f32.mrb[176].mxu1 }
 0x374   : > { %v7070_v52 = vadd.f32 %v12695_v3, %v7034_v39  ;;  %6488 = vst.msk [vmem:[%s15267_s14 + $0x110] sm:$0xff] %vm619_vm9, %v12661_v31  ;;  %v6973_v37 = vpop.f32.mrb[209].mxu0  ;;  %v7032_v25 = vld [vmem:[%s15267_s14 + $0xe0] sm:$0xff]  ;;  %v6439_v51 = vpop.f32.mrb[177].mxu1  ;;  %v7521_v3 = vld [vmem:[%s15267_s14 + $0x30] sm:$0xff] }
 0x375   : > { %v7068_v17 = vadd.f32 %v7032_v25, %v6973_v37  ;;  %6486 = vst.msk [vmem:[%s15267_s14 + $0x100] sm:$0xff] %vm619_vm9, %v6439_v51  ;;  %v12696_v55 = vpop.f32.mrb[210].mxu0  ;;  %v7035_v11 = vld [vmem:[%s15267_s14 + $0xf8] sm:$0xff]  ;;  %v12662_v20 = vpop.f32.mrb[178].mxu1 }
 0x376   : > { %7106 = vst.msk [vmem:[%s15267_s14 + $0xf0] sm:$0xff] %vm619_vm9, %v7070_v52  ;;  %v7071_v10 = vadd.f32 %v12696_v55, %v7035_v11  ;;  %6489 = vst.msk [vmem:[%s15267_s14 + $0x118] sm:$0xff] %vm619_vm9, %v12662_v20  ;;  %v6976_v57 = vpop.f32.mrb[211].mxu0  ;;  %v7033_v45 = vld [vmem:[%s15267_s14 + $0xe8] sm:$0xff]  ;;  %v6442_v13 = vpop.f32.mrb[179].mxu1  ;;  %v10585_v52 = vrot.slane %v15639_v53, 3 }
 0x377   : > { %7104 = vst.msk [vmem:[%s15267_s14 + $0xe0] sm:$0xff] %vm619_vm9, %v7068_v17  ;;  %v7069_v30 = vadd.f32 %v7033_v45, %v6976_v57  ;;  %6487 = vst.msk [vmem:[%s15267_s14 + $0x108] sm:$0xff] %vm619_vm9, %v6442_v13  ;;  %v10584_v57 = vsel %vm4776_vm11, %v10581_v42, %v10583_v2  ;;  %v7529_v53 = vld [vmem:[%s15267_s14 + $0x70] sm:$0xff] }
 0x378   : > { %7107 = vst.msk [vmem:[%s15267_s14 + $0xf8] sm:$0xff] %vm619_vm9, %v7071_v10  ;;  %12922 = vmatmul.mubr.msk.bf16.gmra.mrb[60].mxu0 %vm619_vm9, %v10083_v54  ;;  %12888 = vmatmul.mubr.msk.bf16.gmra.mrb[28].mxu1 %vm619_vm9, %v9457_v22  ;;  %v7520_v10 = vld [vmem:[%s15267_s14 + $0x28] sm:$0xff]  ;;  %v13325_v54 = vld [vmem:[#allocation3 + $0x40] sm:$0xff]   ;;  %v10586_v38 = vsel %vm4776_vm11, %v10583_v2, %v10585_v52 }
 0x379   : > { %7105 = vst.msk [vmem:[%s15267_s14 + $0xe8] sm:$0xff] %vm619_vm9, %v7069_v30  ;;  %12925 = vmatprep.mubr.msk.bf16.mxu0 %vm619_vm9, %v10092_v27  ;;  %12931 = vmatprep.mubr.msk.bf16.mxu1 %vm619_vm9, %v10578_v23  ;;  %v10587_v23 = vrot.slane %v13325_v54, 3  ;;  %v15728_v54 = vld [vmem:[#allocation3 + $0x68] sm:$0xff]  }
 0x37b   : > { %v12699_v14 = vpop.f32.mrb[212].mxu0  ;;  %v7038_v0 = vld [vmem:[%s15267_s14 + $0x110] sm:$0xff]  ;;  %v12705_v28 = vpop.f32.mrb[180].mxu1 }
 0x37c   : > { %v7074_v12 = vadd.f32 %v12699_v14, %v7038_v0  ;;  %v6989_v47 = vpop.f32.mrb[213].mxu0  ;;  %v7036_v4 = vld [vmem:[%s15267_s14 + $0x100] sm:$0xff]  ;;  %v7553_v19 = vadd.f32 %v12705_v28, %v7517_v48  ;;  %v7372_v1 = vpop.f32.mrb[181].mxu1 }
 0x37d   : > { %v7072_v41 = vadd.f32 %v7036_v4, %v6989_v47  ;;  %v12700_v9 = vpop.f32.mrb[214].mxu0  ;;  %v7039_v16 = vld [vmem:[%s15267_s14 + $0x118] sm:$0xff]  ;;  %v7551_v58 = vadd.f32 %v7515_v56, %v7372_v1  ;;  %v12706_v7 = vpop.f32.mrb[182].mxu1  ;;  %v7523_v48 = vld [vmem:[%s15267_s14 + $0x40] sm:$0xff] }
 0x37e   : > { %7110 = vst.msk [vmem:[%s15267_s14 + $0x110] sm:$0xff] %vm619_vm9, %v7074_v12  ;;  %7589 = vst.msk [vmem:[%s15267_s14 + $0x10] sm:$0xff] %vm619_vm9, %v7553_v19  ;;  %v7075_v35 = vadd.f32 %v12700_v9, %v7039_v16  ;;  %v6992_v49 = vpop.f32.mrb[215].mxu0  ;;  %v7037_v60 = vld [vmem:[%s15267_s14 + $0x108] sm:$0xff]  ;;  %v7554_v34 = vadd.f32 %v12706_v7, %v7518_v8  ;;  %v7375_v24 = vpop.f32.mrb[183].mxu1  ;;  %v10589_v12 = vrot.slane %v15666_v44, 3  ;;  %v10588_v8 = vsel %vm4776_vm11, %v10585_v52, %v10587_v23 }
 0x37f   : > { %7108 = vst.msk [vmem:[%s15267_s14 + $0x100] sm:$0xff] %vm619_vm9, %v7072_v41  ;;  %7587 = vst.msk [vmem:[%s15267_s14] sm:$0xff] %vm619_vm9, %v7551_v58  ;;  %v7073_v46 = vadd.f32 %v7037_v60, %v6992_v49  ;;  %v7552_v6 = vadd.f32 %v7516_v40, %v7375_v24  ;;  %v7526_v56 = vld [vmem:[%s15267_s14 + $0x58] sm:$0xff]  ;;  %v7524_v7 = vld [vmem:[%s15267_s14 + $0x48] sm:$0xff] }
 0x380   : > { %7111 = vst.msk [vmem:[%s15267_s14 + $0x118] sm:$0xff] %vm619_vm9, %v7075_v35  ;;  %7590 = vst.msk [vmem:[%s15267_s14 + $0x18] sm:$0xff] %vm619_vm9, %v7554_v34  ;;  %12926 = vmatmul.mubr.msk.bf16.gmra.mrb[64].mxu0 %vm619_vm9, %v10101_v36  ;;  %12932 = vmatmul.mubr.msk.bf16.vlgmr.msra.gmra.mrb[32].mxu1 %vm619_vm9, %v10580_v59  ;;  %v13327_v34 = vld [vmem:[#allocation3 + $0x50] sm:$0xff]   ;;  %v10590_v36 = vsel %vm4776_vm11, %v10587_v23, %v10589_v12  ;;  %v15697_v59 = vld [vmem:[#allocation3 + $0x58] sm:$0xff]  }
 0x381   : > { %7109 = vst.msk [vmem:[%s15267_s14 + $0x108] sm:$0xff] %vm619_vm9, %v7073_v46  ;;  %7588 = vst.msk [vmem:[%s15267_s14 + $0x8] sm:$0xff] %vm619_vm9, %v7552_v6  ;;  %12935 = vmatprep.mubr.msk.bf16.mxu1 %vm619_vm9, %v10582_v18  ;;  %v10591_v6 = vrot.slane %v13327_v34, 3  ;;  %v15759_v34 = vld [vmem:[#allocation3 + $0x78] sm:$0xff]  }
 0x383   : > { %v12743_v61 = vpop.f32.mrb[216].mxu0  ;;  %v12709_v43 = vpop.f32.mrb[184].mxu1 }
 0x384   : > { %v7557_v39 = vadd.f32 %v12709_v43, %v7521_v3  ;;  %v7883_v31 = vpop.f32.mrb[217].mxu0  ;;  %v7388_v50 = vpop.f32.mrb[185].mxu1  ;;  %v7527_v3 = vld [vmem:[%s15267_s14 + $0x60] sm:$0xff] }
 0x385   : > { %v8028_v37 = vld [vmem:[%s15267_s14 + $0x10] sm:$0xff]  ;;  %v7555_v25 = vadd.f32 %v7519_v62, %v7388_v50  ;;  %v12744_v51 = vpop.f32.mrb[218].mxu0  ;;  %v12710_v5 = vpop.f32.mrb[186].mxu1 }
 0x386   : > { %v8064_v17 = vadd.f32 %v12743_v61, %v8028_v37  ;;  %7593 = vst.msk [vmem:[%s15267_s14 + $0x30] sm:$0xff] %vm619_vm9, %v7557_v39  ;;  %v8026_v55 = vld [vmem:[%s15267_s14] sm:$0xff]  ;;  %v7558_v11 = vadd.f32 %v12710_v5, %v7522_v33  ;;  %v7886_v20 = vpop.f32.mrb[219].mxu0  ;;  %v7391_v22 = vpop.f32.mrb[187].mxu1  ;;  %v10593_v39 = vrot.slane %v15697_v59, 3  ;;  %v7530_v37 = vld [vmem:[%s15267_s14 + $0x78] sm:$0xff] }
 0x387   : > { %v8062_v45 = vadd.f32 %v8026_v55, %v7883_v31  ;;  %7591 = vst.msk [vmem:[%s15267_s14 + $0x20] sm:$0xff] %vm619_vm9, %v7555_v25  ;;  %v8029_v13 = vld [vmem:[%s15267_s14 + $0x18] sm:$0xff]  ;;  %v7556_v21 = vadd.f32 %v7520_v10, %v7391_v22  ;;  %v7528_v55 = vld [vmem:[%s15267_s14 + $0x68] sm:$0xff] }
 0x388   : > { %8100 = vst.msk [vmem:[%s15267_s14 + $0x10] sm:$0xff] %vm619_vm9, %v8064_v17  ;;  %v8065_v30 = vadd.f32 %v12744_v51, %v8029_v13  ;;  %7594 = vst.msk [vmem:[%s15267_s14 + $0x38] sm:$0xff] %vm619_vm9, %v7558_v11  ;;  %v8027_v15 = vld [vmem:[%s15267_s14 + $0x8] sm:$0xff]  ;;  %12936 = vmatmul.mubr.msk.bf16.gmra.mrb[36].mxu1 %vm619_vm9, %v10584_v57  ;;  %v10592_v11 = vsel %vm4776_vm11, %v10589_v12, %v10591_v6  ;;  %v13329_v57 = vld [vmem:[#allocation3 + $0x60] sm:$0xff]  }
 0x389   : > { %8098 = vst.msk [vmem:[%s15267_s14] sm:$0xff] %vm619_vm9, %v8062_v45  ;;  %v8063_v27 = vadd.f32 %v8027_v15, %v7886_v20  ;;  %7592 = vst.msk [vmem:[%s15267_s14 + $0x28] sm:$0xff] %vm619_vm9, %v7556_v21  ;;  %12939 = vmatprep.mubr.msk.bf16.mxu1 %vm619_vm9, %v10586_v38  ;;  %v10594_v21 = vsel %vm4776_vm11, %v10591_v6, %v10593_v39  ;;  %v10595_v15 = vrot.slane %v13329_v57, 3  ;;  %v15790_v57 = vld [vmem:[#allocation3 + $0x88] sm:$0xff]  }
 0x38a   : > { %8101 = vst.msk [vmem:[%s15267_s14 + $0x18] sm:$0xff] %vm619_vm9, %v8065_v30 }
 0x38b   : > { %8099 = vst.msk [vmem:[%s15267_s14 + $0x8] sm:$0xff] %vm619_vm9, %v8063_v27  ;;  %v12747_v32 = vpop.f32.mrb[220].mxu0  ;;  %v12713_v29 = vpop.f32.mrb[188].mxu1  ;;  %v7533_v27 = vld [vmem:[%s15267_s14 + $0x90] sm:$0xff] }
 0x38c   : > { %v7561_v14 = vadd.f32 %v12713_v29, %v7525_v26  ;;  %v7899_v0 = vpop.f32.mrb[221].mxu0  ;;  %v7404_v28 = vpop.f32.mrb[189].mxu1  ;;  %v7531_v26 = vld [vmem:[%s15267_s14 + $0x80] sm:$0xff] }
 0x38d   : > { %v8032_v47 = vld [vmem:[%s15267_s14 + $0x30] sm:$0xff]  ;;  %v7559_v4 = vadd.f32 %v7523_v48, %v7404_v28  ;;  %v12748_v19 = vpop.f32.mrb[222].mxu0  ;;  %v12714_v1 = vpop.f32.mrb[190].mxu1 }
 0x38e   : > { %v8068_v42 = vadd.f32 %v12747_v32, %v8032_v47  ;;  %7597 = vst.msk [vmem:[%s15267_s14 + $0x50] sm:$0xff] %vm619_vm9, %v7561_v14  ;;  %v8030_v41 = vld [vmem:[%s15267_s14 + $0x20] sm:$0xff]  ;;  %v7562_v9 = vadd.f32 %v12714_v1, %v7526_v56  ;;  %v7902_v16 = vpop.f32.mrb[223].mxu0  ;;  %v7407_v58 = vpop.f32.mrb[191].mxu1  ;;  %v10597_v14 = vrot.slane %v15728_v54, 3  ;;  %v7534_v47 = vld [vmem:[%s15267_s14 + $0x98] sm:$0xff] }
 0x38f   : > { %v8066_v35 = vadd.f32 %v8030_v41, %v7899_v0  ;;  %7595 = vst.msk [vmem:[%s15267_s14 + $0x40] sm:$0xff] %vm619_vm9, %v7559_v4  ;;  %v8033_v49 = vld [vmem:[%s15267_s14 + $0x38] sm:$0xff]  ;;  %v7560_v60 = vadd.f32 %v7524_v7, %v7407_v58  ;;  %v7532_v41 = vld [vmem:[%s15267_s14 + $0x88] sm:$0xff] }
 0x390   : > { %8104 = vst.msk [vmem:[%s15267_s14 + $0x30] sm:$0xff] %vm619_vm9, %v8068_v42  ;;  %v8069_v24 = vadd.f32 %v12748_v19, %v8033_v49  ;;  %7598 = vst.msk [vmem:[%s15267_s14 + $0x58] sm:$0xff] %vm619_vm9, %v7562_v9  ;;  %v8031_v40 = vld [vmem:[%s15267_s14 + $0x28] sm:$0xff]  ;;  %12940 = vmatmul.mubr.msk.bf16.gmra.mrb[40].mxu1 %vm619_vm9, %v10588_v8  ;;  %v10596_v9 = vsel %vm4776_vm11, %v10593_v39, %v10595_v15  ;;  %v13331_v8 = vld [vmem:[#allocation3 + $0x70] sm:$0xff]  }
 0x391   : > { %8102 = vst.msk [vmem:[%s15267_s14 + $0x20] sm:$0xff] %vm619_vm9, %v8066_v35  ;;  %v8067_v46 = vadd.f32 %v8031_v40, %v7902_v16  ;;  %7596 = vst.msk [vmem:[%s15267_s14 + $0x48] sm:$0xff] %vm619_vm9, %v7560_v60  ;;  %12943 = vmatprep.mubr.msk.bf16.mxu1 %vm619_vm9, %v10590_v36  ;;  %v10598_v60 = vsel %vm4776_vm11, %v10595_v15, %v10597_v14  ;;  %v10599_v40 = vrot.slane %v13331_v8, 3  ;;  %v15821_v8 = vld [vmem:[#allocation3 + $0x98] sm:$0xff]  }
 0x392   : > { %8105 = vst.msk [vmem:[%s15267_s14 + $0x38] sm:$0xff] %vm619_vm9, %v8069_v24 }
 0x393   : > { %8103 = vst.msk [vmem:[%s15267_s14 + $0x28] sm:$0xff] %vm619_vm9, %v8067_v46  ;;  %v12751_v63 = vpop.f32.mrb[224].mxu0  ;;  %v12717_v18 = vpop.f32.mrb[192].mxu1  ;;  %v7537_v46 = vld [vmem:[%s15267_s14 + $0xb0] sm:$0xff] }
 0x394   : > { %v7565_v2 = vadd.f32 %v12717_v18, %v7529_v53  ;;  %v7915_v61 = vpop.f32.mrb[225].mxu0  ;;  %v7420_v43 = vpop.f32.mrb[193].mxu1  ;;  %v7535_v53 = vld [vmem:[%s15267_s14 + $0xa0] sm:$0xff] }
 0x395   : > { %v8036_v31 = vld [vmem:[%s15267_s14 + $0x50] sm:$0xff]  ;;  %v7563_v50 = vadd.f32 %v7527_v3, %v7420_v43  ;;  %v12752_v62 = vpop.f32.mrb[226].mxu0  ;;  %v12718_v52 = vpop.f32.mrb[194].mxu1 }
 0x396   : > { %v8072_v25 = vadd.f32 %v12751_v63, %v8036_v31  ;;  %7601 = vst.msk [vmem:[%s15267_s14 + $0x70] sm:$0xff] %vm619_vm9, %v7565_v2  ;;  %v8034_v51 = vld [vmem:[%s15267_s14 + $0x40] sm:$0xff]  ;;  %v7566_v5 = vadd.f32 %v12718_v52, %v7530_v37  ;;  %v7918_v33 = vpop.f32.mrb[227].mxu0  ;;  %v7423_v17 = vpop.f32.mrb[195].mxu1  ;;  %v10601_v2 = vrot.slane %v15759_v34, 3  ;;  %v7538_v31 = vld [vmem:[%s15267_s14 + $0xb8] sm:$0xff] }
 0x397   : > { %v8070_v20 = vadd.f32 %v8034_v51, %v7915_v61  ;;  %7599 = vst.msk [vmem:[%s15267_s14 + $0x60] sm:$0xff] %vm619_vm9, %v7563_v50  ;;  %v8037_v22 = vld [vmem:[%s15267_s14 + $0x58] sm:$0xff]  ;;  %v7564_v10 = vadd.f32 %v7528_v55, %v7423_v17  ;;  %v7536_v51 = vld [vmem:[%s15267_s14 + $0xa8] sm:$0xff] }
 0x398   : > { %8108 = vst.msk [vmem:[%s15267_s14 + $0x50] sm:$0xff] %vm619_vm9, %v8072_v25  ;;  %v8073_v45 = vadd.f32 %v12752_v62, %v8037_v22  ;;  %7602 = vst.msk [vmem:[%s15267_s14 + $0x78] sm:$0xff] %vm619_vm9, %v7566_v5  ;;  %v8035_v13 = vld [vmem:[%s15267_s14 + $0x48] sm:$0xff]  ;;  %12944 = vmatmul.mubr.msk.bf16.gmra.mrb[44].mxu1 %vm619_vm9, %v10592_v11  ;;  %v10600_v5 = vsel %vm4776_vm11, %v10597_v14, %v10599_v40  ;;  %v13333_v11 = vld [vmem:[#allocation3 + $0x80] sm:$0xff]  }
 0x399   : > { %8106 = vst.msk [vmem:[%s15267_s14 + $0x40] sm:$0xff] %vm619_vm9, %v8070_v20  ;;  %v8071_v30 = vadd.f32 %v8035_v13, %v7918_v33  ;;  %7600 = vst.msk [vmem:[%s15267_s14 + $0x68] sm:$0xff] %vm619_vm9, %v7564_v10  ;;  %12947 = vmatprep.mubr.msk.bf16.mxu1 %vm619_vm9, %v10594_v21  ;;  %v10602_v10 = vsel %vm4776_vm11, %v10599_v40, %v10601_v2  ;;  %v10603_v13 = vrot.slane %v13333_v11, 3 }
 0x39a   : > { %8109 = vst.msk [vmem:[%s15267_s14 + $0x58] sm:$0xff] %vm619_vm9, %v8073_v45 }
 0x39b   : > { %8107 = vst.msk [vmem:[%s15267_s14 + $0x48] sm:$0xff] %vm619_vm9, %v8071_v30  ;;  %v12755_v38 = vpop.f32.mrb[228].mxu0  ;;  %v12721_v44 = vpop.f32.mrb[196].mxu1  ;;  %v7541_v30 = vld [vmem:[%s15267_s14 + $0xd0] sm:$0xff] }
 0x39c   : > { %v7569_v23 = vadd.f32 %v12721_v44, %v7533_v27  ;;  %v7931_v32 = vpop.f32.mrb[229].mxu0  ;;  %v7436_v29 = vpop.f32.mrb[197].mxu1  ;;  %v7539_v27 = vld [vmem:[%s15267_s14 + $0xc0] sm:$0xff] }
 0x39d   : > { %v8040_v0 = vld [vmem:[%s15267_s14 + $0x70] sm:$0xff]  ;;  %v7567_v28 = vadd.f32 %v7531_v26, %v7436_v29  ;;  %v12756_v48 = vpop.f32.mrb[230].mxu0  ;;  %v12722_v12 = vpop.f32.mrb[198].mxu1 }
 0x39e   : > { %v8076_v4 = vadd.f32 %v12755_v38, %v8040_v0  ;;  %7605 = vst.msk [vmem:[%s15267_s14 + $0x90] sm:$0xff] %vm619_vm9, %v7569_v23  ;;  %v8038_v19 = vld [vmem:[%s15267_s14 + $0x60] sm:$0xff]  ;;  %v7570_v1 = vadd.f32 %v12722_v12, %v7534_v47  ;;  %v7934_v56 = vpop.f32.mrb[231].mxu0  ;;  %v7439_v42 = vpop.f32.mrb[199].mxu1  ;;  %v10605_v23 = vrot.slane %v15790_v57, 3  ;;  %v7542_v0 = vld [vmem:[%s15267_s14 + $0xd8] sm:$0xff] }
 0x39f   : > { %v8074_v16 = vadd.f32 %v8038_v19, %v7931_v32  ;;  %7603 = vst.msk [vmem:[%s15267_s14 + $0x80] sm:$0xff] %vm619_vm9, %v7567_v28  ;;  %v8041_v58 = vld [vmem:[%s15267_s14 + $0x78] sm:$0xff]  ;;  %v7568_v7 = vadd.f32 %v7532_v41, %v7439_v42  ;;  %v7540_v19 = vld [vmem:[%s15267_s14 + $0xc8] sm:$0xff]  ;;  %v7549_v57 = vld [vmem:[%s15267_s14 + $0x110] sm:$0xff] }
 0x3a0   : > { %8112 = vst.msk [vmem:[%s15267_s14 + $0x70] sm:$0xff] %vm619_vm9, %v8076_v4  ;;  %v8077_v35 = vadd.f32 %v12756_v48, %v8041_v58  ;;  %7606 = vst.msk [vmem:[%s15267_s14 + $0x98] sm:$0xff] %vm619_vm9, %v7570_v1  ;;  %v8039_v49 = vld [vmem:[%s15267_s14 + $0x68] sm:$0xff]  ;;  %12948 = vmatmul.mubr.msk.bf16.gmra.mrb[48].mxu1 %vm619_vm9, %v10596_v9  ;;  %v10604_v1 = vsel %vm4776_vm11, %v10601_v2, %v10603_v13  ;;  %v13335_v9 = vld [vmem:[#allocation3 + $0x90] sm:$0xff]  }
 0x3a1   : > { %8110 = vst.msk [vmem:[%s15267_s14 + $0x60] sm:$0xff] %vm619_vm9, %v8074_v16  ;;  %v8075_v24 = vadd.f32 %v8039_v49, %v7934_v56  ;;  %7604 = vst.msk [vmem:[%s15267_s14 + $0x88] sm:$0xff] %vm619_vm9, %v7568_v7  ;;  %12951 = vmatprep.mubr.msk.bf16.mxu1 %vm619_vm9, %v10598_v60  ;;  %v10606_v7 = vsel %vm4776_vm11, %v10603_v13, %v10605_v23  ;;  %v10607_v49 = vrot.slane %v13335_v9, 3 }
 0x3a2   : > { %8113 = vst.msk [vmem:[%s15267_s14 + $0x78] sm:$0xff] %vm619_vm9, %v8077_v35 }
 0x3a3   : > { %8111 = vst.msk [vmem:[%s15267_s14 + $0x68] sm:$0xff] %vm619_vm9, %v8075_v24  ;;  %v12759_v36 = vpop.f32.mrb[232].mxu0  ;;  %v12725_v59 = vpop.f32.mrb[200].mxu1  ;;  %v7545_v24 = vld [vmem:[%s15267_s14 + $0xf0] sm:$0xff] }
 0x3a4   : > { %v7573_v6 = vadd.f32 %v12725_v59, %v7537_v46  ;;  %v7947_v63 = vpop.f32.mrb[233].mxu0  ;;  %v7452_v18 = vpop.f32.mrb[201].mxu1  ;;  %v7543_v46 = vld [vmem:[%s15267_s14 + $0xe0] sm:$0xff] }
 0x3a5   : > { %v8044_v61 = vld [vmem:[%s15267_s14 + $0x90] sm:$0xff]  ;;  %v7571_v43 = vadd.f32 %v7535_v53, %v7452_v18  ;;  %v12760_v3 = vpop.f32.mrb[234].mxu0  ;;  %v12726_v39 = vpop.f32.mrb[202].mxu1 }
 0x3a6   : > { %v8080_v50 = vadd.f32 %v12759_v36, %v8044_v61  ;;  %7609 = vst.msk [vmem:[%s15267_s14 + $0xb0] sm:$0xff] %vm619_vm9, %v7573_v6  ;;  %v8042_v62 = vld [vmem:[%s15267_s14 + $0x80] sm:$0xff]  ;;  %v7574_v52 = vadd.f32 %v12726_v39, %v7538_v31  ;;  %v7950_v37 = vpop.f32.mrb[235].mxu0  ;;  %v7455_v25 = vpop.f32.mrb[203].mxu1  ;;  %v10609_v6 = vrot.slane %v15821_v8, 3  ;;  %v7546_v61 = vld [vmem:[%s15267_s14 + $0xf8] sm:$0xff] }
 0x3a7   : > { %v8078_v33 = vadd.f32 %v8042_v62, %v7947_v63  ;;  %7607 = vst.msk [vmem:[%s15267_s14 + $0xa0] sm:$0xff] %vm619_vm9, %v7571_v43  ;;  %v8045_v17 = vld [vmem:[%s15267_s14 + $0x98] sm:$0xff]  ;;  %v7572_v55 = vadd.f32 %v7536_v51, %v7455_v25  ;;  %v7544_v62 = vld [vmem:[%s15267_s14 + $0xe8] sm:$0xff] }
 0x3a8   : > { %8116 = vst.msk [vmem:[%s15267_s14 + $0x90] sm:$0xff] %vm619_vm9, %v8080_v50  ;;  %v8081_v20 = vadd.f32 %v12760_v3, %v8045_v17  ;;  %7610 = vst.msk [vmem:[%s15267_s14 + $0xb8] sm:$0xff] %vm619_vm9, %v7574_v52  ;;  %v8043_v22 = vld [vmem:[%s15267_s14 + $0x88] sm:$0xff]  ;;  %12952 = vmatmul.mubr.msk.bf16.gmra.mrb[52].mxu1 %vm619_vm9, %v10600_v5  ;;  %v10608_v52 = vsel %vm4776_vm11, %v10605_v23, %v10607_v49  ;;  %v13337_v5 = vld [vmem:[#allocation3 + $0xa0] ss:$0 sps:$4 sm:$0x77]  }
 0x3a9   : > { %8114 = vst.msk [vmem:[%s15267_s14 + $0x80] sm:$0xff] %vm619_vm9, %v8078_v33  ;;  %v8079_v45 = vadd.f32 %v8043_v22, %v7950_v37  ;;  %7608 = vst.msk [vmem:[%s15267_s14 + $0xa8] sm:$0xff] %vm619_vm9, %v7572_v55  ;;  %12955 = vmatprep.mubr.msk.bf16.mxu1 %vm619_vm9, %v10602_v10  ;;  %v10610_v55 = vsel %vm4776_vm11, %v10607_v49, %v10609_v6 }
 0x3aa   : > { %8117 = vst.msk [vmem:[%s15267_s14 + $0x98] sm:$0xff] %vm619_vm9, %v8081_v20  ;;  %v10611_v20 = vrot.slane %v13337_v5, 3 }
 0x3ab   : > { %8115 = vst.msk [vmem:[%s15267_s14 + $0x88] sm:$0xff] %vm619_vm9, %v8079_v45  ;;  %v12763_v21 = vpop.f32.mrb[236].mxu0  ;;  %v12729_v54 = vpop.f32.mrb[204].mxu1 }
 0x3ac   : > { %v7577_v15 = vadd.f32 %v12729_v54, %v7541_v30  ;;  %v7963_v38 = vpop.f32.mrb[237].mxu0  ;;  %v7468_v44 = vpop.f32.mrb[205].mxu1  ;;  %v7547_v54 = vld [vmem:[%s15267_s14 + $0x100] sm:$0xff] }
 0x3ad   : > { %v8048_v32 = vld [vmem:[%s15267_s14 + $0xb0] sm:$0xff]  ;;  %v7575_v29 = vadd.f32 %v7539_v27, %v7468_v44  ;;  %v12764_v26 = vpop.f32.mrb[238].mxu0  ;;  %v12730_v14 = vpop.f32.mrb[206].mxu1  ;;  %v7550_v27 = vld [vmem:[%s15267_s14 + $0x118] sm:$0xff] }
 0x3ae   : > { %v8084_v28 = vadd.f32 %v12763_v21, %v8048_v32  ;;  %7613 = vst.msk [vmem:[%s15267_s14 + $0xd0] sm:$0xff] %vm619_vm9, %v7577_v15  ;;  %v8046_v48 = vld [vmem:[%s15267_s14 + $0xa0] sm:$0xff]  ;;  %v7578_v12 = vadd.f32 %v12730_v14, %v7542_v0  ;;  %v7966_v47 = vpop.f32.mrb[239].mxu0  ;;  %v7471_v4 = vpop.f32.mrb[207].mxu1  ;;  %v7548_v0 = vld [vmem:[%s15267_s14 + $0x108] sm:$0xff] }
 0x3af   : > { %v8082_v56 = vadd.f32 %v8046_v48, %v7963_v38  ;;  %7611 = vst.msk [vmem:[%s15267_s14 + $0xc0] sm:$0xff] %vm619_vm9, %v7575_v29  ;;  %v8049_v42 = vld [vmem:[%s15267_s14 + $0xb8] sm:$0xff]  ;;  %v7576_v41 = vadd.f32 %v7540_v19, %v7471_v4 }
 0x3b0   : > { %8120 = vst.msk [vmem:[%s15267_s14 + $0xb0] sm:$0xff] %vm619_vm9, %v8084_v28  ;;  %v8085_v16 = vadd.f32 %v12764_v26, %v8049_v42  ;;  %7614 = vst.msk [vmem:[%s15267_s14 + $0xd8] sm:$0xff] %vm619_vm9, %v7578_v12  ;;  %v8047_v58 = vld [vmem:[%s15267_s14 + $0xa8] sm:$0xff]  ;;  %12956 = vmatmul.mubr.msk.bf16.gmra.mrb[56].mxu1 %vm619_vm9, %v10604_v1  ;;  %v10612_v28 = vsel %vm4776_vm11, %v10609_v6, %v10611_v20 }
 0x3b1   : > { %8118 = vst.msk [vmem:[%s15267_s14 + $0xa0] sm:$0xff] %vm619_vm9, %v8082_v56  ;;  %v8083_v35 = vadd.f32 %v8047_v58, %v7966_v47  ;;  %7612 = vst.msk [vmem:[%s15267_s14 + $0xc8] sm:$0xff] %vm619_vm9, %v7576_v41  ;;  %12959 = vmatprep.mubr.msk.bf16.mxu1 %vm619_vm9, %v10606_v7  ;;  %v8672_v41 = vld [vmem:[%s15267_s14 + $0x10] sm:$0xff]  ;;  %v8670_v7 = vld [vmem:[%s15267_s14] sm:$0xff] }
 0x3b2   : > { %8121 = vst.msk [vmem:[%s15267_s14 + $0xb8] sm:$0xff] %vm619_vm9, %v8085_v16  ;;  %v8671_v6 = vld [vmem:[%s15267_s14 + $0x8] sm:$0xff] }
 0x3b3   : > { %8119 = vst.msk [vmem:[%s15267_s14 + $0xa8] sm:$0xff] %vm619_vm9, %v8083_v35  ;;  %v12767_v60 = vpop.f32.mrb[240].mxu0  ;;  %v12733_v34 = vpop.f32.mrb[208].mxu1 }
 0x3b4   : > { %v7581_v40 = vadd.f32 %v12733_v34, %v7545_v24  ;;  %v7979_v36 = vpop.f32.mrb[241].mxu0  ;;  %v7484_v59 = vpop.f32.mrb[209].mxu1  ;;  %v8673_v34 = vld [vmem:[%s15267_s14 + $0x18] sm:$0xff] }
 0x3b5   : > { %v8052_v63 = vld [vmem:[%s15267_s14 + $0xd0] sm:$0xff]  ;;  %v7579_v18 = vadd.f32 %v7543_v46, %v7484_v59  ;;  %v12768_v53 = vpop.f32.mrb[242].mxu0  ;;  %v12734_v2 = vpop.f32.mrb[210].mxu1 }
 0x3b6   : > { %v8088_v43 = vadd.f32 %v12767_v60, %v8052_v63  ;;  %7617 = vst.msk [vmem:[%s15267_s14 + $0xf0] sm:$0xff] %vm619_vm9, %v7581_v40  ;;  %v8050_v3 = vld [vmem:[%s15267_s14 + $0xc0] sm:$0xff]  ;;  %v7582_v39 = vadd.f32 %v12734_v2, %v7546_v61  ;;  %v7982_v31 = vpop.f32.mrb[243].mxu0  ;;  %v7487_v50 = vpop.f32.mrb[211].mxu1 }
 0x3b7   : > { %v8086_v37 = vadd.f32 %v8050_v3, %v7979_v36  ;;  %7615 = vst.msk [vmem:[%s15267_s14 + $0xe0] sm:$0xff] %vm619_vm9, %v7579_v18  ;;  %v8053_v25 = vld [vmem:[%s15267_s14 + $0xd8] sm:$0xff]  ;;  %v7580_v51 = vadd.f32 %v7544_v62, %v7487_v50 }
 0x3b8   : > { %8124 = vst.msk [vmem:[%s15267_s14 + $0xd0] sm:$0xff] %vm619_vm9, %v8088_v43  ;;  %v8089_v33 = vadd.f32 %v12768_v53, %v8053_v25  ;;  %7618 = vst.msk [vmem:[%s15267_s14 + $0xf8] sm:$0xff] %vm619_vm9, %v7582_v39  ;;  %v8051_v17 = vld [vmem:[%s15267_s14 + $0xc8] sm:$0xff]  ;;  %12960 = vmatmul.mubr.msk.bf16.gmra.mrb[60].mxu1 %vm619_vm9, %v10608_v52 }
 0x3b9   : > { %8122 = vst.msk [vmem:[%s15267_s14 + $0xc0] sm:$0xff] %vm619_vm9, %v8086_v37  ;;  %v8087_v11 = vadd.f32 %v8051_v17, %v7982_v31  ;;  %7616 = vst.msk [vmem:[%s15267_s14 + $0xe8] sm:$0xff] %vm619_vm9, %v7580_v51  ;;  %12963 = vmatprep.mubr.msk.bf16.mxu1 %vm619_vm9, %v10610_v55  ;;  %v8676_v31 = vld [vmem:[%s15267_s14 + $0x30] sm:$0xff]  ;;  %v8674_v37 = vld [vmem:[%s15267_s14 + $0x20] sm:$0xff] }
 0x3ba   : > { %8125 = vst.msk [vmem:[%s15267_s14 + $0xd8] sm:$0xff] %vm619_vm9, %v8089_v33  ;;  %v8677_v17 = vld [vmem:[%s15267_s14 + $0x38] sm:$0xff] }
 0x3bb   : > { %8123 = vst.msk [vmem:[%s15267_s14 + $0xc8] sm:$0xff] %vm619_vm9, %v8087_v11  ;;  %v12771_v22 = vpop.f32.mrb[244].mxu0  ;;  %v12737_v10 = vpop.f32.mrb[212].mxu1 }
 0x3bc   : > { %v7585_v45 = vadd.f32 %v12737_v10, %v7549_v57  ;;  %v7995_v13 = vpop.f32.mrb[245].mxu0  ;;  %v7500_v21 = vpop.f32.mrb[213].mxu1  ;;  %v8675_v57 = vld [vmem:[%s15267_s14 + $0x28] sm:$0xff] }
 0x3bd   : > { %v8056_v30 = vld [vmem:[%s15267_s14 + $0xf0] sm:$0xff]  ;;  %v7583_v15 = vadd.f32 %v7547_v54, %v7500_v21  ;;  %v12772_v38 = vpop.f32.mrb[246].mxu0  ;;  %v12738_v44 = vpop.f32.mrb[214].mxu1 }
 0x3be   : > { %v8092_v23 = vadd.f32 %v12771_v22, %v8056_v30  ;;  %7621 = vst.msk [vmem:[%s15267_s14 + $0x110] sm:$0xff] %vm619_vm9, %v7585_v45  ;;  %v8054_v32 = vld [vmem:[%s15267_s14 + $0xe0] sm:$0xff]  ;;  %v7586_v29 = vadd.f32 %v12738_v44, %v7550_v27  ;;  %v7998_v26 = vpop.f32.mrb[247].mxu0  ;;  %v7503_v14 = vpop.f32.mrb[215].mxu1  ;;  %v8680_v27 = vld [vmem:[%s15267_s14 + $0x50] sm:$0xff] }
 0x3bf   : > { %v8090_v48 = vadd.f32 %v8054_v32, %v7995_v13  ;;  %7619 = vst.msk [vmem:[%s15267_s14 + $0x100] sm:$0xff] %vm619_vm9, %v7583_v15  ;;  %v8057_v12 = vld [vmem:[%s15267_s14 + $0xf8] sm:$0xff]  ;;  %v7584_v47 = vadd.f32 %v7548_v0, %v7503_v14 }
 0x3c0   : > { %8128 = vst.msk [vmem:[%s15267_s14 + $0xf0] sm:$0xff] %vm619_vm9, %v8092_v23  ;;  %v8093_v4 = vadd.f32 %v12772_v38, %v8057_v12  ;;  %7622 = vst.msk [vmem:[%s15267_s14 + $0x118] sm:$0xff] %vm619_vm9, %v7586_v29  ;;  %v8055_v19 = vld [vmem:[%s15267_s14 + $0xe8] sm:$0xff]  ;;  %12964 = vmatmul.mubr.msk.bf16.gmra.mrb[64].mxu1 %vm619_vm9, %v10612_v28  ;;  %v8681_v12 = vld [vmem:[%s15267_s14 + $0x58] sm:$0xff] }
 0x3c1   : > { %8126 = vst.msk [vmem:[%s15267_s14 + $0xe0] sm:$0xff] %vm619_vm9, %v8090_v48  ;;  %v8091_v1 = vadd.f32 %v8055_v19, %v7998_v26  ;;  %7620 = vst.msk [vmem:[%s15267_s14 + $0x108] sm:$0xff] %vm619_vm9, %v7584_v47  ;;  %v8678_v26 = vld [vmem:[%s15267_s14 + $0x40] sm:$0xff] }
 0x3c2   : > { %8129 = vst.msk [vmem:[%s15267_s14 + $0xf8] sm:$0xff] %vm619_vm9, %v8093_v4 }
 0x3c3   : > { %8127 = vst.msk [vmem:[%s15267_s14 + $0xe8] sm:$0xff] %vm619_vm9, %v8091_v1  ;;  %v12775_v56 = vpop.f32.mrb[248].mxu0  ;;  %v12781_v42 = vpop.f32.mrb[216].mxu1 }
 0x3c4   : > { %v8011_v9 = vpop.f32.mrb[249].mxu0  ;;  %v8708_v16 = vadd.f32 %v12781_v42, %v8672_v41  ;;  %v8527_v58 = vpop.f32.mrb[217].mxu1  ;;  %v8679_v42 = vld [vmem:[%s15267_s14 + $0x48] sm:$0xff] }
 0x3c5   : > { %v8060_v8 = vld [vmem:[%s15267_s14 + $0x110] sm:$0xff]  ;;  %v12776_v35 = vpop.f32.mrb[250].mxu0  ;;  %v8706_v49 = vadd.f32 %v8670_v7, %v8527_v58  ;;  %v12782_v60 = vpop.f32.mrb[218].mxu1 }
 0x3c6   : > { %v8096_v24 = vadd.f32 %v12775_v56, %v8060_v8  ;;  %v8058_v40 = vld [vmem:[%s15267_s14 + $0x100] sm:$0xff]  ;;  %8744 = vst.msk [vmem:[%s15267_s14 + $0x10] sm:$0xff] %vm619_vm9, %v8708_v16  ;;  %v8014_v36 = vpop.f32.mrb[251].mxu0  ;;  %v8709_v59 = vadd.f32 %v12782_v60, %v8673_v34  ;;  %v8530_v46 = vpop.f32.mrb[219].mxu1  ;;  %v8684_v60 = vld [vmem:[%s15267_s14 + $0x70] sm:$0xff] }
 0x3c7   : > { %v8094_v63 = vadd.f32 %v8058_v40, %v8011_v9  ;;  %v8061_v18 = vld [vmem:[%s15267_s14 + $0x118] sm:$0xff]  ;;  %8742 = vst.msk [vmem:[%s15267_s14] sm:$0xff] %vm619_vm9, %v8706_v49  ;;  %v8707_v53 = vadd.f32 %v8671_v6, %v8530_v46 }
 0x3c8   : > { %8132 = vst.msk [vmem:[%s15267_s14 + $0x110] sm:$0xff] %vm619_vm9, %v8096_v24  ;;  %v8097_v2 = vadd.f32 %v12776_v35, %v8061_v18  ;;  %v8059_v61 = vld [vmem:[%s15267_s14 + $0x108] sm:$0xff]  ;;  %8745 = vst.msk [vmem:[%s15267_s14 + $0x18] sm:$0xff] %vm619_vm9, %v8709_v59  ;;  %v8685_v18 = vld [vmem:[%s15267_s14 + $0x78] sm:$0xff] }
 0x3c9   : > { %8130 = vst.msk [vmem:[%s15267_s14 + $0x100] sm:$0xff] %vm619_vm9, %v8094_v63  ;;  %v8095_v43 = vadd.f32 %v8059_v61, %v8014_v36  ;;  %8743 = vst.msk [vmem:[%s15267_s14 + $0x8] sm:$0xff] %vm619_vm9, %v8707_v53  ;;  %v8682_v36 = vld [vmem:[%s15267_s14 + $0x60] sm:$0xff] }
 0x3ca   : > { %8133 = vst.msk [vmem:[%s15267_s14 + $0x118] sm:$0xff] %vm619_vm9, %v8097_v2 }
 0x3cb   : > { %8131 = vst.msk [vmem:[%s15267_s14 + $0x108] sm:$0xff] %vm619_vm9, %v8095_v43  ;;  %v12819_v3 = vpop.f32.mrb[252].mxu0  ;;  %v12785_v39 = vpop.f32.mrb[220].mxu1 }
 0x3cc   : > { %v8712_v50 = vadd.f32 %v12785_v39, %v8676_v31  ;;  %v9038_v62 = vpop.f32.mrb[253].mxu0  ;;  %v8543_v52 = vpop.f32.mrb[221].mxu1  ;;  %v8683_v39 = vld [vmem:[%s15267_s14 + $0x68] sm:$0xff] }
 0x3cd   : > { %v9183_v25 = vld [vmem:[%s15267_s14 + $0x10] sm:$0xff]  ;;  %v8710_v51 = vadd.f32 %v8674_v37, %v8543_v52  ;;  %v12820_v5 = vpop.f32.mrb[254].mxu0  ;;  %v12786_v33 = vpop.f32.mrb[222].mxu1 }
 0x3ce   : > { %v9219_v55 = vadd.f32 %v12819_v3, %v9183_v25  ;;  %8748 = vst.msk [vmem:[%s15267_s14 + $0x30] sm:$0xff] %vm619_vm9, %v8712_v50  ;;  %v9181_v11 = vld [vmem:[%s15267_s14] sm:$0xff]  ;;  %v8713_v20 = vadd.f32 %v12786_v33, %v8677_v17  ;;  %v9041_v22 = vpop.f32.mrb[255].mxu0  ;;  %v8546_v10 = vpop.f32.mrb[223].mxu1  ;;  %v8688_v33 = vld [vmem:[%s15267_s14 + $0x90] sm:$0xff] }
 0x3cf   : > { %v9217_v45 = vadd.f32 %v9181_v11, %v9038_v62  ;;  %8746 = vst.msk [vmem:[%s15267_s14 + $0x20] sm:$0xff] %vm619_vm9, %v8710_v51  ;;  %v9184_v13 = vld [vmem:[%s15267_s14 + $0x18] sm:$0xff]  ;;  %v8711_v21 = vadd.f32 %v8675_v57, %v8546_v10 }
 0x3d0   : > { %9255 = vst.msk [vmem:[%s15267_s14 + $0x10] sm:$0xff] %vm619_vm9, %v9219_v55  ;;  %v9220_v54 = vadd.f32 %v12820_v5, %v9184_v13  ;;  %8749 = vst.msk [vmem:[%s15267_s14 + $0x38] sm:$0xff] %vm619_vm9, %v8713_v20  ;;  %v9182_v30 = vld [vmem:[%s15267_s14 + $0x8] sm:$0xff]  ;;  %v8686_v20 = vld [vmem:[%s15267_s14 + $0x80] sm:$0xff] }
 0x3d1   : > { %9253 = vst.msk [vmem:[%s15267_s14] sm:$0xff] %vm619_vm9, %v9217_v45  ;;  %v9218_v15 = vadd.f32 %v9182_v30, %v9041_v22  ;;  %8747 = vst.msk [vmem:[%s15267_s14 + $0x28] sm:$0xff] %vm619_vm9, %v8711_v21  ;;  %v8689_v13 = vld [vmem:[%s15267_s14 + $0x98] sm:$0xff] }
 0x3d2   : > { %9256 = vst.msk [vmem:[%s15267_s14 + $0x18] sm:$0xff] %vm619_vm9, %v9220_v54 }
 0x3d3   : > { %9254 = vst.msk [vmem:[%s15267_s14 + $0x8] sm:$0xff] %vm619_vm9, %v9218_v15  ;;  %v12823_v38 = vpop.f32.mrb[0].mxu0  ;;  %v12789_v44 = vpop.f32.mrb[224].mxu1 }
 0x3d4   : > { %v8716_v23 = vadd.f32 %v12789_v44, %v8680_v27  ;;  %v9054_v32 = vpop.f32.mrb[1].mxu0  ;;  %v8559_v29 = vpop.f32.mrb[225].mxu1  ;;  %v8687_v44 = vld [vmem:[%s15267_s14 + $0x88] sm:$0xff] }
 0x3d5   : > { %v9187_v14 = vld [vmem:[%s15267_s14 + $0x30] sm:$0xff]  ;;  %v8714_v0 = vadd.f32 %v8678_v26, %v8559_v29  ;;  %v12824_v28 = vpop.f32.mrb[2].mxu0  ;;  %v12790_v48 = vpop.f32.mrb[226].mxu1 }
 0x3d6   : > { %v9223_v47 = vadd.f32 %v12823_v38, %v9187_v14  ;;  %8752 = vst.msk [vmem:[%s15267_s14 + $0x50] sm:$0xff] %vm619_vm9, %v8716_v23  ;;  %v9185_v4 = vld [vmem:[%s15267_s14 + $0x20] sm:$0xff]  ;;  %v8717_v19 = vadd.f32 %v12790_v48, %v8681_v12  ;;  %v9057_v1 = vpop.f32.mrb[3].mxu0  ;;  %v8562_v56 = vpop.f32.mrb[227].mxu1  ;;  %v8692_v48 = vld [vmem:[%s15267_s14 + $0xb0] sm:$0xff] }
 0x3d7   : > { %v9221_v41 = vadd.f32 %v9185_v4, %v9054_v32  ;;  %8750 = vst.msk [vmem:[%s15267_s14 + $0x40] sm:$0xff] %vm619_vm9, %v8714_v0  ;;  %v9188_v9 = vld [vmem:[%s15267_s14 + $0x38] sm:$0xff]  ;;  %v8715_v16 = vadd.f32 %v8679_v42, %v8562_v56 }
 0x3d8   : > { %9259 = vst.msk [vmem:[%s15267_s14 + $0x30] sm:$0xff] %vm619_vm9, %v9223_v47  ;;  %v9224_v58 = vadd.f32 %v12824_v28, %v9188_v9  ;;  %8753 = vst.msk [vmem:[%s15267_s14 + $0x58] sm:$0xff] %vm619_vm9, %v8717_v19  ;;  %v9186_v7 = vld [vmem:[%s15267_s14 + $0x28] sm:$0xff]  ;;  %v8690_v19 = vld [vmem:[%s15267_s14 + $0xa0] sm:$0xff] }
 0x3d9   : > { %9257 = vst.msk [vmem:[%s15267_s14 + $0x20] sm:$0xff] %vm619_vm9, %v9221_v41  ;;  %v9222_v8 = vadd.f32 %v9186_v7, %v9057_v1  ;;  %8751 = vst.msk [vmem:[%s15267_s14 + $0x48] sm:$0xff] %vm619_vm9, %v8715_v16  ;;  %v8693_v9 = vld [vmem:[%s15267_s14 + $0xb8] sm:$0xff] }
 0x3da   : > { %9260 = vst.msk [vmem:[%s15267_s14 + $0x38] sm:$0xff] %vm619_vm9, %v9224_v58 }
 0x3db   : > { %9258 = vst.msk [vmem:[%s15267_s14 + $0x28] sm:$0xff] %vm619_vm9, %v9222_v8  ;;  %v12827_v35 = vpop.f32.mrb[4].mxu0  ;;  %v12793_v49 = vpop.f32.mrb[228].mxu1 }
 0x3dc   : > { %v8720_v34 = vadd.f32 %v12793_v49, %v8684_v60  ;;  %v9070_v24 = vpop.f32.mrb[5].mxu0  ;;  %v8575_v40 = vpop.f32.mrb[229].mxu1  ;;  %v8691_v49 = vld [vmem:[%s15267_s14 + $0xa8] sm:$0xff] }
 0x3dd   : > { %v9191_v59 = vld [vmem:[%s15267_s14 + $0x50] sm:$0xff]  ;;  %v8718_v46 = vadd.f32 %v8682_v36, %v8575_v40  ;;  %v12828_v6 = vpop.f32.mrb[6].mxu0  ;;  %v12794_v63 = vpop.f32.mrb[230].mxu1 }
 0x3de   : > { %v9227_v53 = vadd.f32 %v12827_v35, %v9191_v59  ;;  %8756 = vst.msk [vmem:[%s15267_s14 + $0x70] sm:$0xff] %vm619_vm9, %v8720_v34  ;;  %v9189_v2 = vld [vmem:[%s15267_s14 + $0x40] sm:$0xff]  ;;  %v8721_v61 = vadd.f32 %v12794_v63, %v8685_v18  ;;  %v9073_v43 = vpop.f32.mrb[7].mxu0  ;;  %v8578_v3 = vpop.f32.mrb[231].mxu1  ;;  %v8696_v63 = vld [vmem:[%s15267_s14 + $0xd0] sm:$0xff] }
 0x3df   : > { %v9225_v31 = vadd.f32 %v9189_v2, %v9070_v24  ;;  %8754 = vst.msk [vmem:[%s15267_s14 + $0x60] sm:$0xff] %vm619_vm9, %v8718_v46  ;;  %v9192_v50 = vld [vmem:[%s15267_s14 + $0x58] sm:$0xff]  ;;  %v8719_v62 = vadd.f32 %v8683_v39, %v8578_v3 }
 0x3e0   : > { %9263 = vst.msk [vmem:[%s15267_s14 + $0x50] sm:$0xff] %vm619_vm9, %v9227_v53  ;;  %v9228_v52 = vadd.f32 %v12828_v6, %v9192_v50  ;;  %8757 = vst.msk [vmem:[%s15267_s14 + $0x78] sm:$0xff] %vm619_vm9, %v8721_v61  ;;  %v9190_v37 = vld [vmem:[%s15267_s14 + $0x48] sm:$0xff]  ;;  %v8694_v61 = vld [vmem:[%s15267_s14 + $0xc0] sm:$0xff] }
 0x3e1   : > { %9261 = vst.msk [vmem:[%s15267_s14 + $0x40] sm:$0xff] %vm619_vm9, %v9225_v31  ;;  %v9226_v25 = vadd.f32 %v9190_v37, %v9073_v43  ;;  %8755 = vst.msk [vmem:[%s15267_s14 + $0x68] sm:$0xff] %vm619_vm9, %v8719_v62  ;;  %v8697_v50 = vld [vmem:[%s15267_s14 + $0xd8] sm:$0xff] }
 0x3e2   : > { %9264 = vst.msk [vmem:[%s15267_s14 + $0x58] sm:$0xff] %vm619_vm9, %v9228_v52 }
 0x3e3   : > { %9262 = vst.msk [vmem:[%s15267_s14 + $0x48] sm:$0xff] %vm619_vm9, %v9226_v25  ;;  %v12831_v51 = vpop.f32.mrb[8].mxu0  ;;  %v12797_v5 = vpop.f32.mrb[232].mxu1 }
 0x3e4   : > { %v8724_v17 = vadd.f32 %v12797_v5, %v8688_v33  ;;  %v9086_v55 = vpop.f32.mrb[9].mxu0  ;;  %v8591_v11 = vpop.f32.mrb[233].mxu1  ;;  %v8695_v5 = vld [vmem:[%s15267_s14 + $0xc8] sm:$0xff] }
 0x3e5   : > { %v9195_v22 = vld [vmem:[%s15267_s14 + $0x70] sm:$0xff]  ;;  %v8722_v10 = vadd.f32 %v8686_v20, %v8591_v11  ;;  %v12832_v57 = vpop.f32.mrb[10].mxu0  ;;  %v12798_v45 = vpop.f32.mrb[234].mxu1 }
 0x3e6   : > { %v9231_v21 = vadd.f32 %v12831_v51, %v9195_v22  ;;  %8760 = vst.msk [vmem:[%s15267_s14 + $0x90] sm:$0xff] %vm619_vm9, %v8724_v17  ;;  %v9193_v54 = vld [vmem:[%s15267_s14 + $0x60] sm:$0xff]  ;;  %v8725_v30 = vadd.f32 %v12798_v45, %v8689_v13  ;;  %v9089_v15 = vpop.f32.mrb[11].mxu0  ;;  %v8594_v38 = vpop.f32.mrb[235].mxu1  ;;  %v8700_v45 = vld [vmem:[%s15267_s14 + $0xf0] sm:$0xff] }
 0x3e7   : > { %v9229_v27 = vadd.f32 %v9193_v54, %v9086_v55  ;;  %8758 = vst.msk [vmem:[%s15267_s14 + $0x80] sm:$0xff] %vm619_vm9, %v8722_v10  ;;  %v9196_v23 = vld [vmem:[%s15267_s14 + $0x78] sm:$0xff]  ;;  %v8723_v32 = vadd.f32 %v8687_v44, %v8594_v38 }
 0x3e8   : > { %9267 = vst.msk [vmem:[%s15267_s14 + $0x70] sm:$0xff] %vm619_vm9, %v9231_v21  ;;  %v9232_v29 = vadd.f32 %v12832_v57, %v9196_v23  ;;  %8761 = vst.msk [vmem:[%s15267_s14 + $0x98] sm:$0xff] %vm619_vm9, %v8725_v30  ;;  %v9194_v26 = vld [vmem:[%s15267_s14 + $0x68] sm:$0xff]  ;;  %v8698_v30 = vld [vmem:[%s15267_s14 + $0xe0] sm:$0xff] }
 0x3e9   : > { %9265 = vst.msk [vmem:[%s15267_s14 + $0x60] sm:$0xff] %vm619_vm9, %v9229_v27  ;;  %v9230_v14 = vadd.f32 %v9194_v26, %v9089_v15  ;;  %8759 = vst.msk [vmem:[%s15267_s14 + $0x88] sm:$0xff] %vm619_vm9, %v8723_v32  ;;  %v8701_v23 = vld [vmem:[%s15267_s14 + $0xf8] sm:$0xff] }
 0x3ea   : > { %9268 = vst.msk [vmem:[%s15267_s14 + $0x78] sm:$0xff] %vm619_vm9, %v9232_v29 }
 0x3eb   : > { %9266 = vst.msk [vmem:[%s15267_s14 + $0x68] sm:$0xff] %vm619_vm9, %v9230_v14  ;;  %v12835_v0 = vpop.f32.mrb[12].mxu0  ;;  %v12801_v28 = vpop.f32.mrb[236].mxu1 }
 0x3ec   : > { %v8728_v12 = vadd.f32 %v12801_v28, %v8692_v48  ;;  %v9102_v47 = vpop.f32.mrb[13].mxu0  ;;  %v8607_v4 = vpop.f32.mrb[237].mxu1  ;;  %v8699_v28 = vld [vmem:[%s15267_s14 + $0xe8] sm:$0xff] }
 0x3ed   : > { %v9199_v1 = vld [vmem:[%s15267_s14 + $0x90] sm:$0xff]  ;;  %v8726_v56 = vadd.f32 %v8690_v19, %v8607_v4  ;;  %v12836_v42 = vpop.f32.mrb[14].mxu0  ;;  %v12802_v41 = vpop.f32.mrb[238].mxu1 }
 0x3ee   : > { %v9235_v16 = vadd.f32 %v12835_v0, %v9199_v1  ;;  %8764 = vst.msk [vmem:[%s15267_s14 + $0xb0] sm:$0xff] %vm619_vm9, %v8728_v12  ;;  %v9197_v58 = vld [vmem:[%s15267_s14 + $0x80] sm:$0xff]  ;;  %v8729_v7 = vadd.f32 %v12802_v41, %v8693_v9  ;;  %v9105_v8 = vpop.f32.mrb[15].mxu0  ;;  %v8610_v35 = vpop.f32.mrb[239].mxu1  ;;  %v8704_v41 = vld [vmem:[%s15267_s14 + $0x110] sm:$0xff] }
 0x3ef   : > { %v9233_v60 = vadd.f32 %v9197_v58, %v9102_v47  ;;  %8762 = vst.msk [vmem:[%s15267_s14 + $0xa0] sm:$0xff] %vm619_vm9, %v8726_v56  ;;  %v9200_v34 = vld [vmem:[%s15267_s14 + $0x98] sm:$0xff]  ;;  %v8727_v24 = vadd.f32 %v8691_v49, %v8610_v35 }
 0x3f0   : > { %9271 = vst.msk [vmem:[%s15267_s14 + $0x90] sm:$0xff] %vm619_vm9, %v9235_v16  ;;  %v9236_v40 = vadd.f32 %v12836_v42, %v9200_v34  ;;  %8765 = vst.msk [vmem:[%s15267_s14 + $0xb8] sm:$0xff] %vm619_vm9, %v8729_v7  ;;  %v9198_v36 = vld [vmem:[%s15267_s14 + $0x88] sm:$0xff]  ;;  %v8702_v7 = vld [vmem:[%s15267_s14 + $0x100] sm:$0xff] }
 0x3f1   : > { %9269 = vst.msk [vmem:[%s15267_s14 + $0x80] sm:$0xff] %vm619_vm9, %v9233_v60  ;;  %v9234_v59 = vadd.f32 %v9198_v36, %v9105_v8  ;;  %8763 = vst.msk [vmem:[%s15267_s14 + $0xa8] sm:$0xff] %vm619_vm9, %v8727_v24  ;;  %v8705_v34 = vld [vmem:[%s15267_s14 + $0x118] sm:$0xff] }
 0x3f2   : > { %9272 = vst.msk [vmem:[%s15267_s14 + $0x98] sm:$0xff] %vm619_vm9, %v9236_v40 }
 0x3f3   : > { %9270 = vst.msk [vmem:[%s15267_s14 + $0x88] sm:$0xff] %vm619_vm9, %v9234_v59  ;;  %v12839_v46 = vpop.f32.mrb[16].mxu0  ;;  %v12805_v6 = vpop.f32.mrb[240].mxu1 }
 0x3f4   : > { %v8732_v18 = vadd.f32 %v12805_v6, %v8696_v63  ;;  %v9118_v53 = vpop.f32.mrb[17].mxu0  ;;  %v8623_v2 = vpop.f32.mrb[241].mxu1  ;;  %v8703_v6 = vld [vmem:[%s15267_s14 + $0x108] sm:$0xff] }
 0x3f5   : > { %v9203_v43 = vld [vmem:[%s15267_s14 + $0xb0] sm:$0xff]  ;;  %v8730_v3 = vadd.f32 %v8694_v61, %v8623_v2  ;;  %v12840_v39 = vpop.f32.mrb[18].mxu0  ;;  %v12806_v31 = vpop.f32.mrb[242].mxu1 }
 0x3f6   : > { %v9239_v62 = vadd.f32 %v12839_v46, %v9203_v43  ;;  %8768 = vst.msk [vmem:[%s15267_s14 + $0xd0] sm:$0xff] %vm619_vm9, %v8732_v18  ;;  %v9201_v52 = vld [vmem:[%s15267_s14 + $0xa0] sm:$0xff]  ;;  %v8733_v37 = vadd.f32 %v12806_v31, %v8697_v50  ;;  %v9121_v25 = vpop.f32.mrb[19].mxu0  ;;  %v8626_v51 = vpop.f32.mrb[243].mxu1  ;;  %v9694_v31 = vld [vmem:[%s15267_s14 + $0x10] sm:$0xff] }
 0x3f7   : > { %v9237_v33 = vadd.f32 %v9201_v52, %v9118_v53  ;;  %8766 = vst.msk [vmem:[%s15267_s14 + $0xc0] sm:$0xff] %vm619_vm9, %v8730_v3  ;;  %v9204_v17 = vld [vmem:[%s15267_s14 + $0xb8] sm:$0xff]  ;;  %v8731_v55 = vadd.f32 %v8695_v5, %v8626_v51 }
 0x3f8   : > { %9275 = vst.msk [vmem:[%s15267_s14 + $0xb0] sm:$0xff] %vm619_vm9, %v9239_v62  ;;  %v9240_v11 = vadd.f32 %v12840_v39, %v9204_v17  ;;  %8769 = vst.msk [vmem:[%s15267_s14 + $0xd8] sm:$0xff] %vm619_vm9, %v8733_v37  ;;  %v9202_v20 = vld [vmem:[%s15267_s14 + $0xa8] sm:$0xff]  ;;  %v9692_v37 = vld [vmem:[%s15267_s14] sm:$0xff] }
 0x3f9   : > { %9273 = vst.msk [vmem:[%s15267_s14 + $0xa0] sm:$0xff] %vm619_vm9, %v9237_v33  ;;  %v9238_v22 = vadd.f32 %v9202_v20, %v9121_v25  ;;  %8767 = vst.msk [vmem:[%s15267_s14 + $0xc8] sm:$0xff] %vm619_vm9, %v8731_v55  ;;  %v9695_v17 = vld [vmem:[%s15267_s14 + $0x18] sm:$0xff] }
 0x3fa   : > { %9276 = vst.msk [vmem:[%s15267_s14 + $0xb8] sm:$0xff] %vm619_vm9, %v9240_v11 }
 0x3fb   : > { %9274 = vst.msk [vmem:[%s15267_s14 + $0xa8] sm:$0xff] %vm619_vm9, %v9238_v22  ;;  %v12843_v10 = vpop.f32.mrb[20].mxu0  ;;  %v12809_v57 = vpop.f32.mrb[244].mxu1 }
 0x3fc   : > { %v8736_v13 = vadd.f32 %v12809_v57, %v8700_v45  ;;  %v9134_v21 = vpop.f32.mrb[21].mxu0  ;;  %v8639_v54 = vpop.f32.mrb[245].mxu1  ;;  %v9693_v57 = vld [vmem:[%s15267_s14 + $0x8] sm:$0xff] }
 0x3fd   : > { %v9207_v15 = vld [vmem:[%s15267_s14 + $0xd0] sm:$0xff]  ;;  %v8734_v38 = vadd.f32 %v8698_v30, %v8639_v54  ;;  %v12844_v44 = vpop.f32.mrb[22].mxu0  ;;  %v12810_v27 = vpop.f32.mrb[246].mxu1 }
 0x3fe   : > { %v9243_v32 = vadd.f32 %v12843_v10, %v9207_v15  ;;  %8772 = vst.msk [vmem:[%s15267_s14 + $0xf0] sm:$0xff] %vm619_vm9, %v8736_v13  ;;  %v9205_v29 = vld [vmem:[%s15267_s14 + $0xc0] sm:$0xff]  ;;  %v8737_v26 = vadd.f32 %v12810_v27, %v8701_v23  ;;  %v9137_v14 = vpop.f32.mrb[23].mxu0  ;;  %v8642_v0 = vpop.f32.mrb[247].mxu1  ;;  %v9698_v27 = vld [vmem:[%s15267_s14 + $0x30] sm:$0xff] }
 0x3ff   : > { %v9241_v48 = vadd.f32 %v9205_v29, %v9134_v21  ;;  %8770 = vst.msk [vmem:[%s15267_s14 + $0xe0] sm:$0xff] %vm619_vm9, %v8734_v38  ;;  %v9208_v12 = vld [vmem:[%s15267_s14 + $0xd8] sm:$0xff]  ;;  %v8735_v47 = vadd.f32 %v8699_v28, %v8642_v0 }
 0x400   : > { %9279 = vst.msk [vmem:[%s15267_s14 + $0xd0] sm:$0xff] %vm619_vm9, %v9243_v32  ;;  %v9244_v4 = vadd.f32 %v12844_v44, %v9208_v12  ;;  %8773 = vst.msk [vmem:[%s15267_s14 + $0xf8] sm:$0xff] %vm619_vm9, %v8737_v26  ;;  %v9206_v19 = vld [vmem:[%s15267_s14 + $0xc8] sm:$0xff]  ;;  %v9696_v26 = vld [vmem:[%s15267_s14 + $0x20] sm:$0xff] }
 0x401   : > { %9277 = vst.msk [vmem:[%s15267_s14 + $0xc0] sm:$0xff] %vm619_vm9, %v9241_v48  ;;  %v9242_v1 = vadd.f32 %v9206_v19, %v9137_v14  ;;  %8771 = vst.msk [vmem:[%s15267_s14 + $0xe8] sm:$0xff] %vm619_vm9, %v8735_v47  ;;  %v9699_v12 = vld [vmem:[%s15267_s14 + $0x38] sm:$0xff] }
 0x402   : > { %9280 = vst.msk [vmem:[%s15267_s14 + $0xd8] sm:$0xff] %vm619_vm9, %v9244_v4 }
 0x403   : > { %9278 = vst.msk [vmem:[%s15267_s14 + $0xc8] sm:$0xff] %vm619_vm9, %v9242_v1  ;;  %v12847_v56 = vpop.f32.mrb[24].mxu0  ;;  %v12813_v42 = vpop.f32.mrb[248].mxu1 }
 0x404   : > { %v8740_v9 = vadd.f32 %v12813_v42, %v8704_v41  ;;  %v9150_v16 = vpop.f32.mrb[25].mxu0  ;;  %v8655_v58 = vpop.f32.mrb[249].mxu1  ;;  %v9697_v42 = vld [vmem:[%s15267_s14 + $0x28] sm:$0xff] }
 0x405   : > { %v9211_v8 = vld [vmem:[%s15267_s14 + $0xf0] sm:$0xff]  ;;  %v8738_v35 = vadd.f32 %v8702_v7, %v8655_v58  ;;  %v12848_v49 = vpop.f32.mrb[26].mxu0  ;;  %v12814_v60 = vpop.f32.mrb[250].mxu1 }
 0x406   : > { %v9247_v24 = vadd.f32 %v12847_v56, %v9211_v8  ;;  %8776 = vst.msk [vmem:[%s15267_s14 + $0x110] sm:$0xff] %vm619_vm9, %v8740_v9  ;;  %v9209_v40 = vld [vmem:[%s15267_s14 + $0xe0] sm:$0xff]  ;;  %v8741_v36 = vadd.f32 %v12814_v60, %v8705_v34  ;;  %v9153_v59 = vpop.f32.mrb[27].mxu0  ;;  %v8658_v46 = vpop.f32.mrb[251].mxu1  ;;  %v9702_v60 = vld [vmem:[%s15267_s14 + $0x50] sm:$0xff] }
 0x407   : > { %v9245_v63 = vadd.f32 %v9209_v40, %v9150_v16  ;;  %8774 = vst.msk [vmem:[%s15267_s14 + $0x100] sm:$0xff] %vm619_vm9, %v8738_v35  ;;  %v9212_v18 = vld [vmem:[%s15267_s14 + $0xf8] sm:$0xff]  ;;  %v8739_v53 = vadd.f32 %v8703_v6, %v8658_v46 }
 0x408   : > { %9283 = vst.msk [vmem:[%s15267_s14 + $0xf0] sm:$0xff] %vm619_vm9, %v9247_v24  ;;  %v9248_v2 = vadd.f32 %v12848_v49, %v9212_v18  ;;  %8777 = vst.msk [vmem:[%s15267_s14 + $0x118] sm:$0xff] %vm619_vm9, %v8741_v36  ;;  %v9210_v61 = vld [vmem:[%s15267_s14 + $0xe8] sm:$0xff]  ;;  %v9700_v36 = vld [vmem:[%s15267_s14 + $0x40] sm:$0xff] }
 0x409   : > { %9281 = vst.msk [vmem:[%s15267_s14 + $0xe0] sm:$0xff] %vm619_vm9, %v9245_v63  ;;  %v9246_v43 = vadd.f32 %v9210_v61, %v9153_v59  ;;  %8775 = vst.msk [vmem:[%s15267_s14 + $0x108] sm:$0xff] %vm619_vm9, %v8739_v53  ;;  %v9703_v18 = vld [vmem:[%s15267_s14 + $0x58] sm:$0xff] }
 0x40a   : > { %9284 = vst.msk [vmem:[%s15267_s14 + $0xf8] sm:$0xff] %vm619_vm9, %v9248_v2 }
 0x40b   : > { %9282 = vst.msk [vmem:[%s15267_s14 + $0xe8] sm:$0xff] %vm619_vm9, %v9246_v43  ;;  %v12851_v3 = vpop.f32.mrb[28].mxu0  ;;  %v12857_v39 = vpop.f32.mrb[252].mxu1 }
 0x40c   : > { %v9166_v50 = vpop.f32.mrb[29].mxu0  ;;  %v9730_v62 = vadd.f32 %v12857_v39, %v9694_v31  ;;  %v9549_v52 = vpop.f32.mrb[253].mxu1  ;;  %v9701_v39 = vld [vmem:[%s15267_s14 + $0x48] sm:$0xff] }
 0x40d   : > { %v9215_v25 = vld [vmem:[%s15267_s14 + $0x110] sm:$0xff]  ;;  %v12852_v51 = vpop.f32.mrb[30].mxu0  ;;  %v9728_v5 = vadd.f32 %v9692_v37, %v9549_v52  ;;  %v12858_v33 = vpop.f32.mrb[254].mxu1 }
 0x40e   : > { %v9251_v55 = vadd.f32 %v12851_v3, %v9215_v25  ;;  %v9213_v11 = vld [vmem:[%s15267_s14 + $0x100] sm:$0xff]  ;;  %9766 = vst.msk [vmem:[%s15267_s14 + $0x10] sm:$0xff] %vm619_vm9, %v9730_v62  ;;  %v9169_v20 = vpop.f32.mrb[31].mxu0  ;;  %v9731_v22 = vadd.f32 %v12858_v33, %v9695_v17  ;;  %v9552_v10 = vpop.f32.mrb[255].mxu1  ;;  %v9706_v33 = vld [vmem:[%s15267_s14 + $0x70] sm:$0xff] }
 0x40f   : > { %v9249_v45 = vadd.f32 %v9213_v11, %v9166_v50  ;;  %v9216_v13 = vld [vmem:[%s15267_s14 + $0x118] sm:$0xff]  ;;  %9764 = vst.msk [vmem:[%s15267_s14] sm:$0xff] %vm619_vm9, %v9728_v5  ;;  %v9729_v21 = vadd.f32 %v9693_v57, %v9552_v10 }
 0x410   : > { %9287 = vst.msk [vmem:[%s15267_s14 + $0x110] sm:$0xff] %vm619_vm9, %v9251_v55  ;;  %v9252_v54 = vadd.f32 %v12852_v51, %v9216_v13  ;;  %v9214_v30 = vld [vmem:[%s15267_s14 + $0x108] sm:$0xff]  ;;  %9767 = vst.msk [vmem:[%s15267_s14 + $0x18] sm:$0xff] %vm619_vm9, %v9731_v22  ;;  %v9707_v13 = vld [vmem:[%s15267_s14 + $0x78] sm:$0xff] }
 0x411   : > { %9285 = vst.msk [vmem:[%s15267_s14 + $0x100] sm:$0xff] %vm619_vm9, %v9249_v45  ;;  %v9250_v15 = vadd.f32 %v9214_v30, %v9169_v20  ;;  %9765 = vst.msk [vmem:[%s15267_s14 + $0x8] sm:$0xff] %vm619_vm9, %v9729_v21  ;;  %v9704_v20 = vld [vmem:[%s15267_s14 + $0x60] sm:$0xff] }
 0x412   : > { %9288 = vst.msk [vmem:[%s15267_s14 + $0x118] sm:$0xff] %vm619_vm9, %v9252_v54 }
 0x413   : > { %9286 = vst.msk [vmem:[%s15267_s14 + $0x108] sm:$0xff] %vm619_vm9, %v9250_v15  ;;  %v12895_v38 = vpop.f32.mrb[32].mxu0  ;;  %v12861_v44 = vpop.f32.mrb[0].mxu1 }
 0x414   : > { %v9734_v23 = vadd.f32 %v12861_v44, %v9698_v27  ;;  %v10193_v32 = vpop.f32.mrb[33].mxu0  ;;  %v9565_v29 = vpop.f32.mrb[1].mxu1  ;;  %v9705_v44 = vld [vmem:[%s15267_s14 + $0x68] sm:$0xff] }
 0x415   : > { %v10338_v14 = vld [vmem:[%s15267_s14 + $0x10] sm:$0xff]  ;;  %v9732_v0 = vadd.f32 %v9696_v26, %v9565_v29  ;;  %v12896_v28 = vpop.f32.mrb[34].mxu0  ;;  %v12862_v48 = vpop.f32.mrb[2].mxu1 }
 0x416   : > { %v10374_v47 = vadd.f32 %v12895_v38, %v10338_v14  ;;  %9770 = vst.msk [vmem:[%s15267_s14 + $0x30] sm:$0xff] %vm619_vm9, %v9734_v23  ;;  %v10336_v4 = vld [vmem:[%s15267_s14] sm:$0xff]  ;;  %v9735_v19 = vadd.f32 %v12862_v48, %v9699_v12  ;;  %v10196_v1 = vpop.f32.mrb[35].mxu0  ;;  %v9568_v56 = vpop.f32.mrb[3].mxu1  ;;  %v9710_v48 = vld [vmem:[%s15267_s14 + $0x90] sm:$0xff] }
 0x417   : > { %v10372_v41 = vadd.f32 %v10336_v4, %v10193_v32  ;;  %9768 = vst.msk [vmem:[%s15267_s14 + $0x20] sm:$0xff] %vm619_vm9, %v9732_v0  ;;  %v10339_v9 = vld [vmem:[%s15267_s14 + $0x18] sm:$0xff]  ;;  %v9733_v16 = vadd.f32 %v9697_v42, %v9568_v56 }
 0x418   : > { %10410 = vst.msk [vmem:[%s15267_s14 + $0x10] sm:$0xff] %vm619_vm9, %v10374_v47  ;;  %v10375_v58 = vadd.f32 %v12896_v28, %v10339_v9  ;;  %9771 = vst.msk [vmem:[%s15267_s14 + $0x38] sm:$0xff] %vm619_vm9, %v9735_v19  ;;  %v10337_v7 = vld [vmem:[%s15267_s14 + $0x8] sm:$0xff]  ;;  %v9708_v19 = vld [vmem:[%s15267_s14 + $0x80] sm:$0xff] }
 0x419   : > { %10408 = vst.msk [vmem:[%s15267_s14] sm:$0xff] %vm619_vm9, %v10372_v41  ;;  %v10373_v8 = vadd.f32 %v10337_v7, %v10196_v1  ;;  %9769 = vst.msk [vmem:[%s15267_s14 + $0x28] sm:$0xff] %vm619_vm9, %v9733_v16  ;;  %v9711_v9 = vld [vmem:[%s15267_s14 + $0x98] sm:$0xff] }
 0x41a   : > { %10411 = vst.msk [vmem:[%s15267_s14 + $0x18] sm:$0xff] %vm619_vm9, %v10375_v58 }
 0x41b   : > { %10409 = vst.msk [vmem:[%s15267_s14 + $0x8] sm:$0xff] %vm619_vm9, %v10373_v8  ;;  %v12899_v35 = vpop.f32.mrb[36].mxu0  ;;  %v12865_v49 = vpop.f32.mrb[4].mxu1 }
 0x41c   : > { %v9738_v34 = vadd.f32 %v12865_v49, %v9702_v60  ;;  %v10209_v24 = vpop.f32.mrb[37].mxu0  ;;  %v9581_v40 = vpop.f32.mrb[5].mxu1  ;;  %v9709_v49 = vld [vmem:[%s15267_s14 + $0x88] sm:$0xff] }
 0x41d   : > { %v10342_v59 = vld [vmem:[%s15267_s14 + $0x30] sm:$0xff]  ;;  %v9736_v46 = vadd.f32 %v9700_v36, %v9581_v40  ;;  %v12900_v6 = vpop.f32.mrb[38].mxu0  ;;  %v12866_v63 = vpop.f32.mrb[6].mxu1 }
 0x41e   : > { %v10378_v53 = vadd.f32 %v12899_v35, %v10342_v59  ;;  %9774 = vst.msk [vmem:[%s15267_s14 + $0x50] sm:$0xff] %vm619_vm9, %v9738_v34  ;;  %v10340_v2 = vld [vmem:[%s15267_s14 + $0x20] sm:$0xff]  ;;  %v9739_v61 = vadd.f32 %v12866_v63, %v9703_v18  ;;  %v10212_v43 = vpop.f32.mrb[39].mxu0  ;;  %v9584_v3 = vpop.f32.mrb[7].mxu1  ;;  %v9714_v63 = vld [vmem:[%s15267_s14 + $0xb0] sm:$0xff] }
 0x41f   : > { %v10376_v31 = vadd.f32 %v10340_v2, %v10209_v24  ;;  %9772 = vst.msk [vmem:[%s15267_s14 + $0x40] sm:$0xff] %vm619_vm9, %v9736_v46  ;;  %v10343_v50 = vld [vmem:[%s15267_s14 + $0x38] sm:$0xff]  ;;  %v9737_v62 = vadd.f32 %v9701_v39, %v9584_v3 }
 0x420   : > { %10414 = vst.msk [vmem:[%s15267_s14 + $0x30] sm:$0xff] %vm619_vm9, %v10378_v53  ;;  %v10379_v52 = vadd.f32 %v12900_v6, %v10343_v50  ;;  %9775 = vst.msk [vmem:[%s15267_s14 + $0x58] sm:$0xff] %vm619_vm9, %v9739_v61  ;;  %v10341_v37 = vld [vmem:[%s15267_s14 + $0x28] sm:$0xff]  ;;  %v9712_v61 = vld [vmem:[%s15267_s14 + $0xa0] sm:$0xff] }
 0x421   : > { %10412 = vst.msk [vmem:[%s15267_s14 + $0x20] sm:$0xff] %vm619_vm9, %v10376_v31  ;;  %v10377_v25 = vadd.f32 %v10341_v37, %v10212_v43  ;;  %9773 = vst.msk [vmem:[%s15267_s14 + $0x48] sm:$0xff] %vm619_vm9, %v9737_v62  ;;  %v9715_v50 = vld [vmem:[%s15267_s14 + $0xb8] sm:$0xff] }
 0x422   : > { %10415 = vst.msk [vmem:[%s15267_s14 + $0x38] sm:$0xff] %vm619_vm9, %v10379_v52 }
 0x423   : > { %10413 = vst.msk [vmem:[%s15267_s14 + $0x28] sm:$0xff] %vm619_vm9, %v10377_v25  ;;  %v12903_v51 = vpop.f32.mrb[40].mxu0  ;;  %v12869_v5 = vpop.f32.mrb[8].mxu1 }
 0x424   : > { %v9742_v17 = vadd.f32 %v12869_v5, %v9706_v33  ;;  %v10225_v55 = vpop.f32.mrb[41].mxu0  ;;  %v9597_v11 = vpop.f32.mrb[9].mxu1  ;;  %v9713_v5 = vld [vmem:[%s15267_s14 + $0xa8] sm:$0xff] }
 0x425   : > { %v10346_v22 = vld [vmem:[%s15267_s14 + $0x50] sm:$0xff]  ;;  %v9740_v10 = vadd.f32 %v9704_v20, %v9597_v11  ;;  %v12904_v57 = vpop.f32.mrb[42].mxu0  ;;  %v12870_v45 = vpop.f32.mrb[10].mxu1 }
 0x426   : > { %v10382_v21 = vadd.f32 %v12903_v51, %v10346_v22  ;;  %9778 = vst.msk [vmem:[%s15267_s14 + $0x70] sm:$0xff] %vm619_vm9, %v9742_v17  ;;  %v10344_v54 = vld [vmem:[%s15267_s14 + $0x40] sm:$0xff]  ;;  %v9743_v30 = vadd.f32 %v12870_v45, %v9707_v13  ;;  %v10228_v15 = vpop.f32.mrb[43].mxu0  ;;  %v9600_v38 = vpop.f32.mrb[11].mxu1  ;;  %v9718_v45 = vld [vmem:[%s15267_s14 + $0xd0] sm:$0xff] }
 0x427   : > { %v10380_v27 = vadd.f32 %v10344_v54, %v10225_v55  ;;  %9776 = vst.msk [vmem:[%s15267_s14 + $0x60] sm:$0xff] %vm619_vm9, %v9740_v10  ;;  %v10347_v23 = vld [vmem:[%s15267_s14 + $0x58] sm:$0xff]  ;;  %v9741_v32 = vadd.f32 %v9705_v44, %v9600_v38 }
 0x428   : > { %10418 = vst.msk [vmem:[%s15267_s14 + $0x50] sm:$0xff] %vm619_vm9, %v10382_v21  ;;  %v10383_v29 = vadd.f32 %v12904_v57, %v10347_v23  ;;  %9779 = vst.msk [vmem:[%s15267_s14 + $0x78] sm:$0xff] %vm619_vm9, %v9743_v30  ;;  %v10345_v26 = vld [vmem:[%s15267_s14 + $0x48] sm:$0xff]  ;;  %v9716_v30 = vld [vmem:[%s15267_s14 + $0xc0] sm:$0xff] }
 0x429   : > { %10416 = vst.msk [vmem:[%s15267_s14 + $0x40] sm:$0xff] %vm619_vm9, %v10380_v27  ;;  %v10381_v14 = vadd.f32 %v10345_v26, %v10228_v15  ;;  %9777 = vst.msk [vmem:[%s15267_s14 + $0x68] sm:$0xff] %vm619_vm9, %v9741_v32  ;;  %v9719_v23 = vld [vmem:[%s15267_s14 + $0xd8] sm:$0xff] }
 0x42a   : > { %10419 = vst.msk [vmem:[%s15267_s14 + $0x58] sm:$0xff] %vm619_vm9, %v10383_v29 }
 0x42b   : > { %10417 = vst.msk [vmem:[%s15267_s14 + $0x48] sm:$0xff] %vm619_vm9, %v10381_v14  ;;  %v12907_v0 = vpop.f32.mrb[44].mxu0  ;;  %v12873_v28 = vpop.f32.mrb[12].mxu1 }
 0x42c   : > { %v9746_v12 = vadd.f32 %v12873_v28, %v9710_v48  ;;  %v10241_v47 = vpop.f32.mrb[45].mxu0  ;;  %v9613_v4 = vpop.f32.mrb[13].mxu1  ;;  %v9717_v28 = vld [vmem:[%s15267_s14 + $0xc8] sm:$0xff] }
 0x42d   : > { %v10350_v1 = vld [vmem:[%s15267_s14 + $0x70] sm:$0xff]  ;;  %v9744_v56 = vadd.f32 %v9708_v19, %v9613_v4  ;;  %v12908_v42 = vpop.f32.mrb[46].mxu0  ;;  %v12874_v41 = vpop.f32.mrb[14].mxu1 }
 0x42e   : > { %v10386_v16 = vadd.f32 %v12907_v0, %v10350_v1  ;;  %9782 = vst.msk [vmem:[%s15267_s14 + $0x90] sm:$0xff] %vm619_vm9, %v9746_v12  ;;  %v10348_v58 = vld [vmem:[%s15267_s14 + $0x60] sm:$0xff]  ;;  %v9747_v7 = vadd.f32 %v12874_v41, %v9711_v9  ;;  %v10244_v8 = vpop.f32.mrb[47].mxu0  ;;  %v9616_v35 = vpop.f32.mrb[15].mxu1  ;;  %v9722_v41 = vld [vmem:[%s15267_s14 + $0xf0] sm:$0xff] }
 0x42f   : > { %v10384_v60 = vadd.f32 %v10348_v58, %v10241_v47  ;;  %9780 = vst.msk [vmem:[%s15267_s14 + $0x80] sm:$0xff] %vm619_vm9, %v9744_v56  ;;  %v10351_v34 = vld [vmem:[%s15267_s14 + $0x78] sm:$0xff]  ;;  %v9745_v24 = vadd.f32 %v9709_v49, %v9616_v35 }
 0x430   : > { %10422 = vst.msk [vmem:[%s15267_s14 + $0x70] sm:$0xff] %vm619_vm9, %v10386_v16  ;;  %v10387_v40 = vadd.f32 %v12908_v42, %v10351_v34  ;;  %9783 = vst.msk [vmem:[%s15267_s14 + $0x98] sm:$0xff] %vm619_vm9, %v9747_v7  ;;  %v10349_v36 = vld [vmem:[%s15267_s14 + $0x68] sm:$0xff]  ;;  %v9720_v7 = vld [vmem:[%s15267_s14 + $0xe0] sm:$0xff] }
 0x431   : > { %10420 = vst.msk [vmem:[%s15267_s14 + $0x60] sm:$0xff] %vm619_vm9, %v10384_v60  ;;  %v10385_v59 = vadd.f32 %v10349_v36, %v10244_v8  ;;  %9781 = vst.msk [vmem:[%s15267_s14 + $0x88] sm:$0xff] %vm619_vm9, %v9745_v24  ;;  %v9723_v34 = vld [vmem:[%s15267_s14 + $0xf8] sm:$0xff] }
 0x432   : > { %10423 = vst.msk [vmem:[%s15267_s14 + $0x78] sm:$0xff] %vm619_vm9, %v10387_v40 }
 0x433   : > { %10421 = vst.msk [vmem:[%s15267_s14 + $0x68] sm:$0xff] %vm619_vm9, %v10385_v59  ;;  %v12911_v46 = vpop.f32.mrb[48].mxu0  ;;  %v12877_v6 = vpop.f32.mrb[16].mxu1 }
 0x434   : > { %v9750_v18 = vadd.f32 %v12877_v6, %v9714_v63  ;;  %v10257_v53 = vpop.f32.mrb[49].mxu0  ;;  %v9629_v2 = vpop.f32.mrb[17].mxu1  ;;  %v9721_v6 = vld [vmem:[%s15267_s14 + $0xe8] sm:$0xff] }
 0x435   : > { %v10354_v43 = vld [vmem:[%s15267_s14 + $0x90] sm:$0xff]  ;;  %v9748_v3 = vadd.f32 %v9712_v61, %v9629_v2  ;;  %v12912_v39 = vpop.f32.mrb[50].mxu0  ;;  %v12878_v31 = vpop.f32.mrb[18].mxu1 }
 0x436   : > { %v10390_v62 = vadd.f32 %v12911_v46, %v10354_v43  ;;  %9786 = vst.msk [vmem:[%s15267_s14 + $0xb0] sm:$0xff] %vm619_vm9, %v9750_v18  ;;  %v10352_v52 = vld [vmem:[%s15267_s14 + $0x80] sm:$0xff]  ;;  %v9751_v37 = vadd.f32 %v12878_v31, %v9715_v50  ;;  %v10260_v25 = vpop.f32.mrb[51].mxu0  ;;  %v9632_v51 = vpop.f32.mrb[19].mxu1  ;;  %v9726_v31 = vld [vmem:[%s15267_s14 + $0x110] sm:$0xff] }
 0x437   : > { %v10388_v33 = vadd.f32 %v10352_v52, %v10257_v53  ;;  %9784 = vst.msk [vmem:[%s15267_s14 + $0xa0] sm:$0xff] %vm619_vm9, %v9748_v3  ;;  %v10355_v17 = vld [vmem:[%s15267_s14 + $0x98] sm:$0xff]  ;;  %v9749_v55 = vadd.f32 %v9713_v5, %v9632_v51 }
 0x438   : > { %10426 = vst.msk [vmem:[%s15267_s14 + $0x90] sm:$0xff] %vm619_vm9, %v10390_v62  ;;  %v10391_v11 = vadd.f32 %v12912_v39, %v10355_v17  ;;  %9787 = vst.msk [vmem:[%s15267_s14 + $0xb8] sm:$0xff] %vm619_vm9, %v9751_v37  ;;  %v10353_v20 = vld [vmem:[%s15267_s14 + $0x88] sm:$0xff]  ;;  %v9724_v37 = vld [vmem:[%s15267_s14 + $0x100] sm:$0xff] }
 0x439   : > { %10424 = vst.msk [vmem:[%s15267_s14 + $0x80] sm:$0xff] %vm619_vm9, %v10388_v33  ;;  %v10389_v22 = vadd.f32 %v10353_v20, %v10260_v25  ;;  %9785 = vst.msk [vmem:[%s15267_s14 + $0xa8] sm:$0xff] %vm619_vm9, %v9749_v55  ;;  %v9727_v17 = vld [vmem:[%s15267_s14 + $0x118] sm:$0xff] }
 0x43a   : > { %10427 = vst.msk [vmem:[%s15267_s14 + $0x98] sm:$0xff] %vm619_vm9, %v10391_v11 }
 0x43b   : > { %10425 = vst.msk [vmem:[%s15267_s14 + $0x88] sm:$0xff] %vm619_vm9, %v10389_v22  ;;  %v12915_v10 = vpop.f32.mrb[52].mxu0  ;;  %v12881_v57 = vpop.f32.mrb[20].mxu1 }
 0x43c   : > { %v9754_v13 = vadd.f32 %v12881_v57, %v9718_v45  ;;  %v10273_v21 = vpop.f32.mrb[53].mxu0  ;;  %v9645_v54 = vpop.f32.mrb[21].mxu1  ;;  %v9725_v57 = vld [vmem:[%s15267_s14 + $0x108] sm:$0xff] }
 0x43d   : > { %v10358_v15 = vld [vmem:[%s15267_s14 + $0xb0] sm:$0xff]  ;;  %v9752_v38 = vadd.f32 %v9716_v30, %v9645_v54  ;;  %v12916_v44 = vpop.f32.mrb[54].mxu0  ;;  %v12882_v27 = vpop.f32.mrb[22].mxu1 }
 0x43e   : > { %v10394_v32 = vadd.f32 %v12915_v10, %v10358_v15  ;;  %9790 = vst.msk [vmem:[%s15267_s14 + $0xd0] sm:$0xff] %vm619_vm9, %v9754_v13  ;;  %v10356_v29 = vld [vmem:[%s15267_s14 + $0xa0] sm:$0xff]  ;;  %v9755_v26 = vadd.f32 %v12882_v27, %v9719_v23  ;;  %v10276_v14 = vpop.f32.mrb[55].mxu0  ;;  %v9648_v0 = vpop.f32.mrb[23].mxu1  ;;  %v10849_v27 = vld [vmem:[%s15267_s14 + $0x10] sm:$0xff] }
 0x43f   : > { %v10392_v48 = vadd.f32 %v10356_v29, %v10273_v21  ;;  %9788 = vst.msk [vmem:[%s15267_s14 + $0xc0] sm:$0xff] %vm619_vm9, %v9752_v38  ;;  %v10359_v12 = vld [vmem:[%s15267_s14 + $0xb8] sm:$0xff]  ;;  %v9753_v47 = vadd.f32 %v9717_v28, %v9648_v0 }
 0x440   : > { %10430 = vst.msk [vmem:[%s15267_s14 + $0xb0] sm:$0xff] %vm619_vm9, %v10394_v32  ;;  %v10395_v4 = vadd.f32 %v12916_v44, %v10359_v12  ;;  %9791 = vst.msk [vmem:[%s15267_s14 + $0xd8] sm:$0xff] %vm619_vm9, %v9755_v26  ;;  %v10357_v19 = vld [vmem:[%s15267_s14 + $0xa8] sm:$0xff]  ;;  %v10847_v26 = vld [vmem:[%s15267_s14] sm:$0xff] }
 0x441   : > { %10428 = vst.msk [vmem:[%s15267_s14 + $0xa0] sm:$0xff] %vm619_vm9, %v10392_v48  ;;  %v10393_v1 = vadd.f32 %v10357_v19, %v10276_v14  ;;  %9789 = vst.msk [vmem:[%s15267_s14 + $0xc8] sm:$0xff] %vm619_vm9, %v9753_v47  ;;  %v10850_v12 = vld [vmem:[%s15267_s14 + $0x18] sm:$0xff] }
 0x442   : > { %10431 = vst.msk [vmem:[%s15267_s14 + $0xb8] sm:$0xff] %vm619_vm9, %v10395_v4 }
 0x443   : > { %10429 = vst.msk [vmem:[%s15267_s14 + $0xa8] sm:$0xff] %vm619_vm9, %v10393_v1  ;;  %v12919_v56 = vpop.f32.mrb[56].mxu0  ;;  %v12885_v42 = vpop.f32.mrb[24].mxu1 }
 0x444   : > { %v9758_v9 = vadd.f32 %v12885_v42, %v9722_v41  ;;  %v10289_v16 = vpop.f32.mrb[57].mxu0  ;;  %v9661_v58 = vpop.f32.mrb[25].mxu1  ;;  %v10848_v42 = vld [vmem:[%s15267_s14 + $0x8] sm:$0xff] }
 0x445   : > { %v10362_v8 = vld [vmem:[%s15267_s14 + $0xd0] sm:$0xff]  ;;  %v9756_v35 = vadd.f32 %v9720_v7, %v9661_v58  ;;  %v12920_v49 = vpop.f32.mrb[58].mxu0  ;;  %v12886_v60 = vpop.f32.mrb[26].mxu1 }
 0x446   : > { %v10398_v24 = vadd.f32 %v12919_v56, %v10362_v8  ;;  %9794 = vst.msk [vmem:[%s15267_s14 + $0xf0] sm:$0xff] %vm619_vm9, %v9758_v9  ;;  %v10360_v40 = vld [vmem:[%s15267_s14 + $0xc0] sm:$0xff]  ;;  %v9759_v36 = vadd.f32 %v12886_v60, %v9723_v34  ;;  %v10292_v59 = vpop.f32.mrb[59].mxu0  ;;  %v9664_v46 = vpop.f32.mrb[27].mxu1  ;;  %v10853_v60 = vld [vmem:[%s15267_s14 + $0x30] sm:$0xff] }
 0x447   : > { %v10396_v63 = vadd.f32 %v10360_v40, %v10289_v16  ;;  %9792 = vst.msk [vmem:[%s15267_s14 + $0xe0] sm:$0xff] %vm619_vm9, %v9756_v35  ;;  %v10363_v18 = vld [vmem:[%s15267_s14 + $0xd8] sm:$0xff]  ;;  %v9757_v53 = vadd.f32 %v9721_v6, %v9664_v46  ;;  %v16344_v35 = vld [vmem:[%s16596_s5] ss:$0 sm:$0xff] }
 0x448   : > { %10434 = vst.msk [vmem:[%s15267_s14 + $0xd0] sm:$0xff] %vm619_vm9, %v10398_v24  ;;  %v10399_v2 = vadd.f32 %v12920_v49, %v10363_v18  ;;  %9795 = vst.msk [vmem:[%s15267_s14 + $0xf8] sm:$0xff] %vm619_vm9, %v9759_v36  ;;  %v10361_v61 = vld [vmem:[%s15267_s14 + $0xc8] sm:$0xff]  ;;  %v10851_v40 = vld [vmem:[%s15267_s14 + $0x20] sm:$0xff] }
 0x449   : > { %10432 = vst.msk [vmem:[%s15267_s14 + $0xc0] sm:$0xff] %vm619_vm9, %v10396_v63  ;;  %v10397_v43 = vadd.f32 %v10361_v61, %v10292_v59  ;;  %9793 = vst.msk [vmem:[%s15267_s14 + $0xe8] sm:$0xff] %vm619_vm9, %v9757_v53  ;;  %v10854_v6 = vld [vmem:[%s15267_s14 + $0x38] sm:$0xff]  ;;  %v10852_v61 = vld [vmem:[%s15267_s14 + $0x28] sm:$0xff] }
 0x44a   : > { %10435 = vst.msk [vmem:[%s15267_s14 + $0xd8] sm:$0xff] %vm619_vm9, %v10399_v2 }
 0x44b   : > { %10433 = vst.msk [vmem:[%s15267_s14 + $0xc8] sm:$0xff] %vm619_vm9, %v10397_v43  ;;  %v12923_v3 = vpop.f32.mrb[60].mxu0  ;;  %v12889_v39 = vpop.f32.mrb[28].mxu1 }
 0x44c   : > { %v9762_v50 = vadd.f32 %v12889_v39, %v9726_v31  ;;  %v10305_v62 = vpop.f32.mrb[61].mxu0  ;;  %v9677_v52 = vpop.f32.mrb[29].mxu1 }
 0x44d   : > { %v10366_v25 = vld [vmem:[%s15267_s14 + $0xf0] sm:$0xff]  ;;  %v9760_v51 = vadd.f32 %v9724_v37, %v9677_v52  ;;  %v12924_v5 = vpop.f32.mrb[62].mxu0  ;;  %v12890_v33 = vpop.f32.mrb[30].mxu1 }
 0x44e   : > { %v10402_v55 = vadd.f32 %v12923_v3, %v10366_v25  ;;  %9798 = vst.msk [vmem:[%s15267_s14 + $0x110] sm:$0xff] %vm619_vm9, %v9762_v50  ;;  %v10364_v11 = vld [vmem:[%s15267_s14 + $0xe0] sm:$0xff]  ;;  %v9763_v20 = vadd.f32 %v12890_v33, %v9727_v17  ;;  %v10308_v22 = vpop.f32.mrb[63].mxu0  ;;  %v9680_v10 = vpop.f32.mrb[31].mxu1  ;;  %v10857_v33 = vld [vmem:[%s15267_s14 + $0x50] sm:$0xff] }
 0x44f   : > { %v10400_v45 = vadd.f32 %v10364_v11, %v10305_v62  ;;  %9796 = vst.msk [vmem:[%s15267_s14 + $0x100] sm:$0xff] %vm619_vm9, %v9760_v51  ;;  %v10367_v13 = vld [vmem:[%s15267_s14 + $0xf8] sm:$0xff]  ;;  %v9761_v21 = vadd.f32 %v9725_v57, %v9680_v10  ;;  %v10855_v11 = vld [vmem:[%s15267_s14 + $0x40] sm:$0xff] }
 0x450   : > { %10438 = vst.msk [vmem:[%s15267_s14 + $0xf0] sm:$0xff] %vm619_vm9, %v10402_v55  ;;  %v10403_v54 = vadd.f32 %v12924_v5, %v10367_v13  ;;  %9799 = vst.msk [vmem:[%s15267_s14 + $0x118] sm:$0xff] %vm619_vm9, %v9763_v20  ;;  %v10365_v30 = vld [vmem:[%s15267_s14 + $0xe8] sm:$0xff]  ;;  %v10858_v57 = vld [vmem:[%s15267_s14 + $0x58] sm:$0xff] }
 0x451   : > { %10436 = vst.msk [vmem:[%s15267_s14 + $0xe0] sm:$0xff] %vm619_vm9, %v10400_v45  ;;  %v10401_v15 = vadd.f32 %v10365_v30, %v10308_v22  ;;  %9797 = vst.msk [vmem:[%s15267_s14 + $0x108] sm:$0xff] %vm619_vm9, %v9761_v21  ;;  %v10856_v30 = vld [vmem:[%s15267_s14 + $0x48] sm:$0xff] }
 0x452   : > { %10439 = vst.msk [vmem:[%s15267_s14 + $0xf8] sm:$0xff] %vm619_vm9, %v10403_v54 }
 0x453   : > { %10437 = vst.msk [vmem:[%s15267_s14 + $0xe8] sm:$0xff] %vm619_vm9, %v10401_v15  ;;  %v12927_v38 = vpop.f32.mrb[64].mxu0  ;;  %v12933_v44 = vpop.f32.mrb[32].mxu1 }
 0x454   : > { %v10321_v23 = vpop.f32.mrb[65].mxu0  ;;  %v10885_v32 = vadd.f32 %v12933_v44, %v10849_v27  ;;  %v10704_v29 = vpop.f32.mrb[33].mxu1 }
 0x455   : > { %v10370_v14 = vld [vmem:[%s15267_s14 + $0x110] sm:$0xff]  ;;  %v12928_v0 = vpop.f32.mrb[66].mxu0  ;;  %v10883_v28 = vadd.f32 %v10847_v26, %v10704_v29  ;;  %v12934_v48 = vpop.f32.mrb[34].mxu1 }
 0x456   : > { %v10406_v47 = vadd.f32 %v12927_v38, %v10370_v14  ;;  %v10368_v4 = vld [vmem:[%s15267_s14 + $0x100] sm:$0xff]  ;;  %10921 = vst.msk [vmem:[%s15267_s14 + $0x10] sm:$0xff] %vm619_vm9, %v10885_v32  ;;  %v10324_v19 = vpop.f32.mrb[67].mxu0  ;;  %v10886_v1 = vadd.f32 %v12934_v48, %v10850_v12  ;;  %v10707_v56 = vpop.f32.mrb[35].mxu1  ;;  %v10861_v48 = vld [vmem:[%s15267_s14 + $0x70] sm:$0xff] }
 0x457   : > { %v10404_v41 = vadd.f32 %v10368_v4, %v10321_v23  ;;  %v10371_v9 = vld [vmem:[%s15267_s14 + $0x118] sm:$0xff]  ;;  %10919 = vst.msk [vmem:[%s15267_s14] sm:$0xff] %vm619_vm9, %v10883_v28  ;;  %v10884_v16 = vadd.f32 %v10848_v42, %v10707_v56  ;;  %v10859_v4 = vld [vmem:[%s15267_s14 + $0x60] sm:$0xff] }
 0x458   : > { %10442 = vst.msk [vmem:[%s15267_s14 + $0x110] sm:$0xff] %vm619_vm9, %v10406_v47  ;;  %v10407_v58 = vadd.f32 %v12928_v0, %v10371_v9  ;;  %v10369_v7 = vld [vmem:[%s15267_s14 + $0x108] sm:$0xff]  ;;  %10922 = vst.msk [vmem:[%s15267_s14 + $0x18] sm:$0xff] %vm619_vm9, %v10886_v1  ;;  %v10862_v42 = vld [vmem:[%s15267_s14 + $0x78] sm:$0xff] }
 0x459   : > { %10440 = vst.msk [vmem:[%s15267_s14 + $0x100] sm:$0xff] %vm619_vm9, %v10404_v41  ;;  %v10405_v8 = vadd.f32 %v10369_v7, %v10324_v19  ;;  %10920 = vst.msk [vmem:[%s15267_s14 + $0x8] sm:$0xff] %vm619_vm9, %v10884_v16  ;;  %v10860_v7 = vld [vmem:[%s15267_s14 + $0x68] sm:$0xff] }
 0x45a   : > { %10443 = vst.msk [vmem:[%s15267_s14 + $0x118] sm:$0xff] %vm619_vm9, %v10407_v58 }
 0x45b   : > { %10441 = vst.msk [vmem:[%s15267_s14 + $0x108] sm:$0xff] %vm619_vm9, %v10405_v8  ;;  %v12937_v49 = vpop.f32.mrb[36].mxu1 }
 0x45c   : > { %v10889_v34 = vadd.f32 %v12937_v49, %v10853_v60  ;;  %v10720_v24 = vpop.f32.mrb[37].mxu1 }
 0x45d   : > { %v10957_v36 = vld [vmem:[%s15267_s14 + $0x10] sm:$0xff]  ;;  %v10887_v59 = vadd.f32 %v10851_v40, %v10720_v24  ;;  %v12938_v46 = vpop.f32.mrb[38].mxu1 }
 0x45e   : > { %v11000_v63 = vadd.f32 %v16344_v35, %v10957_v36  ;;  %v10955_v18 = vld [vmem:[%s15267_s14] sm:$0xff]  ;;  %10925 = vst.msk [vmem:[%s15267_s14 + $0x30] sm:$0xff] %vm619_vm9, %v10889_v34  ;;  %v10890_v53 = vadd.f32 %v12938_v46, %v10854_v6  ;;  %v10723_v2 = vpop.f32.mrb[39].mxu1 }
 0x45f   : > { %v10998_v43 = vadd.f32 %v16344_v35, %v10955_v18  ;;  %v10958_v3 = vld [vmem:[%s15267_s14 + $0x18] sm:$0xff]  ;;  %10923 = vst.msk [vmem:[%s15267_s14 + $0x20] sm:$0xff] %vm619_vm9, %v10887_v59  ;;  %v10888_v39 = vadd.f32 %v10852_v61, %v10723_v2  ;;  %v10865_v18 = vld [vmem:[%s15267_s14 + $0x90] sm:$0xff]  ;;  %v10863_v61 = vld [vmem:[%s15267_s14 + $0x80] sm:$0xff] }
 0x460   : > { %v11036_v31 = vmax.f32 %v11000_v63, 0.0  ;;  %v11001_v50 = vadd.f32 %v16344_v35, %v10958_v3  ;;  %v10956_v62 = vld [vmem:[%s15267_s14 + $0x8] sm:$0xff]  ;;  %10926 = vst.msk [vmem:[%s15267_s14 + $0x38] sm:$0xff] %vm619_vm9, %v10890_v53 }
 0x461   : > { %v11034_v52 = vmax.f32 %v10998_v43, 0.0  ;;  %v10999_v37 = vadd.f32 %v16344_v35, %v10956_v62  ;;  %10924 = vst.msk [vmem:[%s15267_s14 + $0x28] sm:$0xff] %vm619_vm9, %v10888_v39 }
 0x462   : > { %11072 = vst.msk [vmem:[%s15267_s14 + $0x10] sm:$0xff] %vm619_vm9, %v11036_v31  ;;  %v11037_v25 = vmax.f32 %v11001_v50, 0.0  ;;  %v10866_v31 = vld [vmem:[%s15267_s14 + $0x98] sm:$0xff] }
 0x463   : > { %11070 = vst.msk [vmem:[%s15267_s14] sm:$0xff] %vm619_vm9, %v11034_v52  ;;  %v11035_v51 = vmax.f32 %v10999_v37, 0.0  ;;  %v12941_v5 = vpop.f32.mrb[40].mxu1 }
 0x464   : > { %11073 = vst.msk [vmem:[%s15267_s14 + $0x18] sm:$0xff] %vm619_vm9, %v11037_v25  ;;  %v10893_v17 = vadd.f32 %v12941_v5, %v10857_v33  ;;  %v10736_v55 = vpop.f32.mrb[41].mxu1  ;;  %v10864_v25 = vld [vmem:[%s15267_s14 + $0x88] sm:$0xff] }
 0x465   : > { %11071 = vst.msk [vmem:[%s15267_s14 + $0x8] sm:$0xff] %vm619_vm9, %v11035_v51  ;;  %v10961_v20 = vld [vmem:[%s15267_s14 + $0x30] sm:$0xff]  ;;  %v10891_v22 = vadd.f32 %v10855_v11, %v10736_v55  ;;  %v12942_v10 = vpop.f32.mrb[42].mxu1 }
 0x466   : > { %v11004_v45 = vadd.f32 %v16344_v35, %v10961_v20  ;;  %v10959_v13 = vld [vmem:[%s15267_s14 + $0x20] sm:$0xff]  ;;  %10929 = vst.msk [vmem:[%s15267_s14 + $0x50] sm:$0xff] %vm619_vm9, %v10893_v17  ;;  %v10894_v21 = vadd.f32 %v12942_v10, %v10858_v57  ;;  %v10739_v54 = vpop.f32.mrb[43].mxu1 }
 0x467   : > { %v11002_v15 = vadd.f32 %v16344_v35, %v10959_v13  ;;  %v10962_v38 = vld [vmem:[%s15267_s14 + $0x38] sm:$0xff]  ;;  %10927 = vst.msk [vmem:[%s15267_s14 + $0x40] sm:$0xff] %vm619_vm9, %v10891_v22  ;;  %v10892_v44 = vadd.f32 %v10856_v30, %v10739_v54  ;;  %v10869_v13 = vld [vmem:[%s15267_s14 + $0xb0] sm:$0xff]  ;;  %v10867_v30 = vld [vmem:[%s15267_s14 + $0xa0] sm:$0xff] }
 0x468   : > { %v11040_v27 = vmax.f32 %v11004_v45, 0.0  ;;  %v11005_v23 = vadd.f32 %v16344_v35, %v10962_v38  ;;  %v10960_v32 = vld [vmem:[%s15267_s14 + $0x28] sm:$0xff]  ;;  %10930 = vst.msk [vmem:[%s15267_s14 + $0x58] sm:$0xff] %vm619_vm9, %v10894_v21 }
 0x469   : > { %v11038_v29 = vmax.f32 %v11002_v15, 0.0  ;;  %v11003_v26 = vadd.f32 %v16344_v35, %v10960_v32  ;;  %10928 = vst.msk [vmem:[%s15267_s14 + $0x48] sm:$0xff] %vm619_vm9, %v10892_v44 }
 0x46a   : > { %11076 = vst.msk [vmem:[%s15267_s14 + $0x30] sm:$0xff] %vm619_vm9, %v11040_v27  ;;  %v11041_v14 = vmax.f32 %v11005_v23, 0.0  ;;  %v10870_v27 = vld [vmem:[%s15267_s14 + $0xb8] sm:$0xff] }
 0x46b   : > { %11074 = vst.msk [vmem:[%s15267_s14 + $0x20] sm:$0xff] %vm619_vm9, %v11038_v29  ;;  %v11039_v0 = vmax.f32 %v11003_v26, 0.0  ;;  %v12945_v28 = vpop.f32.mrb[44].mxu1 }
 0x46c   : > { %11077 = vst.msk [vmem:[%s15267_s14 + $0x38] sm:$0xff] %vm619_vm9, %v11041_v14  ;;  %v10897_v12 = vadd.f32 %v12945_v28, %v10861_v48  ;;  %v10752_v47 = vpop.f32.mrb[45].mxu1  ;;  %v10868_v14 = vld [vmem:[%s15267_s14 + $0xa8] sm:$0xff] }
 0x46d   : > { %11075 = vst.msk [vmem:[%s15267_s14 + $0x28] sm:$0xff] %vm619_vm9, %v11039_v0  ;;  %v10965_v19 = vld [vmem:[%s15267_s14 + $0x50] sm:$0xff]  ;;  %v10895_v1 = vadd.f32 %v10859_v4, %v10752_v47  ;;  %v12946_v56 = vpop.f32.mrb[46].mxu1 }
 0x46e   : > { %v11008_v41 = vadd.f32 %v16344_v35, %v10965_v19  ;;  %v10963_v9 = vld [vmem:[%s15267_s14 + $0x40] sm:$0xff]  ;;  %10933 = vst.msk [vmem:[%s15267_s14 + $0x70] sm:$0xff] %vm619_vm9, %v10897_v12  ;;  %v10898_v16 = vadd.f32 %v12946_v56, %v10862_v42  ;;  %v10755_v58 = vpop.f32.mrb[47].mxu1 }
 0x46f   : > { %v11006_v8 = vadd.f32 %v16344_v35, %v10963_v9  ;;  %v10966_v49 = vld [vmem:[%s15267_s14 + $0x58] sm:$0xff]  ;;  %10931 = vst.msk [vmem:[%s15267_s14 + $0x60] sm:$0xff] %vm619_vm9, %v10895_v1  ;;  %v10896_v60 = vadd.f32 %v10860_v7, %v10755_v58  ;;  %v10873_v9 = vld [vmem:[%s15267_s14 + $0xd0] sm:$0xff]  ;;  %v10871_v7 = vld [vmem:[%s15267_s14 + $0xc0] sm:$0xff] }
 0x470   : > { %v11044_v34 = vmax.f32 %v11008_v41, 0.0  ;;  %v11009_v24 = vadd.f32 %v16344_v35, %v10966_v49  ;;  %v10964_v40 = vld [vmem:[%s15267_s14 + $0x48] sm:$0xff]  ;;  %10934 = vst.msk [vmem:[%s15267_s14 + $0x78] sm:$0xff] %vm619_vm9, %v10898_v16 }
 0x471   : > { %v11042_v36 = vmax.f32 %v11006_v8, 0.0  ;;  %v11007_v59 = vadd.f32 %v16344_v35, %v10964_v40  ;;  %10932 = vst.msk [vmem:[%s15267_s14 + $0x68] sm:$0xff] %vm619_vm9, %v10896_v60 }
 0x472   : > { %11080 = vst.msk [vmem:[%s15267_s14 + $0x50] sm:$0xff] %vm619_vm9, %v11044_v34  ;;  %v11045_v46 = vmax.f32 %v11009_v24, 0.0  ;;  %v10874_v34 = vld [vmem:[%s15267_s14 + $0xd8] sm:$0xff] }
 0x473   : > { %11078 = vst.msk [vmem:[%s15267_s14 + $0x40] sm:$0xff] %vm619_vm9, %v11042_v36  ;;  %v11043_v6 = vmax.f32 %v11007_v59, 0.0  ;;  %v12949_v63 = vpop.f32.mrb[48].mxu1 }
 0x474   : > { %11081 = vst.msk [vmem:[%s15267_s14 + $0x58] sm:$0xff] %vm619_vm9, %v11045_v46  ;;  %v10901_v53 = vadd.f32 %v12949_v63, %v10865_v18  ;;  %v10768_v2 = vpop.f32.mrb[49].mxu1  ;;  %v10872_v46 = vld [vmem:[%s15267_s14 + $0xc8] sm:$0xff] }
 0x475   : > { %11079 = vst.msk [vmem:[%s15267_s14 + $0x48] sm:$0xff] %vm619_vm9, %v11043_v6  ;;  %v10969_v43 = vld [vmem:[%s15267_s14 + $0x70] sm:$0xff]  ;;  %v10899_v3 = vadd.f32 %v10863_v61, %v10768_v2  ;;  %v12950_v39 = vpop.f32.mrb[50].mxu1 }
 0x476   : > { %v11012_v50 = vadd.f32 %v16344_v35, %v10969_v43  ;;  %v10967_v62 = vld [vmem:[%s15267_s14 + $0x60] sm:$0xff]  ;;  %10937 = vst.msk [vmem:[%s15267_s14 + $0x90] sm:$0xff] %vm619_vm9, %v10901_v53  ;;  %v10902_v52 = vadd.f32 %v12950_v39, %v10866_v31  ;;  %v10771_v37 = vpop.f32.mrb[51].mxu1 }
 0x477   : > { %v11010_v51 = vadd.f32 %v16344_v35, %v10967_v62  ;;  %v10970_v5 = vld [vmem:[%s15267_s14 + $0x78] sm:$0xff]  ;;  %10935 = vst.msk [vmem:[%s15267_s14 + $0x80] sm:$0xff] %vm619_vm9, %v10899_v3  ;;  %v10900_v33 = vadd.f32 %v10864_v25, %v10771_v37  ;;  %v10877_v62 = vld [vmem:[%s15267_s14 + $0xf0] sm:$0xff]  ;;  %v10875_v25 = vld [vmem:[%s15267_s14 + $0xe0] sm:$0xff] }
 0x478   : > { %v11048_v17 = vmax.f32 %v11012_v50, 0.0  ;;  %v11013_v55 = vadd.f32 %v16344_v35, %v10970_v5  ;;  %v10968_v11 = vld [vmem:[%s15267_s14 + $0x68] sm:$0xff]  ;;  %10938 = vst.msk [vmem:[%s15267_s14 + $0x98] sm:$0xff] %vm619_vm9, %v10902_v52 }
 0x479   : > { %v11046_v20 = vmax.f32 %v11010_v51, 0.0  ;;  %v11011_v22 = vadd.f32 %v16344_v35, %v10968_v11  ;;  %10936 = vst.msk [vmem:[%s15267_s14 + $0x88] sm:$0xff] %vm619_vm9, %v10900_v33 }
 0x47a   : > { %11084 = vst.msk [vmem:[%s15267_s14 + $0x70] sm:$0xff] %vm619_vm9, %v11048_v17  ;;  %v11049_v10 = vmax.f32 %v11013_v55, 0.0  ;;  %v10878_v17 = vld [vmem:[%s15267_s14 + $0xf8] sm:$0xff] }
 0x47b   : > { %11082 = vst.msk [vmem:[%s15267_s14 + $0x60] sm:$0xff] %vm619_vm9, %v11046_v20  ;;  %v11047_v57 = vmax.f32 %v11011_v22, 0.0  ;;  %v12953_v45 = vpop.f32.mrb[52].mxu1 }
 0x47c   : > { %11085 = vst.msk [vmem:[%s15267_s14 + $0x78] sm:$0xff] %vm619_vm9, %v11049_v10  ;;  %v10905_v21 = vadd.f32 %v12953_v45, %v10869_v13  ;;  %v10784_v54 = vpop.f32.mrb[53].mxu1  ;;  %v10876_v10 = vld [vmem:[%s15267_s14 + $0xe8] sm:$0xff] }
 0x47d   : > { %11083 = vst.msk [vmem:[%s15267_s14 + $0x68] sm:$0xff] %vm619_vm9, %v11047_v57  ;;  %v10973_v15 = vld [vmem:[%s15267_s14 + $0x90] sm:$0xff]  ;;  %v10903_v38 = vadd.f32 %v10867_v30, %v10784_v54  ;;  %v12954_v44 = vpop.f32.mrb[54].mxu1 }
 0x47e   : > { %v11016_v23 = vadd.f32 %v16344_v35, %v10973_v15  ;;  %v10971_v32 = vld [vmem:[%s15267_s14 + $0x80] sm:$0xff]  ;;  %10941 = vst.msk [vmem:[%s15267_s14 + $0xb0] sm:$0xff] %vm619_vm9, %v10905_v21  ;;  %v10906_v29 = vadd.f32 %v12954_v44, %v10870_v27  ;;  %v10787_v26 = vpop.f32.mrb[55].mxu1 }
 0x47f   : > { %v11014_v0 = vadd.f32 %v16344_v35, %v10971_v32  ;;  %v10974_v28 = vld [vmem:[%s15267_s14 + $0x98] sm:$0xff]  ;;  %10939 = vst.msk [vmem:[%s15267_s14 + $0xa0] sm:$0xff] %vm619_vm9, %v10903_v38  ;;  %v10904_v48 = vadd.f32 %v10868_v14, %v10787_v26  ;;  %v10881_v32 = vld [vmem:[%s15267_s14 + $0x110] sm:$0xff]  ;;  %v10879_v14 = vld [vmem:[%s15267_s14 + $0x100] sm:$0xff] }
 0x480   : > { %v11052_v12 = vmax.f32 %v11016_v23, 0.0  ;;  %v11017_v47 = vadd.f32 %v16344_v35, %v10974_v28  ;;  %v10972_v4 = vld [vmem:[%s15267_s14 + $0x88] sm:$0xff]  ;;  %10942 = vst.msk [vmem:[%s15267_s14 + $0xb8] sm:$0xff] %vm619_vm9, %v10906_v29 }
 0x481   : > { %v11050_v19 = vmax.f32 %v11014_v0, 0.0  ;;  %v11015_v1 = vadd.f32 %v16344_v35, %v10972_v4  ;;  %10940 = vst.msk [vmem:[%s15267_s14 + $0xa8] sm:$0xff] %vm619_vm9, %v10904_v48 }
 0x482   : > { %11088 = vst.msk [vmem:[%s15267_s14 + $0x90] sm:$0xff] %vm619_vm9, %v11052_v12  ;;  %v11053_v56 = vmax.f32 %v11017_v47, 0.0  ;;  %v10882_v12 = vld [vmem:[%s15267_s14 + $0x118] sm:$0xff] }
 0x483   : > { %11086 = vst.msk [vmem:[%s15267_s14 + $0x80] sm:$0xff] %vm619_vm9, %v11050_v19  ;;  %v11051_v42 = vmax.f32 %v11015_v1, 0.0  ;;  %v12957_v41 = vpop.f32.mrb[56].mxu1 }
 0x484   : > { %11089 = vst.msk [vmem:[%s15267_s14 + $0x98] sm:$0xff] %vm619_vm9, %v11053_v56  ;;  %v10909_v16 = vadd.f32 %v12957_v41, %v10873_v9  ;;  %v10800_v58 = vpop.f32.mrb[57].mxu1  ;;  %v10880_v56 = vld [vmem:[%s15267_s14 + $0x108] sm:$0xff] }
 0x485   : > { %11087 = vst.msk [vmem:[%s15267_s14 + $0x88] sm:$0xff] %vm619_vm9, %v11051_v42  ;;  %v10977_v8 = vld [vmem:[%s15267_s14 + $0xb0] sm:$0xff]  ;;  %v10907_v49 = vadd.f32 %v10871_v7, %v10800_v58  ;;  %v12958_v60 = vpop.f32.mrb[58].mxu1 }
 0x486   : > { %v11020_v24 = vadd.f32 %v16344_v35, %v10977_v8  ;;  %v10975_v40 = vld [vmem:[%s15267_s14 + $0xa0] sm:$0xff]  ;;  %10945 = vst.msk [vmem:[%s15267_s14 + $0xd0] sm:$0xff] %vm619_vm9, %v10909_v16  ;;  %v10910_v36 = vadd.f32 %v12958_v60, %v10874_v34  ;;  %v10803_v59 = vpop.f32.mrb[59].mxu1 }
 0x487   : > { %v11018_v6 = vadd.f32 %v16344_v35, %v10975_v40  ;;  %v10978_v63 = vld [vmem:[%s15267_s14 + $0xb8] sm:$0xff]  ;;  %10943 = vst.msk [vmem:[%s15267_s14 + $0xc0] sm:$0xff] %vm619_vm9, %v10907_v49  ;;  %v10908_v18 = vadd.f32 %v10872_v46, %v10803_v59 }
 0x488   : > { %v11056_v53 = vmax.f32 %v11020_v24, 0.0  ;;  %v11021_v2 = vadd.f32 %v16344_v35, %v10978_v63  ;;  %v10976_v61 = vld [vmem:[%s15267_s14 + $0xa8] sm:$0xff]  ;;  %10946 = vst.msk [vmem:[%s15267_s14 + $0xd8] sm:$0xff] %vm619_vm9, %v10910_v36 }
 0x489   : > { %v11054_v43 = vmax.f32 %v11018_v6, 0.0  ;;  %v11019_v3 = vadd.f32 %v16344_v35, %v10976_v61  ;;  %10944 = vst.msk [vmem:[%s15267_s14 + $0xc8] sm:$0xff] %vm619_vm9, %v10908_v18 }
 0x48a   : > { %11092 = vst.msk [vmem:[%s15267_s14 + $0xb0] sm:$0xff] %vm619_vm9, %v11056_v53  ;;  %v11057_v39 = vmax.f32 %v11021_v2, 0.0 }
 0x48b   : > { %11090 = vst.msk [vmem:[%s15267_s14 + $0xa0] sm:$0xff] %vm619_vm9, %v11054_v43  ;;  %v11055_v31 = vmax.f32 %v11019_v3, 0.0  ;;  %v12961_v50 = vpop.f32.mrb[60].mxu1 }
 0x48c   : > { %11093 = vst.msk [vmem:[%s15267_s14 + $0xb8] sm:$0xff] %vm619_vm9, %v11057_v39  ;;  %v10913_v52 = vadd.f32 %v12961_v50, %v10877_v62  ;;  %v10816_v37 = vpop.f32.mrb[61].mxu1 }
 0x48d   : > { %11091 = vst.msk [vmem:[%s15267_s14 + $0xa8] sm:$0xff] %vm619_vm9, %v11055_v31  ;;  %v10981_v51 = vld [vmem:[%s15267_s14 + $0xd0] sm:$0xff]  ;;  %v10911_v5 = vadd.f32 %v10875_v25, %v10816_v37  ;;  %v12962_v33 = vpop.f32.mrb[62].mxu1 }
 0x48e   : > { %v11024_v55 = vadd.f32 %v16344_v35, %v10981_v51  ;;  %v10979_v11 = vld [vmem:[%s15267_s14 + $0xc0] sm:$0xff]  ;;  %10949 = vst.msk [vmem:[%s15267_s14 + $0xf0] sm:$0xff] %vm619_vm9, %v10913_v52  ;;  %v10914_v20 = vadd.f32 %v12962_v33, %v10878_v17  ;;  %v10819_v22 = vpop.f32.mrb[63].mxu1 }
 0x48f   : > { %v11022_v57 = vadd.f32 %v16344_v35, %v10979_v11  ;;  %v10982_v45 = vld [vmem:[%s15267_s14 + $0xd8] sm:$0xff]  ;;  %10947 = vst.msk [vmem:[%s15267_s14 + $0xe0] sm:$0xff] %vm619_vm9, %v10911_v5  ;;  %v10912_v13 = vadd.f32 %v10876_v10, %v10819_v22 }
 0x490   : > { %v11060_v21 = vmax.f32 %v11024_v55, 0.0  ;;  %v11025_v54 = vadd.f32 %v16344_v35, %v10982_v45  ;;  %v10980_v30 = vld [vmem:[%s15267_s14 + $0xc8] sm:$0xff]  ;;  %10950 = vst.msk [vmem:[%s15267_s14 + $0xf8] sm:$0xff] %vm619_vm9, %v10914_v20 }
 0x491   : > { %v11058_v15 = vmax.f32 %v11022_v57, 0.0  ;;  %v11023_v38 = vadd.f32 %v16344_v35, %v10980_v30  ;;  %10948 = vst.msk [vmem:[%s15267_s14 + $0xe8] sm:$0xff] %vm619_vm9, %v10912_v13 }
 0x492   : > { %11096 = vst.msk [vmem:[%s15267_s14 + $0xd0] sm:$0xff] %vm619_vm9, %v11060_v21  ;;  %v11061_v44 = vmax.f32 %v11025_v54, 0.0 }
 0x493   : > { %11094 = vst.msk [vmem:[%s15267_s14 + $0xc0] sm:$0xff] %vm619_vm9, %v11058_v15  ;;  %v11059_v27 = vmax.f32 %v11023_v38, 0.0  ;;  %v12965_v23 = vpop.f32.mrb[64].mxu1 }
 0x494   : > { %11097 = vst.msk [vmem:[%s15267_s14 + $0xd8] sm:$0xff] %vm619_vm9, %v11061_v44  ;;  %v10917_v29 = vadd.f32 %v12965_v23, %v10881_v32  ;;  %v10832_v26 = vpop.f32.mrb[65].mxu1 }
 0x495   : > { %11095 = vst.msk [vmem:[%s15267_s14 + $0xc8] sm:$0xff] %vm619_vm9, %v11059_v27  ;;  %v10985_v0 = vld [vmem:[%s15267_s14 + $0xf0] sm:$0xff]  ;;  %v10915_v28 = vadd.f32 %v10879_v14, %v10832_v26  ;;  %v12966_v48 = vpop.f32.mrb[66].mxu1 }
 0x496   : > { %v11028_v47 = vadd.f32 %v16344_v35, %v10985_v0  ;;  %v10983_v4 = vld [vmem:[%s15267_s14 + $0xe0] sm:$0xff]  ;;  %10953 = vst.msk [vmem:[%s15267_s14 + $0x110] sm:$0xff] %vm619_vm9, %v10917_v29  ;;  %v10918_v19 = vadd.f32 %v12966_v48, %v10882_v12  ;;  %v10835_v1 = vpop.f32.mrb[67].mxu1 }
 0x497   : > { %v11026_v42 = vadd.f32 %v16344_v35, %v10983_v4  ;;  %v10986_v41 = vld [vmem:[%s15267_s14 + $0xf8] sm:$0xff]  ;;  %10951 = vst.msk [vmem:[%s15267_s14 + $0x100] sm:$0xff] %vm619_vm9, %v10915_v28  ;;  %v10916_v9 = vadd.f32 %v10880_v56, %v10835_v1 }
 0x498   : > { %v11064_v16 = vmax.f32 %v11028_v47, 0.0  ;;  %v11029_v58 = vadd.f32 %v16344_v35, %v10986_v41  ;;  %v10984_v7 = vld [vmem:[%s15267_s14 + $0xe8] sm:$0xff]  ;;  %10954 = vst.msk [vmem:[%s15267_s14 + $0x118] sm:$0xff] %vm619_vm9, %v10918_v19 }
 0x499   : > { %v11062_v8 = vmax.f32 %v11026_v42, 0.0  ;;  %v11027_v49 = vadd.f32 %v16344_v35, %v10984_v7  ;;  %10952 = vst.msk [vmem:[%s15267_s14 + $0x108] sm:$0xff] %vm619_vm9, %v10916_v9 }
 0x49a   : > { %11100 = vst.msk [vmem:[%s15267_s14 + $0xf0] sm:$0xff] %vm619_vm9, %v11064_v16  ;;  %v11065_v60 = vmax.f32 %v11029_v58, 0.0 }
 0x49b   : > { %11098 = vst.msk [vmem:[%s15267_s14 + $0xe0] sm:$0xff] %vm619_vm9, %v11062_v8  ;;  %v11063_v34 = vmax.f32 %v11027_v49, 0.0 }
 0x49c   : > { %11101 = vst.msk [vmem:[%s15267_s14 + $0xf8] sm:$0xff] %vm619_vm9, %v11065_v60 }
 0x49d   : > { %11099 = vst.msk [vmem:[%s15267_s14 + $0xe8] sm:$0xff] %vm619_vm9, %v11063_v34  ;;  %v10989_v24 = vld [vmem:[%s15267_s14 + $0x110] sm:$0xff] }
 0x49e   : > { %v11032_v40 = vadd.f32 %v16344_v35, %v10989_v24  ;;  %v10987_v36 = vld [vmem:[%s15267_s14 + $0x100] sm:$0xff] }
 0x49f   : > { %v11030_v59 = vadd.f32 %v16344_v35, %v10987_v36  ;;  %v10990_v46 = vld [vmem:[%s15267_s14 + $0x118] sm:$0xff] }
 0x4a0   : > { %v11068_v6 = vmax.f32 %v11032_v40, 0.0  ;;  %v11033_v63 = vadd.f32 %v16344_v35, %v10990_v46  ;;  %v10988_v18 = vld [vmem:[%s15267_s14 + $0x108] sm:$0xff] }
 0x4a1   : > { %v11066_v53 = vmax.f32 %v11030_v59, 0.0  ;;  %v11031_v2 = vadd.f32 %v16344_v35, %v10988_v18 }
 0x4a2   : > { %11104 = vst.msk [vmem:[%s15267_s14 + $0x110] sm:$0xff] %vm619_vm9, %v11068_v6  ;;  %v11069_v61 = vmax.f32 %v11033_v63, 0.0 }
 0x4a3   : > { %11102 = vst.msk [vmem:[%s15267_s14 + $0x100] sm:$0xff] %vm619_vm9, %v11066_v53  ;;  %v11067_v43 = vmax.f32 %v11031_v2, 0.0 }
 0x4a4   : > { %11105 = vst.msk [vmem:[%s15267_s14 + $0x118] sm:$0xff] %vm619_vm9, %v11069_v61 }
 0x4a5   : > { %11103 = vst.msk [vmem:[%s15267_s14 + $0x108] sm:$0xff] %vm619_vm9, %v11067_v43 }
 0x4a6 PF: > { %s16_s21 = sadd.s32 1, %s13347_s21  }
 0x4a7   : > { %p13_p4 = scmp.ge.s32.totalorder %s16_s21, 4  }
 0x4a9   :  { %15 = sbr.rel (!%p13_p4) target bundleno = 1 (0x1), region = 90 }

</bundles_post_ra>
